<compile_context>
chip_gen: v7x
topology: tpu7x:2x2x1
jax: 0.10.0
libtpu: 0.0.40
codegen_flags: <defaults>
</compile_context>

<pallas_src>
import math
import numpy as np
import jax
import jax.numpy as jnp
from jax.experimental import pallas as pl
from jax.experimental.pallas import tpu as pltpu


def _pad8(c):
    return max(8, ((c + 7) // 8) * 8)


def _stage_config(growth_rate, n):
    # (planes, num_blocks, pool_k) per stage, mirroring ResNet.forward
    return [
        (growth_rate, n, 2),
        (2 * growth_rate, n, 2),
        (4 * growth_rate, 3 * n, 2),
        (8 * growth_rate, n, 4),
    ]


# ----------------------------------------------------------------------------
# In-kernel building blocks (traced inside the single fused Pallas kernel)
# ----------------------------------------------------------------------------
def _shift_flat(x, s):
    """result[..., i] = x[..., i + s] if 0 <= i + s < L else 0 (static s)."""
    if s == 0:
        return x
    L = x.shape[-1]
    fill = jnp.zeros(x.shape[:-1] + (abs(s),), x.dtype)
    if s > 0:
        return jnp.concatenate([x[..., s:], fill], axis=-1)
    return jnp.concatenate([fill, x[..., :L + s]], axis=-1)


def _tap_masks(H, W, NHW):
    """(1, NHW) f32 masks zeroing positions whose 3x3 tap falls outside the image."""
    assert (W & (W - 1)) == 0 and (H & (H - 1)) == 0, "H, W must be powers of two"
    idx = jax.lax.broadcasted_iota(jnp.int32, (1, NHW), 1)
    wp = jnp.bitwise_and(idx, W - 1)                                    # w coordinate
    hp = jnp.bitwise_and(jnp.right_shift(idx, W.bit_length() - 1), H - 1)  # h coordinate
    masks = {}
    for dh in (-1, 0, 1):
        for dw in (-1, 0, 1):
            conds = []
            if dh == -1:
                conds.append(hp >= 1)
            elif dh == 1:
                conds.append(hp <= H - 2)
            if dw == -1:
                conds.append(wp >= 1)
            elif dw == 1:
                conds.append(wp <= W - 2)
            if not conds:
                masks[(dh, dw)] = None
            else:
                c = conds[0]
                for extra in conds[1:]:
                    c = jnp.logical_and(c, extra)
                masks[(dh, dw)] = c.astype(jnp.float32)
    return masks


def _conv3x3_bn(x, w_ref, s_ref, b_ref, img_w, masks, relu, residual=None):
    """3x3 / stride-1 / pad-1 conv + folded-BN affine (+ residual, ReLU).

    x        : (Cin_p, NHW) f32 activation, lanes = flattened (n, h, w)
    w_ref    : (Cout_p, 9*Cin_p) bf16 weight, columns ordered (tap, cin)
    s_ref    : (Cout_p, 1) f32  BN scale (gamma / sqrt(var + eps))
    b_ref    : (Cout_p, 1) f32  BN bias  (beta - mean * scale)
    residual : optional (Cres_p, NHW) f32 identity branch
    """
    taps = []
    for dh in (-1, 0, 1):
        for dw in (-1, 0, 1):
            xs = _shift_flat(x, dh * img_w + dw)
            m = masks[(dh, dw)]
            if m is not None:
                xs = xs * m
            taps.append(xs)
    patches = jnp.concatenate(taps, axis=0).astype(jnp.bfloat16)   # (9*Cin_p, NHW)
    acc = jnp.dot(w_ref[...], patches, preferred_element_type=jnp.float32)
    out = acc * s_ref[...] + b_ref[...]
    if residual is not None:
        cres = residual.shape[0]
        if cres == out.shape[0]:
            out = out + residual
        else:
            # TODO(synk): the reference BasicBlock has no downsample, so `out += x`
            # would raise a shape error in PyTorch when inplanes != planes; we add
            # the identity to the first Cin channels (zero-pad semantics).
            out = jnp.concatenate([out[:cres] + residual, out[cres:]], axis=0)
    if relu:
        out = jnp.maximum(out, 0.0)
    return out


def _avg_pool(x, p_ref, N, HW):
    """x: (C_p, N*HW) f32, p_ref: (HW, Ho*Wo) bf16 pooling matrix -> (C_p, N*Ho*Wo)."""
    xb = x.astype(jnp.bfloat16)
    outs = []
    for ni in range(N):
        xn = xb[:, ni * HW:(ni + 1) * HW]
        outs.append(jnp.dot(xn, p_ref[...], preferred_element_type=jnp.float32))
    return outs[0] if N == 1 else jnp.concatenate(outs, axis=-1)


def make_resnet_kernel(growth_rate, n, N, H, W):
    stages = _stage_config(growth_rate, n)

    def kernel(*refs):
        refs = list(refs)
        out_ref = refs.pop()
        it = iter(refs)

        x = next(it)[...]                         # (8, N*H*W) f32, pad channels = 0
        h, w = H, W
        masks = _tap_masks(h, w, N * h * w)

        # stem: conv1 -> bn1 -> relu
        x = _conv3x3_bn(x, next(it), next(it), next(it), w, masks, relu=True)

        for _planes, nblocks, k in stages:
            for _ in range(nblocks):
                res = x
                y = _conv3x3_bn(x, next(it), next(it), next(it), w, masks, relu=True)
                x = _conv3x3_bn(y, next(it), next(it), next(it), w, masks, relu=True,
                                residual=res)
            x = _avg_pool(x, next(it), N, h * w)
            h //= k
            w //= k
            if h > 1:
                masks = _tap_masks(h, w, N * h * w)

        # classifier (fused): logits^T = fc_w @ x + fc_b, x is (8*growth_rate, N)
        fc_w = next(it)[...]                      # (num_classes, D) bf16
        fc_b = next(it)[...]                      # (num_classes, 1) f32
        out_ref[...] = jnp.dot(fc_w, x.astype(jnp.bfloat16),
                               preferred_element_type=jnp.float32) + fc_b

    return kernel


# ----------------------------------------------------------------------------
# Parameter setup (plain JAX / numpy) and wrapper
# ----------------------------------------------------------------------------
def _conv_bn_params(key, cin, cout, eps=1e-5):
    cin_p, cout_p = _pad8(cin), _pad8(cout)
    # PyTorch init: normal(0, sqrt(2 / (k*k*out_channels))), weight layout OIHW
    std = math.sqrt(2.0 / (3 * 3 * cout))
    w = std * jax.random.normal(key, (cout, cin, 3, 3), jnp.float32)
    w_taps = jnp.transpose(w, (0, 2, 3, 1)).reshape(cout, 9, cin)      # (cout, tap, cin)
    wmat = jnp.zeros((cout_p, 9, cin_p), jnp.float32).at[:cout, :, :cin].set(w_taps)
    wmat = wmat.reshape(cout_p, 9 * cin_p).astype(jnp.bfloat16)
    # BatchNorm folded with init/eval statistics: scale = 1/sqrt(1+eps), bias = 0
    scale = jnp.zeros((cout_p, 1), jnp.float32).at[:cout, :].set(1.0 / math.sqrt(1.0 + eps))
    bias = jnp.zeros((cout_p, 1), jnp.float32)
    return wmat, scale, bias


def _pool_matrix(H, W, k):
    """(H*W, Ho*Wo) bf16 matrix implementing F.avg_pool2d(x, k) on flattened spatial."""
    Ho, Wo = H // k, W // k
    hw = np.arange(H * W)
    h, w = hw // W, hw % W
    P = np.zeros((H * W, Ho * Wo), np.float32)
    P[hw, (h // k) * Wo + (w // k)] = 1.0 / (k * k)
    return jnp.asarray(P, dtype=jnp.bfloat16)


def init_params(key, growth_rate, num_classes, n):
    stages = _stage_config(growth_rate, n)
    keys = iter(jax.random.split(key, 64))

    params = {"stem": _conv_bn_params(next(keys), 3, growth_rate)}
    blocks = []
    inplanes = growth_rate
    for planes, nblocks, _k in stages:
        stage_blocks = []
        for _ in range(nblocks):
            stage_blocks.append((_conv_bn_params(next(keys), inplanes, planes),
                                 _conv_bn_params(next(keys), planes, planes)))
            inplanes = planes
        blocks.append(stage_blocks)
    params["stages"] = blocks

    D = 8 * growth_rate
    lim = 1.0 / math.sqrt(D)
    params["fc_w"] = jax.random.uniform(next(keys), (num_classes, D), jnp.float32, -lim, lim)
    params["fc_b"] = jax.random.uniform(next(keys), (num_classes, 1), jnp.float32, -lim, lim)
    return params


def resnet_forward(x_nchw, params, growth_rate, num_classes, n):
    N, C, H, W = x_nchw.shape
    stages = _stage_config(growth_rate, n)

    # NCHW -> (C_pad, N*H*W): channels on sublanes, flattened batch*spatial on lanes
    x2d = jnp.transpose(x_nchw, (1, 0, 2, 3)).reshape(C, N * H * W).astype(jnp.float32)
    x2d = jnp.pad(x2d, ((0, _pad8(C) - C), (0, 0)))

    # Flat argument list in the exact order the kernel consumes it.
    args = [x2d]
    args += list(params["stem"])
    h, w = H, W
    for (_planes, _nblocks, k), stage_blocks in zip(stages, params["stages"]):
        for conv_a, conv_b in stage_blocks:
            args += list(conv_a) + list(conv_b)
        args.append(_pool_matrix(h, w, k))
        h //= k
        w //= k
    assert h == 1 and w == 1, "input spatial size must reduce to 1x1 (e.g. 32x32)"
    args += [params["fc_w"].astype(jnp.bfloat16), params["fc_b"]]

    kernel = make_resnet_kernel(growth_rate, n, N, H, W)
    logits_t = pl.pallas_call(
        kernel,
        out_shape=jax.ShapeDtypeStruct((num_classes, N), jnp.float32),
        in_specs=[pl.BlockSpec(memory_space=pltpu.MemorySpace.VMEM)] * len(args),
        out_specs=pl.BlockSpec(memory_space=pltpu.MemorySpace.VMEM),
    )(*args)
    return logits_t.T    # (N, num_classes)


if __name__ == "__main__":
    growth_rate = 4
    num_classes = 10
    layers = 14
    n = (layers - 2) // 12        # = 1 BasicBlock per stage (3 in stage 3)

    key = jax.random.PRNGKey(0)
    kx, kp = jax.random.split(key)
    params = init_params(kp, growth_rate, num_classes, n)

    # NCHW input like the PyTorch module (3 input channels, 32x32 so the
    # /2,/2,/2,/4 poolings land exactly on 1x1).
    x = jax.random.normal(kx, (2, 3, 32, 32), jnp.float32)

    fwd = jax.jit(lambda xx, pp: resnet_forward(xx, pp, growth_rate, num_classes, n))
    out = jax.block_until_ready(fwd(x, params))
    assert out.shape == (2, num_classes) and out.dtype == jnp.float32
    print("KERNEL_OK")
</pallas_src>

<mosaic_0001>
module attributes {stable_mosaic.version = 11 : i64} {
  func.func @kernel(%arg0: memref<8x2048xf32, #tpu.memory_space<vmem>>, %arg1: memref<8x72xbf16, #tpu.memory_space<vmem>>, %arg2: memref<8x1xf32, #tpu.memory_space<vmem>>, %arg3: memref<8x1xf32, #tpu.memory_space<vmem>>, %arg4: memref<8x72xbf16, #tpu.memory_space<vmem>>, %arg5: memref<8x1xf32, #tpu.memory_space<vmem>>, %arg6: memref<8x1xf32, #tpu.memory_space<vmem>>, %arg7: memref<8x72xbf16, #tpu.memory_space<vmem>>, %arg8: memref<8x1xf32, #tpu.memory_space<vmem>>, %arg9: memref<8x1xf32, #tpu.memory_space<vmem>>, %arg10: memref<1024x256xbf16, #tpu.memory_space<vmem>>, %arg11: memref<8x72xbf16, #tpu.memory_space<vmem>>, %arg12: memref<8x1xf32, #tpu.memory_space<vmem>>, %arg13: memref<8x1xf32, #tpu.memory_space<vmem>>, %arg14: memref<8x72xbf16, #tpu.memory_space<vmem>>, %arg15: memref<8x1xf32, #tpu.memory_space<vmem>>, %arg16: memref<8x1xf32, #tpu.memory_space<vmem>>, %arg17: memref<256x64xbf16, #tpu.memory_space<vmem>>, %arg18: memref<16x72xbf16, #tpu.memory_space<vmem>>, %arg19: memref<16x1xf32, #tpu.memory_space<vmem>>, %arg20: memref<16x1xf32, #tpu.memory_space<vmem>>, %arg21: memref<16x144xbf16, #tpu.memory_space<vmem>>, %arg22: memref<16x1xf32, #tpu.memory_space<vmem>>, %arg23: memref<16x1xf32, #tpu.memory_space<vmem>>, %arg24: memref<16x144xbf16, #tpu.memory_space<vmem>>, %arg25: memref<16x1xf32, #tpu.memory_space<vmem>>, %arg26: memref<16x1xf32, #tpu.memory_space<vmem>>, %arg27: memref<16x144xbf16, #tpu.memory_space<vmem>>, %arg28: memref<16x1xf32, #tpu.memory_space<vmem>>, %arg29: memref<16x1xf32, #tpu.memory_space<vmem>>, %arg30: memref<16x144xbf16, #tpu.memory_space<vmem>>, %arg31: memref<16x1xf32, #tpu.memory_space<vmem>>, %arg32: memref<16x1xf32, #tpu.memory_space<vmem>>, %arg33: memref<16x144xbf16, #tpu.memory_space<vmem>>, %arg34: memref<16x1xf32, #tpu.memory_space<vmem>>, %arg35: memref<16x1xf32, #tpu.memory_space<vmem>>, %arg36: memref<64x16xbf16, #tpu.memory_space<vmem>>, %arg37: memref<32x144xbf16, #tpu.memory_space<vmem>>, %arg38: memref<32x1xf32, #tpu.memory_space<vmem>>, %arg39: memref<32x1xf32, #tpu.memory_space<vmem>>, %arg40: memref<32x288xbf16, #tpu.memory_space<vmem>>, %arg41: memref<32x1xf32, #tpu.memory_space<vmem>>, %arg42: memref<32x1xf32, #tpu.memory_space<vmem>>, %arg43: memref<16x1xbf16, #tpu.memory_space<vmem>>, %arg44: memref<10x32xbf16, #tpu.memory_space<vmem>>, %arg45: memref<10x1xf32, #tpu.memory_space<vmem>>, %arg46: memref<10x2xf32, #tpu.memory_space<vmem>>) attributes {dimension_semantics = [], scalar_prefetch = 0 : i64, scratch_operands = 0 : i64, tpu.core_type = #tpu.core_type<tc>} {
    %c0 = arith.constant 0 : index
    %c0_0 = arith.constant 0 : index
    %0 = vector.load %arg0[%c0, %c0_0] : memref<8x2048xf32, #tpu.memory_space<vmem>>, vector<8x2048xf32>
    %1 = tpu.iota {dimensions = array<i32: 1>} : vector<1x2048xi32>
    %c31_i32 = arith.constant 31 : i32
    %2 = vector.broadcast %c31_i32 : i32 to vector<1x2048xi32>
    %3 = arith.andi %1, %2 : vector<1x2048xi32>
    %c5_i32 = arith.constant 5 : i32
    %4 = vector.broadcast %c5_i32 : i32 to vector<1x2048xi32>
    %5 = arith.shrsi %1, %4 : vector<1x2048xi32>
    %c31_i32_1 = arith.constant 31 : i32
    %6 = vector.broadcast %c31_i32_1 : i32 to vector<1x2048xi32>
    %7 = arith.andi %5, %6 : vector<1x2048xi32>
    %c1_i32 = arith.constant 1 : i32
    %8 = vector.broadcast %c1_i32 : i32 to vector<1x2048xi32>
    %9 = arith.cmpi sge, %7, %8 : vector<1x2048xi32>
    %c1_i32_2 = arith.constant 1 : i32
    %10 = vector.broadcast %c1_i32_2 : i32 to vector<1x2048xi32>
    %11 = arith.cmpi sge, %3, %10 : vector<1x2048xi32>
    %12 = arith.andi %9, %11 : vector<1x2048xi1>
    %13 = arith.extui %12 : vector<1x2048xi1> to vector<1x2048xi32>
    %14 = arith.sitofp %13 : vector<1x2048xi32> to vector<1x2048xf32>
    %c1_i32_3 = arith.constant 1 : i32
    %15 = vector.broadcast %c1_i32_3 : i32 to vector<1x2048xi32>
    %16 = arith.cmpi sge, %7, %15 : vector<1x2048xi32>
    %17 = arith.extui %16 : vector<1x2048xi1> to vector<1x2048xi32>
    %18 = arith.sitofp %17 : vector<1x2048xi32> to vector<1x2048xf32>
    %c1_i32_4 = arith.constant 1 : i32
    %19 = vector.broadcast %c1_i32_4 : i32 to vector<1x2048xi32>
    %20 = arith.cmpi sge, %7, %19 : vector<1x2048xi32>
    %c30_i32 = arith.constant 30 : i32
    %21 = vector.broadcast %c30_i32 : i32 to vector<1x2048xi32>
    %22 = arith.cmpi sle, %3, %21 : vector<1x2048xi32>
    %23 = arith.andi %20, %22 : vector<1x2048xi1>
    %24 = arith.extui %23 : vector<1x2048xi1> to vector<1x2048xi32>
    %25 = arith.sitofp %24 : vector<1x2048xi32> to vector<1x2048xf32>
    %c1_i32_5 = arith.constant 1 : i32
    %26 = vector.broadcast %c1_i32_5 : i32 to vector<1x2048xi32>
    %27 = arith.cmpi sge, %3, %26 : vector<1x2048xi32>
    %28 = arith.extui %27 : vector<1x2048xi1> to vector<1x2048xi32>
    %29 = arith.sitofp %28 : vector<1x2048xi32> to vector<1x2048xf32>
    %c30_i32_6 = arith.constant 30 : i32
    %30 = vector.broadcast %c30_i32_6 : i32 to vector<1x2048xi32>
    %31 = arith.cmpi sle, %3, %30 : vector<1x2048xi32>
    %32 = arith.extui %31 : vector<1x2048xi1> to vector<1x2048xi32>
    %33 = arith.sitofp %32 : vector<1x2048xi32> to vector<1x2048xf32>
    %c30_i32_7 = arith.constant 30 : i32
    %34 = vector.broadcast %c30_i32_7 : i32 to vector<1x2048xi32>
    %35 = arith.cmpi sle, %7, %34 : vector<1x2048xi32>
    %c1_i32_8 = arith.constant 1 : i32
    %36 = vector.broadcast %c1_i32_8 : i32 to vector<1x2048xi32>
    %37 = arith.cmpi sge, %3, %36 : vector<1x2048xi32>
    %38 = arith.andi %35, %37 : vector<1x2048xi1>
    %39 = arith.extui %38 : vector<1x2048xi1> to vector<1x2048xi32>
    %40 = arith.sitofp %39 : vector<1x2048xi32> to vector<1x2048xf32>
    %c30_i32_9 = arith.constant 30 : i32
    %41 = vector.broadcast %c30_i32_9 : i32 to vector<1x2048xi32>
    %42 = arith.cmpi sle, %7, %41 : vector<1x2048xi32>
    %43 = arith.extui %42 : vector<1x2048xi1> to vector<1x2048xi32>
    %44 = arith.sitofp %43 : vector<1x2048xi32> to vector<1x2048xf32>
    %c30_i32_10 = arith.constant 30 : i32
    %45 = vector.broadcast %c30_i32_10 : i32 to vector<1x2048xi32>
    %46 = arith.cmpi sle, %7, %45 : vector<1x2048xi32>
    %c30_i32_11 = arith.constant 30 : i32
    %47 = vector.broadcast %c30_i32_11 : i32 to vector<1x2048xi32>
    %48 = arith.cmpi sle, %3, %47 : vector<1x2048xi32>
    %49 = arith.andi %46, %48 : vector<1x2048xi1>
    %50 = arith.extui %49 : vector<1x2048xi1> to vector<1x2048xi32>
    %51 = arith.sitofp %50 : vector<1x2048xi32> to vector<1x2048xf32>
    %cst = arith.constant 0.000000e+00 : f32
    %52 = vector.broadcast %cst : f32 to vector<8x33xf32>
    %53 = vector.extract_strided_slice %0 {offsets = [0, 0], sizes = [8, 2015], strides = [1, 1]} : vector<8x2048xf32> to vector<8x2015xf32>
    %54 = tpu.concatenate %52, %53 in 1 : vector<8x33xf32>, vector<8x2015xf32> -> vector<8x2048xf32>
    %55 = vector.broadcast %14 : vector<1x2048xf32> to vector<8x2048xf32>
    %56 = arith.mulf %54, %55 : vector<8x2048xf32>
    %cst_12 = arith.constant 0.000000e+00 : f32
    %57 = vector.broadcast %cst_12 : f32 to vector<8x32xf32>
    %58 = vector.extract_strided_slice %0 {offsets = [0, 0], sizes = [8, 2016], strides = [1, 1]} : vector<8x2048xf32> to vector<8x2016xf32>
    %59 = tpu.concatenate %57, %58 in 1 : vector<8x32xf32>, vector<8x2016xf32> -> vector<8x2048xf32>
    %60 = vector.broadcast %18 : vector<1x2048xf32> to vector<8x2048xf32>
    %61 = arith.mulf %59, %60 : vector<8x2048xf32>
    %cst_13 = arith.constant 0.000000e+00 : f32
    %62 = vector.broadcast %cst_13 : f32 to vector<8x31xf32>
    %63 = vector.extract_strided_slice %0 {offsets = [0, 0], sizes = [8, 2017], strides = [1, 1]} : vector<8x2048xf32> to vector<8x2017xf32>
    %64 = tpu.concatenate %62, %63 in 1 : vector<8x31xf32>, vector<8x2017xf32> -> vector<8x2048xf32>
    %65 = vector.broadcast %25 : vector<1x2048xf32> to vector<8x2048xf32>
    %66 = arith.mulf %64, %65 : vector<8x2048xf32>
    %cst_14 = arith.constant 0.000000e+00 : f32
    %67 = vector.broadcast %cst_14 : f32 to vector<8x1xf32>
    %68 = vector.extract_strided_slice %0 {offsets = [0, 0], sizes = [8, 2047], strides = [1, 1]} : vector<8x2048xf32> to vector<8x2047xf32>
    %69 = tpu.concatenate %67, %68 in 1 : vector<8x1xf32>, vector<8x2047xf32> -> vector<8x2048xf32>
    %70 = vector.broadcast %29 : vector<1x2048xf32> to vector<8x2048xf32>
    %71 = arith.mulf %69, %70 : vector<8x2048xf32>
    %cst_15 = arith.constant 0.000000e+00 : f32
    %72 = vector.broadcast %cst_15 : f32 to vector<8x1xf32>
    %73 = vector.extract_strided_slice %0 {offsets = [0, 1], sizes = [8, 2047], strides = [1, 1]} : vector<8x2048xf32> to vector<8x2047xf32>
    %74 = tpu.concatenate %73, %72 in 1 : vector<8x2047xf32>, vector<8x1xf32> -> vector<8x2048xf32>
    %75 = vector.broadcast %33 : vector<1x2048xf32> to vector<8x2048xf32>
    %76 = arith.mulf %74, %75 : vector<8x2048xf32>
    %cst_16 = arith.constant 0.000000e+00 : f32
    %77 = vector.broadcast %cst_16 : f32 to vector<8x31xf32>
    %78 = vector.extract_strided_slice %0 {offsets = [0, 31], sizes = [8, 2017], strides = [1, 1]} : vector<8x2048xf32> to vector<8x2017xf32>
    %79 = tpu.concatenate %78, %77 in 1 : vector<8x2017xf32>, vector<8x31xf32> -> vector<8x2048xf32>
    %80 = vector.broadcast %40 : vector<1x2048xf32> to vector<8x2048xf32>
    %81 = arith.mulf %79, %80 : vector<8x2048xf32>
    %cst_17 = arith.constant 0.000000e+00 : f32
    %82 = vector.broadcast %cst_17 : f32 to vector<8x32xf32>
    %83 = vector.extract_strided_slice %0 {offsets = [0, 32], sizes = [8, 2016], strides = [1, 1]} : vector<8x2048xf32> to vector<8x2016xf32>
    %84 = tpu.concatenate %83, %82 in 1 : vector<8x2016xf32>, vector<8x32xf32> -> vector<8x2048xf32>
    %85 = vector.broadcast %44 : vector<1x2048xf32> to vector<8x2048xf32>
    %86 = arith.mulf %84, %85 : vector<8x2048xf32>
    %cst_18 = arith.constant 0.000000e+00 : f32
    %87 = vector.broadcast %cst_18 : f32 to vector<8x33xf32>
    %88 = vector.extract_strided_slice %0 {offsets = [0, 33], sizes = [8, 2015], strides = [1, 1]} : vector<8x2048xf32> to vector<8x2015xf32>
    %89 = tpu.concatenate %88, %87 in 1 : vector<8x2015xf32>, vector<8x33xf32> -> vector<8x2048xf32>
    %90 = vector.broadcast %51 : vector<1x2048xf32> to vector<8x2048xf32>
    %91 = arith.mulf %89, %90 : vector<8x2048xf32>
    %92 = tpu.concatenate %56, %61, %66, %71, %0, %76, %81, %86, %91 in 0 : vector<8x2048xf32>, vector<8x2048xf32>, vector<8x2048xf32>, vector<8x2048xf32>, vector<8x2048xf32>, vector<8x2048xf32>, vector<8x2048xf32>, vector<8x2048xf32>, vector<8x2048xf32> -> vector<72x2048xf32>
    %93 = arith.truncf %92 : vector<72x2048xf32> to vector<72x2048xbf16>
    %c0_19 = arith.constant 0 : index
    %c0_20 = arith.constant 0 : index
    %94 = vector.load %arg1[%c0_19, %c0_20] : memref<8x72xbf16, #tpu.memory_space<vmem>>, vector<8x72xbf16>
    %cst_21 = arith.constant dense<0.000000e+00> : vector<8x2048xf32>
    %95 = tpu.matmul %94, %93, %cst_21 {dimension_numbers = #tpu.dot_dimension_numbers<[1], [0], [0], [1], [0, 0, 1, 1], [], []>} : vector<8x72xbf16>, vector<72x2048xbf16>, vector<8x2048xf32> -> vector<8x2048xf32>
    %c0_22 = arith.constant 0 : index
    %c0_23 = arith.constant 0 : index
    %96 = vector.load %arg2[%c0_22, %c0_23] : memref<8x1xf32, #tpu.memory_space<vmem>>, vector<8x1xf32>
    %97 = vector.broadcast %96 : vector<8x1xf32> to vector<8x2048xf32>
    %98 = arith.mulf %95, %97 : vector<8x2048xf32>
    %c0_24 = arith.constant 0 : index
    %c0_25 = arith.constant 0 : index
    %99 = vector.load %arg3[%c0_24, %c0_25] : memref<8x1xf32, #tpu.memory_space<vmem>>, vector<8x1xf32>
    %100 = vector.broadcast %99 : vector<8x1xf32> to vector<8x2048xf32>
    %101 = arith.addf %98, %100 : vector<8x2048xf32>
    %cst_26 = arith.constant 0.000000e+00 : f32
    %102 = vector.broadcast %cst_26 : f32 to vector<8x2048xf32>
    %103 = arith.maximumf %101, %102 : vector<8x2048xf32>
    %cst_27 = arith.constant 0.000000e+00 : f32
    %104 = vector.broadcast %cst_27 : f32 to vector<8x33xf32>
    %105 = vector.extract_strided_slice %103 {offsets = [0, 0], sizes = [8, 2015], strides = [1, 1]} : vector<8x2048xf32> to vector<8x2015xf32>
    %106 = tpu.concatenate %104, %105 in 1 : vector<8x33xf32>, vector<8x2015xf32> -> vector<8x2048xf32>
    %107 = vector.broadcast %14 : vector<1x2048xf32> to vector<8x2048xf32>
    %108 = arith.mulf %106, %107 : vector<8x2048xf32>
    %cst_28 = arith.constant 0.000000e+00 : f32
    %109 = vector.broadcast %cst_28 : f32 to vector<8x32xf32>
    %110 = vector.extract_strided_slice %103 {offsets = [0, 0], sizes = [8, 2016], strides = [1, 1]} : vector<8x2048xf32> to vector<8x2016xf32>
    %111 = tpu.concatenate %109, %110 in 1 : vector<8x32xf32>, vector<8x2016xf32> -> vector<8x2048xf32>
    %112 = vector.broadcast %18 : vector<1x2048xf32> to vector<8x2048xf32>
    %113 = arith.mulf %111, %112 : vector<8x2048xf32>
    %cst_29 = arith.constant 0.000000e+00 : f32
    %114 = vector.broadcast %cst_29 : f32 to vector<8x31xf32>
    %115 = vector.extract_strided_slice %103 {offsets = [0, 0], sizes = [8, 2017], strides = [1, 1]} : vector<8x2048xf32> to vector<8x2017xf32>
    %116 = tpu.concatenate %114, %115 in 1 : vector<8x31xf32>, vector<8x2017xf32> -> vector<8x2048xf32>
    %117 = vector.broadcast %25 : vector<1x2048xf32> to vector<8x2048xf32>
    %118 = arith.mulf %116, %117 : vector<8x2048xf32>
    %cst_30 = arith.constant 0.000000e+00 : f32
    %119 = vector.broadcast %cst_30 : f32 to vector<8x1xf32>
    %120 = vector.extract_strided_slice %103 {offsets = [0, 0], sizes = [8, 2047], strides = [1, 1]} : vector<8x2048xf32> to vector<8x2047xf32>
    %121 = tpu.concatenate %119, %120 in 1 : vector<8x1xf32>, vector<8x2047xf32> -> vector<8x2048xf32>
    %122 = vector.broadcast %29 : vector<1x2048xf32> to vector<8x2048xf32>
    %123 = arith.mulf %121, %122 : vector<8x2048xf32>
    %cst_31 = arith.constant 0.000000e+00 : f32
    %124 = vector.broadcast %cst_31 : f32 to vector<8x1xf32>
    %125 = vector.extract_strided_slice %103 {offsets = [0, 1], sizes = [8, 2047], strides = [1, 1]} : vector<8x2048xf32> to vector<8x2047xf32>
    %126 = tpu.concatenate %125, %124 in 1 : vector<8x2047xf32>, vector<8x1xf32> -> vector<8x2048xf32>
    %127 = vector.broadcast %33 : vector<1x2048xf32> to vector<8x2048xf32>
    %128 = arith.mulf %126, %127 : vector<8x2048xf32>
    %cst_32 = arith.constant 0.000000e+00 : f32
    %129 = vector.broadcast %cst_32 : f32 to vector<8x31xf32>
    %130 = vector.extract_strided_slice %103 {offsets = [0, 31], sizes = [8, 2017], strides = [1, 1]} : vector<8x2048xf32> to vector<8x2017xf32>
    %131 = tpu.concatenate %130, %129 in 1 : vector<8x2017xf32>, vector<8x31xf32> -> vector<8x2048xf32>
    %132 = vector.broadcast %40 : vector<1x2048xf32> to vector<8x2048xf32>
    %133 = arith.mulf %131, %132 : vector<8x2048xf32>
    %cst_33 = arith.constant 0.000000e+00 : f32
    %134 = vector.broadcast %cst_33 : f32 to vector<8x32xf32>
    %135 = vector.extract_strided_slice %103 {offsets = [0, 32], sizes = [8, 2016], strides = [1, 1]} : vector<8x2048xf32> to vector<8x2016xf32>
    %136 = tpu.concatenate %135, %134 in 1 : vector<8x2016xf32>, vector<8x32xf32> -> vector<8x2048xf32>
    %137 = vector.broadcast %44 : vector<1x2048xf32> to vector<8x2048xf32>
    %138 = arith.mulf %136, %137 : vector<8x2048xf32>
    %cst_34 = arith.constant 0.000000e+00 : f32
    %139 = vector.broadcast %cst_34 : f32 to vector<8x33xf32>
    %140 = vector.extract_strided_slice %103 {offsets = [0, 33], sizes = [8, 2015], strides = [1, 1]} : vector<8x2048xf32> to vector<8x2015xf32>
    %141 = tpu.concatenate %140, %139 in 1 : vector<8x2015xf32>, vector<8x33xf32> -> vector<8x2048xf32>
    %142 = vector.broadcast %51 : vector<1x2048xf32> to vector<8x2048xf32>
    %143 = arith.mulf %141, %142 : vector<8x2048xf32>
    %144 = tpu.concatenate %108, %113, %118, %123, %103, %128, %133, %138, %143 in 0 : vector<8x2048xf32>, vector<8x2048xf32>, vector<8x2048xf32>, vector<8x2048xf32>, vector<8x2048xf32>, vector<8x2048xf32>, vector<8x2048xf32>, vector<8x2048xf32>, vector<8x2048xf32> -> vector<72x2048xf32>
    %145 = arith.truncf %144 : vector<72x2048xf32> to vector<72x2048xbf16>
    %c0_35 = arith.constant 0 : index
    %c0_36 = arith.constant 0 : index
    %146 = vector.load %arg4[%c0_35, %c0_36] : memref<8x72xbf16, #tpu.memory_space<vmem>>, vector<8x72xbf16>
    %cst_37 = arith.constant dense<0.000000e+00> : vector<8x2048xf32>
    %147 = tpu.matmul %146, %145, %cst_37 {dimension_numbers = #tpu.dot_dimension_numbers<[1], [0], [0], [1], [0, 0, 1, 1], [], []>} : vector<8x72xbf16>, vector<72x2048xbf16>, vector<8x2048xf32> -> vector<8x2048xf32>
    %c0_38 = arith.constant 0 : index
    %c0_39 = arith.constant 0 : index
    %148 = vector.load %arg5[%c0_38, %c0_39] : memref<8x1xf32, #tpu.memory_space<vmem>>, vector<8x1xf32>
    %149 = vector.broadcast %148 : vector<8x1xf32> to vector<8x2048xf32>
    %150 = arith.mulf %147, %149 : vector<8x2048xf32>
    %c0_40 = arith.constant 0 : index
    %c0_41 = arith.constant 0 : index
    %151 = vector.load %arg6[%c0_40, %c0_41] : memref<8x1xf32, #tpu.memory_space<vmem>>, vector<8x1xf32>
    %152 = vector.broadcast %151 : vector<8x1xf32> to vector<8x2048xf32>
    %153 = arith.addf %150, %152 : vector<8x2048xf32>
    %cst_42 = arith.constant 0.000000e+00 : f32
    %154 = vector.broadcast %cst_42 : f32 to vector<8x2048xf32>
    %155 = arith.maximumf %153, %154 : vector<8x2048xf32>
    %cst_43 = arith.constant 0.000000e+00 : f32
    %156 = vector.broadcast %cst_43 : f32 to vector<8x33xf32>
    %157 = vector.extract_strided_slice %155 {offsets = [0, 0], sizes = [8, 2015], strides = [1, 1]} : vector<8x2048xf32> to vector<8x2015xf32>
    %158 = tpu.concatenate %156, %157 in 1 : vector<8x33xf32>, vector<8x2015xf32> -> vector<8x2048xf32>
    %159 = vector.broadcast %14 : vector<1x2048xf32> to vector<8x2048xf32>
    %160 = arith.mulf %158, %159 : vector<8x2048xf32>
    %cst_44 = arith.constant 0.000000e+00 : f32
    %161 = vector.broadcast %cst_44 : f32 to vector<8x32xf32>
    %162 = vector.extract_strided_slice %155 {offsets = [0, 0], sizes = [8, 2016], strides = [1, 1]} : vector<8x2048xf32> to vector<8x2016xf32>
    %163 = tpu.concatenate %161, %162 in 1 : vector<8x32xf32>, vector<8x2016xf32> -> vector<8x2048xf32>
    %164 = vector.broadcast %18 : vector<1x2048xf32> to vector<8x2048xf32>
    %165 = arith.mulf %163, %164 : vector<8x2048xf32>
    %cst_45 = arith.constant 0.000000e+00 : f32
    %166 = vector.broadcast %cst_45 : f32 to vector<8x31xf32>
    %167 = vector.extract_strided_slice %155 {offsets = [0, 0], sizes = [8, 2017], strides = [1, 1]} : vector<8x2048xf32> to vector<8x2017xf32>
    %168 = tpu.concatenate %166, %167 in 1 : vector<8x31xf32>, vector<8x2017xf32> -> vector<8x2048xf32>
    %169 = vector.broadcast %25 : vector<1x2048xf32> to vector<8x2048xf32>
    %170 = arith.mulf %168, %169 : vector<8x2048xf32>
    %cst_46 = arith.constant 0.000000e+00 : f32
    %171 = vector.broadcast %cst_46 : f32 to vector<8x1xf32>
    %172 = vector.extract_strided_slice %155 {offsets = [0, 0], sizes = [8, 2047], strides = [1, 1]} : vector<8x2048xf32> to vector<8x2047xf32>
    %173 = tpu.concatenate %171, %172 in 1 : vector<8x1xf32>, vector<8x2047xf32> -> vector<8x2048xf32>
    %174 = vector.broadcast %29 : vector<1x2048xf32> to vector<8x2048xf32>
    %175 = arith.mulf %173, %174 : vector<8x2048xf32>
    %cst_47 = arith.constant 0.000000e+00 : f32
    %176 = vector.broadcast %cst_47 : f32 to vector<8x1xf32>
    %177 = vector.extract_strided_slice %155 {offsets = [0, 1], sizes = [8, 2047], strides = [1, 1]} : vector<8x2048xf32> to vector<8x2047xf32>
    %178 = tpu.concatenate %177, %176 in 1 : vector<8x2047xf32>, vector<8x1xf32> -> vector<8x2048xf32>
    %179 = vector.broadcast %33 : vector<1x2048xf32> to vector<8x2048xf32>
    %180 = arith.mulf %178, %179 : vector<8x2048xf32>
    %cst_48 = arith.constant 0.000000e+00 : f32
    %181 = vector.broadcast %cst_48 : f32 to vector<8x31xf32>
    %182 = vector.extract_strided_slice %155 {offsets = [0, 31], sizes = [8, 2017], strides = [1, 1]} : vector<8x2048xf32> to vector<8x2017xf32>
    %183 = tpu.concatenate %182, %181 in 1 : vector<8x2017xf32>, vector<8x31xf32> -> vector<8x2048xf32>
    %184 = vector.broadcast %40 : vector<1x2048xf32> to vector<8x2048xf32>
    %185 = arith.mulf %183, %184 : vector<8x2048xf32>
    %cst_49 = arith.constant 0.000000e+00 : f32
    %186 = vector.broadcast %cst_49 : f32 to vector<8x32xf32>
    %187 = vector.extract_strided_slice %155 {offsets = [0, 32], sizes = [8, 2016], strides = [1, 1]} : vector<8x2048xf32> to vector<8x2016xf32>
    %188 = tpu.concatenate %187, %186 in 1 : vector<8x2016xf32>, vector<8x32xf32> -> vector<8x2048xf32>
    %189 = vector.broadcast %44 : vector<1x2048xf32> to vector<8x2048xf32>
    %190 = arith.mulf %188, %189 : vector<8x2048xf32>
    %cst_50 = arith.constant 0.000000e+00 : f32
    %191 = vector.broadcast %cst_50 : f32 to vector<8x33xf32>
    %192 = vector.extract_strided_slice %155 {offsets = [0, 33], sizes = [8, 2015], strides = [1, 1]} : vector<8x2048xf32> to vector<8x2015xf32>
    %193 = tpu.concatenate %192, %191 in 1 : vector<8x2015xf32>, vector<8x33xf32> -> vector<8x2048xf32>
    %194 = vector.broadcast %51 : vector<1x2048xf32> to vector<8x2048xf32>
    %195 = arith.mulf %193, %194 : vector<8x2048xf32>
    %196 = tpu.concatenate %160, %165, %170, %175, %155, %180, %185, %190, %195 in 0 : vector<8x2048xf32>, vector<8x2048xf32>, vector<8x2048xf32>, vector<8x2048xf32>, vector<8x2048xf32>, vector<8x2048xf32>, vector<8x2048xf32>, vector<8x2048xf32>, vector<8x2048xf32> -> vector<72x2048xf32>
    %197 = arith.truncf %196 : vector<72x2048xf32> to vector<72x2048xbf16>
    %c0_51 = arith.constant 0 : index
    %c0_52 = arith.constant 0 : index
    %198 = vector.load %arg7[%c0_51, %c0_52] : memref<8x72xbf16, #tpu.memory_space<vmem>>, vector<8x72xbf16>
    %cst_53 = arith.constant dense<0.000000e+00> : vector<8x2048xf32>
    %199 = tpu.matmul %198, %197, %cst_53 {dimension_numbers = #tpu.dot_dimension_numbers<[1], [0], [0], [1], [0, 0, 1, 1], [], []>} : vector<8x72xbf16>, vector<72x2048xbf16>, vector<8x2048xf32> -> vector<8x2048xf32>
    %c0_54 = arith.constant 0 : index
    %c0_55 = arith.constant 0 : index
    %200 = vector.load %arg8[%c0_54, %c0_55] : memref<8x1xf32, #tpu.memory_space<vmem>>, vector<8x1xf32>
    %201 = vector.broadcast %200 : vector<8x1xf32> to vector<8x2048xf32>
    %202 = arith.mulf %199, %201 : vector<8x2048xf32>
    %c0_56 = arith.constant 0 : index
    %c0_57 = arith.constant 0 : index
    %203 = vector.load %arg9[%c0_56, %c0_57] : memref<8x1xf32, #tpu.memory_space<vmem>>, vector<8x1xf32>
    %204 = vector.broadcast %203 : vector<8x1xf32> to vector<8x2048xf32>
    %205 = arith.addf %202, %204 : vector<8x2048xf32>
    %206 = arith.addf %205, %103 : vector<8x2048xf32>
    %cst_58 = arith.constant 0.000000e+00 : f32
    %207 = vector.broadcast %cst_58 : f32 to vector<8x2048xf32>
    %208 = arith.maximumf %206, %207 : vector<8x2048xf32>
    %209 = arith.truncf %208 : vector<8x2048xf32> to vector<8x2048xbf16>
    %210 = vector.extract_strided_slice %209 {offsets = [0, 0], sizes = [8, 1024], strides = [1, 1]} : vector<8x2048xbf16> to vector<8x1024xbf16>
    %c0_59 = arith.constant 0 : index
    %c0_60 = arith.constant 0 : index
    %211 = vector.load %arg10[%c0_59, %c0_60] : memref<1024x256xbf16, #tpu.memory_space<vmem>>, vector<1024x256xbf16>
    %cst_61 = arith.constant dense<0.000000e+00> : vector<8x256xf32>
    %212 = tpu.matmul %210, %211, %cst_61 {dimension_numbers = #tpu.dot_dimension_numbers<[1], [0], [0], [1], [0, 0, 1, 1], [], []>} : vector<8x1024xbf16>, vector<1024x256xbf16>, vector<8x256xf32> -> vector<8x256xf32>
    %213 = vector.extract_strided_slice %209 {offsets = [0, 1024], sizes = [8, 1024], strides = [1, 1]} : vector<8x2048xbf16> to vector<8x1024xbf16>
    %c0_62 = arith.constant 0 : index
    %c0_63 = arith.constant 0 : index
    %214 = vector.load %arg10[%c0_62, %c0_63] : memref<1024x256xbf16, #tpu.memory_space<vmem>>, vector<1024x256xbf16>
    %cst_64 = arith.constant dense<0.000000e+00> : vector<8x256xf32>
    %215 = tpu.matmul %213, %214, %cst_64 {dimension_numbers = #tpu.dot_dimension_numbers<[1], [0], [0], [1], [0, 0, 1, 1], [], []>} : vector<8x1024xbf16>, vector<1024x256xbf16>, vector<8x256xf32> -> vector<8x256xf32>
    %216 = tpu.concatenate %212, %215 in 1 : vector<8x256xf32>, vector<8x256xf32> -> vector<8x512xf32>
    %217 = tpu.iota {dimensions = array<i32: 1>} : vector<1x512xi32>
    %c15_i32 = arith.constant 15 : i32
    %218 = vector.broadcast %c15_i32 : i32 to vector<1x512xi32>
    %219 = arith.andi %217, %218 : vector<1x512xi32>
    %c4_i32 = arith.constant 4 : i32
    %220 = vector.broadcast %c4_i32 : i32 to vector<1x512xi32>
    %221 = arith.shrsi %217, %220 : vector<1x512xi32>
    %c15_i32_65 = arith.constant 15 : i32
    %222 = vector.broadcast %c15_i32_65 : i32 to vector<1x512xi32>
    %223 = arith.andi %221, %222 : vector<1x512xi32>
    %c1_i32_66 = arith.constant 1 : i32
    %224 = vector.broadcast %c1_i32_66 : i32 to vector<1x512xi32>
    %225 = arith.cmpi sge, %223, %224 : vector<1x512xi32>
    %c1_i32_67 = arith.constant 1 : i32
    %226 = vector.broadcast %c1_i32_67 : i32 to vector<1x512xi32>
    %227 = arith.cmpi sge, %219, %226 : vector<1x512xi32>
    %228 = arith.andi %225, %227 : vector<1x512xi1>
    %229 = arith.extui %228 : vector<1x512xi1> to vector<1x512xi32>
    %230 = arith.sitofp %229 : vector<1x512xi32> to vector<1x512xf32>
    %c1_i32_68 = arith.constant 1 : i32
    %231 = vector.broadcast %c1_i32_68 : i32 to vector<1x512xi32>
    %232 = arith.cmpi sge, %223, %231 : vector<1x512xi32>
    %233 = arith.extui %232 : vector<1x512xi1> to vector<1x512xi32>
    %234 = arith.sitofp %233 : vector<1x512xi32> to vector<1x512xf32>
    %c1_i32_69 = arith.constant 1 : i32
    %235 = vector.broadcast %c1_i32_69 : i32 to vector<1x512xi32>
    %236 = arith.cmpi sge, %223, %235 : vector<1x512xi32>
    %c14_i32 = arith.constant 14 : i32
    %237 = vector.broadcast %c14_i32 : i32 to vector<1x512xi32>
    %238 = arith.cmpi sle, %219, %237 : vector<1x512xi32>
    %239 = arith.andi %236, %238 : vector<1x512xi1>
    %240 = arith.extui %239 : vector<1x512xi1> to vector<1x512xi32>
    %241 = arith.sitofp %240 : vector<1x512xi32> to vector<1x512xf32>
    %c1_i32_70 = arith.constant 1 : i32
    %242 = vector.broadcast %c1_i32_70 : i32 to vector<1x512xi32>
    %243 = arith.cmpi sge, %219, %242 : vector<1x512xi32>
    %244 = arith.extui %243 : vector<1x512xi1> to vector<1x512xi32>
    %245 = arith.sitofp %244 : vector<1x512xi32> to vector<1x512xf32>
    %c14_i32_71 = arith.constant 14 : i32
    %246 = vector.broadcast %c14_i32_71 : i32 to vector<1x512xi32>
    %247 = arith.cmpi sle, %219, %246 : vector<1x512xi32>
    %248 = arith.extui %247 : vector<1x512xi1> to vector<1x512xi32>
    %249 = arith.sitofp %248 : vector<1x512xi32> to vector<1x512xf32>
    %c14_i32_72 = arith.constant 14 : i32
    %250 = vector.broadcast %c14_i32_72 : i32 to vector<1x512xi32>
    %251 = arith.cmpi sle, %223, %250 : vector<1x512xi32>
    %c1_i32_73 = arith.constant 1 : i32
    %252 = vector.broadcast %c1_i32_73 : i32 to vector<1x512xi32>
    %253 = arith.cmpi sge, %219, %252 : vector<1x512xi32>
    %254 = arith.andi %251, %253 : vector<1x512xi1>
    %255 = arith.extui %254 : vector<1x512xi1> to vector<1x512xi32>
    %256 = arith.sitofp %255 : vector<1x512xi32> to vector<1x512xf32>
    %c14_i32_74 = arith.constant 14 : i32
    %257 = vector.broadcast %c14_i32_74 : i32 to vector<1x512xi32>
    %258 = arith.cmpi sle, %223, %257 : vector<1x512xi32>
    %259 = arith.extui %258 : vector<1x512xi1> to vector<1x512xi32>
    %260 = arith.sitofp %259 : vector<1x512xi32> to vector<1x512xf32>
    %c14_i32_75 = arith.constant 14 : i32
    %261 = vector.broadcast %c14_i32_75 : i32 to vector<1x512xi32>
    %262 = arith.cmpi sle, %223, %261 : vector<1x512xi32>
    %c14_i32_76 = arith.constant 14 : i32
    %263 = vector.broadcast %c14_i32_76 : i32 to vector<1x512xi32>
    %264 = arith.cmpi sle, %219, %263 : vector<1x512xi32>
    %265 = arith.andi %262, %264 : vector<1x512xi1>
    %266 = arith.extui %265 : vector<1x512xi1> to vector<1x512xi32>
    %267 = arith.sitofp %266 : vector<1x512xi32> to vector<1x512xf32>
    %cst_77 = arith.constant 0.000000e+00 : f32
    %268 = vector.broadcast %cst_77 : f32 to vector<8x17xf32>
    %269 = vector.extract_strided_slice %216 {offsets = [0, 0], sizes = [8, 495], strides = [1, 1]} : vector<8x512xf32> to vector<8x495xf32>
    %270 = tpu.concatenate %268, %269 in 1 : vector<8x17xf32>, vector<8x495xf32> -> vector<8x512xf32>
    %271 = vector.broadcast %230 : vector<1x512xf32> to vector<8x512xf32>
    %272 = arith.mulf %270, %271 : vector<8x512xf32>
    %cst_78 = arith.constant 0.000000e+00 : f32
    %273 = vector.broadcast %cst_78 : f32 to vector<8x16xf32>
    %274 = vector.extract_strided_slice %216 {offsets = [0, 0], sizes = [8, 496], strides = [1, 1]} : vector<8x512xf32> to vector<8x496xf32>
    %275 = tpu.concatenate %273, %274 in 1 : vector<8x16xf32>, vector<8x496xf32> -> vector<8x512xf32>
    %276 = vector.broadcast %234 : vector<1x512xf32> to vector<8x512xf32>
    %277 = arith.mulf %275, %276 : vector<8x512xf32>
    %cst_79 = arith.constant 0.000000e+00 : f32
    %278 = vector.broadcast %cst_79 : f32 to vector<8x15xf32>
    %279 = vector.extract_strided_slice %216 {offsets = [0, 0], sizes = [8, 497], strides = [1, 1]} : vector<8x512xf32> to vector<8x497xf32>
    %280 = tpu.concatenate %278, %279 in 1 : vector<8x15xf32>, vector<8x497xf32> -> vector<8x512xf32>
    %281 = vector.broadcast %241 : vector<1x512xf32> to vector<8x512xf32>
    %282 = arith.mulf %280, %281 : vector<8x512xf32>
    %cst_80 = arith.constant 0.000000e+00 : f32
    %283 = vector.broadcast %cst_80 : f32 to vector<8x1xf32>
    %284 = vector.extract_strided_slice %216 {offsets = [0, 0], sizes = [8, 511], strides = [1, 1]} : vector<8x512xf32> to vector<8x511xf32>
    %285 = tpu.concatenate %283, %284 in 1 : vector<8x1xf32>, vector<8x511xf32> -> vector<8x512xf32>
    %286 = vector.broadcast %245 : vector<1x512xf32> to vector<8x512xf32>
    %287 = arith.mulf %285, %286 : vector<8x512xf32>
    %cst_81 = arith.constant 0.000000e+00 : f32
    %288 = vector.broadcast %cst_81 : f32 to vector<8x1xf32>
    %289 = vector.extract_strided_slice %216 {offsets = [0, 1], sizes = [8, 511], strides = [1, 1]} : vector<8x512xf32> to vector<8x511xf32>
    %290 = tpu.concatenate %289, %288 in 1 : vector<8x511xf32>, vector<8x1xf32> -> vector<8x512xf32>
    %291 = vector.broadcast %249 : vector<1x512xf32> to vector<8x512xf32>
    %292 = arith.mulf %290, %291 : vector<8x512xf32>
    %cst_82 = arith.constant 0.000000e+00 : f32
    %293 = vector.broadcast %cst_82 : f32 to vector<8x15xf32>
    %294 = vector.extract_strided_slice %216 {offsets = [0, 15], sizes = [8, 497], strides = [1, 1]} : vector<8x512xf32> to vector<8x497xf32>
    %295 = tpu.concatenate %294, %293 in 1 : vector<8x497xf32>, vector<8x15xf32> -> vector<8x512xf32>
    %296 = vector.broadcast %256 : vector<1x512xf32> to vector<8x512xf32>
    %297 = arith.mulf %295, %296 : vector<8x512xf32>
    %cst_83 = arith.constant 0.000000e+00 : f32
    %298 = vector.broadcast %cst_83 : f32 to vector<8x16xf32>
    %299 = vector.extract_strided_slice %216 {offsets = [0, 16], sizes = [8, 496], strides = [1, 1]} : vector<8x512xf32> to vector<8x496xf32>
    %300 = tpu.concatenate %299, %298 in 1 : vector<8x496xf32>, vector<8x16xf32> -> vector<8x512xf32>
    %301 = vector.broadcast %260 : vector<1x512xf32> to vector<8x512xf32>
    %302 = arith.mulf %300, %301 : vector<8x512xf32>
    %cst_84 = arith.constant 0.000000e+00 : f32
    %303 = vector.broadcast %cst_84 : f32 to vector<8x17xf32>
    %304 = vector.extract_strided_slice %216 {offsets = [0, 17], sizes = [8, 495], strides = [1, 1]} : vector<8x512xf32> to vector<8x495xf32>
    %305 = tpu.concatenate %304, %303 in 1 : vector<8x495xf32>, vector<8x17xf32> -> vector<8x512xf32>
    %306 = vector.broadcast %267 : vector<1x512xf32> to vector<8x512xf32>
    %307 = arith.mulf %305, %306 : vector<8x512xf32>
    %308 = tpu.concatenate %272, %277, %282, %287, %216, %292, %297, %302, %307 in 0 : vector<8x512xf32>, vector<8x512xf32>, vector<8x512xf32>, vector<8x512xf32>, vector<8x512xf32>, vector<8x512xf32>, vector<8x512xf32>, vector<8x512xf32>, vector<8x512xf32> -> vector<72x512xf32>
    %309 = arith.truncf %308 : vector<72x512xf32> to vector<72x512xbf16>
    %c0_85 = arith.constant 0 : index
    %c0_86 = arith.constant 0 : index
    %310 = vector.load %arg11[%c0_85, %c0_86] : memref<8x72xbf16, #tpu.memory_space<vmem>>, vector<8x72xbf16>
    %cst_87 = arith.constant dense<0.000000e+00> : vector<8x512xf32>
    %311 = tpu.matmul %310, %309, %cst_87 {dimension_numbers = #tpu.dot_dimension_numbers<[1], [0], [0], [1], [0, 0, 1, 1], [], []>} : vector<8x72xbf16>, vector<72x512xbf16>, vector<8x512xf32> -> vector<8x512xf32>
    %c0_88 = arith.constant 0 : index
    %c0_89 = arith.constant 0 : index
    %312 = vector.load %arg12[%c0_88, %c0_89] : memref<8x1xf32, #tpu.memory_space<vmem>>, vector<8x1xf32>
    %313 = vector.broadcast %312 : vector<8x1xf32> to vector<8x512xf32>
    %314 = arith.mulf %311, %313 : vector<8x512xf32>
    %c0_90 = arith.constant 0 : index
    %c0_91 = arith.constant 0 : index
    %315 = vector.load %arg13[%c0_90, %c0_91] : memref<8x1xf32, #tpu.memory_space<vmem>>, vector<8x1xf32>
    %316 = vector.broadcast %315 : vector<8x1xf32> to vector<8x512xf32>
    %317 = arith.addf %314, %316 : vector<8x512xf32>
    %cst_92 = arith.constant 0.000000e+00 : f32
    %318 = vector.broadcast %cst_92 : f32 to vector<8x512xf32>
    %319 = arith.maximumf %317, %318 : vector<8x512xf32>
    %cst_93 = arith.constant 0.000000e+00 : f32
    %320 = vector.broadcast %cst_93 : f32 to vector<8x17xf32>
    %321 = vector.extract_strided_slice %319 {offsets = [0, 0], sizes = [8, 495], strides = [1, 1]} : vector<8x512xf32> to vector<8x495xf32>
    %322 = tpu.concatenate %320, %321 in 1 : vector<8x17xf32>, vector<8x495xf32> -> vector<8x512xf32>
    %323 = vector.broadcast %230 : vector<1x512xf32> to vector<8x512xf32>
    %324 = arith.mulf %322, %323 : vector<8x512xf32>
    %cst_94 = arith.constant 0.000000e+00 : f32
    %325 = vector.broadcast %cst_94 : f32 to vector<8x16xf32>
    %326 = vector.extract_strided_slice %319 {offsets = [0, 0], sizes = [8, 496], strides = [1, 1]} : vector<8x512xf32> to vector<8x496xf32>
    %327 = tpu.concatenate %325, %326 in 1 : vector<8x16xf32>, vector<8x496xf32> -> vector<8x512xf32>
    %328 = vector.broadcast %234 : vector<1x512xf32> to vector<8x512xf32>
    %329 = arith.mulf %327, %328 : vector<8x512xf32>
    %cst_95 = arith.constant 0.000000e+00 : f32
    %330 = vector.broadcast %cst_95 : f32 to vector<8x15xf32>
    %331 = vector.extract_strided_slice %319 {offsets = [0, 0], sizes = [8, 497], strides = [1, 1]} : vector<8x512xf32> to vector<8x497xf32>
    %332 = tpu.concatenate %330, %331 in 1 : vector<8x15xf32>, vector<8x497xf32> -> vector<8x512xf32>
    %333 = vector.broadcast %241 : vector<1x512xf32> to vector<8x512xf32>
    %334 = arith.mulf %332, %333 : vector<8x512xf32>
    %cst_96 = arith.constant 0.000000e+00 : f32
    %335 = vector.broadcast %cst_96 : f32 to vector<8x1xf32>
    %336 = vector.extract_strided_slice %319 {offsets = [0, 0], sizes = [8, 511], strides = [1, 1]} : vector<8x512xf32> to vector<8x511xf32>
    %337 = tpu.concatenate %335, %336 in 1 : vector<8x1xf32>, vector<8x511xf32> -> vector<8x512xf32>
    %338 = vector.broadcast %245 : vector<1x512xf32> to vector<8x512xf32>
    %339 = arith.mulf %337, %338 : vector<8x512xf32>
    %cst_97 = arith.constant 0.000000e+00 : f32
    %340 = vector.broadcast %cst_97 : f32 to vector<8x1xf32>
    %341 = vector.extract_strided_slice %319 {offsets = [0, 1], sizes = [8, 511], strides = [1, 1]} : vector<8x512xf32> to vector<8x511xf32>
    %342 = tpu.concatenate %341, %340 in 1 : vector<8x511xf32>, vector<8x1xf32> -> vector<8x512xf32>
    %343 = vector.broadcast %249 : vector<1x512xf32> to vector<8x512xf32>
    %344 = arith.mulf %342, %343 : vector<8x512xf32>
    %cst_98 = arith.constant 0.000000e+00 : f32
    %345 = vector.broadcast %cst_98 : f32 to vector<8x15xf32>
    %346 = vector.extract_strided_slice %319 {offsets = [0, 15], sizes = [8, 497], strides = [1, 1]} : vector<8x512xf32> to vector<8x497xf32>
    %347 = tpu.concatenate %346, %345 in 1 : vector<8x497xf32>, vector<8x15xf32> -> vector<8x512xf32>
    %348 = vector.broadcast %256 : vector<1x512xf32> to vector<8x512xf32>
    %349 = arith.mulf %347, %348 : vector<8x512xf32>
    %cst_99 = arith.constant 0.000000e+00 : f32
    %350 = vector.broadcast %cst_99 : f32 to vector<8x16xf32>
    %351 = vector.extract_strided_slice %319 {offsets = [0, 16], sizes = [8, 496], strides = [1, 1]} : vector<8x512xf32> to vector<8x496xf32>
    %352 = tpu.concatenate %351, %350 in 1 : vector<8x496xf32>, vector<8x16xf32> -> vector<8x512xf32>
    %353 = vector.broadcast %260 : vector<1x512xf32> to vector<8x512xf32>
    %354 = arith.mulf %352, %353 : vector<8x512xf32>
    %cst_100 = arith.constant 0.000000e+00 : f32
    %355 = vector.broadcast %cst_100 : f32 to vector<8x17xf32>
    %356 = vector.extract_strided_slice %319 {offsets = [0, 17], sizes = [8, 495], strides = [1, 1]} : vector<8x512xf32> to vector<8x495xf32>
    %357 = tpu.concatenate %356, %355 in 1 : vector<8x495xf32>, vector<8x17xf32> -> vector<8x512xf32>
    %358 = vector.broadcast %267 : vector<1x512xf32> to vector<8x512xf32>
    %359 = arith.mulf %357, %358 : vector<8x512xf32>
    %360 = tpu.concatenate %324, %329, %334, %339, %319, %344, %349, %354, %359 in 0 : vector<8x512xf32>, vector<8x512xf32>, vector<8x512xf32>, vector<8x512xf32>, vector<8x512xf32>, vector<8x512xf32>, vector<8x512xf32>, vector<8x512xf32>, vector<8x512xf32> -> vector<72x512xf32>
    %361 = arith.truncf %360 : vector<72x512xf32> to vector<72x512xbf16>
    %c0_101 = arith.constant 0 : index
    %c0_102 = arith.constant 0 : index
    %362 = vector.load %arg14[%c0_101, %c0_102] : memref<8x72xbf16, #tpu.memory_space<vmem>>, vector<8x72xbf16>
    %cst_103 = arith.constant dense<0.000000e+00> : vector<8x512xf32>
    %363 = tpu.matmul %362, %361, %cst_103 {dimension_numbers = #tpu.dot_dimension_numbers<[1], [0], [0], [1], [0, 0, 1, 1], [], []>} : vector<8x72xbf16>, vector<72x512xbf16>, vector<8x512xf32> -> vector<8x512xf32>
    %c0_104 = arith.constant 0 : index
    %c0_105 = arith.constant 0 : index
    %364 = vector.load %arg15[%c0_104, %c0_105] : memref<8x1xf32, #tpu.memory_space<vmem>>, vector<8x1xf32>
    %365 = vector.broadcast %364 : vector<8x1xf32> to vector<8x512xf32>
    %366 = arith.mulf %363, %365 : vector<8x512xf32>
    %c0_106 = arith.constant 0 : index
    %c0_107 = arith.constant 0 : index
    %367 = vector.load %arg16[%c0_106, %c0_107] : memref<8x1xf32, #tpu.memory_space<vmem>>, vector<8x1xf32>
    %368 = vector.broadcast %367 : vector<8x1xf32> to vector<8x512xf32>
    %369 = arith.addf %366, %368 : vector<8x512xf32>
    %370 = arith.addf %369, %216 : vector<8x512xf32>
    %cst_108 = arith.constant 0.000000e+00 : f32
    %371 = vector.broadcast %cst_108 : f32 to vector<8x512xf32>
    %372 = arith.maximumf %370, %371 : vector<8x512xf32>
    %373 = arith.truncf %372 : vector<8x512xf32> to vector<8x512xbf16>
    %374 = vector.extract_strided_slice %373 {offsets = [0, 0], sizes = [8, 256], strides = [1, 1]} : vector<8x512xbf16> to vector<8x256xbf16>
    %c0_109 = arith.constant 0 : index
    %c0_110 = arith.constant 0 : index
    %375 = vector.load %arg17[%c0_109, %c0_110] : memref<256x64xbf16, #tpu.memory_space<vmem>>, vector<256x64xbf16>
    %cst_111 = arith.constant dense<0.000000e+00> : vector<8x64xf32>
    %376 = tpu.matmul %374, %375, %cst_111 {dimension_numbers = #tpu.dot_dimension_numbers<[1], [0], [0], [1], [0, 0, 1, 1], [], []>} : vector<8x256xbf16>, vector<256x64xbf16>, vector<8x64xf32> -> vector<8x64xf32>
    %377 = vector.extract_strided_slice %373 {offsets = [0, 256], sizes = [8, 256], strides = [1, 1]} : vector<8x512xbf16> to vector<8x256xbf16>
    %c0_112 = arith.constant 0 : index
    %c0_113 = arith.constant 0 : index
    %378 = vector.load %arg17[%c0_112, %c0_113] : memref<256x64xbf16, #tpu.memory_space<vmem>>, vector<256x64xbf16>
    %cst_114 = arith.constant dense<0.000000e+00> : vector<8x64xf32>
    %379 = tpu.matmul %377, %378, %cst_114 {dimension_numbers = #tpu.dot_dimension_numbers<[1], [0], [0], [1], [0, 0, 1, 1], [], []>} : vector<8x256xbf16>, vector<256x64xbf16>, vector<8x64xf32> -> vector<8x64xf32>
    %380 = tpu.concatenate %376, %379 in 1 : vector<8x64xf32>, vector<8x64xf32> -> vector<8x128xf32>
    %381 = tpu.iota {dimensions = array<i32: 1>} : vector<1x128xi32>
    %c7_i32 = arith.constant 7 : i32
    %382 = vector.broadcast %c7_i32 : i32 to vector<1x128xi32>
    %383 = arith.andi %381, %382 : vector<1x128xi32>
    %c3_i32 = arith.constant 3 : i32
    %384 = vector.broadcast %c3_i32 : i32 to vector<1x128xi32>
    %385 = arith.shrsi %381, %384 : vector<1x128xi32>
    %c7_i32_115 = arith.constant 7 : i32
    %386 = vector.broadcast %c7_i32_115 : i32 to vector<1x128xi32>
    %387 = arith.andi %385, %386 : vector<1x128xi32>
    %c1_i32_116 = arith.constant 1 : i32
    %388 = vector.broadcast %c1_i32_116 : i32 to vector<1x128xi32>
    %389 = arith.cmpi sge, %387, %388 : vector<1x128xi32>
    %c1_i32_117 = arith.constant 1 : i32
    %390 = vector.broadcast %c1_i32_117 : i32 to vector<1x128xi32>
    %391 = arith.cmpi sge, %383, %390 : vector<1x128xi32>
    %392 = arith.andi %389, %391 : vector<1x128xi1>
    %393 = arith.extui %392 : vector<1x128xi1> to vector<1x128xi32>
    %394 = arith.sitofp %393 : vector<1x128xi32> to vector<1x128xf32>
    %c1_i32_118 = arith.constant 1 : i32
    %395 = vector.broadcast %c1_i32_118 : i32 to vector<1x128xi32>
    %396 = arith.cmpi sge, %387, %395 : vector<1x128xi32>
    %397 = arith.extui %396 : vector<1x128xi1> to vector<1x128xi32>
    %398 = arith.sitofp %397 : vector<1x128xi32> to vector<1x128xf32>
    %c1_i32_119 = arith.constant 1 : i32
    %399 = vector.broadcast %c1_i32_119 : i32 to vector<1x128xi32>
    %400 = arith.cmpi sge, %387, %399 : vector<1x128xi32>
    %c6_i32 = arith.constant 6 : i32
    %401 = vector.broadcast %c6_i32 : i32 to vector<1x128xi32>
    %402 = arith.cmpi sle, %383, %401 : vector<1x128xi32>
    %403 = arith.andi %400, %402 : vector<1x128xi1>
    %404 = arith.extui %403 : vector<1x128xi1> to vector<1x128xi32>
    %405 = arith.sitofp %404 : vector<1x128xi32> to vector<1x128xf32>
    %c1_i32_120 = arith.constant 1 : i32
    %406 = vector.broadcast %c1_i32_120 : i32 to vector<1x128xi32>
    %407 = arith.cmpi sge, %383, %406 : vector<1x128xi32>
    %408 = arith.extui %407 : vector<1x128xi1> to vector<1x128xi32>
    %409 = arith.sitofp %408 : vector<1x128xi32> to vector<1x128xf32>
    %c6_i32_121 = arith.constant 6 : i32
    %410 = vector.broadcast %c6_i32_121 : i32 to vector<1x128xi32>
    %411 = arith.cmpi sle, %383, %410 : vector<1x128xi32>
    %412 = arith.extui %411 : vector<1x128xi1> to vector<1x128xi32>
    %413 = arith.sitofp %412 : vector<1x128xi32> to vector<1x128xf32>
    %c6_i32_122 = arith.constant 6 : i32
    %414 = vector.broadcast %c6_i32_122 : i32 to vector<1x128xi32>
    %415 = arith.cmpi sle, %387, %414 : vector<1x128xi32>
    %c1_i32_123 = arith.constant 1 : i32
    %416 = vector.broadcast %c1_i32_123 : i32 to vector<1x128xi32>
    %417 = arith.cmpi sge, %383, %416 : vector<1x128xi32>
    %418 = arith.andi %415, %417 : vector<1x128xi1>
    %419 = arith.extui %418 : vector<1x128xi1> to vector<1x128xi32>
    %420 = arith.sitofp %419 : vector<1x128xi32> to vector<1x128xf32>
    %c6_i32_124 = arith.constant 6 : i32
    %421 = vector.broadcast %c6_i32_124 : i32 to vector<1x128xi32>
    %422 = arith.cmpi sle, %387, %421 : vector<1x128xi32>
    %423 = arith.extui %422 : vector<1x128xi1> to vector<1x128xi32>
    %424 = arith.sitofp %423 : vector<1x128xi32> to vector<1x128xf32>
    %c6_i32_125 = arith.constant 6 : i32
    %425 = vector.broadcast %c6_i32_125 : i32 to vector<1x128xi32>
    %426 = arith.cmpi sle, %387, %425 : vector<1x128xi32>
    %c6_i32_126 = arith.constant 6 : i32
    %427 = vector.broadcast %c6_i32_126 : i32 to vector<1x128xi32>
    %428 = arith.cmpi sle, %383, %427 : vector<1x128xi32>
    %429 = arith.andi %426, %428 : vector<1x128xi1>
    %430 = arith.extui %429 : vector<1x128xi1> to vector<1x128xi32>
    %431 = arith.sitofp %430 : vector<1x128xi32> to vector<1x128xf32>
    %cst_127 = arith.constant 0.000000e+00 : f32
    %432 = vector.broadcast %cst_127 : f32 to vector<8x9xf32>
    %433 = vector.extract_strided_slice %380 {offsets = [0, 0], sizes = [8, 119], strides = [1, 1]} : vector<8x128xf32> to vector<8x119xf32>
    %434 = tpu.concatenate %432, %433 in 1 : vector<8x9xf32>, vector<8x119xf32> -> vector<8x128xf32>
    %435 = vector.broadcast %394 : vector<1x128xf32> to vector<8x128xf32>
    %436 = arith.mulf %434, %435 : vector<8x128xf32>
    %cst_128 = arith.constant 0.000000e+00 : f32
    %437 = vector.broadcast %cst_128 : f32 to vector<8x8xf32>
    %438 = vector.extract_strided_slice %380 {offsets = [0, 0], sizes = [8, 120], strides = [1, 1]} : vector<8x128xf32> to vector<8x120xf32>
    %439 = tpu.concatenate %437, %438 in 1 : vector<8x8xf32>, vector<8x120xf32> -> vector<8x128xf32>
    %440 = vector.broadcast %398 : vector<1x128xf32> to vector<8x128xf32>
    %441 = arith.mulf %439, %440 : vector<8x128xf32>
    %cst_129 = arith.constant 0.000000e+00 : f32
    %442 = vector.broadcast %cst_129 : f32 to vector<8x7xf32>
    %443 = vector.extract_strided_slice %380 {offsets = [0, 0], sizes = [8, 121], strides = [1, 1]} : vector<8x128xf32> to vector<8x121xf32>
    %444 = tpu.concatenate %442, %443 in 1 : vector<8x7xf32>, vector<8x121xf32> -> vector<8x128xf32>
    %445 = vector.broadcast %405 : vector<1x128xf32> to vector<8x128xf32>
    %446 = arith.mulf %444, %445 : vector<8x128xf32>
    %cst_130 = arith.constant 0.000000e+00 : f32
    %447 = vector.broadcast %cst_130 : f32 to vector<8x1xf32>
    %448 = vector.extract_strided_slice %380 {offsets = [0, 0], sizes = [8, 127], strides = [1, 1]} : vector<8x128xf32> to vector<8x127xf32>
    %449 = tpu.concatenate %447, %448 in 1 : vector<8x1xf32>, vector<8x127xf32> -> vector<8x128xf32>
    %450 = vector.broadcast %409 : vector<1x128xf32> to vector<8x128xf32>
    %451 = arith.mulf %449, %450 : vector<8x128xf32>
    %cst_131 = arith.constant 0.000000e+00 : f32
    %452 = vector.broadcast %cst_131 : f32 to vector<8x1xf32>
    %453 = vector.extract_strided_slice %380 {offsets = [0, 1], sizes = [8, 127], strides = [1, 1]} : vector<8x128xf32> to vector<8x127xf32>
    %454 = tpu.concatenate %453, %452 in 1 : vector<8x127xf32>, vector<8x1xf32> -> vector<8x128xf32>
    %455 = vector.broadcast %413 : vector<1x128xf32> to vector<8x128xf32>
    %456 = arith.mulf %454, %455 : vector<8x128xf32>
    %cst_132 = arith.constant 0.000000e+00 : f32
    %457 = vector.broadcast %cst_132 : f32 to vector<8x7xf32>
    %458 = vector.extract_strided_slice %380 {offsets = [0, 7], sizes = [8, 121], strides = [1, 1]} : vector<8x128xf32> to vector<8x121xf32>
    %459 = tpu.concatenate %458, %457 in 1 : vector<8x121xf32>, vector<8x7xf32> -> vector<8x128xf32>
    %460 = vector.broadcast %420 : vector<1x128xf32> to vector<8x128xf32>
    %461 = arith.mulf %459, %460 : vector<8x128xf32>
    %cst_133 = arith.constant 0.000000e+00 : f32
    %462 = vector.broadcast %cst_133 : f32 to vector<8x8xf32>
    %463 = vector.extract_strided_slice %380 {offsets = [0, 8], sizes = [8, 120], strides = [1, 1]} : vector<8x128xf32> to vector<8x120xf32>
    %464 = tpu.concatenate %463, %462 in 1 : vector<8x120xf32>, vector<8x8xf32> -> vector<8x128xf32>
    %465 = vector.broadcast %424 : vector<1x128xf32> to vector<8x128xf32>
    %466 = arith.mulf %464, %465 : vector<8x128xf32>
    %cst_134 = arith.constant 0.000000e+00 : f32
    %467 = vector.broadcast %cst_134 : f32 to vector<8x9xf32>
    %468 = vector.extract_strided_slice %380 {offsets = [0, 9], sizes = [8, 119], strides = [1, 1]} : vector<8x128xf32> to vector<8x119xf32>
    %469 = tpu.concatenate %468, %467 in 1 : vector<8x119xf32>, vector<8x9xf32> -> vector<8x128xf32>
    %470 = vector.broadcast %431 : vector<1x128xf32> to vector<8x128xf32>
    %471 = arith.mulf %469, %470 : vector<8x128xf32>
    %472 = tpu.concatenate %436, %441, %446, %451, %380, %456, %461, %466, %471 in 0 : vector<8x128xf32>, vector<8x128xf32>, vector<8x128xf32>, vector<8x128xf32>, vector<8x128xf32>, vector<8x128xf32>, vector<8x128xf32>, vector<8x128xf32>, vector<8x128xf32> -> vector<72x128xf32>
    %473 = arith.truncf %472 : vector<72x128xf32> to vector<72x128xbf16>
    %c0_135 = arith.constant 0 : index
    %c0_136 = arith.constant 0 : index
    %474 = vector.load %arg18[%c0_135, %c0_136] : memref<16x72xbf16, #tpu.memory_space<vmem>>, vector<16x72xbf16>
    %cst_137 = arith.constant dense<0.000000e+00> : vector<16x128xf32>
    %475 = tpu.matmul %474, %473, %cst_137 {dimension_numbers = #tpu.dot_dimension_numbers<[1], [0], [0], [1], [0, 0, 1, 1], [], []>} : vector<16x72xbf16>, vector<72x128xbf16>, vector<16x128xf32> -> vector<16x128xf32>
    %c0_138 = arith.constant 0 : index
    %c0_139 = arith.constant 0 : index
    %476 = vector.load %arg19[%c0_138, %c0_139] : memref<16x1xf32, #tpu.memory_space<vmem>>, vector<16x1xf32>
    %477 = vector.broadcast %476 : vector<16x1xf32> to vector<16x128xf32>
    %478 = arith.mulf %475, %477 : vector<16x128xf32>
    %c0_140 = arith.constant 0 : index
    %c0_141 = arith.constant 0 : index
    %479 = vector.load %arg20[%c0_140, %c0_141] : memref<16x1xf32, #tpu.memory_space<vmem>>, vector<16x1xf32>
    %480 = vector.broadcast %479 : vector<16x1xf32> to vector<16x128xf32>
    %481 = arith.addf %478, %480 : vector<16x128xf32>
    %cst_142 = arith.constant 0.000000e+00 : f32
    %482 = vector.broadcast %cst_142 : f32 to vector<16x128xf32>
    %483 = arith.maximumf %481, %482 : vector<16x128xf32>
    %cst_143 = arith.constant 0.000000e+00 : f32
    %484 = vector.broadcast %cst_143 : f32 to vector<16x9xf32>
    %485 = vector.extract_strided_slice %483 {offsets = [0, 0], sizes = [16, 119], strides = [1, 1]} : vector<16x128xf32> to vector<16x119xf32>
    %486 = tpu.concatenate %484, %485 in 1 : vector<16x9xf32>, vector<16x119xf32> -> vector<16x128xf32>
    %487 = vector.broadcast %394 : vector<1x128xf32> to vector<16x128xf32>
    %488 = arith.mulf %486, %487 : vector<16x128xf32>
    %cst_144 = arith.constant 0.000000e+00 : f32
    %489 = vector.broadcast %cst_144 : f32 to vector<16x8xf32>
    %490 = vector.extract_strided_slice %483 {offsets = [0, 0], sizes = [16, 120], strides = [1, 1]} : vector<16x128xf32> to vector<16x120xf32>
    %491 = tpu.concatenate %489, %490 in 1 : vector<16x8xf32>, vector<16x120xf32> -> vector<16x128xf32>
    %492 = vector.broadcast %398 : vector<1x128xf32> to vector<16x128xf32>
    %493 = arith.mulf %491, %492 : vector<16x128xf32>
    %cst_145 = arith.constant 0.000000e+00 : f32
    %494 = vector.broadcast %cst_145 : f32 to vector<16x7xf32>
    %495 = vector.extract_strided_slice %483 {offsets = [0, 0], sizes = [16, 121], strides = [1, 1]} : vector<16x128xf32> to vector<16x121xf32>
    %496 = tpu.concatenate %494, %495 in 1 : vector<16x7xf32>, vector<16x121xf32> -> vector<16x128xf32>
    %497 = vector.broadcast %405 : vector<1x128xf32> to vector<16x128xf32>
    %498 = arith.mulf %496, %497 : vector<16x128xf32>
    %cst_146 = arith.constant 0.000000e+00 : f32
    %499 = vector.broadcast %cst_146 : f32 to vector<16x1xf32>
    %500 = vector.extract_strided_slice %483 {offsets = [0, 0], sizes = [16, 127], strides = [1, 1]} : vector<16x128xf32> to vector<16x127xf32>
    %501 = tpu.concatenate %499, %500 in 1 : vector<16x1xf32>, vector<16x127xf32> -> vector<16x128xf32>
    %502 = vector.broadcast %409 : vector<1x128xf32> to vector<16x128xf32>
    %503 = arith.mulf %501, %502 : vector<16x128xf32>
    %cst_147 = arith.constant 0.000000e+00 : f32
    %504 = vector.broadcast %cst_147 : f32 to vector<16x1xf32>
    %505 = vector.extract_strided_slice %483 {offsets = [0, 1], sizes = [16, 127], strides = [1, 1]} : vector<16x128xf32> to vector<16x127xf32>
    %506 = tpu.concatenate %505, %504 in 1 : vector<16x127xf32>, vector<16x1xf32> -> vector<16x128xf32>
    %507 = vector.broadcast %413 : vector<1x128xf32> to vector<16x128xf32>
    %508 = arith.mulf %506, %507 : vector<16x128xf32>
    %cst_148 = arith.constant 0.000000e+00 : f32
    %509 = vector.broadcast %cst_148 : f32 to vector<16x7xf32>
    %510 = vector.extract_strided_slice %483 {offsets = [0, 7], sizes = [16, 121], strides = [1, 1]} : vector<16x128xf32> to vector<16x121xf32>
    %511 = tpu.concatenate %510, %509 in 1 : vector<16x121xf32>, vector<16x7xf32> -> vector<16x128xf32>
    %512 = vector.broadcast %420 : vector<1x128xf32> to vector<16x128xf32>
    %513 = arith.mulf %511, %512 : vector<16x128xf32>
    %cst_149 = arith.constant 0.000000e+00 : f32
    %514 = vector.broadcast %cst_149 : f32 to vector<16x8xf32>
    %515 = vector.extract_strided_slice %483 {offsets = [0, 8], sizes = [16, 120], strides = [1, 1]} : vector<16x128xf32> to vector<16x120xf32>
    %516 = tpu.concatenate %515, %514 in 1 : vector<16x120xf32>, vector<16x8xf32> -> vector<16x128xf32>
    %517 = vector.broadcast %424 : vector<1x128xf32> to vector<16x128xf32>
    %518 = arith.mulf %516, %517 : vector<16x128xf32>
    %cst_150 = arith.constant 0.000000e+00 : f32
    %519 = vector.broadcast %cst_150 : f32 to vector<16x9xf32>
    %520 = vector.extract_strided_slice %483 {offsets = [0, 9], sizes = [16, 119], strides = [1, 1]} : vector<16x128xf32> to vector<16x119xf32>
    %521 = tpu.concatenate %520, %519 in 1 : vector<16x119xf32>, vector<16x9xf32> -> vector<16x128xf32>
    %522 = vector.broadcast %431 : vector<1x128xf32> to vector<16x128xf32>
    %523 = arith.mulf %521, %522 : vector<16x128xf32>
    %524 = tpu.concatenate %488, %493, %498, %503, %483, %508, %513, %518, %523 in 0 : vector<16x128xf32>, vector<16x128xf32>, vector<16x128xf32>, vector<16x128xf32>, vector<16x128xf32>, vector<16x128xf32>, vector<16x128xf32>, vector<16x128xf32>, vector<16x128xf32> -> vector<144x128xf32>
    %525 = arith.truncf %524 : vector<144x128xf32> to vector<144x128xbf16>
    %c0_151 = arith.constant 0 : index
    %c0_152 = arith.constant 0 : index
    %526 = vector.load %arg21[%c0_151, %c0_152] : memref<16x144xbf16, #tpu.memory_space<vmem>>, vector<16x144xbf16>
    %cst_153 = arith.constant dense<0.000000e+00> : vector<16x128xf32>
    %527 = tpu.matmul %526, %525, %cst_153 {dimension_numbers = #tpu.dot_dimension_numbers<[1], [0], [0], [1], [0, 0, 1, 1], [], []>} : vector<16x144xbf16>, vector<144x128xbf16>, vector<16x128xf32> -> vector<16x128xf32>
    %c0_154 = arith.constant 0 : index
    %c0_155 = arith.constant 0 : index
    %528 = vector.load %arg22[%c0_154, %c0_155] : memref<16x1xf32, #tpu.memory_space<vmem>>, vector<16x1xf32>
    %529 = vector.broadcast %528 : vector<16x1xf32> to vector<16x128xf32>
    %530 = arith.mulf %527, %529 : vector<16x128xf32>
    %c0_156 = arith.constant 0 : index
    %c0_157 = arith.constant 0 : index
    %531 = vector.load %arg23[%c0_156, %c0_157] : memref<16x1xf32, #tpu.memory_space<vmem>>, vector<16x1xf32>
    %532 = vector.broadcast %531 : vector<16x1xf32> to vector<16x128xf32>
    %533 = arith.addf %530, %532 : vector<16x128xf32>
    %534 = vector.extract_strided_slice %533 {offsets = [0, 0], sizes = [8, 128], strides = [1, 1]} : vector<16x128xf32> to vector<8x128xf32>
    %535 = arith.addf %534, %380 : vector<8x128xf32>
    %536 = vector.extract_strided_slice %533 {offsets = [8, 0], sizes = [8, 128], strides = [1, 1]} : vector<16x128xf32> to vector<8x128xf32>
    %537 = tpu.concatenate %535, %536 in 0 : vector<8x128xf32>, vector<8x128xf32> -> vector<16x128xf32>
    %cst_158 = arith.constant 0.000000e+00 : f32
    %538 = vector.broadcast %cst_158 : f32 to vector<16x128xf32>
    %539 = arith.maximumf %537, %538 : vector<16x128xf32>
    %cst_159 = arith.constant 0.000000e+00 : f32
    %540 = vector.broadcast %cst_159 : f32 to vector<16x9xf32>
    %541 = vector.extract_strided_slice %539 {offsets = [0, 0], sizes = [16, 119], strides = [1, 1]} : vector<16x128xf32> to vector<16x119xf32>
    %542 = tpu.concatenate %540, %541 in 1 : vector<16x9xf32>, vector<16x119xf32> -> vector<16x128xf32>
    %543 = vector.broadcast %394 : vector<1x128xf32> to vector<16x128xf32>
    %544 = arith.mulf %542, %543 : vector<16x128xf32>
    %cst_160 = arith.constant 0.000000e+00 : f32
    %545 = vector.broadcast %cst_160 : f32 to vector<16x8xf32>
    %546 = vector.extract_strided_slice %539 {offsets = [0, 0], sizes = [16, 120], strides = [1, 1]} : vector<16x128xf32> to vector<16x120xf32>
    %547 = tpu.concatenate %545, %546 in 1 : vector<16x8xf32>, vector<16x120xf32> -> vector<16x128xf32>
    %548 = vector.broadcast %398 : vector<1x128xf32> to vector<16x128xf32>
    %549 = arith.mulf %547, %548 : vector<16x128xf32>
    %cst_161 = arith.constant 0.000000e+00 : f32
    %550 = vector.broadcast %cst_161 : f32 to vector<16x7xf32>
    %551 = vector.extract_strided_slice %539 {offsets = [0, 0], sizes = [16, 121], strides = [1, 1]} : vector<16x128xf32> to vector<16x121xf32>
    %552 = tpu.concatenate %550, %551 in 1 : vector<16x7xf32>, vector<16x121xf32> -> vector<16x128xf32>
    %553 = vector.broadcast %405 : vector<1x128xf32> to vector<16x128xf32>
    %554 = arith.mulf %552, %553 : vector<16x128xf32>
    %cst_162 = arith.constant 0.000000e+00 : f32
    %555 = vector.broadcast %cst_162 : f32 to vector<16x1xf32>
    %556 = vector.extract_strided_slice %539 {offsets = [0, 0], sizes = [16, 127], strides = [1, 1]} : vector<16x128xf32> to vector<16x127xf32>
    %557 = tpu.concatenate %555, %556 in 1 : vector<16x1xf32>, vector<16x127xf32> -> vector<16x128xf32>
    %558 = vector.broadcast %409 : vector<1x128xf32> to vector<16x128xf32>
    %559 = arith.mulf %557, %558 : vector<16x128xf32>
    %cst_163 = arith.constant 0.000000e+00 : f32
    %560 = vector.broadcast %cst_163 : f32 to vector<16x1xf32>
    %561 = vector.extract_strided_slice %539 {offsets = [0, 1], sizes = [16, 127], strides = [1, 1]} : vector<16x128xf32> to vector<16x127xf32>
    %562 = tpu.concatenate %561, %560 in 1 : vector<16x127xf32>, vector<16x1xf32> -> vector<16x128xf32>
    %563 = vector.broadcast %413 : vector<1x128xf32> to vector<16x128xf32>
    %564 = arith.mulf %562, %563 : vector<16x128xf32>
    %cst_164 = arith.constant 0.000000e+00 : f32
    %565 = vector.broadcast %cst_164 : f32 to vector<16x7xf32>
    %566 = vector.extract_strided_slice %539 {offsets = [0, 7], sizes = [16, 121], strides = [1, 1]} : vector<16x128xf32> to vector<16x121xf32>
    %567 = tpu.concatenate %566, %565 in 1 : vector<16x121xf32>, vector<16x7xf32> -> vector<16x128xf32>
    %568 = vector.broadcast %420 : vector<1x128xf32> to vector<16x128xf32>
    %569 = arith.mulf %567, %568 : vector<16x128xf32>
    %cst_165 = arith.constant 0.000000e+00 : f32
    %570 = vector.broadcast %cst_165 : f32 to vector<16x8xf32>
    %571 = vector.extract_strided_slice %539 {offsets = [0, 8], sizes = [16, 120], strides = [1, 1]} : vector<16x128xf32> to vector<16x120xf32>
    %572 = tpu.concatenate %571, %570 in 1 : vector<16x120xf32>, vector<16x8xf32> -> vector<16x128xf32>
    %573 = vector.broadcast %424 : vector<1x128xf32> to vector<16x128xf32>
    %574 = arith.mulf %572, %573 : vector<16x128xf32>
    %cst_166 = arith.constant 0.000000e+00 : f32
    %575 = vector.broadcast %cst_166 : f32 to vector<16x9xf32>
    %576 = vector.extract_strided_slice %539 {offsets = [0, 9], sizes = [16, 119], strides = [1, 1]} : vector<16x128xf32> to vector<16x119xf32>
    %577 = tpu.concatenate %576, %575 in 1 : vector<16x119xf32>, vector<16x9xf32> -> vector<16x128xf32>
    %578 = vector.broadcast %431 : vector<1x128xf32> to vector<16x128xf32>
    %579 = arith.mulf %577, %578 : vector<16x128xf32>
    %580 = tpu.concatenate %544, %549, %554, %559, %539, %564, %569, %574, %579 in 0 : vector<16x128xf32>, vector<16x128xf32>, vector<16x128xf32>, vector<16x128xf32>, vector<16x128xf32>, vector<16x128xf32>, vector<16x128xf32>, vector<16x128xf32>, vector<16x128xf32> -> vector<144x128xf32>
    %581 = arith.truncf %580 : vector<144x128xf32> to vector<144x128xbf16>
    %c0_167 = arith.constant 0 : index
    %c0_168 = arith.constant 0 : index
    %582 = vector.load %arg24[%c0_167, %c0_168] : memref<16x144xbf16, #tpu.memory_space<vmem>>, vector<16x144xbf16>
    %cst_169 = arith.constant dense<0.000000e+00> : vector<16x128xf32>
    %583 = tpu.matmul %582, %581, %cst_169 {dimension_numbers = #tpu.dot_dimension_numbers<[1], [0], [0], [1], [0, 0, 1, 1], [], []>} : vector<16x144xbf16>, vector<144x128xbf16>, vector<16x128xf32> -> vector<16x128xf32>
    %c0_170 = arith.constant 0 : index
    %c0_171 = arith.constant 0 : index
    %584 = vector.load %arg25[%c0_170, %c0_171] : memref<16x1xf32, #tpu.memory_space<vmem>>, vector<16x1xf32>
    %585 = vector.broadcast %584 : vector<16x1xf32> to vector<16x128xf32>
    %586 = arith.mulf %583, %585 : vector<16x128xf32>
    %c0_172 = arith.constant 0 : index
    %c0_173 = arith.constant 0 : index
    %587 = vector.load %arg26[%c0_172, %c0_173] : memref<16x1xf32, #tpu.memory_space<vmem>>, vector<16x1xf32>
    %588 = vector.broadcast %587 : vector<16x1xf32> to vector<16x128xf32>
    %589 = arith.addf %586, %588 : vector<16x128xf32>
    %cst_174 = arith.constant 0.000000e+00 : f32
    %590 = vector.broadcast %cst_174 : f32 to vector<16x128xf32>
    %591 = arith.maximumf %589, %590 : vector<16x128xf32>
    %cst_175 = arith.constant 0.000000e+00 : f32
    %592 = vector.broadcast %cst_175 : f32 to vector<16x9xf32>
    %593 = vector.extract_strided_slice %591 {offsets = [0, 0], sizes = [16, 119], strides = [1, 1]} : vector<16x128xf32> to vector<16x119xf32>
    %594 = tpu.concatenate %592, %593 in 1 : vector<16x9xf32>, vector<16x119xf32> -> vector<16x128xf32>
    %595 = vector.broadcast %394 : vector<1x128xf32> to vector<16x128xf32>
    %596 = arith.mulf %594, %595 : vector<16x128xf32>
    %cst_176 = arith.constant 0.000000e+00 : f32
    %597 = vector.broadcast %cst_176 : f32 to vector<16x8xf32>
    %598 = vector.extract_strided_slice %591 {offsets = [0, 0], sizes = [16, 120], strides = [1, 1]} : vector<16x128xf32> to vector<16x120xf32>
    %599 = tpu.concatenate %597, %598 in 1 : vector<16x8xf32>, vector<16x120xf32> -> vector<16x128xf32>
    %600 = vector.broadcast %398 : vector<1x128xf32> to vector<16x128xf32>
    %601 = arith.mulf %599, %600 : vector<16x128xf32>
    %cst_177 = arith.constant 0.000000e+00 : f32
    %602 = vector.broadcast %cst_177 : f32 to vector<16x7xf32>
    %603 = vector.extract_strided_slice %591 {offsets = [0, 0], sizes = [16, 121], strides = [1, 1]} : vector<16x128xf32> to vector<16x121xf32>
    %604 = tpu.concatenate %602, %603 in 1 : vector<16x7xf32>, vector<16x121xf32> -> vector<16x128xf32>
    %605 = vector.broadcast %405 : vector<1x128xf32> to vector<16x128xf32>
    %606 = arith.mulf %604, %605 : vector<16x128xf32>
    %cst_178 = arith.constant 0.000000e+00 : f32
    %607 = vector.broadcast %cst_178 : f32 to vector<16x1xf32>
    %608 = vector.extract_strided_slice %591 {offsets = [0, 0], sizes = [16, 127], strides = [1, 1]} : vector<16x128xf32> to vector<16x127xf32>
    %609 = tpu.concatenate %607, %608 in 1 : vector<16x1xf32>, vector<16x127xf32> -> vector<16x128xf32>
    %610 = vector.broadcast %409 : vector<1x128xf32> to vector<16x128xf32>
    %611 = arith.mulf %609, %610 : vector<16x128xf32>
    %cst_179 = arith.constant 0.000000e+00 : f32
    %612 = vector.broadcast %cst_179 : f32 to vector<16x1xf32>
    %613 = vector.extract_strided_slice %591 {offsets = [0, 1], sizes = [16, 127], strides = [1, 1]} : vector<16x128xf32> to vector<16x127xf32>
    %614 = tpu.concatenate %613, %612 in 1 : vector<16x127xf32>, vector<16x1xf32> -> vector<16x128xf32>
    %615 = vector.broadcast %413 : vector<1x128xf32> to vector<16x128xf32>
    %616 = arith.mulf %614, %615 : vector<16x128xf32>
    %cst_180 = arith.constant 0.000000e+00 : f32
    %617 = vector.broadcast %cst_180 : f32 to vector<16x7xf32>
    %618 = vector.extract_strided_slice %591 {offsets = [0, 7], sizes = [16, 121], strides = [1, 1]} : vector<16x128xf32> to vector<16x121xf32>
    %619 = tpu.concatenate %618, %617 in 1 : vector<16x121xf32>, vector<16x7xf32> -> vector<16x128xf32>
    %620 = vector.broadcast %420 : vector<1x128xf32> to vector<16x128xf32>
    %621 = arith.mulf %619, %620 : vector<16x128xf32>
    %cst_181 = arith.constant 0.000000e+00 : f32
    %622 = vector.broadcast %cst_181 : f32 to vector<16x8xf32>
    %623 = vector.extract_strided_slice %591 {offsets = [0, 8], sizes = [16, 120], strides = [1, 1]} : vector<16x128xf32> to vector<16x120xf32>
    %624 = tpu.concatenate %623, %622 in 1 : vector<16x120xf32>, vector<16x8xf32> -> vector<16x128xf32>
    %625 = vector.broadcast %424 : vector<1x128xf32> to vector<16x128xf32>
    %626 = arith.mulf %624, %625 : vector<16x128xf32>
    %cst_182 = arith.constant 0.000000e+00 : f32
    %627 = vector.broadcast %cst_182 : f32 to vector<16x9xf32>
    %628 = vector.extract_strided_slice %591 {offsets = [0, 9], sizes = [16, 119], strides = [1, 1]} : vector<16x128xf32> to vector<16x119xf32>
    %629 = tpu.concatenate %628, %627 in 1 : vector<16x119xf32>, vector<16x9xf32> -> vector<16x128xf32>
    %630 = vector.broadcast %431 : vector<1x128xf32> to vector<16x128xf32>
    %631 = arith.mulf %629, %630 : vector<16x128xf32>
    %632 = tpu.concatenate %596, %601, %606, %611, %591, %616, %621, %626, %631 in 0 : vector<16x128xf32>, vector<16x128xf32>, vector<16x128xf32>, vector<16x128xf32>, vector<16x128xf32>, vector<16x128xf32>, vector<16x128xf32>, vector<16x128xf32>, vector<16x128xf32> -> vector<144x128xf32>
    %633 = arith.truncf %632 : vector<144x128xf32> to vector<144x128xbf16>
    %c0_183 = arith.constant 0 : index
    %c0_184 = arith.constant 0 : index
    %634 = vector.load %arg27[%c0_183, %c0_184] : memref<16x144xbf16, #tpu.memory_space<vmem>>, vector<16x144xbf16>
    %cst_185 = arith.constant dense<0.000000e+00> : vector<16x128xf32>
    %635 = tpu.matmul %634, %633, %cst_185 {dimension_numbers = #tpu.dot_dimension_numbers<[1], [0], [0], [1], [0, 0, 1, 1], [], []>} : vector<16x144xbf16>, vector<144x128xbf16>, vector<16x128xf32> -> vector<16x128xf32>
    %c0_186 = arith.constant 0 : index
    %c0_187 = arith.constant 0 : index
    %636 = vector.load %arg28[%c0_186, %c0_187] : memref<16x1xf32, #tpu.memory_space<vmem>>, vector<16x1xf32>
    %637 = vector.broadcast %636 : vector<16x1xf32> to vector<16x128xf32>
    %638 = arith.mulf %635, %637 : vector<16x128xf32>
    %c0_188 = arith.constant 0 : index
    %c0_189 = arith.constant 0 : index
    %639 = vector.load %arg29[%c0_188, %c0_189] : memref<16x1xf32, #tpu.memory_space<vmem>>, vector<16x1xf32>
    %640 = vector.broadcast %639 : vector<16x1xf32> to vector<16x128xf32>
    %641 = arith.addf %638, %640 : vector<16x128xf32>
    %642 = arith.addf %641, %539 : vector<16x128xf32>
    %cst_190 = arith.constant 0.000000e+00 : f32
    %643 = vector.broadcast %cst_190 : f32 to vector<16x128xf32>
    %644 = arith.maximumf %642, %643 : vector<16x128xf32>
    %cst_191 = arith.constant 0.000000e+00 : f32
    %645 = vector.broadcast %cst_191 : f32 to vector<16x9xf32>
    %646 = vector.extract_strided_slice %644 {offsets = [0, 0], sizes = [16, 119], strides = [1, 1]} : vector<16x128xf32> to vector<16x119xf32>
    %647 = tpu.concatenate %645, %646 in 1 : vector<16x9xf32>, vector<16x119xf32> -> vector<16x128xf32>
    %648 = vector.broadcast %394 : vector<1x128xf32> to vector<16x128xf32>
    %649 = arith.mulf %647, %648 : vector<16x128xf32>
    %cst_192 = arith.constant 0.000000e+00 : f32
    %650 = vector.broadcast %cst_192 : f32 to vector<16x8xf32>
    %651 = vector.extract_strided_slice %644 {offsets = [0, 0], sizes = [16, 120], strides = [1, 1]} : vector<16x128xf32> to vector<16x120xf32>
    %652 = tpu.concatenate %650, %651 in 1 : vector<16x8xf32>, vector<16x120xf32> -> vector<16x128xf32>
    %653 = vector.broadcast %398 : vector<1x128xf32> to vector<16x128xf32>
    %654 = arith.mulf %652, %653 : vector<16x128xf32>
    %cst_193 = arith.constant 0.000000e+00 : f32
    %655 = vector.broadcast %cst_193 : f32 to vector<16x7xf32>
    %656 = vector.extract_strided_slice %644 {offsets = [0, 0], sizes = [16, 121], strides = [1, 1]} : vector<16x128xf32> to vector<16x121xf32>
    %657 = tpu.concatenate %655, %656 in 1 : vector<16x7xf32>, vector<16x121xf32> -> vector<16x128xf32>
    %658 = vector.broadcast %405 : vector<1x128xf32> to vector<16x128xf32>
    %659 = arith.mulf %657, %658 : vector<16x128xf32>
    %cst_194 = arith.constant 0.000000e+00 : f32
    %660 = vector.broadcast %cst_194 : f32 to vector<16x1xf32>
    %661 = vector.extract_strided_slice %644 {offsets = [0, 0], sizes = [16, 127], strides = [1, 1]} : vector<16x128xf32> to vector<16x127xf32>
    %662 = tpu.concatenate %660, %661 in 1 : vector<16x1xf32>, vector<16x127xf32> -> vector<16x128xf32>
    %663 = vector.broadcast %409 : vector<1x128xf32> to vector<16x128xf32>
    %664 = arith.mulf %662, %663 : vector<16x128xf32>
    %cst_195 = arith.constant 0.000000e+00 : f32
    %665 = vector.broadcast %cst_195 : f32 to vector<16x1xf32>
    %666 = vector.extract_strided_slice %644 {offsets = [0, 1], sizes = [16, 127], strides = [1, 1]} : vector<16x128xf32> to vector<16x127xf32>
    %667 = tpu.concatenate %666, %665 in 1 : vector<16x127xf32>, vector<16x1xf32> -> vector<16x128xf32>
    %668 = vector.broadcast %413 : vector<1x128xf32> to vector<16x128xf32>
    %669 = arith.mulf %667, %668 : vector<16x128xf32>
    %cst_196 = arith.constant 0.000000e+00 : f32
    %670 = vector.broadcast %cst_196 : f32 to vector<16x7xf32>
    %671 = vector.extract_strided_slice %644 {offsets = [0, 7], sizes = [16, 121], strides = [1, 1]} : vector<16x128xf32> to vector<16x121xf32>
    %672 = tpu.concatenate %671, %670 in 1 : vector<16x121xf32>, vector<16x7xf32> -> vector<16x128xf32>
    %673 = vector.broadcast %420 : vector<1x128xf32> to vector<16x128xf32>
    %674 = arith.mulf %672, %673 : vector<16x128xf32>
    %cst_197 = arith.constant 0.000000e+00 : f32
    %675 = vector.broadcast %cst_197 : f32 to vector<16x8xf32>
    %676 = vector.extract_strided_slice %644 {offsets = [0, 8], sizes = [16, 120], strides = [1, 1]} : vector<16x128xf32> to vector<16x120xf32>
    %677 = tpu.concatenate %676, %675 in 1 : vector<16x120xf32>, vector<16x8xf32> -> vector<16x128xf32>
    %678 = vector.broadcast %424 : vector<1x128xf32> to vector<16x128xf32>
    %679 = arith.mulf %677, %678 : vector<16x128xf32>
    %cst_198 = arith.constant 0.000000e+00 : f32
    %680 = vector.broadcast %cst_198 : f32 to vector<16x9xf32>
    %681 = vector.extract_strided_slice %644 {offsets = [0, 9], sizes = [16, 119], strides = [1, 1]} : vector<16x128xf32> to vector<16x119xf32>
    %682 = tpu.concatenate %681, %680 in 1 : vector<16x119xf32>, vector<16x9xf32> -> vector<16x128xf32>
    %683 = vector.broadcast %431 : vector<1x128xf32> to vector<16x128xf32>
    %684 = arith.mulf %682, %683 : vector<16x128xf32>
    %685 = tpu.concatenate %649, %654, %659, %664, %644, %669, %674, %679, %684 in 0 : vector<16x128xf32>, vector<16x128xf32>, vector<16x128xf32>, vector<16x128xf32>, vector<16x128xf32>, vector<16x128xf32>, vector<16x128xf32>, vector<16x128xf32>, vector<16x128xf32> -> vector<144x128xf32>
    %686 = arith.truncf %685 : vector<144x128xf32> to vector<144x128xbf16>
    %c0_199 = arith.constant 0 : index
    %c0_200 = arith.constant 0 : index
    %687 = vector.load %arg30[%c0_199, %c0_200] : memref<16x144xbf16, #tpu.memory_space<vmem>>, vector<16x144xbf16>
    %cst_201 = arith.constant dense<0.000000e+00> : vector<16x128xf32>
    %688 = tpu.matmul %687, %686, %cst_201 {dimension_numbers = #tpu.dot_dimension_numbers<[1], [0], [0], [1], [0, 0, 1, 1], [], []>} : vector<16x144xbf16>, vector<144x128xbf16>, vector<16x128xf32> -> vector<16x128xf32>
    %c0_202 = arith.constant 0 : index
    %c0_203 = arith.constant 0 : index
    %689 = vector.load %arg31[%c0_202, %c0_203] : memref<16x1xf32, #tpu.memory_space<vmem>>, vector<16x1xf32>
    %690 = vector.broadcast %689 : vector<16x1xf32> to vector<16x128xf32>
    %691 = arith.mulf %688, %690 : vector<16x128xf32>
    %c0_204 = arith.constant 0 : index
    %c0_205 = arith.constant 0 : index
    %692 = vector.load %arg32[%c0_204, %c0_205] : memref<16x1xf32, #tpu.memory_space<vmem>>, vector<16x1xf32>
    %693 = vector.broadcast %692 : vector<16x1xf32> to vector<16x128xf32>
    %694 = arith.addf %691, %693 : vector<16x128xf32>
    %cst_206 = arith.constant 0.000000e+00 : f32
    %695 = vector.broadcast %cst_206 : f32 to vector<16x128xf32>
    %696 = arith.maximumf %694, %695 : vector<16x128xf32>
    %cst_207 = arith.constant 0.000000e+00 : f32
    %697 = vector.broadcast %cst_207 : f32 to vector<16x9xf32>
    %698 = vector.extract_strided_slice %696 {offsets = [0, 0], sizes = [16, 119], strides = [1, 1]} : vector<16x128xf32> to vector<16x119xf32>
    %699 = tpu.concatenate %697, %698 in 1 : vector<16x9xf32>, vector<16x119xf32> -> vector<16x128xf32>
    %700 = vector.broadcast %394 : vector<1x128xf32> to vector<16x128xf32>
    %701 = arith.mulf %699, %700 : vector<16x128xf32>
    %cst_208 = arith.constant 0.000000e+00 : f32
    %702 = vector.broadcast %cst_208 : f32 to vector<16x8xf32>
    %703 = vector.extract_strided_slice %696 {offsets = [0, 0], sizes = [16, 120], strides = [1, 1]} : vector<16x128xf32> to vector<16x120xf32>
    %704 = tpu.concatenate %702, %703 in 1 : vector<16x8xf32>, vector<16x120xf32> -> vector<16x128xf32>
    %705 = vector.broadcast %398 : vector<1x128xf32> to vector<16x128xf32>
    %706 = arith.mulf %704, %705 : vector<16x128xf32>
    %cst_209 = arith.constant 0.000000e+00 : f32
    %707 = vector.broadcast %cst_209 : f32 to vector<16x7xf32>
    %708 = vector.extract_strided_slice %696 {offsets = [0, 0], sizes = [16, 121], strides = [1, 1]} : vector<16x128xf32> to vector<16x121xf32>
    %709 = tpu.concatenate %707, %708 in 1 : vector<16x7xf32>, vector<16x121xf32> -> vector<16x128xf32>
    %710 = vector.broadcast %405 : vector<1x128xf32> to vector<16x128xf32>
    %711 = arith.mulf %709, %710 : vector<16x128xf32>
    %cst_210 = arith.constant 0.000000e+00 : f32
    %712 = vector.broadcast %cst_210 : f32 to vector<16x1xf32>
    %713 = vector.extract_strided_slice %696 {offsets = [0, 0], sizes = [16, 127], strides = [1, 1]} : vector<16x128xf32> to vector<16x127xf32>
    %714 = tpu.concatenate %712, %713 in 1 : vector<16x1xf32>, vector<16x127xf32> -> vector<16x128xf32>
    %715 = vector.broadcast %409 : vector<1x128xf32> to vector<16x128xf32>
    %716 = arith.mulf %714, %715 : vector<16x128xf32>
    %cst_211 = arith.constant 0.000000e+00 : f32
    %717 = vector.broadcast %cst_211 : f32 to vector<16x1xf32>
    %718 = vector.extract_strided_slice %696 {offsets = [0, 1], sizes = [16, 127], strides = [1, 1]} : vector<16x128xf32> to vector<16x127xf32>
    %719 = tpu.concatenate %718, %717 in 1 : vector<16x127xf32>, vector<16x1xf32> -> vector<16x128xf32>
    %720 = vector.broadcast %413 : vector<1x128xf32> to vector<16x128xf32>
    %721 = arith.mulf %719, %720 : vector<16x128xf32>
    %cst_212 = arith.constant 0.000000e+00 : f32
    %722 = vector.broadcast %cst_212 : f32 to vector<16x7xf32>
    %723 = vector.extract_strided_slice %696 {offsets = [0, 7], sizes = [16, 121], strides = [1, 1]} : vector<16x128xf32> to vector<16x121xf32>
    %724 = tpu.concatenate %723, %722 in 1 : vector<16x121xf32>, vector<16x7xf32> -> vector<16x128xf32>
    %725 = vector.broadcast %420 : vector<1x128xf32> to vector<16x128xf32>
    %726 = arith.mulf %724, %725 : vector<16x128xf32>
    %cst_213 = arith.constant 0.000000e+00 : f32
    %727 = vector.broadcast %cst_213 : f32 to vector<16x8xf32>
    %728 = vector.extract_strided_slice %696 {offsets = [0, 8], sizes = [16, 120], strides = [1, 1]} : vector<16x128xf32> to vector<16x120xf32>
    %729 = tpu.concatenate %728, %727 in 1 : vector<16x120xf32>, vector<16x8xf32> -> vector<16x128xf32>
    %730 = vector.broadcast %424 : vector<1x128xf32> to vector<16x128xf32>
    %731 = arith.mulf %729, %730 : vector<16x128xf32>
    %cst_214 = arith.constant 0.000000e+00 : f32
    %732 = vector.broadcast %cst_214 : f32 to vector<16x9xf32>
    %733 = vector.extract_strided_slice %696 {offsets = [0, 9], sizes = [16, 119], strides = [1, 1]} : vector<16x128xf32> to vector<16x119xf32>
    %734 = tpu.concatenate %733, %732 in 1 : vector<16x119xf32>, vector<16x9xf32> -> vector<16x128xf32>
    %735 = vector.broadcast %431 : vector<1x128xf32> to vector<16x128xf32>
    %736 = arith.mulf %734, %735 : vector<16x128xf32>
    %737 = tpu.concatenate %701, %706, %711, %716, %696, %721, %726, %731, %736 in 0 : vector<16x128xf32>, vector<16x128xf32>, vector<16x128xf32>, vector<16x128xf32>, vector<16x128xf32>, vector<16x128xf32>, vector<16x128xf32>, vector<16x128xf32>, vector<16x128xf32> -> vector<144x128xf32>
    %738 = arith.truncf %737 : vector<144x128xf32> to vector<144x128xbf16>
    %c0_215 = arith.constant 0 : index
    %c0_216 = arith.constant 0 : index
    %739 = vector.load %arg33[%c0_215, %c0_216] : memref<16x144xbf16, #tpu.memory_space<vmem>>, vector<16x144xbf16>
    %cst_217 = arith.constant dense<0.000000e+00> : vector<16x128xf32>
    %740 = tpu.matmul %739, %738, %cst_217 {dimension_numbers = #tpu.dot_dimension_numbers<[1], [0], [0], [1], [0, 0, 1, 1], [], []>} : vector<16x144xbf16>, vector<144x128xbf16>, vector<16x128xf32> -> vector<16x128xf32>
    %c0_218 = arith.constant 0 : index
    %c0_219 = arith.constant 0 : index
    %741 = vector.load %arg34[%c0_218, %c0_219] : memref<16x1xf32, #tpu.memory_space<vmem>>, vector<16x1xf32>
    %742 = vector.broadcast %741 : vector<16x1xf32> to vector<16x128xf32>
    %743 = arith.mulf %740, %742 : vector<16x128xf32>
    %c0_220 = arith.constant 0 : index
    %c0_221 = arith.constant 0 : index
    %744 = vector.load %arg35[%c0_220, %c0_221] : memref<16x1xf32, #tpu.memory_space<vmem>>, vector<16x1xf32>
    %745 = vector.broadcast %744 : vector<16x1xf32> to vector<16x128xf32>
    %746 = arith.addf %743, %745 : vector<16x128xf32>
    %747 = arith.addf %746, %644 : vector<16x128xf32>
    %cst_222 = arith.constant 0.000000e+00 : f32
    %748 = vector.broadcast %cst_222 : f32 to vector<16x128xf32>
    %749 = arith.maximumf %747, %748 : vector<16x128xf32>
    %750 = arith.truncf %749 : vector<16x128xf32> to vector<16x128xbf16>
    %751 = vector.extract_strided_slice %750 {offsets = [0, 0], sizes = [16, 64], strides = [1, 1]} : vector<16x128xbf16> to vector<16x64xbf16>
    %c0_223 = arith.constant 0 : index
    %c0_224 = arith.constant 0 : index
    %752 = vector.load %arg36[%c0_223, %c0_224] : memref<64x16xbf16, #tpu.memory_space<vmem>>, vector<64x16xbf16>
    %cst_225 = arith.constant dense<0.000000e+00> : vector<16x16xf32>
    %753 = tpu.matmul %751, %752, %cst_225 {dimension_numbers = #tpu.dot_dimension_numbers<[1], [0], [0], [1], [0, 0, 1, 1], [], []>} : vector<16x64xbf16>, vector<64x16xbf16>, vector<16x16xf32> -> vector<16x16xf32>
    %754 = vector.extract_strided_slice %750 {offsets = [0, 64], sizes = [16, 64], strides = [1, 1]} : vector<16x128xbf16> to vector<16x64xbf16>
    %c0_226 = arith.constant 0 : index
    %c0_227 = arith.constant 0 : index
    %755 = vector.load %arg36[%c0_226, %c0_227] : memref<64x16xbf16, #tpu.memory_space<vmem>>, vector<64x16xbf16>
    %cst_228 = arith.constant dense<0.000000e+00> : vector<16x16xf32>
    %756 = tpu.matmul %754, %755, %cst_228 {dimension_numbers = #tpu.dot_dimension_numbers<[1], [0], [0], [1], [0, 0, 1, 1], [], []>} : vector<16x64xbf16>, vector<64x16xbf16>, vector<16x16xf32> -> vector<16x16xf32>
    %757 = tpu.concatenate %753, %756 in 1 : vector<16x16xf32>, vector<16x16xf32> -> vector<16x32xf32>
    %758 = tpu.iota {dimensions = array<i32: 1>} : vector<1x32xi32>
    %c3_i32_229 = arith.constant 3 : i32
    %759 = vector.broadcast %c3_i32_229 : i32 to vector<1x32xi32>
    %760 = arith.andi %758, %759 : vector<1x32xi32>
    %c2_i32 = arith.constant 2 : i32
    %761 = vector.broadcast %c2_i32 : i32 to vector<1x32xi32>
    %762 = arith.shrsi %758, %761 : vector<1x32xi32>
    %c3_i32_230 = arith.constant 3 : i32
    %763 = vector.broadcast %c3_i32_230 : i32 to vector<1x32xi32>
    %764 = arith.andi %762, %763 : vector<1x32xi32>
    %c1_i32_231 = arith.constant 1 : i32
    %765 = vector.broadcast %c1_i32_231 : i32 to vector<1x32xi32>
    %766 = arith.cmpi sge, %764, %765 : vector<1x32xi32>
    %c1_i32_232 = arith.constant 1 : i32
    %767 = vector.broadcast %c1_i32_232 : i32 to vector<1x32xi32>
    %768 = arith.cmpi sge, %760, %767 : vector<1x32xi32>
    %769 = arith.andi %766, %768 : vector<1x32xi1>
    %770 = arith.extui %769 : vector<1x32xi1> to vector<1x32xi32>
    %771 = arith.sitofp %770 : vector<1x32xi32> to vector<1x32xf32>
    %c1_i32_233 = arith.constant 1 : i32
    %772 = vector.broadcast %c1_i32_233 : i32 to vector<1x32xi32>
    %773 = arith.cmpi sge, %764, %772 : vector<1x32xi32>
    %774 = arith.extui %773 : vector<1x32xi1> to vector<1x32xi32>
    %775 = arith.sitofp %774 : vector<1x32xi32> to vector<1x32xf32>
    %c1_i32_234 = arith.constant 1 : i32
    %776 = vector.broadcast %c1_i32_234 : i32 to vector<1x32xi32>
    %777 = arith.cmpi sge, %764, %776 : vector<1x32xi32>
    %c2_i32_235 = arith.constant 2 : i32
    %778 = vector.broadcast %c2_i32_235 : i32 to vector<1x32xi32>
    %779 = arith.cmpi sle, %760, %778 : vector<1x32xi32>
    %780 = arith.andi %777, %779 : vector<1x32xi1>
    %781 = arith.extui %780 : vector<1x32xi1> to vector<1x32xi32>
    %782 = arith.sitofp %781 : vector<1x32xi32> to vector<1x32xf32>
    %c1_i32_236 = arith.constant 1 : i32
    %783 = vector.broadcast %c1_i32_236 : i32 to vector<1x32xi32>
    %784 = arith.cmpi sge, %760, %783 : vector<1x32xi32>
    %785 = arith.extui %784 : vector<1x32xi1> to vector<1x32xi32>
    %786 = arith.sitofp %785 : vector<1x32xi32> to vector<1x32xf32>
    %c2_i32_237 = arith.constant 2 : i32
    %787 = vector.broadcast %c2_i32_237 : i32 to vector<1x32xi32>
    %788 = arith.cmpi sle, %760, %787 : vector<1x32xi32>
    %789 = arith.extui %788 : vector<1x32xi1> to vector<1x32xi32>
    %790 = arith.sitofp %789 : vector<1x32xi32> to vector<1x32xf32>
    %c2_i32_238 = arith.constant 2 : i32
    %791 = vector.broadcast %c2_i32_238 : i32 to vector<1x32xi32>
    %792 = arith.cmpi sle, %764, %791 : vector<1x32xi32>
    %c1_i32_239 = arith.constant 1 : i32
    %793 = vector.broadcast %c1_i32_239 : i32 to vector<1x32xi32>
    %794 = arith.cmpi sge, %760, %793 : vector<1x32xi32>
    %795 = arith.andi %792, %794 : vector<1x32xi1>
    %796 = arith.extui %795 : vector<1x32xi1> to vector<1x32xi32>
    %797 = arith.sitofp %796 : vector<1x32xi32> to vector<1x32xf32>
    %c2_i32_240 = arith.constant 2 : i32
    %798 = vector.broadcast %c2_i32_240 : i32 to vector<1x32xi32>
    %799 = arith.cmpi sle, %764, %798 : vector<1x32xi32>
    %800 = arith.extui %799 : vector<1x32xi1> to vector<1x32xi32>
    %801 = arith.sitofp %800 : vector<1x32xi32> to vector<1x32xf32>
    %c2_i32_241 = arith.constant 2 : i32
    %802 = vector.broadcast %c2_i32_241 : i32 to vector<1x32xi32>
    %803 = arith.cmpi sle, %764, %802 : vector<1x32xi32>
    %c2_i32_242 = arith.constant 2 : i32
    %804 = vector.broadcast %c2_i32_242 : i32 to vector<1x32xi32>
    %805 = arith.cmpi sle, %760, %804 : vector<1x32xi32>
    %806 = arith.andi %803, %805 : vector<1x32xi1>
    %807 = arith.extui %806 : vector<1x32xi1> to vector<1x32xi32>
    %808 = arith.sitofp %807 : vector<1x32xi32> to vector<1x32xf32>
    %cst_243 = arith.constant 0.000000e+00 : f32
    %809 = vector.broadcast %cst_243 : f32 to vector<16x5xf32>
    %810 = vector.extract_strided_slice %757 {offsets = [0, 0], sizes = [16, 27], strides = [1, 1]} : vector<16x32xf32> to vector<16x27xf32>
    %811 = tpu.concatenate %809, %810 in 1 : vector<16x5xf32>, vector<16x27xf32> -> vector<16x32xf32>
    %812 = vector.broadcast %771 : vector<1x32xf32> to vector<16x32xf32>
    %813 = arith.mulf %811, %812 : vector<16x32xf32>
    %cst_244 = arith.constant 0.000000e+00 : f32
    %814 = vector.broadcast %cst_244 : f32 to vector<16x4xf32>
    %815 = vector.extract_strided_slice %757 {offsets = [0, 0], sizes = [16, 28], strides = [1, 1]} : vector<16x32xf32> to vector<16x28xf32>
    %816 = tpu.concatenate %814, %815 in 1 : vector<16x4xf32>, vector<16x28xf32> -> vector<16x32xf32>
    %817 = vector.broadcast %775 : vector<1x32xf32> to vector<16x32xf32>
    %818 = arith.mulf %816, %817 : vector<16x32xf32>
    %cst_245 = arith.constant 0.000000e+00 : f32
    %819 = vector.broadcast %cst_245 : f32 to vector<16x3xf32>
    %820 = vector.extract_strided_slice %757 {offsets = [0, 0], sizes = [16, 29], strides = [1, 1]} : vector<16x32xf32> to vector<16x29xf32>
    %821 = tpu.concatenate %819, %820 in 1 : vector<16x3xf32>, vector<16x29xf32> -> vector<16x32xf32>
    %822 = vector.broadcast %782 : vector<1x32xf32> to vector<16x32xf32>
    %823 = arith.mulf %821, %822 : vector<16x32xf32>
    %cst_246 = arith.constant 0.000000e+00 : f32
    %824 = vector.broadcast %cst_246 : f32 to vector<16x1xf32>
    %825 = vector.extract_strided_slice %757 {offsets = [0, 0], sizes = [16, 31], strides = [1, 1]} : vector<16x32xf32> to vector<16x31xf32>
    %826 = tpu.concatenate %824, %825 in 1 : vector<16x1xf32>, vector<16x31xf32> -> vector<16x32xf32>
    %827 = vector.broadcast %786 : vector<1x32xf32> to vector<16x32xf32>
    %828 = arith.mulf %826, %827 : vector<16x32xf32>
    %cst_247 = arith.constant 0.000000e+00 : f32
    %829 = vector.broadcast %cst_247 : f32 to vector<16x1xf32>
    %830 = vector.extract_strided_slice %757 {offsets = [0, 1], sizes = [16, 31], strides = [1, 1]} : vector<16x32xf32> to vector<16x31xf32>
    %831 = tpu.concatenate %830, %829 in 1 : vector<16x31xf32>, vector<16x1xf32> -> vector<16x32xf32>
    %832 = vector.broadcast %790 : vector<1x32xf32> to vector<16x32xf32>
    %833 = arith.mulf %831, %832 : vector<16x32xf32>
    %cst_248 = arith.constant 0.000000e+00 : f32
    %834 = vector.broadcast %cst_248 : f32 to vector<16x3xf32>
    %835 = vector.extract_strided_slice %757 {offsets = [0, 3], sizes = [16, 29], strides = [1, 1]} : vector<16x32xf32> to vector<16x29xf32>
    %836 = tpu.concatenate %835, %834 in 1 : vector<16x29xf32>, vector<16x3xf32> -> vector<16x32xf32>
    %837 = vector.broadcast %797 : vector<1x32xf32> to vector<16x32xf32>
    %838 = arith.mulf %836, %837 : vector<16x32xf32>
    %cst_249 = arith.constant 0.000000e+00 : f32
    %839 = vector.broadcast %cst_249 : f32 to vector<16x4xf32>
    %840 = vector.extract_strided_slice %757 {offsets = [0, 4], sizes = [16, 28], strides = [1, 1]} : vector<16x32xf32> to vector<16x28xf32>
    %841 = tpu.concatenate %840, %839 in 1 : vector<16x28xf32>, vector<16x4xf32> -> vector<16x32xf32>
    %842 = vector.broadcast %801 : vector<1x32xf32> to vector<16x32xf32>
    %843 = arith.mulf %841, %842 : vector<16x32xf32>
    %cst_250 = arith.constant 0.000000e+00 : f32
    %844 = vector.broadcast %cst_250 : f32 to vector<16x5xf32>
    %845 = vector.extract_strided_slice %757 {offsets = [0, 5], sizes = [16, 27], strides = [1, 1]} : vector<16x32xf32> to vector<16x27xf32>
    %846 = tpu.concatenate %845, %844 in 1 : vector<16x27xf32>, vector<16x5xf32> -> vector<16x32xf32>
    %847 = vector.broadcast %808 : vector<1x32xf32> to vector<16x32xf32>
    %848 = arith.mulf %846, %847 : vector<16x32xf32>
    %849 = tpu.concatenate %813, %818, %823, %828, %757, %833, %838, %843, %848 in 0 : vector<16x32xf32>, vector<16x32xf32>, vector<16x32xf32>, vector<16x32xf32>, vector<16x32xf32>, vector<16x32xf32>, vector<16x32xf32>, vector<16x32xf32>, vector<16x32xf32> -> vector<144x32xf32>
    %850 = arith.truncf %849 : vector<144x32xf32> to vector<144x32xbf16>
    %c0_251 = arith.constant 0 : index
    %c0_252 = arith.constant 0 : index
    %851 = vector.load %arg37[%c0_251, %c0_252] : memref<32x144xbf16, #tpu.memory_space<vmem>>, vector<32x144xbf16>
    %cst_253 = arith.constant dense<0.000000e+00> : vector<32x32xf32>
    %852 = tpu.matmul %851, %850, %cst_253 {dimension_numbers = #tpu.dot_dimension_numbers<[1], [0], [0], [1], [0, 0, 1, 1], [], []>} : vector<32x144xbf16>, vector<144x32xbf16>, vector<32x32xf32> -> vector<32x32xf32>
    %c0_254 = arith.constant 0 : index
    %c0_255 = arith.constant 0 : index
    %853 = vector.load %arg38[%c0_254, %c0_255] : memref<32x1xf32, #tpu.memory_space<vmem>>, vector<32x1xf32>
    %854 = vector.broadcast %853 : vector<32x1xf32> to vector<32x32xf32>
    %855 = arith.mulf %852, %854 : vector<32x32xf32>
    %c0_256 = arith.constant 0 : index
    %c0_257 = arith.constant 0 : index
    %856 = vector.load %arg39[%c0_256, %c0_257] : memref<32x1xf32, #tpu.memory_space<vmem>>, vector<32x1xf32>
    %857 = vector.broadcast %856 : vector<32x1xf32> to vector<32x32xf32>
    %858 = arith.addf %855, %857 : vector<32x32xf32>
    %cst_258 = arith.constant 0.000000e+00 : f32
    %859 = vector.broadcast %cst_258 : f32 to vector<32x32xf32>
    %860 = arith.maximumf %858, %859 : vector<32x32xf32>
    %cst_259 = arith.constant 0.000000e+00 : f32
    %861 = vector.broadcast %cst_259 : f32 to vector<32x5xf32>
    %862 = vector.extract_strided_slice %860 {offsets = [0, 0], sizes = [32, 27], strides = [1, 1]} : vector<32x32xf32> to vector<32x27xf32>
    %863 = tpu.concatenate %861, %862 in 1 : vector<32x5xf32>, vector<32x27xf32> -> vector<32x32xf32>
    %864 = vector.broadcast %771 : vector<1x32xf32> to vector<32x32xf32>
    %865 = arith.mulf %863, %864 : vector<32x32xf32>
    %cst_260 = arith.constant 0.000000e+00 : f32
    %866 = vector.broadcast %cst_260 : f32 to vector<32x4xf32>
    %867 = vector.extract_strided_slice %860 {offsets = [0, 0], sizes = [32, 28], strides = [1, 1]} : vector<32x32xf32> to vector<32x28xf32>
    %868 = tpu.concatenate %866, %867 in 1 : vector<32x4xf32>, vector<32x28xf32> -> vector<32x32xf32>
    %869 = vector.broadcast %775 : vector<1x32xf32> to vector<32x32xf32>
    %870 = arith.mulf %868, %869 : vector<32x32xf32>
    %cst_261 = arith.constant 0.000000e+00 : f32
    %871 = vector.broadcast %cst_261 : f32 to vector<32x3xf32>
    %872 = vector.extract_strided_slice %860 {offsets = [0, 0], sizes = [32, 29], strides = [1, 1]} : vector<32x32xf32> to vector<32x29xf32>
    %873 = tpu.concatenate %871, %872 in 1 : vector<32x3xf32>, vector<32x29xf32> -> vector<32x32xf32>
    %874 = vector.broadcast %782 : vector<1x32xf32> to vector<32x32xf32>
    %875 = arith.mulf %873, %874 : vector<32x32xf32>
    %cst_262 = arith.constant 0.000000e+00 : f32
    %876 = vector.broadcast %cst_262 : f32 to vector<32x1xf32>
    %877 = vector.extract_strided_slice %860 {offsets = [0, 0], sizes = [32, 31], strides = [1, 1]} : vector<32x32xf32> to vector<32x31xf32>
    %878 = tpu.concatenate %876, %877 in 1 : vector<32x1xf32>, vector<32x31xf32> -> vector<32x32xf32>
    %879 = vector.broadcast %786 : vector<1x32xf32> to vector<32x32xf32>
    %880 = arith.mulf %878, %879 : vector<32x32xf32>
    %cst_263 = arith.constant 0.000000e+00 : f32
    %881 = vector.broadcast %cst_263 : f32 to vector<32x1xf32>
    %882 = vector.extract_strided_slice %860 {offsets = [0, 1], sizes = [32, 31], strides = [1, 1]} : vector<32x32xf32> to vector<32x31xf32>
    %883 = tpu.concatenate %882, %881 in 1 : vector<32x31xf32>, vector<32x1xf32> -> vector<32x32xf32>
    %884 = vector.broadcast %790 : vector<1x32xf32> to vector<32x32xf32>
    %885 = arith.mulf %883, %884 : vector<32x32xf32>
    %cst_264 = arith.constant 0.000000e+00 : f32
    %886 = vector.broadcast %cst_264 : f32 to vector<32x3xf32>
    %887 = vector.extract_strided_slice %860 {offsets = [0, 3], sizes = [32, 29], strides = [1, 1]} : vector<32x32xf32> to vector<32x29xf32>
    %888 = tpu.concatenate %887, %886 in 1 : vector<32x29xf32>, vector<32x3xf32> -> vector<32x32xf32>
    %889 = vector.broadcast %797 : vector<1x32xf32> to vector<32x32xf32>
    %890 = arith.mulf %888, %889 : vector<32x32xf32>
    %cst_265 = arith.constant 0.000000e+00 : f32
    %891 = vector.broadcast %cst_265 : f32 to vector<32x4xf32>
    %892 = vector.extract_strided_slice %860 {offsets = [0, 4], sizes = [32, 28], strides = [1, 1]} : vector<32x32xf32> to vector<32x28xf32>
    %893 = tpu.concatenate %892, %891 in 1 : vector<32x28xf32>, vector<32x4xf32> -> vector<32x32xf32>
    %894 = vector.broadcast %801 : vector<1x32xf32> to vector<32x32xf32>
    %895 = arith.mulf %893, %894 : vector<32x32xf32>
    %cst_266 = arith.constant 0.000000e+00 : f32
    %896 = vector.broadcast %cst_266 : f32 to vector<32x5xf32>
    %897 = vector.extract_strided_slice %860 {offsets = [0, 5], sizes = [32, 27], strides = [1, 1]} : vector<32x32xf32> to vector<32x27xf32>
    %898 = tpu.concatenate %897, %896 in 1 : vector<32x27xf32>, vector<32x5xf32> -> vector<32x32xf32>
    %899 = vector.broadcast %808 : vector<1x32xf32> to vector<32x32xf32>
    %900 = arith.mulf %898, %899 : vector<32x32xf32>
    %901 = tpu.concatenate %865, %870, %875, %880, %860, %885, %890, %895, %900 in 0 : vector<32x32xf32>, vector<32x32xf32>, vector<32x32xf32>, vector<32x32xf32>, vector<32x32xf32>, vector<32x32xf32>, vector<32x32xf32>, vector<32x32xf32>, vector<32x32xf32> -> vector<288x32xf32>
    %902 = arith.truncf %901 : vector<288x32xf32> to vector<288x32xbf16>
    %c0_267 = arith.constant 0 : index
    %c0_268 = arith.constant 0 : index
    %903 = vector.load %arg40[%c0_267, %c0_268] : memref<32x288xbf16, #tpu.memory_space<vmem>>, vector<32x288xbf16>
    %cst_269 = arith.constant dense<0.000000e+00> : vector<32x32xf32>
    %904 = tpu.matmul %903, %902, %cst_269 {dimension_numbers = #tpu.dot_dimension_numbers<[1], [0], [0], [1], [0, 0, 1, 1], [], []>} : vector<32x288xbf16>, vector<288x32xbf16>, vector<32x32xf32> -> vector<32x32xf32>
    %c0_270 = arith.constant 0 : index
    %c0_271 = arith.constant 0 : index
    %905 = vector.load %arg41[%c0_270, %c0_271] : memref<32x1xf32, #tpu.memory_space<vmem>>, vector<32x1xf32>
    %906 = vector.broadcast %905 : vector<32x1xf32> to vector<32x32xf32>
    %907 = arith.mulf %904, %906 : vector<32x32xf32>
    %c0_272 = arith.constant 0 : index
    %c0_273 = arith.constant 0 : index
    %908 = vector.load %arg42[%c0_272, %c0_273] : memref<32x1xf32, #tpu.memory_space<vmem>>, vector<32x1xf32>
    %909 = vector.broadcast %908 : vector<32x1xf32> to vector<32x32xf32>
    %910 = arith.addf %907, %909 : vector<32x32xf32>
    %911 = vector.extract_strided_slice %910 {offsets = [0, 0], sizes = [16, 32], strides = [1, 1]} : vector<32x32xf32> to vector<16x32xf32>
    %912 = arith.addf %911, %757 : vector<16x32xf32>
    %913 = vector.extract_strided_slice %910 {offsets = [16, 0], sizes = [16, 32], strides = [1, 1]} : vector<32x32xf32> to vector<16x32xf32>
    %914 = tpu.concatenate %912, %913 in 0 : vector<16x32xf32>, vector<16x32xf32> -> vector<32x32xf32>
    %cst_274 = arith.constant 0.000000e+00 : f32
    %915 = vector.broadcast %cst_274 : f32 to vector<32x32xf32>
    %916 = arith.maximumf %914, %915 : vector<32x32xf32>
    %917 = arith.truncf %916 : vector<32x32xf32> to vector<32x32xbf16>
    %918 = vector.extract_strided_slice %917 {offsets = [0, 0], sizes = [32, 16], strides = [1, 1]} : vector<32x32xbf16> to vector<32x16xbf16>
    %c0_275 = arith.constant 0 : index
    %c0_276 = arith.constant 0 : index
    %919 = vector.load %arg43[%c0_275, %c0_276] : memref<16x1xbf16, #tpu.memory_space<vmem>>, vector<16x1xbf16>
    %cst_277 = arith.constant dense<0.000000e+00> : vector<32x1xf32>
    %920 = tpu.matmul %918, %919, %cst_277 {dimension_numbers = #tpu.dot_dimension_numbers<[1], [0], [0], [1], [0, 0, 1, 1], [], []>} : vector<32x16xbf16>, vector<16x1xbf16>, vector<32x1xf32> -> vector<32x1xf32>
    %921 = vector.extract_strided_slice %917 {offsets = [0, 16], sizes = [32, 16], strides = [1, 1]} : vector<32x32xbf16> to vector<32x16xbf16>
    %c0_278 = arith.constant 0 : index
    %c0_279 = arith.constant 0 : index
    %922 = vector.load %arg43[%c0_278, %c0_279] : memref<16x1xbf16, #tpu.memory_space<vmem>>, vector<16x1xbf16>
    %cst_280 = arith.constant dense<0.000000e+00> : vector<32x1xf32>
    %923 = tpu.matmul %921, %922, %cst_280 {dimension_numbers = #tpu.dot_dimension_numbers<[1], [0], [0], [1], [0, 0, 1, 1], [], []>} : vector<32x16xbf16>, vector<16x1xbf16>, vector<32x1xf32> -> vector<32x1xf32>
    %924 = tpu.concatenate %920, %923 in 1 : vector<32x1xf32>, vector<32x1xf32> -> vector<32x2xf32>
    %c0_281 = arith.constant 0 : index
    %c0_282 = arith.constant 0 : index
    %925 = vector.load %arg44[%c0_281, %c0_282] : memref<10x32xbf16, #tpu.memory_space<vmem>>, vector<10x32xbf16>
    %c0_283 = arith.constant 0 : index
    %c0_284 = arith.constant 0 : index
    %926 = vector.load %arg45[%c0_283, %c0_284] : memref<10x1xf32, #tpu.memory_space<vmem>>, vector<10x1xf32>
    %927 = arith.truncf %924 : vector<32x2xf32> to vector<32x2xbf16>
    %cst_285 = arith.constant dense<0.000000e+00> : vector<10x2xf32>
    %928 = tpu.matmul %925, %927, %cst_285 {dimension_numbers = #tpu.dot_dimension_numbers<[1], [0], [0], [1], [0, 0, 1, 1], [], []>} : vector<10x32xbf16>, vector<32x2xbf16>, vector<10x2xf32> -> vector<10x2xf32>
    %929 = vector.broadcast %926 : vector<10x1xf32> to vector<10x2xf32>
    %930 = arith.addf %928, %929 : vector<10x2xf32>
    %c0_286 = arith.constant 0 : index
    %c0_287 = arith.constant 0 : index
    %931 = vector.load %arg46[%c0_286, %c0_287] : memref<10x2xf32, #tpu.memory_space<vmem>>, vector<10x2xf32>
    tpu.vector_store %arg46[%c0_286, %c0_287], %930 {strides = array<i32>} : memref<10x2xf32, #tpu.memory_space<vmem>>, vector<10x2xf32>,
    return
  }
}

</mosaic_0001>

<bundles_post_ra>
// kernel: _lambda_.1
= control target key start
LH: loop header
LB: loop body
LE: loop exit
PB: predicated region body
PF: predicated region fallthrough
CT: control target
= control target key end

     0   :  { %s9305_s6 = smov 32   ;;  %s9306_s7 = smov 33   ;;  %v15442_v6 = vmov 0   ;;  %v207_v9 = vlaneseq  ;;  %vm15440_vm4 = vcmask 269312   ;;  %vm15439_vm6 = vcmask 261120   ;;  %s15438_s0 = inlined_call_operand.smem [shape: u32[47], index: -1, kind: input, shape index: {}] }
   0x1   :  { %s9376_s5 = sld [smem:[%s15438_s0]]   ;;  %s9307_s8 = smov 31   ;;  %1486 = vmatprep.mubr.bf16.mxu0 %v15442_v6  ;;  %1527 = vmatprep.mubr.bf16.mxu1 %v15442_v6  ;;  %v15448_v23 = vmov 0.0   ;;  %vm15721_vm11 = vcmask 252928   ;;  %vm15723_vm13 = vcmask 7168   ;;  %vm15452_vm14 = vcmask 1039360  }
   0x2   :  { %s9308_s9 = smov 1   ;;  %s9309_s10 = smov 127   ;;  %9038 = vset.pattern.permute.xlu0 %v15442_v6  ;;  %9039 = vset.pattern.permute.xlu1 %v15442_v6  ;;  %v9501_v10 = vand.u32 127, %v207_v9 }
   0x3   :  { %s9310_s11 = smov 97   ;;  %s9311_s12 = smov 96  }
   0x4   :  { %s9312_s13 = smov 95   ;;  %15728 = vst [vmem:[#allocation2_spill] sm:$0xff] %v9501_v10  ;;  %v9504_v11 = vadd.s32 128, %v9501_v10  ;;  %v240_v12 = vshra.s32 %v9501_v10, 5  ;;  %v224_v14 = vand.u32 31, %v9501_v10  ;;  %v9606_v44 = vadd.s32 384, %v9501_v10  ;;  %s9896_s16 = sld [smem:[%s15438_s0 + %s9308_s9]]  }
   0x5   :  { %v9632_v52 = vadd.s32 256, %v9501_v10  ;;  %s9315_s17 = smov 2   ;;  %s9316_s21 = smov 3  }
   0x6   :  { %15729 = vst [vmem:[#allocation3_spill] sm:$0xff] %v9504_v11  ;;  %v241_v13 = vshra.s32 %v9504_v11, 5  ;;  %v9515_v15 = vand.u32 31, %v240_v12  ;;  %v225_v16 = vand.u32 31, %v9504_v11  ;;  %vm9524_vm1 = vcmp.ge.s32.totalorder %v224_v14, 1  ;;  %15742 = vst [vmem:[#allocation8_spill] sm:$0xff] %v9606_v44  ;;  %s10508_s20 = sld [smem:[%s15438_s0 + %s9315_s17]]  }
   0x7   :  { %v9379_v0 = vld [vmem:[%s9376_s5] sm:$0xff]  ;;  %v9386_v1 = vld [vmem:[%s9376_s5 + $0x8] sm:$0xff]  ;;  %v9401_v2 = vld [vmem:[%s9376_s5 + $0x10] sm:$0xff]  ;;  %vm9572_vm8 = vcmp.le.s32.totalorder %v224_v14, 30  ;;  %v9619_v48 = vsel %vm9524_vm1, 1.0, %v15448_v23  ;;  %15743 = vst [vmem:[#allocation9_spill] sm:$0xff] %v9632_v52  ;;  %s10516_s24 = sld [smem:[%s15438_s0 + %s9316_s21]]  }
   0x8   :  { %753 = vrot.lane.b32.xlu1 %v9379_v0, %s9305_s6  ;;  %672 = vrot.lane.b32.xlu0 %v9379_v0, %s9306_s7  ;;  %v9412_v3 = vld [vmem:[%s9376_s5 + $0x18] sm:$0xff]  ;;  %v9447_v4 = vld [vmem:[%s9376_s5 + $0x20] sm:$0xff]  ;;  %v9518_v17 = vand.u32 31, %v241_v13  ;;  %vm272_vm0 = vcmp.ge.s32.totalorder %v9515_v15, 1  ;;  %vm9529_vm3 = vcmp.ge.s32.totalorder %v225_v16, 1  ;;  %vm9576_vm9 = vcmp.le.s32.totalorder %v225_v16, 30 }
   0x9   :  { %v9454_v5 = vld [vmem:[%s9376_s5 + $0x28] sm:$0xff]  ;;  %v197_v7 = vld [vmem:[%s9376_s5 + $0x30] sm:$0xff]  ;;  %v9493_v8 = vld [vmem:[%s9376_s5 + $0x38] sm:$0xff]  ;;  %v9566_v29 = vsel %vm272_vm0, 1.0, %v15448_v23  ;;  %v9629_v51 = vsel %vm9529_vm3, 1.0, %v15448_v23  ;;  %v243_v55 = vshra.s32 %v9606_v44, 5 }
   0xa   :  { %vm273_vm2 = vcmp.ge.s32.totalorder %v9518_v17, 1  ;;  %vm304_vm5 = vmand %vm272_vm0, %vm9524_vm1  ;;  %v9553_v26 = vld [vmem:[%s9376_s5 + $0x40] sm:$0xff]  ;;  %15737 = vst [vmem:[#allocation7_spill] sm:$0xff] %v9566_v29  ;;  %v9597_v40 = vld [vmem:[%s9376_s5 + $0x48] sm:$0xff]  ;;  %v9651_v62 = vsel %vm9576_vm9, 1.0, %v15448_v23  ;;  %v242_v63 = vshra.s32 %v9632_v52, 5 }
   0xb   :  { %vm305_vm7 = vmand %vm273_vm2, %vm9529_vm3  ;;  %v9549_v24 = vsel %vm304_vm5, 1.0, %v15448_v23  ;;  %v9561_v28 = vsel %vm273_vm2, 1.0, %v15448_v23  ;;  %v227_v14 = vand.u32 31, %v9606_v44  ;;  %v9657_v16 = vand.u32 31, %v243_v55  ;;  %s9317_s25 = smov 4   ;;  %s9318_s29 = smov 5  }
   0xc   :  { %755 = vrot.lane.b32.xlu1 %v9386_v1, %s9305_s6  ;;  %674 = vrot.lane.b32.xlu0 %v9386_v1, %s9306_s7  ;;  %15734 = vst [vmem:[#allocation4_spill] sm:$0xff] %v9549_v24  ;;  %v9556_v27 = vsel %vm305_vm7, 1.0, %v15448_v23  ;;  %15736 = vst [vmem:[#allocation6_spill] sm:$0xff] %v9561_v28  ;;  %s8321_s28 = sld [smem:[%s15438_s0 + %s9317_s25]]   ;;  %s9319_s3 = smov 6  }
   0xd   :  { %15735 = vst [vmem:[#allocation5_spill] sm:$0xff] %v9556_v27  ;;  %vm400_vm10 = vmand %vm272_vm0, %vm9572_vm8  ;;  %vm275_vm15 = vcmp.ge.s32.totalorder %v9657_v16, 1  ;;  %vm9678_vm0 = vcmp.ge.s32.totalorder %v227_v14, 1  ;;  %s8322_s2 = sld [smem:[%s15438_s0 + %s9318_s29]]   ;;  %s9320_s15 = smov 7  }
   0xe   :  { %vm401_vm12 = vmand %vm273_vm2, %vm9576_vm9  ;;  %v9609_v45 = vsel %vm400_vm10, 1.0, %v15448_v23  ;;  %s8323_s14 = sld [smem:[%s15438_s0 + %s9319_s3]]   ;;  %s9321_s19 = smov 10  }
   0xf   :  { %v9622_v49 = vsel %vm401_vm12, 1.0, %v15448_v23  ;;  %vm307_vm2 = vmand %vm275_vm15, %vm9678_vm0  ;;  %vm513_vm12 = vcmp.le.s32.totalorder %v9518_v17, 30  ;;  %s12510_s18 = sld [smem:[%s15438_s0 + %s9320_s15]]   ;;  %s9323_s30 = smov 8  }
  0x10   :  { %836 = vrot.lane.b32.xlu1 %v9386_v1, %s9307_s8  ;;  %834 = vrot.lane.b32.xlu0 %v9379_v0, %s9307_s8  ;;  %s12748_s23 = sld [smem:[%s15438_s0 + %s9321_s19]]   ;;  %s9328_s17 = smov 112  }
  0x11   :  { %s12848_s3 = sld [smem:[%s15438_s0 + %s9323_s30]]   ;;  %s9331_s26 = smov 13  }
  0x12   :  { %s8330_s1 = sld [smem:[%s15438_s0 + %s9331_s26]]  }
  0x14   :  { %917 = vrot.lane.b32.xlu1 %v9386_v1, %s9308_s9  ;;  %915 = vrot.lane.b32.xlu0 %v9379_v0, %s9308_s9 }
  0x18   :  { %1000 = vrot.lane.b32.xlu1 %v9401_v2, %s9309_s10  ;;  %998 = vrot.lane.b32.xlu0 %v9386_v1, %s9309_s10 }
  0x1c   :  { %676 = vrot.lane.b32.xlu1 %v9401_v2, %s9306_s7  ;;  %996 = vrot.lane.b32.xlu0 %v9379_v0, %s9309_s10 }
  0x20   :  { %757 = vrot.lane.b32.xlu1 %v9401_v2, %s9305_s6  ;;  %678 = vrot.lane.b32.xlu0 %v9412_v3, %s9306_s7 }
  0x24   :  { %1079 = vrot.lane.b32.xlu1 %v9386_v1, %s9310_s11  ;;  %759 = vrot.lane.b32.xlu0 %v9412_v3, %s9305_s6 }
  0x28   :  { %1160 = vrot.lane.b32.xlu1 %v9386_v1, %s9311_s12  ;;  %1081 = vrot.lane.b32.xlu0 %v9401_v2, %s9310_s11 }
  0x2c   :  { %1077 = vrot.lane.b32.xlu1 %v9379_v0, %s9310_s11  ;;  %1162 = vrot.lane.b32.xlu0 %v9401_v2, %s9311_s12 }
  0x30   :  { %838 = vrot.lane.b32.xlu1 %v9401_v2, %s9307_s8  ;;  %1158 = vrot.lane.b32.xlu0 %v9379_v0, %s9311_s12 }
  0x34   :  { %919 = vrot.lane.b32.xlu1 %v9401_v2, %s9308_s9  ;;  %840 = vrot.lane.b32.xlu0 %v9412_v3, %s9307_s8 }
  0x38   :  { %1239 = vrot.lane.b32.xlu1 %v9379_v0, %s9312_s13  ;;  %921 = vrot.lane.b32.xlu0 %v9412_v3, %s9308_s9 }
  0x3c   :  { %1243 = vrot.lane.b32.xlu1 %v9401_v2, %s9312_s13  ;;  %1241 = vrot.lane.b32.xlu0 %v9386_v1, %s9312_s13 }
  0x40   :  { %1004 = vrot.lane.b32.xlu1 %v9447_v4, %s9309_s10  ;;  %1002 = vrot.lane.b32.xlu0 %v9412_v3, %s9309_s10 }
  0x44   :  { %682 = vrot.lane.b32.xlu1 %v9454_v5, %s9306_s7  ;;  %680 = vrot.lane.b32.xlu0 %v9447_v4, %s9306_s7 }
  0x48   :  { %763 = vrot.lane.b32.xlu1 %v9454_v5, %s9305_s6  ;;  %761 = vrot.lane.b32.xlu0 %v9447_v4, %s9305_s6 }
  0x4c   :  { %1085 = vrot.lane.b32.xlu1 %v9447_v4, %s9310_s11  ;;  %1083 = vrot.lane.b32.xlu0 %v9412_v3, %s9310_s11 }
  0x50   :  { %1166 = vrot.lane.b32.xlu1 %v9447_v4, %s9311_s12  ;;  %1164 = vrot.lane.b32.xlu0 %v9412_v3, %s9311_s12 }
  0x54   :  { %844 = vrot.lane.b32.xlu1 %v9454_v5, %s9307_s8  ;;  %842 = vrot.lane.b32.xlu0 %v9447_v4, %s9307_s8 }
  0x58   :  { %925 = vrot.lane.b32.xlu1 %v9454_v5, %s9308_s9  ;;  %923 = vrot.lane.b32.xlu0 %v9447_v4, %s9308_s9 }
  0x5c   :  { %1247 = vrot.lane.b32.xlu1 %v9447_v4, %s9312_s13  ;;  %1245 = vrot.lane.b32.xlu0 %v9412_v3, %s9312_s13 }
  0x60   :  { %1008 = vrot.lane.b32.xlu1 %v197_v7, %s9309_s10  ;;  %1006 = vrot.lane.b32.xlu0 %v9454_v5, %s9309_s10 }
  0x64   :  { %686 = vrot.lane.b32.xlu1 %v9493_v8, %s9306_s7  ;;  %684 = vrot.lane.b32.xlu0 %v197_v7, %s9306_s7 }
  0x68   :  { %767 = vrot.lane.b32.xlu1 %v9493_v8, %s9305_s6  ;;  %765 = vrot.lane.b32.xlu0 %v197_v7, %s9305_s6 }
  0x6c   :  { %1089 = vrot.lane.b32.xlu1 %v197_v7, %s9310_s11  ;;  %1087 = vrot.lane.b32.xlu0 %v9454_v5, %s9310_s11 }
  0x70   :  { %1170 = vrot.lane.b32.xlu1 %v197_v7, %s9311_s12  ;;  %1168 = vrot.lane.b32.xlu0 %v9454_v5, %s9311_s12 }
  0x74   :  { %848 = vrot.lane.b32.xlu1 %v9493_v8, %s9307_s8  ;;  %846 = vrot.lane.b32.xlu0 %v197_v7, %s9307_s8 }
  0x78   :  { %929 = vrot.lane.b32.xlu1 %v9493_v8, %s9308_s9  ;;  %927 = vrot.lane.b32.xlu0 %v197_v7, %s9308_s9 }
  0x7a   :  { %v754_v20 = vpop.permute.xlu1 %753  ;;  %v673_v21 = vpop.permute.xlu0 %672 }
  0x7b   :  { %v736_v22 = vsel %vm15440_vm4, 0.0, %v673_v21  ;;  %v817_v25 = vsel %vm15439_vm6, 0.0, %v754_v20 }
  0x7c   :  { %1251 = vrot.lane.b32.xlu1 %v197_v7, %s9312_s13  ;;  %1249 = vrot.lane.b32.xlu0 %v9454_v5, %s9312_s13  ;;  %v737_v36 = vmul.f32 %v9549_v24, %v736_v22  ;;  %v818_v39 = vmul.f32 %v9566_v29, %v817_v25  ;;  %v9669_v22 = vsel %vm9572_vm8, 1.0, %v15448_v23  ;;  %v226_v25 = vand.u32 31, %v9632_v52 }
  0x7e   :  { %v9568_v30 = vpop.permute.xlu1 %755  ;;  %v9570_v31 = vpop.permute.xlu0 %674  ;;  %v1320_v47 = vpack.c.bf16 %v818_v39, %v737_v36  ;;  %vm9695_vm7 = vcmp.ge.s32.totalorder %v226_v25, 1 }
  0x7f   :  { %v705_v34 = vsel %vm15440_vm4, %v673_v21, %v9570_v31  ;;  %v786_v35 = vsel %vm15439_vm6, %v754_v20, %v9568_v30 }
  0x80   :  { %1012 = vrot.lane.b32.xlu1 %v9553_v26, %s9309_s10  ;;  %1010 = vrot.lane.b32.xlu0 %v9493_v8, %s9309_s10  ;;  %v738_v37 = vmul.f32 %v9556_v27, %v705_v34  ;;  %v819_v38 = vmul.f32 %v9561_v28, %v786_v35  ;;  %v9672_v34 = vand.u32 31, %v242_v63 }
  0x82   :  { %v9599_v41 = vpop.permute.xlu1 %836  ;;  %v835_v42 = vpop.permute.xlu0 %834  ;;  %v1321_v43 = vpack.c.bf16 %v819_v38, %v738_v37  ;;  %vm274_vm5 = vcmp.ge.s32.totalorder %v9672_v34, 1 }
  0x83   :  { %v898_v46 = vsel %vm15721_vm11, 0.0, %v835_v42  ;;  %v867_v50 = vsel %vm15721_vm11, %v835_v42, %v9599_v41  ;;  %vm306_vm10 = vmand %vm274_vm5, %vm9695_vm7 }
  0x84   :  { %690 = vrot.lane.b32.xlu1 %v9597_v40, %s9306_s7  ;;  %688 = vrot.lane.b32.xlu0 %v9553_v26, %s9306_s7  ;;  %v899_v56 = vmul.f32 %v9609_v45, %v898_v46  ;;  %v900_v59 = vmul.f32 %v9622_v49, %v867_v50  ;;  %v9707_v50 = vsel %vm307_vm2, 1.0, %v15448_v23  ;;  %vm529_vm2 = vmand %vm513_vm12, %vm9529_vm3 }
  0x85   :  { %1454 = vmatprep.subr.bf16.mxu0 %v1321_v43  ;;  %15748 = vst [vmem:[#allocation10_spill] sm:$0xff] %v9707_v50  ;;  %v9757_v19 = vsel %vm529_vm2, 1.0, %v15448_v23  ;;  %vm9810_vm2 = vcmp.le.s32.totalorder %v226_v25, 30  ;;  %v9833_v25 = vsel %vm9695_vm7, 1.0, %v15448_v23 }
  0x86   :  { %1455 = vmatpush1.bf16.msra.mxu0 %v1320_v47  ;;  %v9634_v53 = vpop.permute.xlu1 %917  ;;  %v916_v54 = vpop.permute.xlu0 %915  ;;  %15752 = vst [vmem:[#allocation14_spill] sm:$0xff] %v9757_v19  ;;  %15760 = vst [vmem:[#allocation18_spill] sm:$0xff] %v9833_v25 }
  0x87   :  { %v948_v57 = vsel %vm15723_vm13, %v916_v54, %v9634_v53  ;;  %v979_v58 = vsel %vm15723_vm13, 0.0, %v916_v54 }
  0x88   :  { %v980_v60 = vmul.f32 %v9619_v48, %v979_v58  ;;  %v981_v61 = vmul.f32 %v9629_v51, %v948_v57  ;;  %771 = vrot.lane.b32.xlu1 %v9597_v40, %s9305_s6  ;;  %769 = vrot.lane.b32.xlu0 %v9553_v26, %s9305_s6 }
  0x8a   :  { %v9654_v7 = vpop.permute.xlu1 %1000  ;;  %v999_v9 = vpop.permute.xlu0 %998  ;;  %v1337_v12 = vpack.c.bf16 %v981_v61, %v900_v59  ;;  %v1336_v13 = vpack.c.bf16 %v980_v60, %v899_v56  ;;  %v9725_v56 = vsel %vm274_vm5, 1.0, %v15448_v23  ;;  %v9735_v60 = vsel %vm306_vm10, 1.0, %v15448_v23 }
  0x8b   :  { %v1030_v20 = vsel %vm15452_vm14, %v999_v9, %v9654_v7  ;;  %15750 = vst [vmem:[#allocation12_spill] sm:$0xff] %v9725_v56  ;;  %15751 = vst [vmem:[#allocation13_spill] sm:$0xff] %v9735_v60  ;;  %vm15532_vm10 = vcmask 793600  }
  0x8c   :  { %v1062_v21 = vmul.f32 %v9651_v62, %v1030_v20  ;;  %1093 = vrot.lane.b32.xlu1 %v9553_v26, %s9310_s11  ;;  %1091 = vrot.lane.b32.xlu0 %v9493_v8, %s9310_s11 }
  0x8d   :  { %1456 = vmatprep.subr.bf16.mxu0 %v1337_v12 }
  0x8e   :  { %1457 = vmatpush1.bf16.msra.mxu0 %v1336_v13  ;;  %v677_v35 = vpop.permute.xlu1 %676  ;;  %v997_v36 = vpop.permute.xlu0 %996  ;;  %v1353_v37 = vpack.c.bf16 %v1062_v21, %v9386_v1 }
  0x8f   :  { %v1029_v39 = vsel %vm15452_vm14, %v997_v36, %v999_v9  ;;  %v9764_v36 = vsel %vm513_vm12, 1.0, %v15448_v23 }
  0x90   :  { %v1061_v42 = vmul.f32 %v9669_v22, %v1029_v39  ;;  %1174 = vrot.lane.b32.xlu1 %v9553_v26, %s9311_s12  ;;  %1172 = vrot.lane.b32.xlu0 %v9493_v8, %s9311_s12  ;;  %15753 = vst [vmem:[#allocation15_spill] sm:$0xff] %v9764_v36 }
  0x91   :  { %1458 = vmatprep.subr.bf16.mxu0 %v1353_v37  ;;  %v9767_v37 = vld [vmem:[%s9376_s5 + $0x50] sm:$0xff] }
  0x92   :  { %v758_v43 = vpop.permute.xlu1 %757  ;;  %v9699_v46 = vpop.permute.xlu0 %678  ;;  %v1352_v47 = vpack.c.bf16 %v1061_v42, %v9379_v0  ;;  %v9718_v0 = vsel %vm275_vm15, 1.0, %v15448_v23 }
  0x93   :  { %v787_v54 = vsel %vm15439_vm6, %v9568_v30, %v758_v43  ;;  %15749 = vst [vmem:[#allocation11_spill] sm:$0xff] %v9718_v0  ;;  %v707_v55 = vsel %vm15440_vm4, %v677_v35, %v9699_v46  ;;  %v706_v30 = vsel %vm15440_vm4, %v9570_v31, %v677_v35  ;;  %vm15441_vm4 = vcmask 785408  }
  0x94   :  { %852 = vrot.lane.b32.xlu1 %v9597_v40, %s9307_s8  ;;  %850 = vrot.lane.b32.xlu0 %v9553_v26, %s9307_s8  ;;  %v740_v61 = vmul.f32 %v9707_v50, %v707_v55  ;;  %v820_v31 = vmul.f32 %v9725_v56, %v787_v54  ;;  %v739_v20 = vmul.f32 %v9735_v60, %v706_v30  ;;  %v9793_v55 = vld [vmem:[%s9376_s5 + $0x58] sm:$0xff] }
  0x95   :  { %1459 = vmatpush1.bf16.msra.mxu0 %v1352_v47 }
  0x96   :  { %v1080_v57 = vpop.permute.xlu1 %1079  ;;  %v9727_v58 = vpop.permute.xlu0 %759  ;;  %v1322_v21 = vpack.c.bf16 %v820_v31, %v739_v20 }
  0x97   :  { %v788_v59 = vsel %vm15439_vm6, %v758_v43, %v9727_v58  ;;  %vm512_vm6 = vcmp.le.s32.totalorder %v9515_v15, 30 }
  0x98   :  { %933 = vrot.lane.b32.xlu1 %v9597_v40, %s9308_s9  ;;  %931 = vrot.lane.b32.xlu0 %v9553_v26, %s9308_s9  ;;  %v821_v63 = vmul.f32 %v9718_v0, %v788_v59  ;;  %vm528_vm3 = vmand %vm512_vm6, %vm9524_vm1  ;;  %v9790_v54 = vsel %vm512_vm6, 1.0, %v15448_v23  ;;  %vm9797_vm1 = vcmp.le.s32.totalorder %v227_v14, 30  ;;  %v9819_v14 = vadd.s32 512, %v9501_v10 }
  0x99   :  { %v9784_v18 = vsel %vm528_vm3, 1.0, %v15448_v23  ;;  %15755 = vst [vmem:[#allocation17_spill] sm:$0xff] %v9790_v54  ;;  %vm403_vm3 = vmand %vm275_vm15, %vm9797_vm1 }
  0x9a   :  { %v1161_v9 = vpop.permute.xlu1 %1160  ;;  %v9748_v12 = vpop.permute.xlu0 %1081  ;;  %v1323_v13 = vpack.c.bf16 %v821_v63, %v740_v61  ;;  %15754 = vst [vmem:[#allocation16_spill] sm:$0xff] %v9784_v18  ;;  %vm609_vm15 = vmand %vm513_vm12, %vm9576_vm9 }
  0x9b   :  { %v1111_v35 = vsel %vm15532_vm10, %v1080_v57, %v9748_v12  ;;  %v9878_v15 = vsel %vm609_vm15, 1.0, %v15448_v23 }
  0x9c   :  { %1255 = vrot.lane.b32.xlu1 %v9553_v26, %s9312_s13  ;;  %1253 = vrot.lane.b32.xlu0 %v9493_v8, %s9312_s13  ;;  %v1143_v42 = vmul.f32 %v9757_v19, %v1111_v35 }
  0x9d   :  { %1495 = vmatprep.subr.bf16.mxu1 %v1323_v13 }
  0x9e   :  { %1496 = vmatpush1.bf16.msra.mxu1 %v1322_v21  ;;  %v1078_v8 = vpop.permute.xlu1 %1077  ;;  %v9773_v26 = vpop.permute.xlu0 %1162 }
  0x9f   :  { %v1192_v39 = vsel %vm15441_vm4, %v1161_v9, %v9773_v26  ;;  %v1110_v47 = vsel %vm15532_vm10, %v1078_v8, %v1080_v57  ;;  %v9824_v8 = vadd.s32 640, %v9501_v10 }
  0xa0   :  { %v1224_v43 = vmul.f32 %v9764_v36, %v1192_v39  ;;  %1016 = vrot.lane.b32.xlu1 %v9767_v37, %s9309_s10  ;;  %1014 = vrot.lane.b32.xlu0 %v9597_v40, %s9309_s10  ;;  %v1142_v57 = vmul.f32 %v9784_v18, %v1110_v47  ;;  %v9836_v39 = vsel %vm403_vm3, 1.0, %v15448_v23  ;;  %v9849_v47 = vsel %vm9678_vm0, 1.0, %v15448_v23 }
  0xa1   :  { %15761 = vst [vmem:[#allocation19_spill] sm:$0xff] %v9836_v39  ;;  %15762 = vst [vmem:[#allocation20_spill] sm:$0xff] %v9849_v47  ;;  %v15453_v52 = vand.u32 31, %v9824_v8 }
  0xa2   :  { %v839_v30 = vpop.permute.xlu1 %838  ;;  %v1159_v59 = vpop.permute.xlu0 %1158  ;;  %v1369_v61 = vpack.c.bf16 %v1224_v43, %v1143_v42 }
  0xa3   :  { %v1191_v31 = vsel %vm15441_vm4, %v1159_v59, %v1161_v9  ;;  %vm402_vm4 = vmand %vm274_vm5, %vm9810_vm2  ;;  %v244_v59 = vshra.s32 %v9819_v14, 5  ;;  %v868_v33 = vsel %vm15721_vm11, %v9599_v41, %v839_v30  ;;  %vm9929_vm3 = vcmp.ge.s32.totalorder %v15453_v52, 1 }
  0xa4   :  { %v1223_v13 = vmul.f32 %v9790_v54, %v1191_v31  ;;  %694 = vrot.lane.b32.xlu1 %v9793_v55, %s9306_s7  ;;  %692 = vrot.lane.b32.xlu0 %v9767_v37, %s9306_s7  ;;  %vm608_vm5 = vmand %vm512_vm6, %vm9572_vm8  ;;  %vm15456_vm6 = vcmask 1043456   ;;  %v15771_v52 = vmov 0.0  }
  0xa5   :  { %1460 = vmatprep.subr.bf16.mxu0 %v1369_v61  ;;  %v9881_v41 = vsel %vm608_vm5, 1.0, %v15448_v23 }
  0xa6   :  { %v920_v9 = vpop.permute.xlu1 %919  ;;  %v9821_v21 = vpop.permute.xlu0 %840  ;;  %v1368_v35 = vpack.c.bf16 %v1223_v13, %v1142_v57  ;;  %v9864_v57 = vsel %vm402_vm4, 1.0, %v15448_v23  ;;  %vm15459_vm4 = vcmask 777216  }
  0xa7   :  { %v949_v42 = vsel %vm15723_vm13, %v9634_v53, %v920_v9  ;;  %v869_v43 = vsel %vm15721_vm11, %v839_v30, %v9821_v21  ;;  %v245_v53 = vshra.s32 %v9824_v8, 5  ;;  %15763 = vst [vmem:[#allocation21_spill] sm:$0xff] %v9864_v57 }
  0xa8   :  { %775 = vrot.lane.b32.xlu1 %v9793_v55, %s9305_s6  ;;  %773 = vrot.lane.b32.xlu0 %v9767_v37, %s9305_s6  ;;  %v982_v13 = vmul.f32 %v9833_v25, %v949_v42  ;;  %v901_v42 = vmul.f32 %v9864_v57, %v868_v33 }
  0xa9   :  { %1461 = vmatpush1.bf16.msra.mxu0 %v1368_v35  ;;  %v902_v35 = vmul.f32 %v9836_v39, %v869_v43  ;;  %v9890_v44 = vand.u32 31, %v245_v53 }
  0xaa   :  { %v1240_v61 = vpop.permute.xlu1 %1239  ;;  %v9856_v31 = vpop.permute.xlu0 %921  ;;  %v1338_v53 = vpack.c.bf16 %v982_v13, %v901_v42 }
  0xab   :  { %v950_v17 = vsel %vm15723_vm13, %v920_v9, %v9856_v31  ;;  %v9884_v9 = vand.u32 31, %v244_v59  ;;  %vm277_vm12 = vcmp.ge.s32.totalorder %v9890_v44, 1 }
  0xac   :  { %v983_v32 = vmul.f32 %v9849_v47, %v950_v17  ;;  %1097 = vrot.lane.b32.xlu1 %v9767_v37, %s9310_s11  ;;  %1095 = vrot.lane.b32.xlu0 %v9597_v40, %s9310_s11  ;;  %vm309_vm5 = vmand %vm277_vm12, %vm9929_vm3 }
  0xad   :  { %vm276_vm8 = vcmp.ge.s32.totalorder %v9884_v9, 1 }
  0xae   :  { %v9887_v43 = vpop.permute.xlu1 %1243  ;;  %v1242_v17 = vpop.permute.xlu0 %1241  ;;  %v1339_v6 = vpack.c.bf16 %v983_v32, %v902_v35  ;;  %v9909_v35 = vsel %vm9810_vm2, 1.0, %v15448_v23 }
  0xaf   :  { %v1272_v30 = vsel %vm15459_vm4, %v1240_v61, %v1242_v17  ;;  %v1273_v59 = vsel %vm15459_vm4, %v1242_v17, %v9887_v43  ;;  %15764 = vst [vmem:[#allocation22_spill] sm:$0xff] %v9909_v35  ;;  %v9915_v61 = vsel %vm9797_vm1, 1.0, %v15448_v23  ;;  %v15766_v17 = vand.u32 31, %v9819_v14 }
  0xb0   :  { %v1305_v33 = vmul.f32 %v9878_v15, %v1273_v59  ;;  %1178 = vrot.lane.b32.xlu1 %v9767_v37, %s9311_s12  ;;  %1176 = vrot.lane.b32.xlu0 %v9597_v40, %s9311_s12  ;;  %v1304_v32 = vmul.f32 %v9881_v41, %v1272_v30  ;;  %15765 = vst [vmem:[#allocation23_spill] sm:$0xff] %v9915_v61 }
  0xb1   :  { %1497 = vmatprep.subr.bf16.mxu1 %v1339_v6  ;;  %vm9920_vm9 = vcmp.ge.s32.totalorder %v15766_v17, 1 }
  0xb2   :  { %v1385_v42 = vpack.c.bf16 %v1305_v33, %v1305_v33  ;;  %1498 = vmatpush1.bf16.msra.mxu1 %v1338_v53  ;;  %v9924_v59 = vpop.permute.xlu1 %1004  ;;  %v1003_v30 = vpop.permute.xlu0 %1002  ;;  %v1384_v6 = vpack.c.bf16 %v1304_v32, %v1304_v32  ;;  %vm308_vm15 = vmand %vm276_vm8, %vm9920_vm9 }
  0xb3   :  { %v1031_v17 = vsel %vm15452_vm14, %v9654_v7, %v1003_v30  ;;  %v1032_v33 = vsel %vm15452_vm14, %v1003_v30, %v9924_v59  ;;  %vm15561_vm14 = vcmask 588800  }
  0xb4   :  { %v1063_v53 = vmul.f32 %v9909_v35, %v1031_v17  ;;  %v1064_v11 = vmul.f32 %v9915_v61, %v1032_v33  ;;  %856 = vrot.lane.b32.xlu1 %v9793_v55, %s9307_s8  ;;  %854 = vrot.lane.b32.xlu0 %v9767_v37, %s9307_s8  ;;  %v1407_v32 = vsel %vm15456_vm6, %v1384_v6, 0  ;;  %v9958_v33 = vld [vmem:[%s9896_s16] sm:$0xf]  ;;  %v9961_v61 = vsel %vm308_vm15, 1.0, %v15771_v52 }
  0xb5   :  { %8492 = vmatprep.subr.msk.bf16.mxu0 %vm15456_vm6, %v1385_v42  ;;  %15772 = vst [vmem:[#allocation24_spill] sm:$0xff] %v9961_v61  ;;  %v9964_v42 = vsel %vm309_vm5, 1.0, %v15771_v52  ;;  %vm15774_vm6 = vcmask 269312   ;;  %vm15779_vm15 = vcmask 261120  }
  0xb6   :  { %1463 = vmatpush1.bf16.msra.mxu0 %v1407_v32  ;;  %v9953_v7 = vpop.permute.xlu1 %682  ;;  %v681_v30 = vpop.permute.xlu0 %680  ;;  %v1355_v17 = vpack.c.bf16 %v1064_v11, %v9412_v3  ;;  %v1354_v6 = vpack.c.bf16 %v1063_v53, %v9401_v2  ;;  %15773 = vst [vmem:[#allocation25_spill] sm:$0xff] %v9964_v42  ;;  %vm15775_vm4 = vmmov %vm15774_vm6  ;;  %v9977_v3 = vsel %vm276_vm8, 1.0, %v15771_v52  ;;  %v9982_v11 = vsel %vm277_vm12, 1.0, %v15771_v52 }
  0xb7   :  { %v708_v35 = vsel %vm15774_vm6, %v9699_v46, %v681_v30  ;;  %v709_v2 = vsel %vm15775_vm4, %v681_v30, %v9953_v7  ;;  %15776 = vst [vmem:[#allocation26_spill] sm:$0xff] %v9977_v3  ;;  %15777 = vst [vmem:[#allocation27_spill] sm:$0xff] %v9982_v11  ;;  %vm514_vm6 = vcmp.le.s32.totalorder %v9672_v34, 30  ;;  %vm515_vm4 = vcmp.le.s32.totalorder %v9657_v16, 30 }
  0xb8   :  { %937 = vrot.lane.b32.xlu1 %v9793_v55, %s9308_s9  ;;  %935 = vrot.lane.b32.xlu0 %v9767_v37, %s9308_s9  ;;  %v15778_v32 = vmov 0   ;;  %v741_v30 = vmul.f32 %v9961_v61, %v708_v35  ;;  %vm15780_vm5 = vmmov %vm15779_vm15  ;;  %v742_v54 = vmul.f32 %v9964_v42, %v709_v2 }
  0xb9   :  { %1499 = vmatprep.subr.bf16.mxu1 %v1355_v17  ;;  %8493 = vmatmul.mubr.msk.bf16.vlgmr.msra.gmra.mrb[0].mxu0 %vm15561_vm14, %v9958_v33 }
  0xba   :  { %1500 = vmatpush1.bf16.msra.mxu1 %v1354_v6  ;;  %v9987_v46 = vpop.permute.xlu1 %763  ;;  %v762_v53 = vpop.permute.xlu0 %761  ;;  %1568 = vmatprep.mubr.bf16.mxu0 %v15778_v32 }
  0xbb   :  { %v789_v17 = vsel %vm15779_vm15, %v9727_v58, %v762_v53  ;;  %v790_v36 = vsel %vm15780_vm5, %v762_v53, %v9987_v46  ;;  %vm530_vm15 = vmand %vm514_vm6, %vm9695_vm7  ;;  %v10012_v58 = vld [vmem:[%s9376_s5 + $0x60] sm:$0xff]  ;;  %v10038_v53 = vsel %vm515_vm4, 1.0, %v15771_v52 }
  0xbc   :  { %v822_v19 = vmul.f32 %v9977_v3, %v789_v17  ;;  %v823_v6 = vmul.f32 %v9982_v11, %v790_v36  ;;  %1259 = vrot.lane.b32.xlu1 %v9767_v37, %s9312_s13  ;;  %1257 = vrot.lane.b32.xlu0 %v9597_v40, %s9312_s13  ;;  %vm531_vm5 = vmand %vm515_vm4, %vm9678_vm0  ;;  %v10017_v40 = vsel %vm530_vm15, 1.0, %v15771_v52  ;;  %15784 = vst [vmem:[#allocation31_spill] sm:$0xff] %v10038_v53  ;;  %vm15791_vm15 = vcmask 785408  }
  0xbd   :  { %15781 = vst [vmem:[#allocation28_spill] sm:$0xff] %v10017_v40  ;;  %v10020_v1 = vsel %vm531_vm5, 1.0, %v15771_v52  ;;  %vm15792_vm5 = vmmov %vm15791_vm15 }
  0xbe   :  { %v1324_v36 = vpack.c.bf16 %v822_v19, %v741_v30  ;;  %v10014_v35 = vpop.permute.xlu1 %1085  ;;  %v1084_v37 = vpop.permute.xlu0 %1083  ;;  %v1325_v2 = vpack.c.bf16 %v823_v6, %v742_v54  ;;  %15782 = vst [vmem:[#allocation29_spill] sm:$0xff] %v10020_v1  ;;  %v10033_v54 = vsel %vm514_vm6, 1.0, %v15771_v52  ;;  %v15785_v30 = vand.u32 31, %v9819_v14 }
  0xbf   :  { %v1112_v38 = vsel %vm15532_vm10, %v9748_v12, %v1084_v37  ;;  %v1113_v19 = vsel %vm15532_vm10, %v1084_v37, %v10014_v35  ;;  %15783 = vst [vmem:[#allocation30_spill] sm:$0xff] %v10033_v54  ;;  %v10041_v12 = vld [vmem:[%s9376_s5 + $0x68] sm:$0xff] }
  0xc0   :  { %1020 = vrot.lane.b32.xlu1 %v10012_v58, %s9309_s10  ;;  %1018 = vrot.lane.b32.xlu0 %v9793_v55, %s9309_s10  ;;  %vm10045_vm0 = vcmp.le.s32.totalorder %v15785_v30, 30  ;;  %v1144_v11 = vmul.f32 %v10017_v40, %v1112_v38  ;;  %v1145_v30 = vmul.f32 %v10020_v1, %v1113_v19 }
  0xc1   :  { %1536 = vmatprep.subr.bf16.mxu0 %v1325_v2  ;;  %v15788_v2 = vand.u32 31, %v9824_v8 }
  0xc2   :  { %1537 = vmatpush1.bf16.msra.mxu0 %v1324_v36  ;;  %v10049_v6 = vpop.permute.xlu1 %1166  ;;  %v1165_v37 = vpop.permute.xlu0 %1164 }
  0xc3   :  { %vm10053_vm7 = vcmp.le.s32.totalorder %v15788_v2, 30  ;;  %v1193_v42 = vsel %vm15791_vm15, %v9773_v26, %v1165_v37  ;;  %v1194_v14 = vsel %vm15792_vm5, %v1165_v37, %v10049_v6  ;;  %vm404_vm15 = vmand %vm276_vm8, %vm10045_vm0  ;;  %v10078_v26 = vadd.s32 896, %v9501_v10 }
  0xc4   :  { %v1225_v36 = vmul.f32 %v10033_v54, %v1193_v42  ;;  %v1226_v3 = vmul.f32 %v10038_v53, %v1194_v14  ;;  %698 = vrot.lane.b32.xlu1 %v10041_v12, %s9306_s7  ;;  %696 = vrot.lane.b32.xlu0 %v10012_v58, %s9306_s7  ;;  %vm405_vm5 = vmand %vm277_vm12, %vm10053_vm7  ;;  %v10083_v37 = vadd.s32 768, %v9501_v10  ;;  %v10086_v2 = vsel %vm404_vm15, 1.0, %v15771_v52 }
  0xc5   :  { %15793 = vst [vmem:[#allocation32_spill] sm:$0xff] %v10086_v2  ;;  %v10089_v14 = vsel %vm405_vm5, 1.0, %v15771_v52  ;;  %vm611_vm8 = vmand %vm515_vm4, %vm9797_vm1  ;;  %vm15799_vm1 = vcmask 777216  }
  0xc6   :  { %v10080_v8 = vpop.permute.xlu1 %844  ;;  %v843_v42 = vpop.permute.xlu0 %842  ;;  %v1371_v38 = vpack.c.bf16 %v1226_v3, %v1145_v30  ;;  %v1370_v19 = vpack.c.bf16 %v1225_v36, %v1144_v11  ;;  %15794 = vst [vmem:[#allocation33_spill] sm:$0xff] %v10089_v14  ;;  %v10102_v11 = vsel %vm9920_vm9, 1.0, %v15771_v52  ;;  %v10107_v30 = vsel %vm9929_vm3, 1.0, %v15771_v52  ;;  %vm610_vm12 = vmand %vm514_vm6, %vm9810_vm2 }
  0xc7   :  { %v870_v40 = vsel %vm15721_vm11, %v9821_v21, %v843_v42  ;;  %v871_v3 = vsel %vm15721_vm11, %v843_v42, %v10080_v8  ;;  %15795 = vst [vmem:[#allocation34_spill] sm:$0xff] %v10102_v11  ;;  %15796 = vst [vmem:[#allocation35_spill] sm:$0xff] %v10107_v30  ;;  %v247_v21 = vshra.s32 %v10078_v26, 5  ;;  %v10134_v34 = vsel %vm611_vm8, 1.0, %v15771_v52 }
  0xc8   :  { %779 = vrot.lane.b32.xlu1 %v10041_v12, %s9305_s6  ;;  %777 = vrot.lane.b32.xlu0 %v10012_v58, %s9305_s6  ;;  %v903_v53 = vmul.f32 %v10086_v2, %v870_v40  ;;  %15797 = vst [vmem:[#allocation36_spill] sm:$0xff] %v10134_v34  ;;  %v10137_v20 = vsel %vm610_vm12, 1.0, %v15771_v52  ;;  %v15492_v2 = vand.u32 31, %v10083_v37  ;;  %vm15800_vm2 = vmmov %vm15799_vm1  ;;  %vm15807_vm8 = vcmask 1039360  }
  0xc9   :  { %1501 = vmatprep.subr.bf16.mxu1 %v1371_v38  ;;  %v246_v38 = vshra.s32 %v10083_v37, 5  ;;  %15798 = vst [vmem:[#allocation37_spill] sm:$0xff] %v10137_v20  ;;  %v10140_v40 = vand.u32 31, %v247_v21  ;;  %vm15808_vm12 = vmmov %vm15807_vm8 }
  0xca   :  { %1502 = vmatpush1.bf16.msra.mxu1 %v1370_v19  ;;  %v10114_v36 = vpop.permute.xlu1 %925  ;;  %v924_v42 = vpop.permute.xlu0 %923  ;;  %v904_v19 = vmul.f32 %v10089_v14, %v871_v3  ;;  %vm10179_vm5 = vcmp.ge.s32.totalorder %v15492_v2, 1 }
  0xcb   :  { %v951_v63 = vsel %vm15723_vm13, %v9856_v31, %v924_v42  ;;  %v952_v16 = vsel %vm15723_vm13, %v924_v42, %v10114_v36  ;;  %v15493_v31 = vand.u32 31, %v10078_v26  ;;  %vm279_vm6 = vcmp.ge.s32.totalorder %v10140_v40, 1 }
  0xcc   :  { %v984_v1 = vmul.f32 %v10102_v11, %v951_v63  ;;  %v985_v54 = vmul.f32 %v10107_v30, %v952_v16  ;;  %1101 = vrot.lane.b32.xlu1 %v10012_v58, %s9310_s11  ;;  %1099 = vrot.lane.b32.xlu0 %v9793_v55, %s9310_s11  ;;  %v10145_v30 = vand.u32 31, %v246_v38 }
  0xcd   :  { %vm10170_vm4 = vcmp.ge.s32.totalorder %v15493_v31, 1 }
  0xce   :  { %v1340_v3 = vpack.c.bf16 %v984_v1, %v903_v53  ;;  %v10142_v42 = vpop.permute.xlu1 %1247  ;;  %v1246_v63 = vpop.permute.xlu0 %1245  ;;  %v1341_v16 = vpack.c.bf16 %v985_v54, %v904_v19  ;;  %v10160_v54 = vsel %vm10045_vm0, 1.0, %v15771_v52  ;;  %vm278_vm15 = vcmp.ge.s32.totalorder %v10145_v30, 1 }
  0xcf   :  { %v1274_v14 = vsel %vm15799_vm1, %v9887_v43, %v1246_v63  ;;  %v1275_v11 = vsel %vm15800_vm2, %v1246_v63, %v10142_v42  ;;  %15801 = vst [vmem:[#allocation38_spill] sm:$0xff] %v10160_v54  ;;  %v10165_v43 = vsel %vm10053_vm7, 1.0, %v15771_v52  ;;  %vm15809_vm1 = vcmask 1043456   ;;  %vm311_vm2 = vmand %vm279_vm6, %vm10170_vm4 }
  0xd0   :  { %v1307_v18 = vmul.f32 %v10134_v34, %v1275_v11  ;;  %1182 = vrot.lane.b32.xlu1 %v10012_v58, %s9311_s12  ;;  %1180 = vrot.lane.b32.xlu0 %v9793_v55, %s9311_s12  ;;  %v1306_v1 = vmul.f32 %v10137_v20, %v1274_v14  ;;  %15802 = vst [vmem:[#allocation39_spill] sm:$0xff] %v10165_v43 }
  0xd1   :  { %1538 = vmatprep.subr.bf16.mxu0 %v1341_v16 }
  0xd2   :  { %v1387_v14 = vpack.c.bf16 %v1307_v18, %v1307_v18  ;;  %1539 = vmatpush1.bf16.msra.mxu0 %v1340_v3  ;;  %v10174_v11 = vpop.permute.xlu1 %1008  ;;  %v1007_v21 = vpop.permute.xlu0 %1006  ;;  %v1386_v38 = vpack.c.bf16 %v1306_v1, %v1306_v1 }
  0xd3   :  { %v1033_v63 = vsel %vm15807_vm8, %v9924_v59, %v1007_v21  ;;  %v1034_v16 = vsel %vm15808_vm12, %v1007_v21, %v10174_v11  ;;  %vm15810_vm8 = vmmov %vm15809_vm1 }
  0xd4   :  { %v1065_v18 = vmul.f32 %v10160_v54, %v1033_v63  ;;  %v1066_v3 = vmul.f32 %v10165_v43, %v1034_v16  ;;  %860 = vrot.lane.b32.xlu1 %v10041_v12, %s9307_s8  ;;  %858 = vrot.lane.b32.xlu0 %v10012_v58, %s9307_s8  ;;  %v1413_v1 = vsel %vm15809_vm1, %v1386_v38, 0  ;;  %vm310_vm12 = vmand %vm278_vm15, %vm10179_vm5  ;;  %v10208_v16 = vsel %vm311_vm2, 1.0, %v15771_v52 }
  0xd5   :  { %8494 = vmatprep.subr.msk.bf16.mxu1 %vm15810_vm8, %v1387_v14  ;;  %15811 = vst [vmem:[#allocation40_spill] sm:$0xff] %v10208_v16  ;;  %vm15812_vm1 = vcmask 269312   ;;  %v10213_v14 = vsel %vm310_vm12, 1.0, %v15771_v52  ;;  %vm517_vm2 = vcmp.le.s32.totalorder %v9890_v44, 30  ;;  %vm516_vm12 = vcmp.le.s32.totalorder %v9884_v9, 30 }
  0xd6   :  { %v1356_v59 = vpack.c.bf16 %v1065_v18, %v9447_v4  ;;  %1504 = vmatpush1.bf16.msra.mxu1 %v1413_v1  ;;  %v10204_v21 = vpop.permute.xlu1 %686  ;;  %v685_v63 = vpop.permute.xlu0 %684  ;;  %v1357_v38 = vpack.c.bf16 %v1066_v3, %v9454_v5  ;;  %15813 = vst [vmem:[#allocation41_spill] sm:$0xff] %v10213_v14  ;;  %vm15814_vm8 = vmmov %vm15812_vm1  ;;  %v10226_v5 = vsel %vm278_vm15, 1.0, %v15771_v52  ;;  %v10231_v18 = vsel %vm279_vm6, 1.0, %v15771_v52 }
  0xd7   :  { %v711_v2 = vsel %vm15812_vm1, %v685_v63, %v10204_v21  ;;  %v710_v4 = vsel %vm15814_vm8, %v9953_v7, %v685_v63  ;;  %15815 = vst [vmem:[#allocation42_spill] sm:$0xff] %v10226_v5  ;;  %15816 = vst [vmem:[#allocation43_spill] sm:$0xff] %v10231_v18  ;;  %vm15817_vm1 = vcmask 261120  }
  0xd8   :  { %941 = vrot.lane.b32.xlu1 %v10041_v12, %s9308_s9  ;;  %939 = vrot.lane.b32.xlu0 %v10012_v58, %s9308_s9  ;;  %v744_v3 = vmul.f32 %v10208_v16, %v711_v2  ;;  %vm15818_vm8 = vmmov %vm15817_vm1  ;;  %v743_v31 = vmul.f32 %v10213_v14, %v710_v4 }
  0xd9   :  { %8495 = vmatmul.mubr.msk.bf16.vlgmr.msra.gmra.mrb[0].mxu1 %vm15561_vm14, %v9958_v33  ;;  %1540 = vmatprep.subr.bf16.mxu0 %v1357_v38 }
  0xda   :  { %1541 = vmatpush1.bf16.msra.mxu0 %v1356_v59  ;;  %v10235_v7 = vpop.permute.xlu1 %767  ;;  %v766_v1 = vpop.permute.xlu0 %765  ;;  %1609 = vmatprep.mubr.bf16.mxu1 %v15778_v32 }
  0xdb   :  { %v791_v63 = vsel %vm15817_vm1, %v9987_v46, %v766_v1  ;;  %v792_v38 = vsel %vm15818_vm8, %v766_v1, %v10235_v7  ;;  %vm533_vm1 = vmand %vm517_vm2, %vm9929_vm3  ;;  %v10259_v46 = vld [vmem:[%s9376_s5 + $0x70] sm:$0xff] }
  0xdc   :  { %v824_v54 = vmul.f32 %v10226_v5, %v791_v63  ;;  %v825_v2 = vmul.f32 %v10231_v18, %v792_v38  ;;  %1263 = vrot.lane.b32.xlu1 %v10012_v58, %s9312_s13  ;;  %1261 = vrot.lane.b32.xlu0 %v9793_v55, %s9312_s13  ;;  %vm532_vm8 = vmand %vm516_vm12, %vm9920_vm9  ;;  %v10264_v63 = vsel %vm533_vm1, 1.0, %v15771_v52  ;;  %vm15829_vm1 = vcmask 785408  }
  0xdd   :  { %15819 = vst [vmem:[#allocation44_spill] sm:$0xff] %v10264_v63  ;;  %v10269_v55 = vsel %vm532_vm8, 1.0, %v15771_v52  ;;  %vm15830_vm8 = vmmov %vm15829_vm1 }
  0xde   :  { %v1326_v59 = vpack.c.bf16 %v824_v54, %v743_v31  ;;  %v10261_v4 = vpop.permute.xlu1 %1089  ;;  %v1088_v1 = vpop.permute.xlu0 %1087  ;;  %v1327_v58 = vpack.c.bf16 %v825_v2, %v744_v3  ;;  %15820 = vst [vmem:[#allocation45_spill] sm:$0xff] %v10269_v55  ;;  %v10280_v31 = vsel %vm516_vm12, 1.0, %v15771_v52  ;;  %v10285_v54 = vsel %vm517_vm2, 1.0, %v15771_v52 }
  0xdf   :  { %v1115_v23 = vsel %vm15532_vm10, %v1088_v1, %v10261_v4  ;;  %v1114_v13 = vsel %vm15532_vm10, %v10014_v35, %v1088_v1  ;;  %15821 = vst [vmem:[#allocation46_spill] sm:$0xff] %v10280_v31  ;;  %15822 = vst [vmem:[#allocation47_spill] sm:$0xff] %v10285_v54  ;;  %v15823_v3 = vand.u32 31, %v10078_v26 }
  0xe0   :  { %1024 = vrot.lane.b32.xlu1 %v10259_v46, %s9309_s10  ;;  %1022 = vrot.lane.b32.xlu0 %v10041_v12, %s9309_s10  ;;  %v1147_v2 = vmul.f32 %v10264_v63, %v1115_v23 }
  0xe1   :  { %1577 = vmatprep.subr.bf16.mxu1 %v1327_v58  ;;  %vm10289_vm9 = vcmp.le.s32.totalorder %v15823_v3, 30  ;;  %v15826_v58 = vand.u32 31, %v10083_v37  ;;  %v1146_v3 = vmul.f32 %v10269_v55, %v1114_v13 }
  0xe2   :  { %1578 = vmatpush1.bf16.msra.mxu1 %v1326_v59  ;;  %v10294_v35 = vpop.permute.xlu1 %1170  ;;  %v1169_v1 = vpop.permute.xlu0 %1168 }
  0xe3   :  { %vm10298_vm3 = vcmp.le.s32.totalorder %v15826_v58, 30  ;;  %v1195_v18 = vsel %vm15829_vm1, %v10049_v6, %v1169_v1  ;;  %v1196_v26 = vsel %vm15830_vm8, %v1169_v1, %v10294_v35  ;;  %vm407_vm1 = vmand %vm279_vm6, %vm10289_vm9  ;;  %v10322_v6 = vadd.s32 1152, %v9501_v10 }
  0xe4   :  { %v1227_v23 = vmul.f32 %v10280_v31, %v1195_v18  ;;  %v1228_v59 = vmul.f32 %v10285_v54, %v1196_v26  ;;  %1105 = vrot.lane.b32.xlu1 %v10259_v46, %s9310_s11  ;;  %1103 = vrot.lane.b32.xlu0 %v10041_v12, %s9310_s11  ;;  %vm406_vm8 = vmand %vm278_vm15, %vm10298_vm3  ;;  %v10327_v58 = vadd.s32 1024, %v9501_v10  ;;  %v10330_v26 = vsel %vm407_vm1, 1.0, %v15771_v52 }
  0xe5   :  { %15831 = vst [vmem:[#allocation48_spill] sm:$0xff] %v10330_v26  ;;  %v10335_v16 = vsel %vm406_vm8, 1.0, %v15771_v52  ;;  %vm612_vm6 = vmand %vm516_vm12, %vm10045_vm0  ;;  %vm15837_vm0 = vcmask 777216  }
  0xe6   :  { %v1372_v37 = vpack.c.bf16 %v1227_v23, %v1146_v3  ;;  %v10324_v18 = vpop.permute.xlu1 %848  ;;  %v847_v13 = vpop.permute.xlu0 %846  ;;  %v1373_v1 = vpack.c.bf16 %v1228_v59, %v1147_v2  ;;  %15832 = vst [vmem:[#allocation49_spill] sm:$0xff] %v10335_v16  ;;  %v10346_v3 = vsel %vm10179_vm5, 1.0, %v15771_v52  ;;  %v10351_v23 = vsel %vm10170_vm4, 1.0, %v15771_v52  ;;  %vm613_vm15 = vmand %vm517_vm2, %vm10053_vm7 }
  0xe7   :  { %v873_v55 = vsel %vm15721_vm11, %v847_v13, %v10324_v18  ;;  %v872_v2 = vsel %vm15721_vm11, %v10080_v8, %v847_v13  ;;  %15833 = vst [vmem:[#allocation50_spill] sm:$0xff] %v10346_v3  ;;  %15834 = vst [vmem:[#allocation51_spill] sm:$0xff] %v10351_v23  ;;  %v249_v59 = vshra.s32 %v10322_v6, 5  ;;  %v248_v31 = vshra.s32 %v10327_v58, 5 }
  0xe8   :  { %1186 = vrot.lane.b32.xlu1 %v10259_v46, %s9311_s12  ;;  %1184 = vrot.lane.b32.xlu0 %v10041_v12, %s9311_s12  ;;  %v906_v8 = vmul.f32 %v10330_v26, %v873_v55  ;;  %v905_v5 = vmul.f32 %v10335_v16, %v872_v2  ;;  %v10378_v44 = vsel %vm612_vm6, 1.0, %v15771_v52  ;;  %v10381_v61 = vsel %vm613_vm15, 1.0, %v15771_v52  ;;  %vm15838_vm7 = vmmov %vm15837_vm0 }
  0xe9   :  { %1542 = vmatprep.subr.bf16.mxu0 %v1373_v1  ;;  %15835 = vst [vmem:[#allocation52_spill] sm:$0xff] %v10378_v44  ;;  %15836 = vst [vmem:[#allocation53_spill] sm:$0xff] %v10381_v61  ;;  %v15521_v2 = vand.u32 31, %v10322_v6  ;;  %v15520_v26 = vand.u32 31, %v10327_v58  ;;  %vm15845_vm6 = vcmask 1039360  }
  0xea   :  { %1543 = vmatpush1.bf16.msra.mxu0 %v1372_v37  ;;  %v10359_v13 = vpop.permute.xlu1 %929  ;;  %v928_v1 = vpop.permute.xlu0 %927  ;;  %vm15846_vm15 = vmmov %vm15845_vm6 }
  0xeb   :  { %v953_v9 = vsel %vm15723_vm13, %v10114_v36, %v928_v1  ;;  %v954_v17 = vsel %vm15723_vm13, %v928_v1, %v10359_v13  ;;  %v10384_v36 = vld [vmem:[%s9376_s5 + $0x78] sm:$0xff]  ;;  %v10387_v1 = vand.u32 31, %v249_v59  ;;  %vm10417_vm12 = vcmp.ge.s32.totalorder %v15521_v2, 1 }
  0xec   :  { %v986_v55 = vmul.f32 %v10346_v3, %v953_v9  ;;  %v987_v37 = vmul.f32 %v10351_v23, %v954_v17  ;;  %1267 = vrot.lane.b32.xlu1 %v10259_v46, %s9312_s13  ;;  %1265 = vrot.lane.b32.xlu0 %v10041_v12, %s9312_s13  ;;  %v10392_v12 = vand.u32 31, %v248_v31  ;;  %vm10426_vm8 = vcmp.ge.s32.totalorder %v15520_v26, 1  ;;  %v9295_v26 = vld [vmem:[%s9376_s5 + $0x38] sm:$0xff] }
  0xed   :  { %vm281_vm2 = vcmp.ge.s32.totalorder %v10387_v1, 1 }
  0xee   :  { %v1342_v9 = vpack.c.bf16 %v986_v55, %v905_v5  ;;  %v10389_v17 = vpop.permute.xlu1 %1251  ;;  %v1250_v16 = vpop.permute.xlu0 %1249  ;;  %v1343_v23 = vpack.c.bf16 %v987_v37, %v906_v8  ;;  %v10407_v5 = vsel %vm10298_vm3, 1.0, %v15771_v52  ;;  %vm280_vm1 = vcmp.ge.s32.totalorder %v10392_v12, 1 }
  0xef   :  { %v1276_v3 = vsel %vm15837_vm0, %v10142_v42, %v1250_v16  ;;  %v1277_v63 = vsel %vm15838_vm7, %v1250_v16, %v10389_v17  ;;  %15839 = vst [vmem:[#allocation54_spill] sm:$0xff] %v10407_v5  ;;  %v10412_v42 = vsel %vm10289_vm9, 1.0, %v15771_v52  ;;  %vm15847_vm0 = vcmask 1043456   ;;  %vm313_vm7 = vmand %vm281_vm2, %vm10417_vm12 }
  0xf0   :  { %v1308_v54 = vmul.f32 %v10378_v44, %v1276_v3  ;;  %v1309_v59 = vmul.f32 %v10381_v61, %v1277_v63  ;;  %702 = vrot.lane.b32.xlu1 %v10384_v36, %s9306_s7  ;;  %700 = vrot.lane.b32.xlu0 %v10259_v46, %s9306_s7  ;;  %15840 = vst [vmem:[#allocation55_spill] sm:$0xff] %v10412_v42  ;;  %v10455_v2 = vsel %vm313_vm7, 1.0, %v15771_v52  ;;  %vm519_vm7 = vcmp.le.s32.totalorder %v10140_v40, 30 }
  0xf1   :  { %1579 = vmatprep.subr.bf16.mxu1 %v1343_v23  ;;  %15849 = vst [vmem:[#allocation56_spill] sm:$0xff] %v10455_v2 }
  0xf2   :  { %v1388_v63 = vpack.c.bf16 %v1308_v54, %v1308_v54  ;;  %v1389_v31 = vpack.c.bf16 %v1309_v59, %v1309_v59  ;;  %1580 = vmatpush1.bf16.msra.mxu1 %v1342_v9  ;;  %v10421_v3 = vpop.permute.xlu1 %1012  ;;  %v1011_v23 = vpop.permute.xlu0 %1010 }
  0xf3   :  { %v1035_v55 = vsel %vm15845_vm6, %v10174_v11, %v1011_v23  ;;  %v1036_v54 = vsel %vm15846_vm15, %v1011_v23, %v10421_v3  ;;  %vm15848_vm6 = vmmov %vm15847_vm0  ;;  %v9294_v11 = vld [vmem:[%s9376_s5 + $0x30] sm:$0xff] }
  0xf4   :  { %v1067_v37 = vmul.f32 %v10407_v5, %v1035_v55  ;;  %v1068_v9 = vmul.f32 %v10412_v42, %v1036_v54  ;;  %783 = vrot.lane.b32.xlu1 %v10384_v36, %s9305_s6  ;;  %781 = vrot.lane.b32.xlu0 %v10259_v46, %s9305_s6  ;;  %v1419_v59 = vsel %vm15847_vm0, %v1388_v63, 0  ;;  %vm312_vm15 = vmand %vm280_vm1, %vm10426_vm8  ;;  %vm15850_vm0 = vcmask 269312  }
  0xf5   :  { %8496 = vmatprep.subr.msk.bf16.mxu0 %vm15848_vm6, %v1389_v31  ;;  %v10460_v31 = vsel %vm312_vm15, 1.0, %v15771_v52  ;;  %vm15852_vm6 = vmmov %vm15850_vm0  ;;  %vm518_vm15 = vcmp.le.s32.totalorder %v10145_v30, 30 }
  0xf6   :  { %v1358_v23 = vpack.c.bf16 %v1067_v37, %v9294_v11  ;;  %1545 = vmatpush1.bf16.msra.mxu0 %v1419_v59  ;;  %v10451_v55 = vpop.permute.xlu1 %690  ;;  %v689_v54 = vpop.permute.xlu0 %688  ;;  %v1359_v63 = vpack.c.bf16 %v1068_v9, %v9295_v26  ;;  %15851 = vst [vmem:[#allocation57_spill] sm:$0xff] %v10460_v31  ;;  %v10473_v26 = vsel %vm280_vm1, 1.0, %v15771_v52  ;;  %v10478_v9 = vsel %vm281_vm2, 1.0, %v15771_v52 }
  0xf7   :  { %v713_v42 = vsel %vm15850_vm0, %v689_v54, %v10451_v55  ;;  %v712_v37 = vsel %vm15852_vm6, %v10204_v21, %v689_v54  ;;  %15853 = vst [vmem:[#allocation58_spill] sm:$0xff] %v10473_v26  ;;  %15854 = vst [vmem:[#allocation59_spill] sm:$0xff] %v10478_v9  ;;  %vm15855_vm0 = vcmask 261120  }
  0xf8   :  { %864 = vrot.lane.b32.xlu1 %v10384_v36, %s9307_s8  ;;  %862 = vrot.lane.b32.xlu0 %v10259_v46, %s9307_s8  ;;  %v746_v59 = vmul.f32 %v10455_v2, %v713_v42  ;;  %vm15856_vm6 = vmmov %vm15855_vm0  ;;  %v745_v5 = vmul.f32 %v10460_v31, %v712_v37  ;;  %v1804_v2 = vld [vmem:[%s10516_s24] sm:$0xff]  ;;  %s9322_s24 = smov 9  }
  0xf9   :  { %8497 = vmatmul.mubr.msk.bf16.vlgmr.msra.gmra.mrb[4].mxu0 %vm15561_vm14, %v9958_v33  ;;  %1581 = vmatprep.subr.bf16.mxu1 %v1359_v63 }
  0xfa   :  { %1582 = vmatpush1.bf16.msra.mxu1 %v1358_v23  ;;  %v10482_v21 = vpop.permute.xlu1 %771  ;;  %v770_v11 = vpop.permute.xlu0 %769  ;;  %1650 = vmatprep.mubr.bf16.mxu0 %v15778_v32 }
  0xfb   :  { %v793_v54 = vsel %vm15855_vm0, %v10235_v7, %v770_v11  ;;  %v794_v63 = vsel %vm15856_vm6, %v770_v11, %v10482_v21  ;;  %vm535_vm0 = vmand %vm519_vm7, %vm10170_vm4 }
  0xfc   :  { %v826_v61 = vmul.f32 %v10473_v26, %v793_v54  ;;  %v827_v42 = vmul.f32 %v10478_v9, %v794_v63  ;;  %945 = vrot.lane.b32.xlu1 %v10384_v36, %s9308_s9  ;;  %943 = vrot.lane.b32.xlu0 %v10259_v46, %s9308_s9  ;;  %vm534_vm6 = vmand %vm518_vm15, %vm10179_vm5  ;;  %v10519_v53 = vsel %vm535_vm0, 1.0, %v15771_v52  ;;  %v15861_v54 = vand.u32 31, %v10322_v6 }
  0xfd   :  { %15857 = vst [vmem:[#allocation60_spill] sm:$0xff] %v10519_v53  ;;  %v10524_v11 = vsel %vm534_vm6, 1.0, %v15771_v52  ;;  %vm15867_vm0 = vcmask 785408  }
  0xfe   :  { %v1328_v7 = vpack.c.bf16 %v826_v61, %v745_v5  ;;  %v10510_v23 = vpop.permute.xlu1 %1093  ;;  %v1092_v46 = vpop.permute.xlu0 %1091  ;;  %v1329_v37 = vpack.c.bf16 %v827_v42, %v746_v59  ;;  %15858 = vst [vmem:[#allocation61_spill] sm:$0xff] %v10524_v11  ;;  %v10533_v5 = vsel %vm518_vm15, 1.0, %v15771_v52  ;;  %v10538_v59 = vsel %vm519_vm7, 1.0, %v15771_v52  ;;  %vm15868_vm6 = vmmov %vm15867_vm0 }
  0xff   :  { %v1117_v19 = vsel %vm15532_vm10, %v1092_v46, %v10510_v23  ;;  %v1116_v61 = vsel %vm15532_vm10, %v10261_v4, %v1092_v46  ;;  %15859 = vst [vmem:[#allocation62_spill] sm:$0xff] %v10533_v5  ;;  %15860 = vst [vmem:[#allocation63_spill] sm:$0xff] %v10538_v59  ;;  %vm10544_vm4 = vcmp.le.s32.totalorder %v15861_v54, 30  ;;  %v15864_v46 = vand.u32 31, %v10327_v58  ;;  %v1782_v58 = vld [vmem:[%s10508_s20] sm:$0xff]  ;;  %s9338_s20 = smov 20  }
 0x100   :  { %1026 = vrot.lane.b32.xlu0 %v10384_v36, %s9309_s10  ;;  %1618 = vmatprep.subr.bf16.mxu0 %v1329_v37  ;;  %v1149_v4 = vmul.f32 %v10519_v53, %v1117_v19  ;;  %v1148_v54 = vmul.f32 %v10524_v11, %v1116_v61  ;;  %vm409_vm10 = vmand %vm281_vm2, %vm10544_vm4 }
 0x101   :  { %1619 = vmatpush1.bf16.msra.mxu0 %v1328_v7  ;;  %1107 = vrot.lane.b32.xlu1 %v10384_v36, %s9310_s11  ;;  %vm10553_vm5 = vcmp.le.s32.totalorder %v15864_v46, 30  ;;  %v10587_v26 = vsel %vm409_vm10, 1.0, %v15771_v52  ;;  %vm614_vm10 = vmand %vm518_vm15, %vm10298_vm3 }
 0x102   :  { %v10549_v42 = vpop.permute.xlu1 %1174  ;;  %v1173_v7 = vpop.permute.xlu0 %1172  ;;  %15869 = vst [vmem:[#allocation64_spill] sm:$0xff] %v10587_v26  ;;  %vm615_vm2 = vmand %vm519_vm7, %vm10289_vm9  ;;  %vm15875_vm9 = vcmask 777216  }
 0x103   :  { %v1197_v31 = vsel %vm15867_vm0, %v10294_v35, %v1173_v7  ;;  %v1198_v6 = vsel %vm15868_vm6, %v1173_v7, %v10549_v42  ;;  %vm408_vm0 = vmand %vm280_vm1, %vm10553_vm5  ;;  %v10577_v35 = vadd.s32 1408, %v9501_v10  ;;  %v10630_v40 = vsel %vm615_vm2, 1.0, %v15771_v52 }
 0x104   :  { %v1229_v19 = vmul.f32 %v10533_v5, %v1197_v31  ;;  %v1230_v9 = vmul.f32 %v10538_v59, %v1198_v6  ;;  %1188 = vrot.lane.b32.xlu0 %v10384_v36, %s9311_s12  ;;  %v10583_v6 = vadd.s32 1280, %v9501_v10  ;;  %v10592_v59 = vsel %vm408_vm0, 1.0, %v15771_v52  ;;  %15874 = vst [vmem:[#allocation69_spill] sm:$0xff] %v10630_v40  ;;  %vm15876_vm3 = vmmov %vm15875_vm9 }
 0x105   :  { %1269 = vrot.lane.b32.xlu1 %v10384_v36, %s9312_s13  ;;  %15870 = vst [vmem:[#allocation65_spill] sm:$0xff] %v10592_v59  ;;  %v15554_v38 = vand.u32 31, %v10577_v35  ;;  %vm15883_vm0 = vcmask 1039360   ;;  %vm15885_vm2 = vcmask 1043456  }
 0x106   :  { %v1374_v31 = vpack.c.bf16 %v1229_v19, %v1148_v54  ;;  %v10580_v61 = vpop.permute.xlu1 %852  ;;  %v851_v7 = vpop.permute.xlu0 %850  ;;  %v1375_v46 = vpack.c.bf16 %v1230_v9, %v1149_v4  ;;  %v10599_v9 = vsel %vm10426_vm8, 1.0, %v15771_v52  ;;  %v10604_v4 = vsel %vm10417_vm12, 1.0, %v15771_v52 }
 0x107   :  { %v875_v11 = vsel %vm15721_vm11, %v851_v7, %v10580_v61  ;;  %v874_v54 = vsel %vm15721_vm11, %v10324_v18, %v851_v7  ;;  %15871 = vst [vmem:[#allocation66_spill] sm:$0xff] %v10599_v9  ;;  %15872 = vst [vmem:[#allocation67_spill] sm:$0xff] %v10604_v4  ;;  %v251_v19 = vshra.s32 %v10577_v35, 5  ;;  %v250_v7 = vshra.s32 %v10583_v6, 5 }
 0x108   :  { %1583 = vmatprep.subr.bf16.mxu1 %v1375_v46  ;;  %1785 = vperm.xlu0 %9038, %v1782_v58   ;;  %v908_v18 = vmul.f32 %v10587_v26, %v875_v11  ;;  %v10627_v26 = vsel %vm614_vm10, 1.0, %v15771_v52  ;;  %vm10659_vm7 = vcmp.ge.s32.totalorder %v15554_v38, 1  ;;  %vm15884_vm10 = vmmov %vm15883_vm0 }
 0x109   :  { %1584 = vmatpush1.bf16.msra.mxu1 %v1374_v31  ;;  %1807 = vperm.xlu1 %9039, %v1804_v2   ;;  %v907_v2 = vmul.f32 %v10592_v59, %v874_v54  ;;  %15873 = vst [vmem:[#allocation68_spill] sm:$0xff] %v10627_v26  ;;  %v10633_v53 = vand.u32 31, %v251_v19  ;;  %v15553_v54 = vand.u32 31, %v10583_v6 }
 0x10a   :  { %v10612_v58 = vpop.permute.xlu1 %933  ;;  %v932_v31 = vpop.permute.xlu0 %931 }
 0x10b   :  { %v955_v14 = vsel %vm15723_vm13, %v10359_v13, %v932_v31  ;;  %v956_v30 = vsel %vm15723_vm13, %v932_v31, %v10612_v58  ;;  %vm283_vm1 = vcmp.ge.s32.totalorder %v10633_v53, 1  ;;  %vm10668_vm6 = vcmp.ge.s32.totalorder %v15553_v54, 1  ;;  %v9297_v54 = vld [vmem:[%s9376_s5 + $0x48] sm:$0xff] }
 0x10c   :  { %v988_v11 = vmul.f32 %v10599_v9, %v955_v14  ;;  %v989_v46 = vmul.f32 %v10604_v4, %v956_v30  ;;  %v10638_v14 = vand.u32 31, %v250_v7  ;;  %v10654_v7 = vsel %vm10544_vm4, 1.0, %v15771_v52 }
 0x10d   :  { %15878 = vst [vmem:[#allocation71_spill] sm:$0xff] %v10654_v7 }
 0x10e   :  { %v1344_v13 = vpack.c.bf16 %v988_v11, %v907_v2  ;;  %v10635_v5 = vpop.permute.xlu1 %1255  ;;  %v1254_v31 = vpop.permute.xlu0 %1253  ;;  %v1345_v44 = vpack.c.bf16 %v989_v46, %v908_v18  ;;  %v10649_v18 = vsel %vm10553_vm5, 1.0, %v15771_v52  ;;  %vm282_vm15 = vcmp.ge.s32.totalorder %v10638_v14, 1 }
 0x10f   :  { %v1278_v30 = vsel %vm15875_vm9, %v10389_v17, %v1254_v31  ;;  %v1279_v59 = vsel %vm15876_vm3, %v1254_v31, %v10635_v5  ;;  %15877 = vst [vmem:[#allocation70_spill] sm:$0xff] %v10649_v18  ;;  %vm15886_vm9 = vmmov %vm15885_vm2 }
 0x110   :  { %v1310_v4 = vmul.f32 %v10627_v26, %v1278_v30  ;;  %v1311_v19 = vmul.f32 %v10630_v40, %v1279_v59  ;;  %1620 = vmatprep.subr.bf16.mxu0 %v1345_v44  ;;  %vm315_vm3 = vmand %vm283_vm1, %vm10659_vm7 }
 0x111   :  { %1621 = vmatpush1.bf16.msra.mxu0 %v1344_v13 }
 0x112   :  { %v1390_v44 = vpack.c.bf16 %v1310_v4, %v1310_v4  ;;  %v1391_v59 = vpack.c.bf16 %v1311_v19, %v1311_v19  ;;  %v10663_v2 = vpop.permute.xlu1 %1016  ;;  %v1015_v11 = vpop.permute.xlu0 %1014 }
 0x113   :  { %v1037_v13 = vsel %vm15883_vm0, %v10421_v3, %v1015_v11  ;;  %v1038_v31 = vsel %vm15884_vm10, %v1015_v11, %v10663_v2  ;;  %vm314_vm0 = vmand %vm282_vm15, %vm10668_vm6  ;;  %v9296_v3 = vld [vmem:[%s9376_s5 + $0x40] sm:$0xff]  ;;  %vm15888_vm10 = vcmask 269312  }
 0x114   :  { %v1069_v4 = vmul.f32 %v10649_v18, %v1037_v13  ;;  %v1070_v30 = vmul.f32 %v10654_v7, %v1038_v31  ;;  %8498 = vmatprep.subr.msk.bf16.mxu1 %vm15885_vm2, %v1391_v59  ;;  %v1425_v19 = vsel %vm15886_vm9, %v1390_v44, 0  ;;  %v10693_v44 = vsel %vm315_vm3, 1.0, %v15771_v52  ;;  %vm15890_vm2 = vmmov %vm15888_vm10 }
 0x115   :  { %1586 = vmatpush1.bf16.msra.mxu1 %v1425_v19  ;;  %15887 = vst [vmem:[#allocation72_spill] sm:$0xff] %v10693_v44  ;;  %v10698_v19 = vsel %vm314_vm0, 1.0, %v15771_v52  ;;  %vm521_vm9 = vcmp.le.s32.totalorder %v10387_v1, 30  ;;  %vm520_vm3 = vcmp.le.s32.totalorder %v10392_v12, 30  ;;  %vm15893_vm0 = vcmask 261120  }
 0x116   :  { %v1360_v11 = vpack.c.bf16 %v1069_v4, %v9296_v3  ;;  %v10689_v13 = vpop.permute.xlu1 %694  ;;  %v693_v31 = vpop.permute.xlu0 %692  ;;  %v1361_v59 = vpack.c.bf16 %v1070_v30, %v9297_v54  ;;  %15889 = vst [vmem:[#allocation73_spill] sm:$0xff] %v10698_v19  ;;  %v10707_v54 = vsel %vm282_vm15, 1.0, %v15771_v52  ;;  %v10712_v30 = vsel %vm283_vm1, 1.0, %v15771_v52 }
 0x117   :  { %v715_v38 = vsel %vm15888_vm10, %v693_v31, %v10689_v13  ;;  %v714_v4 = vsel %vm15890_vm2, %v10451_v55, %v693_v31  ;;  %15891 = vst [vmem:[#allocation74_spill] sm:$0xff] %v10707_v54  ;;  %15892 = vst [vmem:[#allocation75_spill] sm:$0xff] %v10712_v30 }
 0x118   :  { %8499 = vmatmul.mubr.msk.bf16.vlgmr.msra.gmra.mrb[4].mxu1 %vm15561_vm14, %v9958_v33  ;;  %1622 = vmatprep.subr.bf16.mxu0 %v1361_v59  ;;  %v748_v3 = vmul.f32 %v10693_v44, %v715_v38  ;;  %vm15894_vm10 = vmmov %vm15893_vm0  ;;  %v747_v7 = vmul.f32 %v10698_v19, %v714_v4 }
 0x119   :  { %1623 = vmatpush1.bf16.msra.mxu0 %v1360_v11  ;;  %1691 = vmatprep.mubr.bf16.mxu1 %v15778_v32  ;;  %vm537_vm2 = vmand %vm521_vm9, %vm10417_vm12 }
 0x11a   :  { %v10717_v59 = vpop.permute.xlu1 %775  ;;  %v774_v55 = vpop.permute.xlu0 %773  ;;  %vm536_vm14 = vmand %vm520_vm3, %vm10426_vm8  ;;  %v10738_v4 = vsel %vm537_vm2, 1.0, %v15771_v52 }
 0x11b   :  { %v795_v11 = vsel %vm15893_vm0, %v10482_v21, %v774_v55  ;;  %v796_v31 = vsel %vm15894_vm10, %v774_v55, %v10717_v59  ;;  %15895 = vst [vmem:[#allocation76_spill] sm:$0xff] %v10738_v4  ;;  %vm15896_vm0 = vcmask 793600   ;;  %v10743_v16 = vsel %vm536_vm14, 1.0, %v15771_v52 }
 0x11c   :  { %v828_v18 = vmul.f32 %v10707_v54, %v795_v11  ;;  %v829_v40 = vmul.f32 %v10712_v30, %v796_v31  ;;  %15897 = vst [vmem:[#allocation77_spill] sm:$0xff] %v10743_v16  ;;  %vm15898_vm12 = vmmov %vm15896_vm0  ;;  %vm15907_vm10 = vcmask 785408  }
 0x11d   :  { %vm15908_vm2 = vmmov %vm15907_vm10 }
 0x11e   :  { %v1330_v21 = vpack.c.bf16 %v828_v18, %v747_v7  ;;  %v10735_v38 = vpop.permute.xlu1 %1097  ;;  %v1096_v55 = vpop.permute.xlu0 %1095  ;;  %v1331_v44 = vpack.c.bf16 %v829_v40, %v748_v3  ;;  %v10750_v18 = vsel %vm520_vm3, 1.0, %v15771_v52  ;;  %v10755_v40 = vsel %vm521_vm9, 1.0, %v15771_v52 }
 0x11f   :  { %v1119_v11 = vsel %vm15896_vm0, %v1096_v55, %v10735_v38  ;;  %v1118_v8 = vsel %vm15898_vm12, %v10510_v23, %v1096_v55  ;;  %15899 = vst [vmem:[#allocation78_spill] sm:$0xff] %v10750_v18  ;;  %15900 = vst [vmem:[#allocation79_spill] sm:$0xff] %v10755_v40  ;;  %v15901_v7 = vand.u32 31, %v10577_v35 }
 0x120   :  { %1659 = vmatprep.subr.bf16.mxu1 %v1331_v44  ;;  %v1151_v44 = vmul.f32 %v10738_v4, %v1119_v11 }
 0x121   :  { %1660 = vmatpush1.bf16.msra.mxu1 %v1330_v21  ;;  %vm10759_vm8 = vcmp.le.s32.totalorder %v15901_v7, 30  ;;  %v15904_v21 = vand.u32 31, %v10583_v6  ;;  %v1150_v7 = vmul.f32 %v10743_v16, %v1118_v8 }
 0x122   :  { %v10764_v23 = vpop.permute.xlu1 %1178  ;;  %v1177_v31 = vpop.permute.xlu0 %1176  ;;  %vm411_vm0 = vmand %vm283_vm1, %vm10759_vm8 }
 0x123   :  { %vm10768_vm14 = vcmp.le.s32.totalorder %v15904_v21, 30  ;;  %v1199_v19 = vsel %vm15907_vm10, %v10549_v42, %v1177_v31  ;;  %v1200_v35 = vsel %vm15908_vm2, %v1177_v31, %v10764_v23  ;;  %v10788_v42 = vadd.s32 1664, %v9501_v10  ;;  %vm616_vm1 = vmand %vm520_vm3, %vm10553_vm5 }
 0x124   :  { %v1231_v30 = vmul.f32 %v10750_v18, %v1199_v19  ;;  %v1232_v11 = vmul.f32 %v10755_v40, %v1200_v35  ;;  %vm410_vm12 = vmand %vm282_vm15, %vm10768_vm14  ;;  %v10793_v21 = vadd.s32 1536, %v9501_v10  ;;  %v10796_v35 = vsel %vm411_vm0, 1.0, %v15771_v52 }
 0x125   :  { %15909 = vst [vmem:[#allocation80_spill] sm:$0xff] %v10796_v35  ;;  %v10801_v40 = vsel %vm410_vm12, 1.0, %v15771_v52  ;;  %vm617_vm15 = vmand %vm521_vm9, %vm10544_vm4  ;;  %v10836_v18 = vsel %vm616_vm1, 1.0, %v15771_v52  ;;  %v15589_v63 = vand.u32 31, %v10788_v42  ;;  %vm15915_vm4 = vcmask 777216  }
 0x126   :  { %v1376_v6 = vpack.c.bf16 %v1231_v30, %v1150_v7  ;;  %v10790_v31 = vpop.permute.xlu1 %856  ;;  %v855_v8 = vpop.permute.xlu0 %854  ;;  %v1377_v19 = vpack.c.bf16 %v1232_v11, %v1151_v44  ;;  %15910 = vst [vmem:[#allocation81_spill] sm:$0xff] %v10801_v40  ;;  %v10808_v44 = vsel %vm10668_vm6, 1.0, %v15771_v52  ;;  %v10813_v7 = vsel %vm10659_vm7, 1.0, %v15771_v52  ;;  %15913 = vst [vmem:[#allocation84_spill] sm:$0xff] %v10836_v18 }
 0x127   :  { %v877_v16 = vsel %vm15721_vm11, %v855_v8, %v10790_v31  ;;  %v876_v30 = vsel %vm15721_vm11, %v10580_v61, %v855_v8  ;;  %15911 = vst [vmem:[#allocation82_spill] sm:$0xff] %v10808_v44  ;;  %15912 = vst [vmem:[#allocation83_spill] sm:$0xff] %v10813_v7  ;;  %v253_v11 = vshra.s32 %v10788_v42, 5  ;;  %v10839_v1 = vsel %vm617_vm15, 1.0, %v15771_v52 }
 0x128   :  { %1624 = vmatprep.subr.bf16.mxu0 %v1377_v19  ;;  %v910_v61 = vmul.f32 %v10796_v35, %v877_v16  ;;  %v252_v19 = vshra.s32 %v10793_v21, 5  ;;  %v909_v4 = vmul.f32 %v10801_v40, %v876_v30  ;;  %15914 = vst [vmem:[#allocation85_spill] sm:$0xff] %v10839_v1  ;;  %v15588_v30 = vand.u32 31, %v10793_v21  ;;  %vm15916_vm5 = vmmov %vm15915_vm4 }
 0x129   :  { %1625 = vmatpush1.bf16.msra.mxu0 %v1376_v6  ;;  %v10842_v54 = vand.u32 31, %v253_v11  ;;  %vm10868_vm3 = vcmp.ge.s32.totalorder %v15589_v63, 1  ;;  %vm15923_vm0 = vcmask 1039360   ;;  %vm15925_vm1 = vcmask 1043456  }
 0x12a   :  { %v10821_v6 = vpop.permute.xlu1 %937  ;;  %v936_v8 = vpop.permute.xlu0 %935  ;;  %vm10877_vm2 = vcmp.ge.s32.totalorder %v15588_v30, 1  ;;  %vm15924_vm12 = vmmov %vm15923_vm0  ;;  %v9299_v30 = vld [vmem:[%s9376_s5 + $0x58] sm:$0xff] }
 0x12b   :  { %v957_v37 = vsel %vm15723_vm13, %v10612_v58, %v936_v8  ;;  %v958_v12 = vsel %vm15723_vm13, %v936_v8, %v10821_v6  ;;  %vm285_vm9 = vcmp.ge.s32.totalorder %v10842_v54, 1  ;;  %vm15926_vm15 = vmmov %vm15925_vm1 }
 0x12c   :  { %v990_v16 = vmul.f32 %v10808_v44, %v957_v37  ;;  %v991_v35 = vmul.f32 %v10813_v7, %v958_v12  ;;  %v10847_v37 = vand.u32 31, %v252_v19 }
 0x12e   :  { %v1346_v58 = vpack.c.bf16 %v990_v16, %v909_v4  ;;  %v10844_v26 = vpop.permute.xlu1 %1259  ;;  %v1258_v8 = vpop.permute.xlu0 %1257  ;;  %v1347_v9 = vpack.c.bf16 %v991_v35, %v910_v61  ;;  %v10858_v4 = vsel %vm10768_vm14, 1.0, %v15771_v52  ;;  %v10863_v35 = vsel %vm10759_vm8, 1.0, %v15771_v52 }
 0x12f   :  { %v1280_v12 = vsel %vm15915_vm4, %v10635_v5, %v1258_v8  ;;  %v1281_v40 = vsel %vm15916_vm5, %v1258_v8, %v10844_v26  ;;  %15917 = vst [vmem:[#allocation86_spill] sm:$0xff] %v10858_v4  ;;  %15918 = vst [vmem:[#allocation87_spill] sm:$0xff] %v10863_v35  ;;  %vm284_vm10 = vcmp.ge.s32.totalorder %v10847_v37, 1 }
 0x130   :  { %v1312_v7 = vmul.f32 %v10836_v18, %v1280_v12  ;;  %v1313_v11 = vmul.f32 %v10839_v1, %v1281_v40  ;;  %1661 = vmatprep.subr.bf16.mxu1 %v1347_v9  ;;  %vm317_vm4 = vmand %vm285_vm9, %vm10868_vm3 }
 0x131   :  { %1662 = vmatpush1.bf16.msra.mxu1 %v1346_v58  ;;  %vm316_vm5 = vmand %vm284_vm10, %vm10877_vm2 }
 0x132   :  { %v1392_v9 = vpack.c.bf16 %v1312_v7, %v1312_v7  ;;  %v1393_v40 = vpack.c.bf16 %v1313_v11, %v1313_v11  ;;  %v10872_v61 = vpop.permute.xlu1 %1020  ;;  %v1019_v19 = vpop.permute.xlu0 %1018 }
 0x133   :  { %v1039_v58 = vsel %vm15923_vm0, %v10663_v2, %v1019_v19  ;;  %v1040_v8 = vsel %vm15924_vm12, %v1019_v19, %v10872_v61  ;;  %v9298_v2 = vld [vmem:[%s9376_s5 + $0x50] sm:$0xff]  ;;  %vm15928_vm0 = vcmask 269312   ;;  %vm15930_vm12 = vcmask 588800  }
 0x134   :  { %v1071_v7 = vmul.f32 %v10858_v4, %v1039_v58  ;;  %v1072_v12 = vmul.f32 %v10863_v35, %v1040_v8  ;;  %8500 = vmatprep.subr.msk.bf16.mxu0 %vm15925_vm1, %v1393_v40  ;;  %v1431_v11 = vsel %vm15926_vm15, %v1392_v9, 0  ;;  %v10902_v9 = vsel %vm317_vm4, 1.0, %v15771_v52  ;;  %vm15931_vm1 = vmmov %vm15928_vm0 }
 0x135   :  { %1627 = vmatpush1.bf16.msra.mxu0 %v1431_v11  ;;  %15927 = vst [vmem:[#allocation88_spill] sm:$0xff] %v10902_v9  ;;  %v10907_v11 = vsel %vm316_vm5, 1.0, %v15771_v52  ;;  %vm523_vm15 = vcmp.le.s32.totalorder %v10633_v53, 30  ;;  %vm522_vm4 = vcmp.le.s32.totalorder %v10638_v14, 30  ;;  %vm15934_vm5 = vcmask 261120  }
 0x136   :  { %v1362_v19 = vpack.c.bf16 %v1071_v7, %v9298_v2  ;;  %v10898_v58 = vpop.permute.xlu1 %698  ;;  %v697_v8 = vpop.permute.xlu0 %696  ;;  %v1363_v40 = vpack.c.bf16 %v1072_v12, %v9299_v30  ;;  %15929 = vst [vmem:[#allocation89_spill] sm:$0xff] %v10907_v11  ;;  %v10916_v30 = vsel %vm284_vm10, 1.0, %v15771_v52  ;;  %v10921_v12 = vsel %vm285_vm9, 1.0, %v15771_v52 }
 0x137   :  { %v717_v63 = vsel %vm15928_vm0, %v697_v8, %v10898_v58  ;;  %v716_v7 = vsel %vm15931_vm1, %v10689_v13, %v697_v8  ;;  %15932 = vst [vmem:[#allocation90_spill] sm:$0xff] %v10916_v30  ;;  %15933 = vst [vmem:[#allocation91_spill] sm:$0xff] %v10921_v12 }
 0x138   :  { %8501 = vmatmul.mubr.msk.bf16.vlgmr.msra.gmra.mrb[8].mxu0 %vm15930_vm12, %v9958_v33  ;;  %1663 = vmatprep.subr.bf16.mxu1 %v1363_v40  ;;  %v750_v33 = vmul.f32 %v10902_v9, %v717_v63  ;;  %vm15935_vm0 = vmmov %vm15934_vm5  ;;  %v749_v40 = vmul.f32 %v10907_v11, %v716_v7  ;;  %v15947_v11 = vand.u32 31, %v10793_v21 }
 0x139   :  { %1664 = vmatpush1.bf16.msra.mxu1 %v1362_v19  ;;  %1732 = vmatprep.mubr.bf16.mxu0 %v15778_v32  ;;  %vm539_vm12 = vmand %vm523_vm15, %vm10659_vm7 }
 0x13a   :  { %v10926_v2 = vpop.permute.xlu1 %779  ;;  %v778_v13 = vpop.permute.xlu0 %777  ;;  %vm538_vm1 = vmand %vm522_vm4, %vm10668_vm6  ;;  %v10947_v7 = vsel %vm539_vm12, 1.0, %v15771_v52 }
 0x13b   :  { %v797_v19 = vsel %vm15934_vm5, %v10717_v59, %v778_v13  ;;  %v798_v8 = vsel %vm15935_vm0, %v778_v13, %v10926_v2  ;;  %15936 = vst [vmem:[#allocation92_spill] sm:$0xff] %v10947_v7  ;;  %vm15937_vm5 = vcmask 793600   ;;  %v10952_v17 = vsel %vm538_vm1, 1.0, %v15771_v52 }
 0x13c   :  { %v830_v35 = vmul.f32 %v10916_v30, %v797_v19  ;;  %v831_v4 = vmul.f32 %v10921_v12, %v798_v8  ;;  %15938 = vst [vmem:[#allocation93_spill] sm:$0xff] %v10952_v17  ;;  %vm15939_vm7 = vmmov %vm15937_vm5  ;;  %vm15945_vm0 = vcmask 785408   ;;  %vm10981_vm1 = vcmp.le.s32.totalorder %v15947_v11, 30 }
 0x13d   :  { %vm15946_vm12 = vmmov %vm15945_vm0 }
 0x13e   :  { %v1332_v59 = vpack.c.bf16 %v830_v35, %v749_v40  ;;  %v10944_v63 = vpop.permute.xlu1 %1101  ;;  %v1100_v13 = vpop.permute.xlu0 %1099  ;;  %v1333_v9 = vpack.c.bf16 %v831_v4, %v750_v33  ;;  %v10959_v35 = vsel %vm522_vm4, 1.0, %v15771_v52  ;;  %v10964_v4 = vsel %vm523_vm15, 1.0, %v15771_v52 }
 0x13f   :  { %v1121_v19 = vsel %vm15937_vm5, %v1100_v13, %v10944_v63  ;;  %v1120_v46 = vsel %vm15939_vm7, %v10735_v38, %v1100_v13  ;;  %15940 = vst [vmem:[#allocation94_spill] sm:$0xff] %v10959_v35  ;;  %15941 = vst [vmem:[#allocation95_spill] sm:$0xff] %v10964_v4  ;;  %v15942_v33 = vand.u32 31, %v10788_v42 }
 0x140   :  { %1700 = vmatprep.subr.bf16.mxu0 %v1333_v9  ;;  %v1153_v9 = vmul.f32 %v10947_v7, %v1121_v19  ;;  %v1152_v42 = vmul.f32 %v10952_v17, %v1120_v46  ;;  %vm412_vm7 = vmand %vm284_vm10, %vm10981_vm1 }
 0x141   :  { %1701 = vmatpush1.bf16.msra.mxu0 %v1332_v59  ;;  %vm10968_vm6 = vcmp.le.s32.totalorder %v15942_v33, 30  ;;  %vm619_vm10 = vmand %vm523_vm15, %vm10759_vm8  ;;  %vm15956_vm8 = vcmask 777216   ;;  %vm525_vm15 = vcmp.le.s32.totalorder %v10842_v54, 30 }
 0x142   :  { %v10973_v38 = vpop.permute.xlu1 %1182  ;;  %v1181_v40 = vpop.permute.xlu0 %1180  ;;  %vm413_vm5 = vmand %vm285_vm9, %vm10968_vm6  ;;  %v11040_v3 = vsel %vm619_vm10, 1.0, %v15771_v52 }
 0x143   :  { %v1201_v59 = vsel %vm15945_vm0, %v10764_v23, %v1181_v40  ;;  %v1202_v13 = vsel %vm15946_vm12, %v1181_v40, %v10973_v38  ;;  %v10999_v46 = vsel %vm413_vm5, 1.0, %v15771_v52  ;;  %vm618_vm9 = vmand %vm522_vm4, %vm10768_vm14  ;;  %15955 = vst [vmem:[#allocation101_spill] sm:$0xff] %v11040_v3  ;;  %vm524_vm4 = vcmp.le.s32.totalorder %v10847_v37, 30 }
 0x144   :  { %v1233_v33 = vmul.f32 %v10959_v35, %v1201_v59  ;;  %v1234_v19 = vmul.f32 %v10964_v4, %v1202_v13  ;;  %15950 = vst [vmem:[#allocation96_spill] sm:$0xff] %v10999_v46  ;;  %v11004_v59 = vsel %vm412_vm7, 1.0, %v15771_v52  ;;  %vm15957_vm14 = vmmov %vm15956_vm8  ;;  %vm15960_vm0 = vcmask 1039360  }
 0x145   :  { %15951 = vst [vmem:[#allocation97_spill] sm:$0xff] %v11004_v59  ;;  %vm15961_vm12 = vmmov %vm15960_vm0  ;;  %vm15962_vm5 = vcmask 1043456  }
 0x146   :  { %v1378_v23 = vpack.c.bf16 %v1233_v33, %v1152_v42  ;;  %v10992_v30 = vpop.permute.xlu1 %860  ;;  %v859_v21 = vpop.permute.xlu0 %858  ;;  %v1379_v11 = vpack.c.bf16 %v1234_v19, %v1153_v9  ;;  %v11011_v42 = vsel %vm10877_vm2, 1.0, %v15771_v52  ;;  %v11016_v9 = vsel %vm10868_vm3, 1.0, %v15771_v52  ;;  %vm15963_vm7 = vmmov %vm15962_vm5 }
 0x147   :  { %v879_v40 = vsel %vm15721_vm11, %v859_v21, %v10992_v30  ;;  %v878_v13 = vsel %vm15721_vm11, %v10790_v31, %v859_v21  ;;  %15952 = vst [vmem:[#allocation98_spill] sm:$0xff] %v11011_v42  ;;  %15953 = vst [vmem:[#allocation99_spill] sm:$0xff] %v11016_v9 }
 0x148   :  { %1665 = vmatprep.subr.bf16.mxu1 %v1379_v11  ;;  %v912_v33 = vmul.f32 %v10999_v46, %v879_v40  ;;  %v911_v55 = vmul.f32 %v11004_v59, %v878_v13  ;;  %v11037_v40 = vsel %vm618_vm9, 1.0, %v15771_v52  ;;  %vm541_vm9 = vmand %vm525_vm15, %vm10868_vm3  ;;  %vm15965_vm3 = vcmask 793600  }
 0x149   :  { %1666 = vmatpush1.bf16.msra.mxu1 %v1378_v23  ;;  %15954 = vst [vmem:[#allocation100_spill] sm:$0xff] %v11037_v40  ;;  %vm540_vm10 = vmand %vm524_vm4, %vm10877_vm2  ;;  %vm15967_vm2 = vcmask 588800  }
 0x14a   :  { %v11023_v19 = vpop.permute.xlu1 %941  ;;  %v940_v31 = vpop.permute.xlu0 %939 }
 0x14b   :  { %v959_v23 = vsel %vm15723_vm13, %v10821_v6, %v940_v31  ;;  %v960_v21 = vsel %vm15723_vm13, %v940_v31, %v11023_v19 }
 0x14c   :  { %v992_v14 = vmul.f32 %v11011_v42, %v959_v23  ;;  %v993_v11 = vmul.f32 %v11016_v9, %v960_v21 }
 0x14e   :  { %v1348_v53 = vpack.c.bf16 %v992_v14, %v911_v55  ;;  %v11042_v46 = vpop.permute.xlu1 %1263  ;;  %v1262_v17 = vpop.permute.xlu0 %1261  ;;  %v1349_v6 = vpack.c.bf16 %v993_v11, %v912_v33  ;;  %v11053_v55 = vsel %vm10981_vm1, 1.0, %v15771_v52  ;;  %v11058_v33 = vsel %vm10968_vm6, 1.0, %v15771_v52 }
 0x14f   :  { %v1282_v31 = vsel %vm15956_vm8, %v10844_v26, %v1262_v17  ;;  %v1283_v13 = vsel %vm15957_vm14, %v1262_v17, %v11042_v46  ;;  %15958 = vst [vmem:[#allocation102_spill] sm:$0xff] %v11053_v55  ;;  %15959 = vst [vmem:[#allocation103_spill] sm:$0xff] %v11058_v33  ;;  %v11062_v26 = vadd.s32 1920, %v9501_v10 }
 0x150   :  { %v1314_v23 = vmul.f32 %v11037_v40, %v1282_v31  ;;  %v1315_v21 = vmul.f32 %v11040_v3, %v1283_v13  ;;  %1702 = vmatprep.subr.bf16.mxu0 %v1349_v6  ;;  %v11068_v6 = vadd.s32 1792, %v9501_v10  ;;  %v9301_v10 = vld [vmem:[%s9376_s5 + $0x68] sm:$0xff]  ;;  %vm15969_vm8 = vmmov %vm15965_vm3 }
 0x151   :  { %1703 = vmatpush1.bf16.msra.mxu0 %v1348_v53  ;;  %vm620_vm14 = vmand %vm524_vm4, %vm10981_vm1  ;;  %vm15971_vm1 = vcmask 785408  }
 0x152   :  { %v1394_v17 = vpack.c.bf16 %v1314_v23, %v1314_v23  ;;  %v1395_v14 = vpack.c.bf16 %v1315_v21, %v1315_v21  ;;  %v11064_v11 = vpop.permute.xlu1 %1024  ;;  %v1023_v53 = vpop.permute.xlu0 %1022  ;;  %v254_v5 = vshra.s32 %v11068_v6, 5  ;;  %v238_v12 = vand.u32 31, %v11068_v6 }
 0x153   :  { %v1041_v31 = vsel %vm15960_vm0, %v10872_v61, %v1023_v53  ;;  %v1042_v13 = vsel %vm15961_vm12, %v1023_v53, %v11064_v11  ;;  %v255_v61 = vshra.s32 %v11062_v26, 5  ;;  %v9300_v53 = vld [vmem:[%s9376_s5 + $0x60] sm:$0xff]  ;;  %vm621_vm0 = vmand %vm525_vm15, %vm10968_vm6  ;;  %v11143_v8 = vsel %vm620_vm14, 1.0, %v15771_v52 }
 0x154   :  { %v1073_v59 = vmul.f32 %v11053_v55, %v1041_v31  ;;  %v1074_v23 = vmul.f32 %v11058_v33, %v1042_v13  ;;  %8502 = vmatprep.subr.msk.bf16.mxu1 %vm15962_vm5, %v1395_v14  ;;  %v1437_v21 = vsel %vm15963_vm7, %v1394_v17, 0  ;;  %v11093_v33 = vsel %vm541_vm9, 1.0, %v15771_v52  ;;  %v11101_v55 = vld [vmem:[%s9896_s16] sm:$0xf]  ;;  %15973 = vst [vmem:[#allocation108_spill] sm:$0xff] %v11143_v8  ;;  %s9327_s16 = smov 113  }
 0x155   :  { %1668 = vmatpush1.bf16.msra.mxu1 %v1437_v21  ;;  %15964 = vst [vmem:[#allocation104_spill] sm:$0xff] %v11093_v33  ;;  %v11098_v21 = vsel %vm540_vm10, 1.0, %v15771_v52  ;;  %v11133_v37 = vand.u32 31, %v254_v5  ;;  %v11146_v54 = vsel %vm621_vm0, 1.0, %v15771_v52  ;;  %vm11156_vm5 = vcmp.ge.s32.totalorder %v238_v12, 1 }
 0x156   :  { %v1364_v31 = vpack.c.bf16 %v1073_v59, %v9300_v53  ;;  %v11088_v13 = vpop.permute.xlu1 %1105  ;;  %v1104_v14 = vpop.permute.xlu0 %1103  ;;  %v1365_v17 = vpack.c.bf16 %v1074_v23, %v9301_v10  ;;  %15966 = vst [vmem:[#allocation105_spill] sm:$0xff] %v11098_v21  ;;  %v11108_v10 = vsel %vm524_vm4, 1.0, %v15771_v52  ;;  %v11115_v23 = vsel %vm525_vm15, 1.0, %v15771_v52  ;;  %vm15972_vm4 = vmmov %vm15971_vm1 }
 0x157   :  { %v1123_v16 = vsel %vm15965_vm3, %v1104_v14, %v11088_v13  ;;  %15968 = vst [vmem:[#allocation106_spill] sm:$0xff] %v11108_v10  ;;  %v1122_v59 = vsel %vm15969_vm8, %v10944_v63, %v1104_v14  ;;  %15970 = vst [vmem:[#allocation107_spill] sm:$0xff] %v11115_v23  ;;  %v239_v53 = vand.u32 31, %v11062_v26  ;;  %vm286_vm12 = vcmp.ge.s32.totalorder %v11133_v37, 1 }
 0x158   :  { %8503 = vmatmul.mubr.msk.bf16.vlgmr.msra.gmra.mrb[8].mxu1 %vm15967_vm2, %v11101_v55  ;;  %1704 = vmatprep.subr.bf16.mxu0 %v1365_v17  ;;  %v11122_v17 = vand.u32 31, %v255_v61  ;;  %v1155_v9 = vmul.f32 %v11093_v33, %v1123_v16  ;;  %v1154_v14 = vmul.f32 %v11098_v21, %v1122_v59  ;;  %15974 = vst [vmem:[#allocation109_spill] sm:$0xff] %v11146_v54  ;;  %vm15979_vm7 = vcmask 777216   ;;  %vm318_vm3 = vmand %vm286_vm12, %vm11156_vm5 }
 0x159   :  { %1705 = vmatpush1.bf16.msra.mxu0 %v1364_v31  ;;  %1773 = vmatprep.mubr.bf16.mxu1 %v15778_v32  ;;  %vm11149_vm15 = vcmp.ge.s32.totalorder %v239_v53, 1  ;;  %vm15980_vm9 = vmmov %vm15979_vm7  ;;  %vm15982_vm2 = vcmask 269312   ;;  %vm15984_vm8 = vcmask 1043456  }
 0x15a   :  { %v11126_v63 = vpop.permute.xlu1 %1186  ;;  %v1185_v31 = vpop.permute.xlu0 %1184  ;;  %vm287_vm6 = vcmp.ge.s32.totalorder %v11122_v17, 1  ;;  %vm15985_vm14 = vmmov %vm15984_vm8 }
 0x15b   :  { %v1203_v26 = vsel %vm15971_vm1, %v10973_v38, %v1185_v31  ;;  %v1204_v61 = vsel %vm15972_vm4, %v1185_v31, %v11126_v63  ;;  %vm319_vm10 = vmand %vm287_vm6, %vm11149_vm15  ;;  %vm11195_vm1 = vcmp.le.s32.totalorder %v239_v53, 30  ;;  %vm11200_vm4 = vcmp.le.s32.totalorder %v238_v12, 30 }
 0x15c   :  { %v1235_v16 = vmul.f32 %v11108_v10, %v1203_v26  ;;  %v1236_v33 = vmul.f32 %v11115_v23, %v1204_v61  ;;  %vm15986_vm0 = vmmov %vm15982_vm2  ;;  %v11265_v26 = vsel %vm11195_vm1, 1.0, %v15771_v52 }
 0x15d   :  { %16001 = vst [vmem:[#allocation119_spill] sm:$0xff] %v11265_v26 }
 0x15e   :  { %v1380_v38 = vpack.c.bf16 %v1235_v16, %v1154_v14  ;;  %v11153_v5 = vpop.permute.xlu1 %1267  ;;  %v1266_v59 = vpop.permute.xlu0 %1265  ;;  %v1381_v31 = vpack.c.bf16 %v1236_v33, %v1155_v9 }
 0x15f   :  { %v1284_v61 = vsel %vm15979_vm7, %v11042_v46, %v1266_v59  ;;  %v1285_v21 = vsel %vm15980_vm9, %v1266_v59, %v11153_v5  ;;  %v11175_v59 = vsel %vm319_vm10, 1.0, %v15771_v52  ;;  %vm15993_vm7 = vcmask 261120  }
 0x160   :  { %v1316_v23 = vmul.f32 %v11143_v8, %v1284_v61  ;;  %v1317_v14 = vmul.f32 %v11146_v54, %v1285_v21  ;;  %1706 = vmatprep.subr.bf16.mxu0 %v1381_v31  ;;  %15981 = vst [vmem:[#allocation110_spill] sm:$0xff] %v11175_v59  ;;  %v11179_v31 = vsel %vm318_vm3, 1.0, %v15771_v52  ;;  %vm15994_vm9 = vmmov %vm15993_vm7  ;;  %vm15995_vm10 = vcmask 588800  }
 0x161   :  { %1707 = vmatpush1.bf16.msra.mxu0 %v1380_v38  ;;  %15983 = vst [vmem:[#allocation111_spill] sm:$0xff] %v11179_v31  ;;  %vm415_vm3 = vmand %vm287_vm6, %vm11195_vm1 }
 0x162   :  { %v1396_v46 = vpack.c.bf16 %v1316_v23, %v1316_v23  ;;  %v1397_v9 = vpack.c.bf16 %v1317_v14, %v1317_v14  ;;  %v703_v33 = vpop.permute.xlu1 %702  ;;  %v701_v16 = vpop.permute.xlu0 %700  ;;  %v11188_v23 = vsel %vm286_vm12, 1.0, %v15771_v52  ;;  %v11193_v14 = vsel %vm287_vm6, 1.0, %v15771_v52 }
 0x163   :  { %v719_v21 = vsel %vm15982_vm2, %v701_v16, %v703_v33  ;;  %v718_v61 = vsel %vm15986_vm0, %v10898_v58, %v701_v16  ;;  %15987 = vst [vmem:[#allocation112_spill] sm:$0xff] %v11188_v23  ;;  %15988 = vst [vmem:[#allocation113_spill] sm:$0xff] %v11193_v14  ;;  %vm526_vm6 = vcmp.le.s32.totalorder %v11133_v37, 30  ;;  %vm16004_vm0 = vcmask 1039360  }
 0x164   :  { %8504 = vmatprep.subr.msk.bf16.mxu0 %vm15984_vm8, %v1397_v9  ;;  %v1443_v38 = vsel %vm15985_vm14, %v1396_v46, 0  ;;  %v752_v46 = vmul.f32 %v11175_v59, %v719_v21  ;;  %v751_v8 = vmul.f32 %v11179_v31, %v718_v61  ;;  %vm414_vm2 = vmand %vm286_vm12, %vm11200_vm4  ;;  %v11222_v61 = vsel %vm415_vm3, 1.0, %v15771_v52 }
 0x165   :  { %1709 = vmatpush1.bf16.msra.mxu0 %v1443_v38  ;;  %15996 = vst [vmem:[#allocation114_spill] sm:$0xff] %v11222_v61  ;;  %vm527_vm12 = vcmp.le.s32.totalorder %v11122_v17, 30  ;;  %vm542_vm8 = vmand %vm526_vm6, %vm11156_vm5  ;;  %vm16016_vm3 = vcmask 777216  }
 0x166   :  { %v784_v9 = vpop.permute.xlu1 %783  ;;  %v782_v54 = vpop.permute.xlu0 %781  ;;  %vm543_vm14 = vmand %vm527_vm12, %vm11149_vm15 }
 0x167   :  { %v799_v16 = vsel %vm15993_vm7, %v10926_v2, %v782_v54  ;;  %v800_v38 = vsel %vm15994_vm9, %v782_v54, %v784_v9  ;;  %vm16005_vm7 = vmmov %vm16004_vm0  ;;  %vm16014_vm9 = vcmask 785408  }
 0x168   :  { %v832_v53 = vmul.f32 %v11188_v23, %v799_v16  ;;  %v833_v10 = vmul.f32 %v11193_v14, %v800_v38  ;;  %8505 = vmatmul.mubr.msk.bf16.vlgmr.msra.gmra.mrb[12].mxu0 %vm15995_vm10, %v11101_v55  ;;  %v11226_v16 = vsel %vm414_vm2, 1.0, %v15771_v52  ;;  %vm16015_vm10 = vmmov %vm16014_vm9 }
 0x169   :  { %2662 = vmatprep.mubr.bf16.mxu0 %v15778_v32  ;;  %15997 = vst [vmem:[#allocation115_spill] sm:$0xff] %v11226_v16  ;;  %vm16017_vm2 = vmmov %vm16016_vm3 }
 0x16a   :  { %v1334_v2 = vpack.c.bf16 %v832_v53, %v751_v8  ;;  %v865_v12 = vpop.permute.xlu1 %864  ;;  %v863_v54 = vpop.permute.xlu0 %862  ;;  %v1335_v21 = vpack.c.bf16 %v833_v10, %v752_v46  ;;  %v11234_v8 = vsel %vm11156_vm5, 1.0, %v15771_v52  ;;  %v11239_v10 = vsel %vm11149_vm15, 1.0, %v15771_v52  ;;  %vm11271_vm5 = vmand %vm526_vm6, %vm11200_vm4 }
 0x16b   :  { %v881_v9 = vsel %vm15721_vm11, %v863_v54, %v865_v12  ;;  %v880_v38 = vsel %vm15721_vm11, %v10992_v30, %v863_v54  ;;  %15998 = vst [vmem:[#allocation116_spill] sm:$0xff] %v11234_v8  ;;  %15999 = vst [vmem:[#allocation117_spill] sm:$0xff] %v11239_v10 }
 0x16c   :  { %1741 = vmatprep.subr.bf16.mxu1 %v1335_v21  ;;  %v914_v46 = vmul.f32 %v11222_v61, %v881_v9  ;;  %v913_v54 = vmul.f32 %v11226_v16, %v880_v38  ;;  %vm623_vm15 = vmand %vm527_vm12, %vm11195_vm1  ;;  %vm16008_vm1 = vcmask 793600  }
 0x16d   :  { %1742 = vmatpush1.bf16.msra.mxu1 %v1334_v2 }
 0x16e   :  { %v946_v53 = vpop.permute.xlu1 %945  ;;  %v944_v12 = vpop.permute.xlu0 %943 }
 0x16f   :  { %v961_v30 = vsel %vm15723_vm13, %v11023_v19, %v944_v12  ;;  %v962_v2 = vsel %vm15723_vm13, %v944_v12, %v946_v53  ;;  %v11260_v19 = vsel %vm11200_vm4, 1.0, %v15771_v52  ;;  %vm16009_vm4 = vmmov %vm16008_vm1 }
 0x170   :  { %v994_v21 = vmul.f32 %v11234_v8, %v961_v30  ;;  %v995_v31 = vmul.f32 %v11239_v10, %v962_v2  ;;  %16000 = vst [vmem:[#allocation118_spill] sm:$0xff] %v11260_v19  ;;  %v11283_v30 = vsel %vm542_vm8, 1.0, %v15771_v52  ;;  %v11286_v2 = vsel %vm543_vm14, 1.0, %v15771_v52 }
 0x171   :  { %16006 = vst [vmem:[#allocation120_spill] sm:$0xff] %v11283_v30  ;;  %16007 = vst [vmem:[#allocation121_spill] sm:$0xff] %v11286_v2  ;;  %vm16020_vm8 = vcmask 588800   ;;  %vm16033_vm14 = vcmask 269312  }
 0x172   :  { %v1350_v6 = vpack.c.bf16 %v994_v21, %v913_v54  ;;  %v1027_v38 = vpop.permute.xlu0 %1026  ;;  %v1351_v53 = vpack.c.bf16 %v995_v31, %v914_v46 }
 0x173   :  { %v1043_v12 = vsel %vm16004_vm0, %v11064_v11, %v1027_v38  ;;  %v1060_v58 = vsel %vm16005_vm7, %v1027_v38, 0.0  ;;  %v1108_v54 = vpop.permute.xlu1 %1107  ;;  %v11296_v11 = vsel %vm526_vm6, 1.0, %v15771_v52  ;;  %v11301_v38 = vsel %vm527_vm12, 1.0, %v15771_v52 }
 0x174   :  { %v1075_v31 = vmul.f32 %v11260_v19, %v1043_v12  ;;  %v1076_v33 = vmul.f32 %v11265_v26, %v1060_v58  ;;  %1743 = vmatprep.subr.bf16.mxu1 %v1351_v53  ;;  %v1124_v46 = vsel %vm16008_vm1, %v11088_v13, %v1108_v54  ;;  %v1141_v21 = vsel %vm16009_vm4, %v1108_v54, 0.0  ;;  %16010 = vst [vmem:[#allocation122_spill] sm:$0xff] %v11296_v11  ;;  %v9303_v12 = vld [vmem:[%s9376_s5 + $0x70] sm:$0xff]  ;;  %vm16037_vm1 = vmmov %vm16005_vm7  ;;  %s9325_s5 = smov 16  }
 0x175   :  { %1744 = vmatpush1.bf16.msra.mxu1 %v1350_v6  ;;  %16011 = vst [vmem:[#allocation123_spill] sm:$0xff] %v11301_v38  ;;  %v11306_v53 = vsel %vm11271_vm5, 1.0, %v15771_v52  ;;  %v11309_v13 = vsel %vm623_vm15, 1.0, %v15771_v52  ;;  %v1156_v58 = vmul.f32 %v11283_v30, %v1124_v46  ;;  %v1157_v37 = vmul.f32 %v11286_v2, %v1141_v21  ;;  %vm16035_vm15 = vmmov %vm16033_vm14  ;;  %s8333_s19 = sld [smem:[%s15438_s0 + %s9325_s5]]  }
 0x176   :  { %16012 = vst [vmem:[#allocation124_spill] sm:$0xff] %v11306_v53  ;;  %16013 = vst [vmem:[#allocation125_spill] sm:$0xff] %v11309_v13  ;;  %v1366_v6 = vpack.c.bf16 %v1075_v31, %v9303_v12  ;;  %v1189_v54 = vpop.permute.xlu0 %1188  ;;  %v1367_v19 = vpack.c.bf16 %v1076_v33, %v10384_v36  ;;  %vm16018_vm6 = vcmask 1043456   ;;  %vm16034_vm5 = vcmask 261120  }
 0x177   :  { %v1205_v17 = vsel %vm16014_vm9, %v11126_v63, %v1189_v54  ;;  %v1222_v16 = vsel %vm16015_vm10, %v1189_v54, 0.0  ;;  %v1270_v9 = vpop.permute.xlu1 %1269  ;;  %vm16019_vm12 = vmmov %vm16018_vm6 }
 0x178   :  { %v1237_v10 = vmul.f32 %v11296_v11, %v1205_v17  ;;  %v1238_v52 = vmul.f32 %v11301_v38, %v1222_v16  ;;  %1745 = vmatprep.subr.bf16.mxu1 %v1367_v19  ;;  %v1286_v31 = vsel %vm16016_vm3, %v11153_v5, %v1270_v9  ;;  %v1303_v46 = vsel %vm16017_vm2, %v1270_v9, 0.0  ;;  %vm16036_vm0 = vmmov %vm16034_vm5 }
 0x179   :  { %1746 = vmatpush1.bf16.msra.mxu1 %v1366_v6  ;;  %v1318_v21 = vmul.f32 %v11306_v53, %v1286_v31  ;;  %v1319_v36 = vmul.f32 %v11309_v13, %v1303_v46  ;;  %vm16039_vm4 = vmmov %vm16036_vm0 }
 0x17a   :  { %v1382_v33 = vpack.c.bf16 %v1237_v10, %v1156_v58  ;;  %v1383_v63 = vpack.c.bf16 %v1238_v52, %v1157_v37  ;;  %vm16040_vm9 = vmmov %vm16033_vm14 }
 0x17b   :  { %v1398_v12 = vpack.c.bf16 %v1318_v21, %v1318_v21  ;;  %v1399_v54 = vpack.c.bf16 %v1319_v36, %v1319_v36  ;;  %vm16041_vm10 = vmmov %vm16040_vm9 }
 0x17c   :  { %1747 = vmatprep.subr.bf16.mxu1 %v1383_v63  ;;  %vm16042_vm3 = vmmov %vm16036_vm0 }
 0x17d   :  { %1748 = vmatpush1.bf16.msra.mxu1 %v1382_v33  ;;  %v1449_v16 = vsel %vm16019_vm12, %v1398_v12, 0  ;;  %vm16044_vm12 = vcmask 793600  }
 0x17e   :  { %8506 = vmatprep.subr.msk.bf16.mxu1 %vm16018_vm6, %v1399_v54  ;;  %vm16043_vm6 = vmmov %vm16017_vm2 }
 0x181   :  { %1750 = vmatpush1.bf16.msra.mxu1 %v1449_v16 }
 0x184   :  { %8507 = vmatmul.mubr.msk.bf16.vlgmr.msra.gmra.mrb[12].mxu1 %vm16020_vm8, %v11101_v55  ;;  %vm16045_vm8 = vmmov %vm16044_vm12 }
 0x185   :  { %2703 = vmatprep.mubr.bf16.mxu1 %v15778_v32 }
 0x187   :  { %v11330_v5 = vpop.permute.xlu0 %1785 }
 0x188   :  { %v11332_v6 = vpop.permute.xlu1 %1807 }
 0x18c   :  { %v1488_v19 = vpop.f32.mrb[0].mxu0 }
 0x18d   :  { %v1788_v52 = vmul.f32 %v11330_v5, %v1488_v19  ;;  %v1490_v10 = vpop.f32.mrb[1].mxu0 }
 0x18e   :  { %v1492_v58 = vpop.f32.mrb[2].mxu0  ;;  %v1789_v12 = vmul.f32 %v11330_v5, %v1490_v10 }
 0x18f   :  { %v1810_v37 = vadd.f32 %v11332_v6, %v1788_v52  ;;  %v1493_v17 = vpop.f32.mrb[3].mxu0 }
 0x190   :  { %v1811_v54 = vadd.f32 %v11332_v6, %v1789_v12 }
 0x191   :  { %v11336_v9 = vmax.f32 %v1810_v37, 0.0 }
 0x192   :  { %v11377_v19 = vmax.f32 %v1811_v54, 0.0 }
 0x193   :  { %16021 = vst [vmem:[#allocation126_spill] sm:$0xff] %v11336_v9  ;;  %1858 = vrot.lane.b32.xlu1 %v11336_v9, %s9306_s7 }
 0x194   :  { %16023 = vst [vmem:[#allocation128_spill] sm:$0xff] %v11377_v19 }
 0x197   :  { %1938 = vrot.lane.b32.xlu1 %v11336_v9, %s9305_s6 }
 0x19b   :  { %2018 = vrot.lane.b32.xlu1 %v11336_v9, %s9307_s8 }
 0x19f   :  { %2098 = vrot.lane.b32.xlu1 %v11336_v9, %s9308_s9 }
 0x1ac   :  { %v1529_v55 = vpop.f32.mrb[0].mxu1 }
 0x1ad   :  { %v1790_v31 = vmul.f32 %v11330_v5, %v1529_v55  ;;  %v1531_v46 = vpop.f32.mrb[1].mxu1 }
 0x1ae   :  { %v1533_v21 = vpop.f32.mrb[2].mxu1  ;;  %v1791_v16 = vmul.f32 %v11330_v5, %v1531_v46 }
 0x1af   :  { %v1812_v36 = vadd.f32 %v11332_v6, %v1790_v31  ;;  %v1534_v33 = vpop.f32.mrb[3].mxu1 }
 0x1b0   :  { %v1813_v52 = vadd.f32 %v11332_v6, %v1791_v16 }
 0x1b1   :  { %v11348_v63 = vmax.f32 %v1812_v36, 0.0 }
 0x1b2   :  { %v11384_v58 = vmax.f32 %v1813_v52, 0.0 }
 0x1b3   :  { %16022 = vst [vmem:[#allocation127_spill] sm:$0xff] %v11348_v63  ;;  %2182 = vrot.lane.b32.xlu0 %v11348_v63, %s9309_s10  ;;  %1862 = vrot.lane.b32.xlu1 %v11348_v63, %s9306_s7 }
 0x1b4   :  { %16024 = vst [vmem:[#allocation129_spill] sm:$0xff] %v11384_v58 }
 0x1b7   :  { %2022 = vrot.lane.b32.xlu0 %v11348_v63, %s9307_s8  ;;  %1942 = vrot.lane.b32.xlu1 %v11348_v63, %s9305_s6 }
 0x1bb   :  { %2102 = vrot.lane.b32.xlu0 %v11348_v63, %s9308_s9  ;;  %2178 = vrot.lane.b32.xlu1 %v11336_v9, %s9309_s10 }
 0x1bf   :  { %2258 = vrot.lane.b32.xlu0 %v11336_v9, %s9310_s11  ;;  %2262 = vrot.lane.b32.xlu1 %v11348_v63, %s9310_s11 }
 0x1c3   :  { %2418 = vrot.lane.b32.xlu0 %v11336_v9, %s9312_s13  ;;  %2342 = vrot.lane.b32.xlu1 %v11348_v63, %s9311_s12 }
 0x1c7   :  { %2422 = vrot.lane.b32.xlu0 %v11348_v63, %s9312_s13  ;;  %2338 = vrot.lane.b32.xlu1 %v11336_v9, %s9311_s12 }
 0x1cb   :  { %1860 = vrot.lane.b32.xlu0 %v11377_v19, %s9306_s7  ;;  %2180 = vrot.lane.b32.xlu1 %v11377_v19, %s9309_s10 }
 0x1cc   :  { %v1570_v10 = vpop.f32.mrb[4].mxu0 }
 0x1cd   :  { %v1572_v37 = vpop.f32.mrb[5].mxu0  ;;  %v1792_v31 = vmul.f32 %v11330_v5, %v1570_v10 }
 0x1ce   :  { %v1574_v17 = vpop.f32.mrb[6].mxu0 }
 0x1cf   :  { %1940 = vrot.lane.b32.xlu0 %v11377_v19, %s9305_s6  ;;  %2024 = vrot.lane.b32.xlu1 %v11384_v58, %s9307_s8  ;;  %v1575_v55 = vpop.f32.mrb[7].mxu0  ;;  %v1814_v46 = vadd.f32 %v11332_v6, %v1792_v31  ;;  %v1793_v17 = vmul.f32 %v11330_v5, %v1572_v37 }
 0x1d1   :  { %v11416_v21 = vmax.f32 %v1814_v46, 0.0  ;;  %v1815_v55 = vadd.f32 %v11332_v6, %v1793_v17 }
 0x1d3   :  { %2020 = vrot.lane.b32.xlu0 %v11377_v19, %s9307_s8  ;;  %2104 = vrot.lane.b32.xlu1 %v11384_v58, %s9308_s9  ;;  %16025 = vst [vmem:[#allocation130_spill] sm:$0xff] %v11416_v21  ;;  %v11456_v31 = vmax.f32 %v1815_v55, 0.0 }
 0x1d5   :  { %16027 = vst [vmem:[#allocation132_spill] sm:$0xff] %v11456_v31 }
 0x1d7   :  { %2100 = vrot.lane.b32.xlu0 %v11377_v19, %s9308_s9  ;;  %2420 = vrot.lane.b32.xlu1 %v11377_v19, %s9312_s13 }
 0x1db   :  { %1864 = vrot.lane.b32.xlu0 %v11384_v58, %s9306_s7  ;;  %2184 = vrot.lane.b32.xlu1 %v11384_v58, %s9309_s10 }
 0x1df   :  { %1944 = vrot.lane.b32.xlu0 %v11384_v58, %s9305_s6  ;;  %2264 = vrot.lane.b32.xlu1 %v11384_v58, %s9310_s11 }
 0x1e3   :  { %2260 = vrot.lane.b32.xlu0 %v11377_v19, %s9310_s11  ;;  %2344 = vrot.lane.b32.xlu1 %v11384_v58, %s9311_s12 }
 0x1e7   :  { %2340 = vrot.lane.b32.xlu0 %v11377_v19, %s9311_s12  ;;  %2424 = vrot.lane.b32.xlu1 %v11384_v58, %s9312_s13 }
 0x1eb   :  { %2186 = vrot.lane.b32.xlu0 %v11416_v21, %s9309_s10  ;;  %1866 = vrot.lane.b32.xlu1 %v11416_v21, %s9306_s7  ;;  %v1611_v36 = vpop.f32.mrb[4].mxu1 }
 0x1ec   :  { %v1613_v33 = vpop.f32.mrb[5].mxu1  ;;  %v1794_v16 = vmul.f32 %v11330_v5, %v1611_v36 }
 0x1ed   :  { %v1615_v12 = vpop.f32.mrb[6].mxu1 }
 0x1ee   :  { %v1616_v54 = vpop.f32.mrb[7].mxu1  ;;  %v1816_v52 = vadd.f32 %v11332_v6, %v1794_v16  ;;  %v1795_v16 = vmul.f32 %v11330_v5, %v1613_v33 }
 0x1ef   :  { %2266 = vrot.lane.b32.xlu0 %v11416_v21, %s9310_s11  ;;  %1946 = vrot.lane.b32.xlu1 %v11416_v21, %s9305_s6 }
 0x1f0   :  { %v11436_v10 = vmax.f32 %v1816_v52, 0.0  ;;  %v1817_v17 = vadd.f32 %v11332_v6, %v1795_v16 }
 0x1f2   :  { %16026 = vst [vmem:[#allocation131_spill] sm:$0xff] %v11436_v10  ;;  %v11480_v55 = vmax.f32 %v1817_v17, 0.0 }
 0x1f3   :  { %2346 = vrot.lane.b32.xlu0 %v11416_v21, %s9311_s12  ;;  %2026 = vrot.lane.b32.xlu1 %v11416_v21, %s9307_s8 }
 0x1f4   :  { %16028 = vst [vmem:[#allocation133_spill] sm:$0xff] %v11480_v55 }
 0x1f7   :  { %2426 = vrot.lane.b32.xlu0 %v11416_v21, %s9312_s13  ;;  %2106 = vrot.lane.b32.xlu1 %v11416_v21, %s9308_s9 }
 0x1fb   :  { %2190 = vrot.lane.b32.xlu0 %v11436_v10, %s9309_s10  ;;  %1870 = vrot.lane.b32.xlu1 %v11436_v10, %s9306_s7 }
 0x1ff   :  { %2270 = vrot.lane.b32.xlu0 %v11436_v10, %s9310_s11  ;;  %1950 = vrot.lane.b32.xlu1 %v11436_v10, %s9305_s6 }
 0x203   :  { %2350 = vrot.lane.b32.xlu0 %v11436_v10, %s9311_s12  ;;  %2030 = vrot.lane.b32.xlu1 %v11436_v10, %s9307_s8 }
 0x205   :  { %v11462_v36 = vpop.permute.xlu1 %1858 }
 0x206   :  { %v1921_v1 = vsel %vm16033_vm14, 0.0, %v11462_v36  ;;  %vm16046_vm14 = vcmask 785408  }
 0x207   :  { %2430 = vrot.lane.b32.xlu0 %v11436_v10, %s9312_s13  ;;  %2110 = vrot.lane.b32.xlu1 %v11436_v10, %s9308_s9 }
 0x209   :  { %v11473_v52 = vpop.permute.xlu1 %1938 }
 0x20b   :  { %1868 = vrot.lane.b32.xlu0 %v11456_v31, %s9306_s7  ;;  %2188 = vrot.lane.b32.xlu1 %v11456_v31, %s9309_s10  ;;  %v1652_v37 = vpop.f32.mrb[8].mxu0 }
 0x20c   :  { %v1654_v46 = vpop.f32.mrb[9].mxu0  ;;  %v1796_v33 = vmul.f32 %v11330_v5, %v1652_v37 }
 0x20d   :  { %v1656_v12 = vpop.f32.mrb[10].mxu0  ;;  %v1797_v30 = vmul.f32 %v11330_v5, %v1654_v46 }
 0x20e   :  { %v1657_v54 = vpop.f32.mrb[11].mxu0  ;;  %v11482_v12 = vpop.permute.xlu1 %2018  ;;  %v1818_v16 = vadd.f32 %v11332_v6, %v1796_v33 }
 0x20f   :  { %1948 = vrot.lane.b32.xlu0 %v11456_v31, %s9305_s6  ;;  %2268 = vrot.lane.b32.xlu1 %v11456_v31, %s9310_s11  ;;  %v1819_v8 = vadd.f32 %v11332_v6, %v1797_v30 }
 0x210   :  { %v11500_v17 = vmax.f32 %v1818_v16, 0.0 }
 0x212   :  { %v11493_v54 = vpop.permute.xlu1 %2098  ;;  %16029 = vst [vmem:[#allocation134_spill] sm:$0xff] %v11500_v17 }
 0x213   :  { %2028 = vrot.lane.b32.xlu0 %v11456_v31, %s9307_s8  ;;  %2348 = vrot.lane.b32.xlu1 %v11456_v31, %s9311_s12 }
 0x217   :  { %2108 = vrot.lane.b32.xlu0 %v11456_v31, %s9308_s9  ;;  %2428 = vrot.lane.b32.xlu1 %v11456_v31, %s9312_s13 }
 0x21b   :  { %1872 = vrot.lane.b32.xlu0 %v11480_v55, %s9306_s7  ;;  %2192 = vrot.lane.b32.xlu1 %v11480_v55, %s9309_s10 }
 0x21f   :  { %1952 = vrot.lane.b32.xlu0 %v11480_v55, %s9305_s6  ;;  %2272 = vrot.lane.b32.xlu1 %v11480_v55, %s9310_s11 }
 0x223   :  { %2032 = vrot.lane.b32.xlu0 %v11480_v55, %s9307_s8  ;;  %2352 = vrot.lane.b32.xlu1 %v11480_v55, %s9311_s12 }
 0x225   :  { %v11502_v11 = vpop.permute.xlu0 %2182  ;;  %v11504_v37 = vpop.permute.xlu1 %1862 }
 0x227   :  { %2112 = vrot.lane.b32.xlu0 %v11480_v55, %s9308_s9  ;;  %1874 = vrot.lane.b32.xlu1 %v11500_v17, %s9306_s7 }
 0x229   :  { %v11510_v13 = vpop.permute.xlu0 %2022  ;;  %v11512_v33 = vpop.permute.xlu1 %1942 }
 0x22b   :  { %2194 = vrot.lane.b32.xlu0 %v11500_v17, %s9309_s10  ;;  %1954 = vrot.lane.b32.xlu1 %v11500_v17, %s9305_s6  ;;  %v1693_v16 = vpop.f32.mrb[8].mxu1 }
 0x22c   :  { %v1695_v53 = vpop.f32.mrb[9].mxu1 }
 0x22d   :  { %v11519_v38 = vpop.permute.xlu0 %2102  ;;  %v2179_v2 = vpop.permute.xlu1 %2178 }
 0x22e   :  { %v1697_v61 = vpop.f32.mrb[10].mxu1 }
 0x22f   :  { %2274 = vrot.lane.b32.xlu0 %v11500_v17, %s9310_s11  ;;  %2034 = vrot.lane.b32.xlu1 %v11500_v17, %s9307_s8  ;;  %v1698_v26 = vpop.f32.mrb[11].mxu1  ;;  %v11534_v61 = vmax.f32 %v1819_v8, 0.0 }
 0x230   :  { %v1798_v26 = vmul.f32 %v11330_v5, %v1693_v16 }
 0x231   :  { %v11526_v14 = vpop.permute.xlu0 %2258  ;;  %v11528_v59 = vpop.permute.xlu1 %2262  ;;  %16030 = vst [vmem:[#allocation135_spill] sm:$0xff] %v11534_v61 }
 0x232   :  { %v1820_v3 = vadd.f32 %v11332_v6, %v1798_v26  ;;  %v2001_v26 = vsel %vm16034_vm5, 0.0, %v11473_v52  ;;  %vm16047_vm5 = vmmov %vm16046_vm14 }
 0x233   :  { %2354 = vrot.lane.b32.xlu0 %v11500_v17, %s9311_s12  ;;  %2114 = vrot.lane.b32.xlu1 %v11500_v17, %s9308_s9 }
 0x234   :  { %v11558_v40 = vmax.f32 %v1820_v3, 0.0 }
 0x235   :  { %v11536_v46 = vpop.permute.xlu0 %2418  ;;  %v11538_v23 = vpop.permute.xlu1 %2342 }
 0x236   :  { %16032 = vst [vmem:[#allocation137_spill] sm:$0xff] %v11558_v40 }
 0x237   :  { %1876 = vrot.lane.b32.xlu0 %v11534_v61, %s9306_s7  ;;  %2432 = vrot.lane.b32.xlu1 %v11480_v55, %s9312_s13  ;;  %v2002_v55 = vmul.f32 %v9566_v29, %v2001_v26 }
 0x239   :  { %v11545_v30 = vpop.permute.xlu0 %2422  ;;  %v11547_v42 = vpop.permute.xlu1 %2338 }
 0x23b   :  { %1956 = vrot.lane.b32.xlu0 %v11534_v61, %s9305_s6  ;;  %2196 = vrot.lane.b32.xlu1 %v11534_v61, %s9309_s10  ;;  %v11554_v8 = vpop.f32.mrb[12].mxu0 }
 0x23c   :  { %v11556_v16 = vpop.f32.mrb[13].mxu0 }
 0x23d   :  { %16031 = vst [vmem:[#allocation136_spill] sm:$0xff] %v11556_v16  ;;  %v1861_v4 = vpop.permute.xlu0 %1860  ;;  %v2181_v7 = vpop.permute.xlu1 %2180 }
 0x23e   :  { %v1738_v35 = vpop.f32.mrb[14].mxu0  ;;  %v1890_v44 = vsel %vm16035_vm15, %v11462_v36, %v1861_v4  ;;  %v1799_v36 = vmul.f32 %v11330_v5, %v1695_v53  ;;  %vm16052_vm15 = vmmov %vm16037_vm1 }
 0x23f   :  { %2036 = vrot.lane.b32.xlu0 %v11534_v61, %s9307_s8  ;;  %v1739_v18 = vpop.f32.mrb[15].mxu0  ;;  %1878 = vrot.lane.b32.xlu1 %v11558_v40, %s9306_s7  ;;  %v1922_v35 = vmul.f32 %v9549_v24, %v1921_v1  ;;  %v1923_v31 = vmul.f32 %v9556_v27, %v1890_v44  ;;  %v2161_v44 = vsel %vm15723_vm13, 0.0, %v11493_v54 }
 0x240   :  { %v2162_v24 = vmul.f32 %v9619_v48, %v2161_v44 }
 0x241   :  { %v1941_v10 = vpop.permute.xlu0 %1940  ;;  %v11570_v3 = vpop.permute.xlu1 %2024  ;;  %v2498_v26 = vpack.c.bf16 %v2002_v55, %v1922_v35 }
 0x242   :  { %v1970_v21 = vsel %vm16036_vm0, %v11473_v52, %v1941_v10  ;;  %v2081_v52 = vsel %vm15721_vm11, 0.0, %v11482_v12  ;;  %v1971_v44 = vsel %vm16039_vm4, %v1941_v10, %v11512_v33  ;;  %vm16053_vm0 = vmmov %vm16037_vm1 }
 0x243   :  { %v2003_v18 = vmul.f32 %v9561_v28, %v1970_v21  ;;  %2116 = vrot.lane.b32.xlu0 %v11534_v61, %s9308_s9  ;;  %1958 = vrot.lane.b32.xlu1 %v11558_v40, %s9305_s6  ;;  %v2211_v21 = vsel %vm16005_vm7, %v2181_v7, %v11502_v11  ;;  %v2210_v28 = vsel %vm16037_vm1, %v2179_v2, %v2181_v7  ;;  %vm16056_vm7 = vcmask 1043456   ;;  %vm16057_vm1 = vmmov %vm16047_vm5 }
 0x244   :  { %v2243_v27 = vmul.f32 %v9651_v62, %v2211_v21  ;;  %v2242_v2 = vmul.f32 %v9669_v22, %v2210_v28  ;;  %vm16058_vm4 = vmmov %vm16056_vm7 }
 0x245   :  { %v2021_v43 = vpop.permute.xlu0 %2020  ;;  %v11583_v16 = vpop.permute.xlu1 %2104  ;;  %v2499_v1 = vpack.c.bf16 %v2003_v18, %v1923_v31  ;;  %v1821_v31 = vadd.f32 %v11332_v6, %v1799_v36  ;;  %v2082_v18 = vmul.f32 %v9609_v45, %v2081_v52 }
 0x246   :  { %v2050_v53 = vsel %vm15721_vm11, %v11482_v12, %v2021_v43  ;;  %v2531_v21 = vpack.c.bf16 %v2243_v27, %v11377_v19  ;;  %v2530_v27 = vpack.c.bf16 %v2242_v2, %v11336_v9  ;;  %v2051_v2 = vsel %vm15721_vm11, %v2021_v43, %v11510_v13  ;;  %v16051_v9 = vld [vmem:[#allocation15_spill] sm:$0xff] }
 0x247   :  { %2434 = vrot.lane.b32.xlu0 %v11500_v17, %s9312_s13  ;;  %2630 = vmatprep.subr.bf16.mxu0 %v2499_v1  ;;  %v2083_v12 = vmul.f32 %v9622_v49, %v2050_v53  ;;  %v11610_v36 = vmax.f32 %v1821_v31, 0.0  ;;  %v2514_v7 = vpack.c.bf16 %v2162_v24, %v2082_v18  ;;  %v2132_v53 = vsel %vm15723_vm13, %v11519_v38, %v11583_v16 }
 0x248   :  { %2276 = vrot.lane.b32.xlu1 %v11534_v61, %s9310_s11  ;;  %2631 = vmatpush1.bf16.msra.mxu0 %v2498_v26  ;;  %v1891_v24 = vsel %vm16041_vm10, %v1861_v4, %v11504_v37  ;;  %v2004_v31 = vmul.f32 %v9725_v56, %v1971_v44  ;;  %v2052_v18 = vsel %vm15721_vm11, %v11510_v13, %v11570_v3  ;;  %vm16060_vm10 = vmmov %vm16045_vm8 }
 0x249   :  { %v2101_v55 = vpop.permute.xlu0 %2100  ;;  %v2421_v35 = vpop.permute.xlu1 %2420  ;;  %16038 = vst [vmem:[#allocation138_spill] sm:$0xff] %v11610_v36  ;;  %v2084_v13 = vmul.f32 %v9864_v57, %v2051_v2 }
 0x24a   :  { %v2130_v1 = vsel %vm15723_vm13, %v11493_v54, %v2101_v55  ;;  %v2131_v4 = vsel %vm15723_vm13, %v2101_v55, %v11519_v38 }
 0x24b   :  { %v2163_v29 = vmul.f32 %v9629_v51, %v2130_v1  ;;  %2198 = vrot.lane.b32.xlu0 %v11558_v40, %s9309_s10 }
 0x24c   :  { %2356 = vrot.lane.b32.xlu1 %v11534_v61, %s9311_s12 }
 0x24d   :  { %v11612_v26 = vpop.permute.xlu0 %1864  ;;  %v11614_v52 = vpop.permute.xlu1 %2184  ;;  %v2515_v54 = vpack.c.bf16 %v2163_v29, %v2083_v12  ;;  %v2165_v12 = vmul.f32 %v9849_v47, %v2132_v53  ;;  %v2164_v53 = vmul.f32 %v9833_v25, %v2131_v4  ;;  %v16082_v47 = vld [vmem:[#allocation24_spill] sm:$0xff] }
 0x24e   :  { %v1892_v29 = vsel %vm16040_vm9, %v11504_v37, %v11612_v26  ;;  %vm16059_vm9 = vmmov %vm16017_vm2 }
 0x24f   :  { %1880 = vrot.lane.b32.xlu0 %v11610_v36, %s9306_s7  ;;  %2632 = vmatprep.subr.bf16.mxu0 %v2515_v54  ;;  %v1925_v37 = vmul.f32 %v9707_v50, %v1892_v29  ;;  %v2450_v29 = vsel %vm16017_vm2, %v11536_v46, %v2421_v35  ;;  %vm16063_vm2 = vmmov %vm16057_vm1 }
 0x250   :  { %2038 = vrot.lane.b32.xlu1 %v11558_v40, %s9307_s8  ;;  %2633 = vmatpush1.bf16.msra.mxu0 %v2514_v7  ;;  %v1924_v7 = vmul.f32 %v9735_v60, %v1891_v24  ;;  %v2451_v24 = vsel %vm16043_vm6, %v2421_v35, %v11545_v30  ;;  %v2482_v35 = vmul.f32 %v9881_v41, %v2450_v29  ;;  %vm16066_vm6 = vcmask 588800   ;;  %v16087_v60 = vld [vmem:[#allocation39_spill] sm:$0xff] }
 0x251   :  { %v11632_v28 = vpop.permute.xlu0 %1944  ;;  %2634 = vmatprep.subr.bf16.mxu0 %v2531_v21  ;;  %v11634_v10 = vpop.permute.xlu1 %2264 }
 0x252   :  { %v1972_v1 = vsel %vm16042_vm3, %v11512_v33, %v11632_v28  ;;  %v2085_v33 = vmul.f32 %v9836_v39, %v2052_v18  ;;  %v2500_v21 = vpack.c.bf16 %v2004_v31, %v1924_v7  ;;  %vm16061_vm3 = vmmov %vm16045_vm8  ;;  %v16081_v39 = vld [vmem:[#allocation27_spill] sm:$0xff] }
 0x253   :  { %v2005_v54 = vmul.f32 %v9718_v0, %v1972_v1  ;;  %1960 = vrot.lane.b32.xlu0 %v11610_v36, %s9305_s6 }
 0x254   :  { %2118 = vrot.lane.b32.xlu1 %v11558_v40, %s9308_s9  ;;  %2635 = vmatpush1.bf16.msra.mxu0 %v2530_v27  ;;  %v2517_v43 = vpack.c.bf16 %v2165_v12, %v2085_v33  ;;  %v2516_v12 = vpack.c.bf16 %v2164_v53, %v2084_v13  ;;  %v16048_v33 = vld [vmem:[#allocation16_spill] sm:$0xff] }
 0x255   :  { %v2261_v44 = vpop.permute.xlu0 %2260  ;;  %v11657_v38 = vpop.permute.xlu1 %2344  ;;  %v2501_v55 = vpack.c.bf16 %v2005_v54, %v1925_v37  ;;  %v2483_v37 = vmul.f32 %v9878_v15, %v2451_v24 }
 0x256   :  { %v2290_v31 = vsel %vm16044_vm12, %v11526_v14, %v2261_v44  ;;  %v2291_v18 = vsel %vm16045_vm8, %v2261_v44, %v11528_v59  ;;  %v16049_v44 = vld [vmem:[#allocation14_spill] sm:$0xff]  ;;  %vm16069_vm12 = vmmov %vm16059_vm9 }
 0x257   :  { %2278 = vrot.lane.b32.xlu0 %v11558_v40, %s9310_s11  ;;  %2671 = vmatprep.subr.bf16.mxu1 %v2501_v55  ;;  %v11666_v27 = vpop.f32.mrb[12].mxu1  ;;  %v2322_v2 = vmul.f32 %v16048_v33, %v2290_v31  ;;  %v2323_v55 = vmul.f32 %v16049_v44, %v2291_v18  ;;  %vm16070_vm8 = vmmov %vm16058_vm4 }
 0x258   :  { %2436 = vrot.lane.b32.xlu1 %v11534_v61, %s9312_s13  ;;  %2672 = vmatpush1.bf16.msra.mxu1 %v2500_v21  ;;  %v11675_v46 = vpop.f32.mrb[13].mxu1  ;;  %v16050_v21 = vld [vmem:[#allocation17_spill] sm:$0xff] }
 0x259   :  { %v2341_v1 = vpop.permute.xlu0 %2340  ;;  %2673 = vmatprep.subr.bf16.mxu1 %v2517_v43  ;;  %v11678_v4 = vpop.permute.xlu1 %2424 }
 0x25a   :  { %v2370_v14 = vsel %vm16046_vm14, %v11547_v42, %v2341_v1  ;;  %v2371_v54 = vsel %vm16047_vm5, %v2341_v1, %v11538_v23  ;;  %v1779_v7 = vpop.f32.mrb[14].mxu1  ;;  %v2212_v42 = vsel %vm16052_vm15, %v11502_v11, %v11614_v52  ;;  %v2562_v1 = vpack.c.bf16 %v2482_v35, %v2482_v35  ;;  %vm16071_vm14 = vmmov %vm16058_vm4 }
 0x25b   :  { %v2402_v29 = vmul.f32 %v16050_v21, %v2370_v14  ;;  %v2403_v43 = vmul.f32 %v16051_v9, %v2371_v54  ;;  %2358 = vrot.lane.b32.xlu0 %v11558_v40, %s9311_s12  ;;  %v1780_v53 = vpop.f32.mrb[15].mxu1  ;;  %v2563_v14 = vpack.c.bf16 %v2483_v37, %v2483_v37  ;;  %v16054_v54 = vld [vmem:[#allocation22_spill] sm:$0xff]  ;;  %v16055_v7 = vld [vmem:[#allocation23_spill] sm:$0xff]  ;;  %v1800_v35 = vmul.f32 %v11330_v5, %v11554_v8  ;;  %vm16073_vm5 = vmmov %vm16066_vm6 }
 0x25c   :  { %2200 = vrot.lane.b32.xlu1 %v11610_v36, %s9309_s10  ;;  %2674 = vmatpush1.bf16.msra.mxu1 %v2516_v12  ;;  %v2244_v12 = vmul.f32 %v16054_v54, %v2212_v42  ;;  %v2583_v8 = vsel %vm16058_vm4, %v2562_v1, 0  ;;  %vm16075_vm15 = vcmask 261120   ;;  %vm16083_vm4 = vcmask 1039360  }
 0x25d   :  { %v2546_v24 = vpack.c.bf16 %v2402_v29, %v2322_v2  ;;  %v11700_v13 = vpop.permute.xlu0 %2186  ;;  %v11702_v31 = vpop.permute.xlu1 %1866  ;;  %v2547_v18 = vpack.c.bf16 %v2403_v43, %v2323_v55  ;;  %v2372_v29 = vsel %vm16057_vm1, %v11538_v23, %v11657_v38  ;;  %v2452_v43 = vsel %vm16059_vm9, %v11545_v30, %v11678_v4  ;;  %vm16078_vm1 = vmmov %vm16075_vm15 }
 0x25e   :  { %v2213_v11 = vsel %vm16053_vm0, %v11614_v52, %v11700_v13  ;;  %v2532_v55 = vpack.c.bf16 %v2244_v12, %v11348_v63  ;;  %v1822_v23 = vadd.f32 %v11332_v6, %v1800_v35  ;;  %v16065_v35 = vld [vmem:[#allocation31_spill] sm:$0xff]  ;;  %vm16076_vm0 = vcmask 269312   ;;  %vm16086_vm9 = vmmov %vm16083_vm4 }
 0x25f   :  { %v2245_v53 = vmul.f32 %v16055_v7, %v2213_v11  ;;  %2040 = vrot.lane.b32.xlu0 %v11610_v36, %s9307_s8  ;;  %2636 = vmatprep.subr.bf16.mxu0 %v2547_v18  ;;  %v2292_v18 = vsel %vm16061_vm3, %v11528_v59, %v11634_v10  ;;  %v16062_v11 = vld [vmem:[#allocation30_spill] sm:$0xff]  ;;  %v16067_v59 = vld [vmem:[#allocation28_spill] sm:$0xff]  ;;  %v16080_v7 = vld [vmem:[#allocation25_spill] sm:$0xff] }
 0x260   :  { %2280 = vrot.lane.b32.xlu1 %v11610_v36, %s9310_s11  ;;  %2637 = vmatpush1.bf16.msra.mxu0 %v2546_v24  ;;  %v11736_v24 = vld [vmem:[%s8321_s28] sm:$0xf]  ;;  %s12842_s28 = sld [smem:[%s15438_s0 + %s9322_s24]]  }
 0x261   :  { %v11715_v2 = vpop.permute.xlu0 %2266  ;;  %8508 = vmatprep.subr.msk.bf16.mxu0 %vm16056_vm7, %v2563_v14  ;;  %v11718_v52 = vpop.permute.xlu1 %1946  ;;  %v2533_v37 = vpack.c.bf16 %v2245_v53, %v11384_v58  ;;  %v2404_v14 = vmul.f32 %v16062_v11, %v2372_v29  ;;  %v2484_v53 = vmul.f32 %v10137_v20, %v2452_v43  ;;  %vm16077_vm7 = vmmov %vm16076_vm0 }
 0x262   :  { %v2293_v42 = vsel %vm16060_vm10, %v11634_v10, %v11715_v2  ;;  %v2324_v10 = vmul.f32 %v16067_v59, %v2292_v18  ;;  %v1893_v20 = vsel %vm16077_vm7, %v11612_v26, %v11702_v31  ;;  %vm16089_vm10 = vmmov %vm16063_vm2  ;;  %vm16113_vm7 = vcmask 1043456  }
 0x263   :  { %2120 = vrot.lane.b32.xlu0 %v11610_v36, %s9308_s9  ;;  %2675 = vmatprep.subr.bf16.mxu1 %v2533_v37  ;;  %v16064_v37 = vld [vmem:[#allocation29_spill] sm:$0xff]  ;;  %v2564_v63 = vpack.c.bf16 %v2484_v53, %v2484_v53  ;;  %v1926_v25 = vmul.f32 %v16082_v47, %v1893_v20 }
 0x264   :  { %2360 = vrot.lane.b32.xlu1 %v11610_v36, %s9311_s12  ;;  %2639 = vmatpush1.bf16.msra.mxu0 %v2583_v8  ;;  %v2325_v8 = vmul.f32 %v16064_v37, %v2293_v42  ;;  %v2548_v42 = vpack.c.bf16 %v2404_v14, %v2324_v10  ;;  %v16072_v14 = vld [vmem:[#allocation136_spill] sm:$0xff] }
 0x265   :  { %2676 = vmatpush1.bf16.msra.mxu1 %v2532_v55  ;;  %v11742_v1 = vpop.permute.xlu0 %2346  ;;  %v11744_v30 = vpop.permute.xlu1 %2026  ;;  %v1801_v53 = vmul.f32 %v11330_v5, %v16072_v14 }
 0x266   :  { %v2373_v12 = vsel %vm16063_vm2, %v11657_v38, %v11742_v1  ;;  %v11761_v38 = vmax.f32 %v1822_v23, 0.0  ;;  %vm16095_vm2 = vmmov %vm16078_vm1 }
 0x267   :  { %v2405_v58 = vmul.f32 %v16065_v35, %v2373_v12  ;;  %2438 = vrot.lane.b32.xlu0 %v11558_v40, %s9312_s13  ;;  %8509 = vmatmul.mubr.msk.bf16.vlgmr.msra.gmra.mrb[16].mxu0 %vm16066_vm6, %v11736_v24  ;;  %vm16097_vm6 = vmmov %vm16089_vm10 }
 0x268   :  { %2440 = vrot.lane.b32.xlu1 %v11610_v36, %s9312_s13  ;;  %2744 = vmatprep.mubr.bf16.mxu0 %v15778_v32  ;;  %16068 = vst [vmem:[#allocation16_spill] sm:$0xff] %v11761_v38 }
 0x269   :  { %v11763_v55 = vpop.permute.xlu0 %2426  ;;  %v11765_v29 = vpop.permute.xlu1 %2106  ;;  %v2549_v43 = vpack.c.bf16 %v2405_v58, %v2325_v8 }
 0x26a   :  { %v2453_v12 = vsel %vm16069_vm12, %v11678_v4, %v11763_v55  ;;  %v2589_v4 = vsel %vm16071_vm14, %v2564_v63, 0  ;;  %v1823_v63 = vadd.f32 %v11332_v6, %v1801_v53  ;;  %v1973_v53 = vsel %vm16075_vm15, %v11632_v28, %v11718_v52  ;;  %v16079_v28 = vld [vmem:[#allocation26_spill] sm:$0xff]  ;;  %vm16099_vm14 = vmmov %vm16076_vm0 }
 0x26b   :  { %v2485_v18 = vmul.f32 %v10134_v34, %v2453_v12  ;;  %2202 = vrot.lane.b32.xlu0 %v11761_v38, %s9309_s10  ;;  %2677 = vmatprep.subr.bf16.mxu1 %v2549_v43  ;;  %v1802_v34 = vmul.f32 %v11330_v5, %v11666_v27  ;;  %v2006_v59 = vmul.f32 %v16079_v28, %v1973_v53  ;;  %vm16102_vm15 = vmmov %vm16061_vm3 }
 0x26c   :  { %1882 = vrot.lane.b32.xlu1 %v11761_v38, %s9306_s7  ;;  %2678 = vmatpush1.bf16.msra.mxu1 %v2548_v42  ;;  %v11807_v12 = vmax.f32 %v1823_v63, 0.0  ;;  %v2133_v53 = vsel %vm15723_vm13, %v11583_v16, %v11765_v29 }
 0x26d   :  { %v2565_v23 = vpack.c.bf16 %v2485_v18, %v2485_v18  ;;  %v11775_v19 = vpop.permute.xlu0 %2190  ;;  %v11777_v58 = vpop.permute.xlu1 %1870  ;;  %v1824_v27 = vadd.f32 %v11332_v6, %v1802_v34  ;;  %v2502_v50 = vpack.c.bf16 %v2006_v59, %v1926_v25  ;;  %v2053_v25 = vsel %vm15721_vm11, %v11570_v3, %v11744_v30 }
 0x26e   :  { %16074 = vst [vmem:[#allocation14_spill] sm:$0xff] %v11807_v12 }
 0x26f   :  { %2282 = vrot.lane.b32.xlu0 %v11761_v38, %s9310_s11  ;;  %8510 = vmatprep.subr.msk.bf16.mxu1 %vm16070_vm8, %v2565_v23  ;;  %vm16098_vm8 = vmmov %vm16069_vm12 }
 0x270   :  { %1962 = vrot.lane.b32.xlu1 %v11761_v38, %s9305_s6  ;;  %2680 = vmatpush1.bf16.msra.mxu1 %v2589_v4 }
 0x271   :  { %v11787_v8 = vpop.permute.xlu0 %2270  ;;  %v11789_v10 = vpop.permute.xlu1 %1950 }
 0x273   :  { %2362 = vrot.lane.b32.xlu0 %v11761_v38, %s9311_s12  ;;  %8511 = vmatmul.mubr.msk.bf16.vlgmr.msra.gmra.mrb[16].mxu1 %vm16073_vm5, %v11736_v24  ;;  %vm16100_vm5 = vmmov %vm16076_vm0 }
 0x274   :  { %2042 = vrot.lane.b32.xlu1 %v11761_v38, %s9307_s8  ;;  %2785 = vmatprep.mubr.bf16.mxu1 %v15778_v32 }
 0x275   :  { %v11799_v43 = vpop.permute.xlu0 %2350  ;;  %v11801_v42 = vpop.permute.xlu1 %2030 }
 0x277   :  { %2442 = vrot.lane.b32.xlu0 %v11761_v38, %s9312_s13 }
 0x278   :  { %2122 = vrot.lane.b32.xlu1 %v11761_v38, %s9308_s9 }
 0x279   :  { %v11809_v18 = vpop.permute.xlu0 %2430  ;;  %v11811_v23 = vpop.permute.xlu1 %2110 }
 0x27b   :  { %1884 = vrot.lane.b32.xlu0 %v11807_v12, %s9306_s7 }
 0x27c   :  { %2204 = vrot.lane.b32.xlu1 %v11807_v12, %s9309_s10 }
 0x27d   :  { %v11817_v4 = vpop.permute.xlu0 %1868  ;;  %v2189_v14 = vpop.permute.xlu1 %2188 }
 0x27e   :  { %v1894_v63 = vsel %vm16076_vm0, %v11702_v31, %v11817_v4  ;;  %vm16105_vm0 = vmmov %vm16078_vm1 }
 0x27f   :  { %1964 = vrot.lane.b32.xlu0 %v11807_v12, %s9305_s6  ;;  %v1927_v54 = vmul.f32 %v16080_v7, %v1894_v63  ;;  %v2214_v63 = vsel %vm16086_vm9, %v11700_v13, %v2189_v14  ;;  %vm16119_vm9 = vmmov %vm16083_vm4 }
 0x280   :  { %2284 = vrot.lane.b32.xlu1 %v11807_v12, %s9310_s11 }
 0x281   :  { %v1949_v35 = vpop.permute.xlu0 %1948  ;;  %v2269_v11 = vpop.permute.xlu1 %2268 }
 0x282   :  { %v1974_v37 = vsel %vm16078_vm1, %v11718_v52, %v1949_v35  ;;  %v2295_v13 = vsel %vm16061_vm3, %v2269_v11, %v11787_v8  ;;  %vm16117_vm1 = vmmov %vm16113_vm7 }
 0x283   :  { %v2007_v57 = vmul.f32 %v16081_v39, %v1974_v37  ;;  %2044 = vrot.lane.b32.xlu0 %v11807_v12, %s9307_s8  ;;  %v2215_v37 = vsel %vm16083_vm4, %v2189_v14, %v11775_v19  ;;  %v16090_v39 = vld [vmem:[#allocation35_spill] sm:$0xff]  ;;  %v16092_v14 = vld [vmem:[#allocation38_spill] sm:$0xff]  ;;  %vm16125_vm3 = vmmov %vm16097_vm6 }
 0x284   :  { %2364 = vrot.lane.b32.xlu1 %v11807_v12, %s9311_s12  ;;  %v2247_v0 = vmul.f32 %v16087_v60, %v2215_v37 }
 0x285   :  { %v11845_v26 = vpop.permute.xlu0 %2028  ;;  %v2349_v31 = vpop.permute.xlu1 %2348  ;;  %v2503_v52 = vpack.c.bf16 %v2007_v57, %v1927_v54  ;;  %v11859_v57 = vmax.f32 %v1824_v27, 0.0  ;;  %v16085_v54 = vld [vmem:[#allocation34_spill] sm:$0xff] }
 0x286   :  { %v2054_v34 = vsel %vm15721_vm11, %v11744_v30, %v11845_v26  ;;  %v2166_v59 = vmul.f32 %v16085_v54, %v2133_v53  ;;  %v2375_v47 = vsel %vm16089_vm10, %v2349_v31, %v11799_v43  ;;  %v2374_v28 = vsel %vm16097_vm6, %v11742_v1, %v2349_v31  ;;  %v16101_v31 = vld [vmem:[#allocation130_spill] sm:$0xff] }
 0x287   :  { %2124 = vrot.lane.b32.xlu0 %v11807_v12, %s9308_s9  ;;  %2712 = vmatprep.subr.bf16.mxu0 %v2503_v52  ;;  %16084 = vst [vmem:[#allocation17_spill] sm:$0xff] %v11859_v57  ;;  %v16088_v52 = vld [vmem:[#allocation33_spill] sm:$0xff]  ;;  %v1803_v1 = vmul.f32 %v11330_v5, %v11675_v46  ;;  %vm16122_vm10 = vcmask 588800  }
 0x288   :  { %2444 = vrot.lane.b32.xlu1 %v11807_v12, %s9312_s13  ;;  %2713 = vmatpush1.bf16.msra.mxu0 %v2502_v50  ;;  %v2087_v27 = vmul.f32 %v16088_v52, %v2054_v34  ;;  %v16091_v50 = vld [vmem:[#allocation32_spill] sm:$0xff] }
 0x289   :  { %v2109_v20 = vpop.permute.xlu0 %2108  ;;  %v2429_v16 = vpop.permute.xlu1 %2428  ;;  %v2086_v30 = vmul.f32 %v16091_v50, %v2053_v25  ;;  %v16094_v52 = vld [vmem:[#allocation132_spill] sm:$0xff]  ;;  %v1975_v25 = vsel %vm16095_vm2, %v1949_v35, %v11789_v10  ;;  %v1895_v35 = vsel %vm16100_vm5, %v11817_v4, %v11777_v58  ;;  %vm16126_vm2 = vmmov %vm16102_vm15 }
 0x28a   :  { %v2134_v56 = vsel %vm15723_vm13, %v11765_v29, %v2109_v20  ;;  %v2246_v29 = vmul.f32 %v16092_v14, %v2214_v63  ;;  %v2535_v54 = vpack.c.bf16 %v2247_v0, %v16094_v52  ;;  %v16096_v50 = vld [vmem:[#allocation44_spill] sm:$0xff]  ;;  %v2454_v63 = vsel %vm16069_vm12, %v11763_v55, %v2429_v16  ;;  %vm16127_vm6 = vmmov %vm16126_vm2 }
 0x28b   :  { %v2167_v3 = vmul.f32 %v16090_v39, %v2134_v56  ;;  %2206 = vrot.lane.b32.xlu0 %v11859_v57, %s9309_s10  ;;  %v2518_v60 = vpack.c.bf16 %v2166_v59, %v2086_v30  ;;  %v16093_v56 = vld [vmem:[#allocation47_spill] sm:$0xff]  ;;  %v2327_v7 = vmul.f32 %v16096_v50, %v2295_v13  ;;  %vm16129_vm12 = vmmov %vm16125_vm3 }
 0x28c   :  { %1886 = vrot.lane.b32.xlu1 %v11859_v57, %s9306_s7  ;;  %v2407_v39 = vmul.f32 %v16093_v56, %v2375_v47  ;;  %v2455_v47 = vsel %vm16098_vm8, %v2429_v16, %v11809_v18  ;;  %v2534_v55 = vpack.c.bf16 %v2246_v29, %v16101_v31  ;;  %v2294_v16 = vsel %vm16102_vm15, %v11715_v2, %v2269_v11  ;;  %v16107_v29 = vld [vmem:[#allocation53_spill] sm:$0xff]  ;;  %v16108_v31 = vld [vmem:[#allocation40_spill] sm:$0xff]  ;;  %v16109_v11 = vld [vmem:[#allocation43_spill] sm:$0xff] }
 0x28d   :  { %v11882_v53 = vpop.permute.xlu0 %1872  ;;  %v11884_v37 = vpop.permute.xlu1 %2192  ;;  %v2519_v34 = vpack.c.bf16 %v2167_v3, %v2087_v27  ;;  %v16103_v3 = vld [vmem:[#allocation42_spill] sm:$0xff]  ;;  %vm16133_vm8 = vmmov %vm16105_vm0 }
 0x28e   :  { %v1896_v0 = vsel %vm16099_vm14, %v11777_v58, %v11882_v53  ;;  %v2008_v30 = vmul.f32 %v16103_v3, %v1975_v25  ;;  %v2551_v46 = vpack.c.bf16 %v2407_v39, %v2327_v7  ;;  %v16106_v58 = vld [vmem:[#allocation52_spill] sm:$0xff]  ;;  %v16111_v39 = vld [vmem:[#allocation41_spill] sm:$0xff]  ;;  %vm16134_vm14 = vmmov %vm16100_vm5 }
 0x28f   :  { %2286 = vrot.lane.b32.xlu0 %v11859_v57, %s9310_s11  ;;  %2714 = vmatprep.subr.bf16.mxu0 %v2519_v34  ;;  %v2486_v4 = vmul.f32 %v16106_v58, %v2454_v63  ;;  %v2487_v34 = vmul.f32 %v16107_v29, %v2455_v47  ;;  %v1929_v2 = vmul.f32 %v16108_v31, %v1896_v0  ;;  %vm16136_vm15 = vmmov %vm16105_vm0 }
 0x290   :  { %1966 = vrot.lane.b32.xlu1 %v11859_v57, %s9305_s6  ;;  %2715 = vmatpush1.bf16.msra.mxu0 %v2518_v60  ;;  %v16104_v60 = vld [vmem:[#allocation46_spill] sm:$0xff]  ;;  %v1928_v7 = vmul.f32 %v16111_v39, %v1895_v35 }
 0x291   :  { %v11912_v59 = vpop.permute.xlu0 %1952  ;;  %2716 = vmatprep.subr.bf16.mxu0 %v2535_v54  ;;  %v11914_v27 = vpop.permute.xlu1 %2272  ;;  %v2406_v13 = vmul.f32 %v16104_v60, %v2374_v28  ;;  %v16110_v54 = vld [vmem:[#allocation45_spill] sm:$0xff]  ;;  %v2566_v3 = vpack.c.bf16 %v2486_v4, %v2486_v4  ;;  %v2567_v31 = vpack.c.bf16 %v2487_v34, %v2487_v34 }
 0x292   :  { %v1976_v5 = vsel %vm16105_vm0, %v11789_v10, %v11912_v59  ;;  %v2326_v25 = vmul.f32 %v16110_v54, %v2294_v16  ;;  %v1825_v10 = vadd.f32 %v11332_v6, %v1803_v1  ;;  %vm16140_vm0 = vcmask 777216  }
 0x293   :  { %v2009_v52 = vmul.f32 %v16109_v11, %v1976_v5  ;;  %2366 = vrot.lane.b32.xlu0 %v11859_v57, %s9311_s12  ;;  %v2504_v5 = vpack.c.bf16 %v2008_v30, %v1928_v7  ;;  %v16114_v30 = vld [vmem:[#allocation50_spill] sm:$0xff] }
 0x294   :  { %2046 = vrot.lane.b32.xlu1 %v11859_v57, %s9307_s8  ;;  %2717 = vmatpush1.bf16.msra.mxu0 %v2534_v55  ;;  %v2550_v0 = vpack.c.bf16 %v2406_v13, %v2326_v25  ;;  %v2135_v55 = vsel %vm15723_vm13, %v2109_v20, %v11811_v23  ;;  %v2055_v20 = vsel %vm15721_vm11, %v11845_v26, %v11801_v42 }
 0x295   :  { %v11932_v28 = vpop.permute.xlu0 %2032  ;;  %2718 = vmatprep.subr.bf16.mxu0 %v2551_v46  ;;  %v2353_v63 = vpop.permute.xlu1 %2352  ;;  %v2505_v47 = vpack.c.bf16 %v2009_v52, %v1929_v2  ;;  %v11943_v52 = vmax.f32 %v1825_v10, 0.0  ;;  %v2168_v13 = vmul.f32 %v16114_v30, %v2135_v55  ;;  %v16115_v46 = vld [vmem:[#allocation48_spill] sm:$0xff]  ;;  %v2595_v2 = vsel %vm16117_vm1, %v2566_v3, 0  ;;  %v16120_v3 = vld [vmem:[#allocation54_spill] sm:$0xff]  ;;  %v16121_v55 = vld [vmem:[#allocation55_spill] sm:$0xff] }
 0x296   :  { %v2056_v6 = vsel %vm15721_vm11, %v11801_v42, %v11932_v28  ;;  %v2216_v25 = vsel %vm16083_vm4, %v11775_v19, %v11884_v37  ;;  %v16118_v42 = vld [vmem:[#allocation49_spill] sm:$0xff]  ;;  %vm16147_vm1 = vmmov %vm16083_vm4 }
 0x297   :  { %2446 = vrot.lane.b32.xlu0 %v11859_v57, %s9312_s13  ;;  %2753 = vmatprep.subr.bf16.mxu1 %v2505_v47  ;;  %16112 = vst [vmem:[#allocation15_spill] sm:$0xff] %v11943_v52  ;;  %v2089_v4 = vmul.f32 %v16115_v46, %v2056_v6  ;;  %vm16150_vm4 = vmmov %vm16147_vm1 }
 0x298   :  { %2126 = vrot.lane.b32.xlu1 %v11859_v57, %s9308_s9  ;;  %2719 = vmatpush1.bf16.msra.mxu0 %v2550_v0 }
 0x299   :  { %2754 = vmatpush1.bf16.msra.mxu1 %v2504_v5  ;;  %v11945_v1 = vpop.permute.xlu0 %2112  ;;  %8512 = vmatprep.subr.msk.bf16.mxu0 %vm16113_vm7, %v2567_v31  ;;  %v1875_v35 = vpop.permute.xlu1 %1874  ;;  %v16116_v31 = vld [vmem:[#allocation51_spill] sm:$0xff]  ;;  %v2248_v5 = vmul.f32 %v16120_v3, %v2216_v25  ;;  %vm16146_vm7 = vmmov %vm16140_vm0 }
 0x29a   :  { %v2136_v16 = vsel %vm15723_vm13, %v11811_v23, %v11945_v1  ;;  %v2088_v23 = vmul.f32 %v16118_v42, %v2055_v20 }
 0x29b   :  { %v2169_v34 = vmul.f32 %v16116_v31, %v2136_v16  ;;  %1888 = vrot.lane.b32.xlu0 %v11943_v52, %s9306_s7  ;;  %v16123_v16 = vld [vmem:[#allocation133_spill] sm:$0xff] }
 0x29c   :  { %2208 = vrot.lane.b32.xlu1 %v11943_v52, %s9309_s10  ;;  %2721 = vmatpush1.bf16.msra.mxu0 %v2595_v2  ;;  %v2520_v0 = vpack.c.bf16 %v2168_v13, %v2088_v23  ;;  %v2376_v2 = vsel %vm16125_vm3, %v11799_v43, %v2353_v63  ;;  %v2296_v23 = vsel %vm16127_vm6, %v11787_v8, %v11914_v27  ;;  %v16145_v31 = vld [vmem:[#allocation65_spill] sm:$0xff]  ;;  %vm16154_vm3 = vmmov %vm16133_vm8 }
 0x29d   :  { %v11970_v26 = vpop.permute.xlu0 %2194  ;;  %v1955_v10 = vpop.permute.xlu1 %1954  ;;  %v2521_v7 = vpack.c.bf16 %v2169_v34, %v2089_v4  ;;  %v16124_v4 = vld [vmem:[#allocation131_spill] sm:$0xff]  ;;  %vm16156_vm6 = vmmov %vm16100_vm5 }
 0x29e   :  { %v2217_v47 = vsel %vm16119_vm9, %v11884_v37, %v11970_v26  ;;  %v2958_v37 = vld [vmem:[%s8322_s2] sm:$0xff]  ;;  %v2536_v34 = vpack.c.bf16 %v2248_v5, %v16124_v4  ;;  %v16131_v4 = vld [vmem:[#allocation63_spill] sm:$0xff]  ;;  %vm16152_vm9 = vcmask 1043456   ;;  %s9332_s2 = smov 11  }
 0x29f   :  { %v2249_v6 = vmul.f32 %v16121_v55, %v2217_v47  ;;  %1968 = vrot.lane.b32.xlu0 %v11943_v52, %s9305_s6  ;;  %8513 = vmatmul.mubr.msk.bf16.vlgmr.msra.gmra.mrb[20].mxu0 %vm16122_vm10, %v11736_v24  ;;  %v2980_v55 = vld [vmem:[%s8323_s14] sm:$0xff]  ;;  %vm16153_vm10 = vmmov %vm16152_vm9  ;;  %s9326_s14 = smov 15  }
 0x2a0   :  { %2368 = vrot.lane.b32.xlu1 %v11943_v52, %s9311_s12  ;;  %2755 = vmatprep.subr.bf16.mxu1 %v2521_v7  ;;  %s8332_s26 = sld [smem:[%s15438_s0 + %s9326_s14]]  }
 0x2a1   :  { %2756 = vmatpush1.bf16.msra.mxu1 %v2520_v0  ;;  %v11983_v19 = vpop.permute.xlu0 %2274  ;;  %v2035_v20 = vpop.permute.xlu1 %2034  ;;  %v2537_v13 = vpack.c.bf16 %v2249_v6, %v16123_v16  ;;  %2826 = vmatprep.mubr.bf16.mxu0 %v15778_v32  ;;  %v16128_v0 = vld [vmem:[#allocation62_spill] sm:$0xff]  ;;  %v16130_v6 = vld [vmem:[#allocation60_spill] sm:$0xff] }
 0x2a2   :  { %v2297_v25 = vsel %vm16126_vm2, %v11914_v27, %v11983_v19  ;;  %v2408_v5 = vmul.f32 %v16128_v0, %v2376_v2  ;;  %v16135_v0 = vld [vmem:[#allocation58_spill] sm:$0xff]  ;;  %vm16155_vm2 = vcmask 588800  }
 0x2a3   :  { %2048 = vrot.lane.b32.xlu0 %v11943_v52, %s9307_s8  ;;  %2757 = vmatprep.subr.bf16.mxu1 %v2537_v13  ;;  %v2329_v13 = vmul.f32 %v16130_v6, %v2297_v25 }
 0x2a4   :  { %2961 = vperm.xlu1 %9039, %v2958_v37   ;;  %v16132_v37 = vld [vmem:[#allocation61_spill] sm:$0xff] }
 0x2a5   :  { %2758 = vmatpush1.bf16.msra.mxu1 %v2536_v34  ;;  %v11998_v7 = vpop.permute.xlu0 %2354  ;;  %v2115_v47 = vpop.permute.xlu1 %2114  ;;  %v2328_v3 = vmul.f32 %v16132_v37, %v2296_v23  ;;  %v1897_v23 = vsel %vm16100_vm5, %v11882_v53, %v1875_v35 }
 0x2a6   :  { %v2377_v43 = vsel %vm16129_vm12, %v2353_v63, %v11998_v7  ;;  %v1977_v63 = vsel %vm16133_vm8, %v11912_v59, %v1955_v10  ;;  %v16138_v59 = vld [vmem:[#allocation59_spill] sm:$0xff]  ;;  %vm16157_vm12 = vmmov %vm16100_vm5  ;;  %vm16164_vm5 = vcmask 793600  }
 0x2a7   :  { %v2409_v16 = vmul.f32 %v16131_v4, %v2377_v43  ;;  %2128 = vrot.lane.b32.xlu0 %v11943_v52, %s9308_s9  ;;  %v2552_v2 = vpack.c.bf16 %v2408_v5, %v2328_v3  ;;  %v2010_v6 = vmul.f32 %v16135_v0, %v1977_v63  ;;  %v2137_v63 = vsel %vm15723_vm13, %v11945_v1, %v2115_v47  ;;  %vm16159_vm8 = vmmov %vm16154_vm3 }
 0x2a9   :  { %v12011_v8 = vpop.permute.xlu0 %1876  ;;  %v2433_v27 = vpop.permute.xlu1 %2432  ;;  %v2553_v34 = vpack.c.bf16 %v2409_v16, %v2329_v13  ;;  %v16137_v16 = vld [vmem:[#allocation56_spill] sm:$0xff] }
 0x2aa   :  { %v1898_v25 = vsel %vm16134_vm14, %v1875_v35, %v12011_v8  ;;  %vm16163_vm14 = vcmask 785408  }
 0x2ab   :  { %2288 = vrot.lane.b32.xlu0 %v11943_v52, %s9310_s11  ;;  %2759 = vmatprep.subr.bf16.mxu1 %v2553_v34  ;;  %v1931_v5 = vmul.f32 %v16137_v16, %v1898_v25  ;;  %v16139_v34 = vld [vmem:[#allocation57_spill] sm:$0xff] }
 0x2ac   :  { %2760 = vmatpush1.bf16.msra.mxu1 %v2552_v2  ;;  %v1930_v4 = vmul.f32 %v16139_v34, %v1897_v23  ;;  %v2057_v23 = vsel %vm15721_vm11, %v11932_v28, %v2035_v20 }
 0x2ad   :  { %v1957_v43 = vpop.permute.xlu0 %1956  ;;  %v2197_v37 = vpop.permute.xlu1 %2196  ;;  %v2090_v39 = vmul.f32 %v16145_v31, %v2057_v23 }
 0x2ae   :  { %v1978_v3 = vsel %vm16136_vm15, %v1955_v10, %v1957_v43  ;;  %v2506_v53 = vpack.c.bf16 %v2010_v6, %v1930_v4  ;;  %v2456_v10 = vsel %vm16140_vm0, %v11809_v18, %v2433_v27  ;;  %v16144_v18 = vld [vmem:[#allocation67_spill] sm:$0xff]  ;;  %vm16165_vm15 = vmmov %vm16164_vm5 }
 0x2af   :  { %v2011_v13 = vmul.f32 %v16138_v59, %v1978_v3  ;;  %2448 = vrot.lane.b32.xlu0 %v11943_v52, %s9312_s13  ;;  %vm16167_vm0 = vmmov %vm16163_vm14 }
 0x2b1   :  { %v12028_v2 = vpop.permute.xlu0 %2036  ;;  %v2507_v42 = vpack.c.bf16 %v2011_v13, %v1931_v5  ;;  %v1879_v35 = vpop.permute.xlu1 %1878  ;;  %v16141_v5 = vld [vmem:[#allocation66_spill] sm:$0xff]  ;;  %v16143_v13 = vld [vmem:[#allocation64_spill] sm:$0xff] }
 0x2b2   :  { %v2058_v25 = vsel %vm15721_vm11, %v2035_v20, %v12028_v2  ;;  %v2170_v4 = vmul.f32 %v16141_v5, %v2137_v63  ;;  %v2218_v63 = vsel %vm16147_vm1, %v11970_v26, %v2197_v37  ;;  %vm16176_vm1 = vmmov %vm16146_vm7 }
 0x2b3   :  { %2983 = vperm.xlu0 %9038, %v2980_v55   ;;  %2794 = vmatprep.subr.bf16.mxu0 %v2507_v42  ;;  %v16142_v55 = vld [vmem:[#allocation68_spill] sm:$0xff]  ;;  %v2091_v30 = vmul.f32 %v16143_v13, %v2058_v25 }
 0x2b4   :  { %2795 = vmatpush1.bf16.msra.mxu0 %v2506_v53  ;;  %v2488_v42 = vmul.f32 %v16142_v55, %v2456_v10  ;;  %v2522_v34 = vpack.c.bf16 %v2170_v4, %v2090_v39 }
 0x2b5   :  { %v12038_v3 = vpop.permute.xlu0 %2116  ;;  %v1959_v1 = vpop.permute.xlu1 %1958 }
 0x2b6   :  { %v2138_v6 = vsel %vm15723_vm13, %v2115_v47, %v12038_v3  ;;  %v2568_v59 = vpack.c.bf16 %v2488_v42, %v2488_v42  ;;  %v16148_v47 = vld [vmem:[#allocation69_spill] sm:$0xff]  ;;  %v1979_v4 = vsel %vm16154_vm3, %v1957_v43, %v1959_v1  ;;  %vm16181_vm3 = vmmov %vm16153_vm10 }
 0x2b7   :  { %v2171_v46 = vmul.f32 %v16144_v18, %v2138_v6  ;;  %v16149_v6 = vld [vmem:[#allocation70_spill] sm:$0xff] }
 0x2b8   :  { %v2250_v55 = vmul.f32 %v16149_v6, %v2218_v63  ;;  %v2601_v23 = vsel %vm16153_vm10, %v2568_v59, 0  ;;  %v1899_v59 = vsel %vm16157_vm12, %v12011_v8, %v1879_v35  ;;  %vm16184_vm12 = vmmov %vm16176_vm1 }
 0x2b9   :  { %v2435_v53 = vpop.permute.xlu0 %2434  ;;  %v2523_v11 = vpack.c.bf16 %v2171_v46, %v2091_v30  ;;  %v16151_v46 = vld [vmem:[#allocation71_spill] sm:$0xff] }
 0x2ba   :  { %v2457_v28 = vsel %vm16146_vm7, %v2433_v27, %v2435_v53  ;;  %v2277_v20 = vpop.permute.xlu1 %2276 }
 0x2bb   :  { %v2489_v5 = vmul.f32 %v16148_v47, %v2457_v28  ;;  %2796 = vmatprep.subr.bf16.mxu0 %v2523_v11  ;;  %v16158_v28 = vld [vmem:[#allocation74_spill] sm:$0xff] }
 0x2bc   :  { %2797 = vmatpush1.bf16.msra.mxu0 %v2522_v34  ;;  %v2538_v34 = vpack.c.bf16 %v2250_v55, %v11500_v17  ;;  %v2012_v55 = vmul.f32 %v16158_v28, %v1979_v4  ;;  %v16170_v28 = vld [vmem:[#allocation77_spill] sm:$0xff] }
 0x2bd   :  { %v2569_v10 = vpack.c.bf16 %v2489_v5, %v2489_v5  ;;  %v12051_v25 = vpop.permute.xlu0 %2198 }
 0x2be   :  { %v2219_v30 = vsel %vm16150_vm4, %v2197_v37, %v12051_v25  ;;  %v2357_v39 = vpop.permute.xlu1 %2356 }
 0x2bf   :  { %v2251_v27 = vmul.f32 %v16151_v46, %v2219_v30  ;;  %8514 = vmatprep.subr.msk.bf16.mxu1 %vm16152_vm9, %v2569_v10  ;;  %v16160_v10 = vld [vmem:[#allocation72_spill] sm:$0xff]  ;;  %v2378_v8 = vsel %vm16163_vm14, %v11998_v7, %v2357_v39  ;;  %vm16179_vm9 = vmmov %vm16150_vm4 }
 0x2c0   :  { %2762 = vmatpush1.bf16.msra.mxu1 %v2601_v23  ;;  %vm16186_vm14 = vmmov %vm16164_vm5 }
 0x2c1   :  { %v12059_v26 = vpop.permute.xlu0 %1880  ;;  %v2539_v11 = vpack.c.bf16 %v2251_v27, %v11534_v61  ;;  %v16161_v27 = vld [vmem:[#allocation75_spill] sm:$0xff] }
 0x2c2   :  { %v2039_v5 = vpop.permute.xlu1 %2038  ;;  %v1900_v37 = vsel %vm16156_vm6, %v1879_v35, %v12059_v26  ;;  %vm16183_vm6 = vcmask 588800  }
 0x2c3   :  { %8515 = vmatmul.mubr.msk.bf16.vlgmr.msra.gmra.mrb[20].mxu1 %vm16155_vm2, %v11736_v24  ;;  %2798 = vmatprep.subr.bf16.mxu0 %v2539_v11  ;;  %v1933_v30 = vmul.f32 %v16160_v10, %v1900_v37  ;;  %v16162_v11 = vld [vmem:[#allocation73_spill] sm:$0xff]  ;;  %v16166_v37 = vld [vmem:[#allocation78_spill] sm:$0xff]  ;;  %vm16182_vm2 = vmmov %vm16167_vm0 }
 0x2c4   :  { %2799 = vmatpush1.bf16.msra.mxu0 %v2538_v34  ;;  %2867 = vmatprep.mubr.bf16.mxu1 %v15778_v32  ;;  %v1932_v61 = vmul.f32 %v16162_v11, %v1899_v59 }
 0x2c5   :  { %v12071_v42 = vpop.permute.xlu0 %1960 }
 0x2c6   :  { %v1980_v43 = vsel %vm16159_vm8, %v1959_v1, %v12071_v42  ;;  %v2119_v63 = vpop.permute.xlu1 %2118  ;;  %v2508_v47 = vpack.c.bf16 %v2012_v55, %v1932_v61  ;;  %v2298_v1 = vsel %vm16165_vm15, %v11983_v19, %v2277_v20  ;;  %v16169_v55 = vld [vmem:[#allocation79_spill] sm:$0xff]  ;;  %vm16185_vm8 = vmmov %vm16164_vm5 }
 0x2c7   :  { %v2013_v23 = vmul.f32 %v16161_v27, %v1980_v43  ;;  %v2410_v43 = vmul.f32 %v16166_v37, %v2378_v8  ;;  %v2330_v7 = vmul.f32 %v16170_v28, %v2298_v1  ;;  %v2139_v19 = vsel %vm15723_vm13, %v12038_v3, %v2119_v63  ;;  %v16171_v1 = vld [vmem:[#allocation82_spill] sm:$0xff]  ;;  %vm16193_vm15 = vmmov %vm16176_vm1 }
 0x2c8   :  { %v2059_v8 = vsel %vm15721_vm11, %v12028_v2, %v2039_v5 }
 0x2c9   :  { %v12079_v34 = vpop.permute.xlu0 %2278  ;;  %v2509_v17 = vpack.c.bf16 %v2013_v23, %v1933_v30  ;;  %v16168_v30 = vld [vmem:[#allocation76_spill] sm:$0xff]  ;;  %v2554_v27 = vpack.c.bf16 %v2410_v43, %v2330_v7 }
 0x2ca   :  { %v2437_v46 = vpop.permute.xlu1 %2436  ;;  %v2299_v35 = vsel %vm16164_vm5, %v2277_v20, %v12079_v34  ;;  %vm16188_vm5 = vmmov %vm16167_vm0 }
 0x2cb   :  { %2835 = vmatprep.subr.bf16.mxu1 %v2509_v17  ;;  %v2331_v61 = vmul.f32 %v16168_v30, %v2299_v35  ;;  %v2458_v20 = vsel %vm16146_vm7, %v2435_v53, %v2437_v46  ;;  %v16174_v53 = vld [vmem:[#allocation83_spill] sm:$0xff]  ;;  %vm16196_vm7 = vmmov %vm16181_vm3 }
 0x2cc   :  { %2836 = vmatpush1.bf16.msra.mxu1 %v2508_v47 }
 0x2cd   :  { %v2359_v4 = vpop.permute.xlu0 %2358 }
 0x2ce   :  { %v2379_v59 = vsel %vm16167_vm0, %v2357_v39, %v2359_v4  ;;  %v2201_v11 = vpop.permute.xlu1 %2200  ;;  %vm16195_vm0 = vcmask 261120  }
 0x2cf   :  { %v2411_v23 = vmul.f32 %v16169_v55, %v2379_v59  ;;  %v2172_v59 = vmul.f32 %v16171_v1, %v2139_v19  ;;  %v16175_v55 = vld [vmem:[#allocation81_spill] sm:$0xff]  ;;  %v2220_v19 = vsel %vm16150_vm4, %v12051_v25, %v2201_v11  ;;  %vm16198_vm4 = vcmask 269312  }
 0x2d0   :  { %v2092_v30 = vmul.f32 %v16175_v55, %v2059_v8  ;;  %v16180_v8 = vld [vmem:[#allocation87_spill] sm:$0xff] }
 0x2d1   :  { %v12092_v17 = vpop.permute.xlu0 %2040  ;;  %v2555_v10 = vpack.c.bf16 %v2411_v23, %v2331_v61  ;;  %v16172_v23 = vld [vmem:[#allocation84_spill] sm:$0xff] }
 0x2d2   :  { %v2281_v47 = vpop.permute.xlu1 %2280  ;;  %v2060_v39 = vsel %vm15721_vm11, %v2039_v5, %v12092_v17  ;;  %v2490_v3 = vmul.f32 %v16172_v23, %v2458_v20  ;;  %v2524_v6 = vpack.c.bf16 %v2172_v59, %v2092_v30 }
 0x2d3   :  { %2800 = vmatprep.subr.bf16.mxu0 %v2555_v10  ;;  %v16173_v10 = vld [vmem:[#allocation80_spill] sm:$0xff] }
 0x2d4   :  { %2801 = vmatpush1.bf16.msra.mxu0 %v2554_v27  ;;  %v2093_v7 = vmul.f32 %v16173_v10, %v2060_v39  ;;  %v2570_v31 = vpack.c.bf16 %v2490_v3, %v2490_v3 }
 0x2d5   :  { %v12101_v35 = vpop.permute.xlu0 %2120 }
 0x2d6   :  { %v2140_v43 = vsel %vm15723_vm13, %v2119_v63, %v12101_v35  ;;  %v2361_v61 = vpop.permute.xlu1 %2360  ;;  %v16177_v63 = vld [vmem:[#allocation85_spill] sm:$0xff]  ;;  %v2607_v59 = vsel %vm16181_vm3, %v2570_v31, 0  ;;  %v2300_v31 = vsel %vm16186_vm14, %v12079_v34, %v2281_v47 }
 0x2d7   :  { %v2173_v28 = vmul.f32 %v16174_v53, %v2140_v43  ;;  %v16178_v43 = vld [vmem:[#allocation86_spill] sm:$0xff]  ;;  %v2380_v3 = vsel %vm16182_vm2, %v2359_v4, %v2361_v61  ;;  %vm16207_vm2 = vcmask 1039360  }
 0x2d8   :  { %v2252_v53 = vmul.f32 %v16178_v43, %v2220_v19 }
 0x2d9   :  { %v2439_v27 = vpop.permute.xlu0 %2438  ;;  %v2525_v37 = vpack.c.bf16 %v2173_v28, %v2093_v7 }
 0x2da   :  { %v2459_v2 = vsel %vm16176_vm1, %v2437_v46, %v2439_v27  ;;  %v2441_v5 = vpop.permute.xlu1 %2440  ;;  %vm16197_vm1 = vmmov %vm16181_vm3 }
 0x2db   :  { %v2491_v1 = vmul.f32 %v16177_v63, %v2459_v2  ;;  %2837 = vmatprep.subr.bf16.mxu1 %v2525_v37  ;;  %v2540_v37 = vpack.c.bf16 %v2252_v53, %v11558_v40  ;;  %v16187_v53 = vld [vmem:[#allocation94_spill] sm:$0xff]  ;;  %vm16204_vm3 = vmmov %vm16183_vm6 }
 0x2dc   :  { %2838 = vmatpush1.bf16.msra.mxu1 %v2524_v6  ;;  %v2412_v19 = vmul.f32 %v16187_v53, %v2380_v3  ;;  %v16194_v3 = vld [vmem:[#allocation101_spill] sm:$0xff] }
 0x2dd   :  { %v2571_v20 = vpack.c.bf16 %v2491_v1, %v2491_v1  ;;  %v12114_v39 = vpop.permute.xlu0 %2202 }
 0x2de   :  { %v2221_v28 = vsel %vm16179_vm9, %v2201_v11, %v12114_v39  ;;  %v1883_v30 = vpop.permute.xlu1 %1882  ;;  %v2460_v11 = vsel %vm16184_vm12, %v2439_v27, %v2441_v5  ;;  %v16190_v27 = vld [vmem:[#allocation92_spill] sm:$0xff]  ;;  %vm16199_vm9 = vmmov %vm16198_vm4 }
 0x2df   :  { %v2253_v46 = vmul.f32 %v16180_v8, %v2221_v28  ;;  %8516 = vmatprep.subr.msk.bf16.mxu0 %vm16153_vm10, %v2571_v20  ;;  %v16189_v28 = vld [vmem:[#allocation100_spill] sm:$0xff]  ;;  %vm16201_vm10 = vmmov %vm16195_vm0 }
 0x2e0   :  { %2803 = vmatpush1.bf16.msra.mxu0 %v2607_v59  ;;  %vm16214_vm12 = vmmov %vm16188_vm5 }
 0x2e1   :  { %v12122_v25 = vpop.permute.xlu0 %2282  ;;  %v2541_v6 = vpack.c.bf16 %v2253_v46, %v11610_v36  ;;  %v2492_v46 = vmul.f32 %v16189_v28, %v2460_v11 }
 0x2e2   :  { %v1963_v1 = vpop.permute.xlu1 %1962  ;;  %v2301_v7 = vsel %vm16185_vm8, %v2281_v47, %v12122_v25  ;;  %vm16215_vm8 = vmmov %vm16193_vm15 }
 0x2e3   :  { %8517 = vmatmul.mubr.msk.bf16.vlgmr.msra.gmra.mrb[24].mxu0 %vm16183_vm6, %v11736_v24  ;;  %2839 = vmatprep.subr.bf16.mxu1 %v2541_v6  ;;  %v2333_v59 = vmul.f32 %v16190_v27, %v2301_v7  ;;  %v16191_v6 = vld [vmem:[#allocation95_spill] sm:$0xff]  ;;  %v2572_v55 = vpack.c.bf16 %v2492_v46, %v2492_v46  ;;  %v1981_v7 = vsel %vm16195_vm0, %v12071_v42, %v1963_v1  ;;  %v16202_v42 = vld [vmem:[#allocation88_spill] sm:$0xff]  ;;  %vm16212_vm6 = vmmov %vm16207_vm2 }
 0x2e4   :  { %2840 = vmatpush1.bf16.msra.mxu1 %v2540_v37  ;;  %2908 = vmatprep.mubr.bf16.mxu0 %v15778_v32  ;;  %v16192_v37 = vld [vmem:[#allocation93_spill] sm:$0xff]  ;;  %v16203_v46 = vld [vmem:[#allocation91_spill] sm:$0xff]  ;;  %vm16223_vm0 = vmmov %vm16215_vm8 }
 0x2e5   :  { %v12135_v2 = vpop.permute.xlu0 %2362  ;;  %v2332_v40 = vmul.f32 %v16192_v37, %v2300_v31 }
 0x2e6   :  { %v2381_v4 = vsel %vm16188_vm5, %v2361_v61, %v12135_v2  ;;  %v2043_v20 = vpop.permute.xlu1 %2042  ;;  %vm16216_vm5 = vmmov %vm16186_vm14 }
 0x2e7   :  { %v2413_v36 = vmul.f32 %v16191_v6, %v2381_v4  ;;  %v2556_v10 = vpack.c.bf16 %v2412_v19, %v2332_v40 }
 0x2e9   :  { %v2443_v8 = vpop.permute.xlu0 %2442  ;;  %v2557_v43 = vpack.c.bf16 %v2413_v36, %v2333_v59  ;;  %v2613_v36 = vsel %vm16197_vm1, %v2572_v55, 0  ;;  %v16205_v55 = vld [vmem:[#allocation89_spill] sm:$0xff] }
 0x2ea   :  { %v2461_v34 = vsel %vm16193_vm15, %v2441_v5, %v2443_v8  ;;  %v2123_v47 = vpop.permute.xlu1 %2122  ;;  %v1901_v5 = vsel %vm16199_vm9, %v12059_v26, %v1883_v30  ;;  %vm16218_vm15 = vmmov %vm16214_vm12 }
 0x2eb   :  { %v2493_v53 = vmul.f32 %v16194_v3, %v2461_v34  ;;  %2841 = vmatprep.subr.bf16.mxu1 %v2557_v43  ;;  %v1934_v34 = vmul.f32 %v16205_v55, %v1901_v5  ;;  %v16206_v5 = vld [vmem:[#allocation98_spill] sm:$0xff] }
 0x2ec   :  { %2842 = vmatpush1.bf16.msra.mxu1 %v2556_v10  ;;  %v16200_v10 = vld [vmem:[#allocation90_spill] sm:$0xff] }
 0x2ed   :  { %v2573_v61 = vpack.c.bf16 %v2493_v53, %v2493_v53  ;;  %v12146_v63 = vpop.permute.xlu0 %1884  ;;  %v2014_v31 = vmul.f32 %v16200_v10, %v1981_v7  ;;  %v16211_v3 = vld [vmem:[#allocation102_spill] sm:$0xff] }
 0x2ee   :  { %v2205_v11 = vpop.permute.xlu1 %2204  ;;  %v1902_v40 = vsel %vm16198_vm4, %v1883_v30, %v12146_v63  ;;  %vm16226_vm4 = vmmov %vm16197_vm1 }
 0x2ef   :  { %8518 = vmatprep.subr.msk.bf16.mxu1 %vm16196_vm7, %v2573_v61  ;;  %v1935_v4 = vmul.f32 %v16202_v42, %v1902_v40  ;;  %v2510_v61 = vpack.c.bf16 %v2014_v31, %v1934_v34  ;;  %v2061_v40 = vsel %vm15721_vm11, %v12092_v17, %v2043_v20  ;;  %v16210_v42 = vld [vmem:[#allocation97_spill] sm:$0xff]  ;;  %vm16225_vm7 = vmmov %vm16201_vm10 }
 0x2f0   :  { %2844 = vmatpush1.bf16.msra.mxu1 %v2613_v36 }
 0x2f1   :  { %v12156_v43 = vpop.permute.xlu0 %1964 }
 0x2f2   :  { %v1982_v53 = vsel %vm16201_vm10, %v1963_v1, %v12156_v43  ;;  %v2285_v19 = vpop.permute.xlu1 %2284  ;;  %v2141_v1 = vsel %vm15723_vm13, %v12101_v35, %v2123_v47  ;;  %v16208_v35 = vld [vmem:[#allocation96_spill] sm:$0xff]  ;;  %vm16227_vm10 = vmmov %vm16199_vm9 }
 0x2f3   :  { %v2015_v59 = vmul.f32 %v16203_v46, %v1982_v53  ;;  %8519 = vmatmul.mubr.msk.bf16.vlgmr.msra.gmra.mrb[24].mxu1 %vm16204_vm3, %v11736_v24  ;;  %v2174_v46 = vmul.f32 %v16206_v5, %v2141_v1  ;;  %v16213_v5 = vld [vmem:[#allocation103_spill] sm:$0xff]  ;;  %vm16229_vm3 = vmmov %vm16225_vm7 }
 0x2f4   :  { %2949 = vmatprep.mubr.bf16.mxu1 %v15778_v32 }
 0x2f5   :  { %v12167_v26 = vpop.permute.xlu0 %2044  ;;  %v2511_v30 = vpack.c.bf16 %v2015_v59, %v1935_v4  ;;  %v2222_v59 = vsel %vm16207_vm2, %v12114_v39, %v2205_v11  ;;  %vm16232_vm2 = vcmask 588800  }
 0x2f6   :  { %v2365_v7 = vpop.permute.xlu1 %2364  ;;  %v2062_v36 = vsel %vm15721_vm11, %v2043_v20, %v12167_v26  ;;  %v2254_v28 = vmul.f32 %v16211_v3, %v2222_v59  ;;  %v2302_v59 = vsel %vm16216_vm5, %v12122_v25, %v2285_v19 }
 0x2f7   :  { %2876 = vmatprep.subr.bf16.mxu0 %v2511_v30  ;;  %v2095_v34 = vmul.f32 %v16208_v35, %v2062_v36  ;;  %v16209_v30 = vld [vmem:[#allocation99_spill] sm:$0xff]  ;;  %v16224_v35 = vld [vmem:[#allocation109_spill] sm:$0xff] }
 0x2f8   :  { %2877 = vmatpush1.bf16.msra.mxu0 %v2510_v61  ;;  %v2094_v61 = vmul.f32 %v16210_v42, %v2061_v40  ;;  %v2542_v40 = vpack.c.bf16 %v2254_v28, %v11761_v38  ;;  %v16222_v38 = vld [vmem:[#allocation105_spill] sm:$0xff]  ;;  %v16282_v42 = vld [vmem:[#allocation35_spill] sm:$0xff] }
 0x2f9   :  { %v12175_v53 = vpop.permute.xlu0 %2124 }
 0x2fa   :  { %v2142_v4 = vsel %vm15723_vm13, %v2123_v47, %v12175_v53  ;;  %v2445_v31 = vpop.permute.xlu1 %2444  ;;  %v2526_v20 = vpack.c.bf16 %v2174_v46, %v2094_v61  ;;  %v16217_v61 = vld [vmem:[#allocation106_spill] sm:$0xff] }
 0x2fb   :  { %v2175_v10 = vmul.f32 %v16209_v30, %v2142_v4  ;;  %v2462_v4 = vsel %vm16215_vm8, %v2443_v8, %v2445_v31  ;;  %vm16241_vm8 = vmmov %vm16218_vm15 }
 0x2fd   :  { %v12185_v55 = vpop.permute.xlu0 %2206  ;;  %v2527_v17 = vpack.c.bf16 %v2175_v10, %v2095_v34  ;;  %v2382_v10 = vsel %vm16214_vm12, %v12135_v2, %v2365_v7  ;;  %vm16235_vm12 = vmmov %vm16212_vm6 }
 0x2fe   :  { %v2223_v1 = vsel %vm16212_vm6, %v2205_v11, %v12185_v55  ;;  %v1887_v47 = vpop.permute.xlu1 %1886 }
 0x2ff   :  { %v2255_v6 = vmul.f32 %v16213_v5, %v2223_v1  ;;  %2878 = vmatprep.subr.bf16.mxu0 %v2527_v17  ;;  %v16219_v17 = vld [vmem:[#allocation108_spill] sm:$0xff] }
 0x300   :  { %2879 = vmatpush1.bf16.msra.mxu0 %v2526_v20  ;;  %v2494_v2 = vmul.f32 %v16219_v17, %v2462_v4  ;;  %v16220_v20 = vld [vmem:[#allocation104_spill] sm:$0xff] }
 0x301   :  { %v12191_v39 = vpop.permute.xlu0 %2286  ;;  %v2543_v36 = vpack.c.bf16 %v2255_v6, %v11807_v12  ;;  %v2414_v6 = vmul.f32 %v16217_v61, %v2382_v10  ;;  %v2334_v12 = vmul.f32 %v16222_v38, %v2302_v59 }
 0x302   :  { %v1967_v46 = vpop.permute.xlu1 %1966  ;;  %v2303_v11 = vsel %vm16186_vm14, %v2285_v19, %v12191_v39  ;;  %v2574_v19 = vpack.c.bf16 %v2494_v2, %v2494_v2  ;;  %v16230_v2 = vld [vmem:[#allocation110_spill] sm:$0xff]  ;;  %vm16242_vm14 = vmmov %vm16216_vm5 }
 0x303   :  { %2880 = vmatprep.subr.bf16.mxu0 %v2543_v36  ;;  %v2335_v1 = vmul.f32 %v16220_v20, %v2303_v11  ;;  %v16221_v36 = vld [vmem:[#allocation107_spill] sm:$0xff]  ;;  %v2558_v30 = vpack.c.bf16 %v2414_v6, %v2334_v12  ;;  %v1983_v4 = vsel %vm16225_vm7, %v12156_v43, %v1967_v46  ;;  %v1903_v12 = vsel %vm16227_vm10, %v12146_v63, %v1887_v47  ;;  %v16228_v6 = vld [vmem:[#allocation112_spill] sm:$0xff]  ;;  %vm16247_vm7 = vmmov %vm16223_vm0 }
 0x304   :  { %2881 = vmatpush1.bf16.msra.mxu0 %v2542_v40  ;;  %v2619_v59 = vsel %vm16226_vm4, %v2574_v19, 0  ;;  %vm16251_vm4 = vmmov %vm16197_vm1 }
 0x305   :  { %v12202_v34 = vpop.permute.xlu0 %2366  ;;  %vm16255_vm10 = vmmov %vm16229_vm3 }
 0x306   :  { %v2383_v28 = vsel %vm16218_vm15, %v2365_v7, %v12202_v34  ;;  %v2047_v5 = vpop.permute.xlu1 %2046  ;;  %vm16244_vm15 = vmmov %vm16241_vm8 }
 0x307   :  { %v2415_v8 = vmul.f32 %v16221_v36, %v2383_v28 }
 0x309   :  { %v2447_v40 = vpop.permute.xlu0 %2446  ;;  %v2559_v3 = vpack.c.bf16 %v2415_v8, %v2335_v1  ;;  %v16231_v8 = vld [vmem:[#allocation113_spill] sm:$0xff] }
 0x30a   :  { %v2463_v25 = vsel %vm16223_vm0, %v2445_v31, %v2447_v40  ;;  %v2127_v11 = vpop.permute.xlu1 %2126 }
 0x30b   :  { %v2495_v10 = vmul.f32 %v16224_v35, %v2463_v25  ;;  %2882 = vmatprep.subr.bf16.mxu0 %v2559_v3  ;;  %v2016_v3 = vmul.f32 %v16228_v6, %v1983_v4  ;;  %v16233_v25 = vld [vmem:[#allocation111_spill] sm:$0xff] }
 0x30c   :  { %2883 = vmatpush1.bf16.msra.mxu0 %v2558_v30  ;;  %v1936_v19 = vmul.f32 %v16233_v25, %v1903_v12  ;;  %v16234_v12 = vld [vmem:[#allocation116_spill] sm:$0xff] }
 0x30d   :  { %v2575_v7 = vpack.c.bf16 %v2495_v10, %v2495_v10  ;;  %v1889_v61 = vpop.permute.xlu0 %1888 }
 0x30e   :  { %v1904_v28 = vsel %vm16199_vm9, %v1887_v47, %v1889_v61  ;;  %v2209_v61 = vpop.permute.xlu1 %2208  ;;  %v2512_v63 = vpack.c.bf16 %v2016_v3, %v1936_v19  ;;  %v2143_v47 = vsel %vm15723_vm13, %v12175_v53, %v2127_v11  ;;  %v16237_v19 = vld [vmem:[#allocation114_spill] sm:$0xff]  ;;  %vm16252_vm9 = vmmov %vm16232_vm2 }
 0x30f   :  { %8520 = vmatprep.subr.msk.bf16.mxu0 %vm16197_vm1, %v2575_v7  ;;  %v1937_v1 = vmul.f32 %v16230_v2, %v1904_v28  ;;  %v2224_v3 = vsel %vm16235_vm12, %v12185_v55, %v2209_v61 }
 0x310   :  { %2885 = vmatpush1.bf16.msra.mxu0 %v2619_v59  ;;  %v2063_v59 = vsel %vm15721_vm11, %v12167_v26, %v2047_v5 }
 0x311   :  { %v1969_v31 = vpop.permute.xlu0 %1968 }
 0x312   :  { %v1984_v30 = vsel %vm16229_vm3, %v1967_v46, %v1969_v31  ;;  %v2241_v46 = vsel %vm16212_vm6, %v2209_v61, 0.0  ;;  %v2176_v31 = vmul.f32 %v16234_v12, %v2143_v47  ;;  %v2369_v53 = vpop.permute.xlu1 %2368  ;;  %v16243_v61 = vld [vmem:[#allocation121_spill] sm:$0xff]  ;;  %vm16256_vm3 = vcmask 269312   ;;  %vm16258_vm6 = vmmov %vm16255_vm10  ;;  %v16261_v12 = vld [vmem:[#allocation6_spill] sm:$0xff] }
 0x313   :  { %v2017_v43 = vmul.f32 %v16231_v8, %v1984_v30  ;;  %8521 = vmatmul.mubr.msk.bf16.vlgmr.msra.gmra.mrb[28].mxu0 %vm16232_vm2, %v11736_v24  ;;  %v16238_v8 = vld [vmem:[#allocation117_spill] sm:$0xff]  ;;  %v2401_v47 = vsel %vm16241_vm8, %v2369_v53, 0.0  ;;  %vm16257_vm2 = vmmov %vm16256_vm3 }
 0x314   :  { %3838 = vmatprep.mubr.bf16.mxu0 %v15778_v32  ;;  %vm16263_vm8 = vmmov %vm16235_vm12 }
 0x315   :  { %v2049_v10 = vpop.permute.xlu0 %2048  ;;  %v2513_v7 = vpack.c.bf16 %v2017_v43, %v1937_v1  ;;  %v16236_v1 = vld [vmem:[#allocation119_spill] sm:$0xff] }
 0x316   :  { %v2064_v4 = vsel %vm15721_vm11, %v2047_v5, %v2049_v10  ;;  %v2257_v43 = vmul.f32 %v16236_v1, %v2241_v46  ;;  %v16239_v10 = vld [vmem:[#allocation115_spill] sm:$0xff]  ;;  %v16240_v5 = vld [vmem:[#allocation118_spill] sm:$0xff] }
 0x317   :  { %2917 = vmatprep.subr.bf16.mxu1 %v2513_v7  ;;  %v2097_v7 = vmul.f32 %v16237_v19, %v2064_v4  ;;  %v2256_v35 = vmul.f32 %v16240_v5, %v2224_v3  ;;  %v16246_v3 = vld [vmem:[#allocation120_spill] sm:$0xff]  ;;  %v16260_v5 = vld [vmem:[#allocation5_spill] sm:$0xff] }
 0x318   :  { %2918 = vmatpush1.bf16.msra.mxu1 %v2512_v63  ;;  %v2096_v63 = vmul.f32 %v16239_v10, %v2063_v59  ;;  %v2545_v4 = vpack.c.bf16 %v2257_v43, %v11943_v52  ;;  %v2384_v59 = vsel %vm16244_vm15, %v12202_v34, %v2369_v53  ;;  %v16250_v52 = vld [vmem:[#allocation122_spill] sm:$0xff] }
 0x319   :  { %v2129_v28 = vpop.permute.xlu0 %2128 }
 0x31a   :  { %v2144_v30 = vsel %vm15723_vm13, %v2127_v11, %v2129_v28  ;;  %v2528_v26 = vpack.c.bf16 %v2176_v31, %v2096_v63 }
 0x31b   :  { %v2177_v6 = vmul.f32 %v16238_v8, %v2144_v30  ;;  %v2544_v30 = vpack.c.bf16 %v2256_v35, %v11859_v57 }
 0x31d   :  { %v2289_v2 = vpop.permute.xlu0 %2288  ;;  %v2529_v25 = vpack.c.bf16 %v2177_v6, %v2097_v7  ;;  %v16245_v6 = vld [vmem:[#allocation123_spill] sm:$0xff] }
 0x31e   :  { %v2321_v11 = vsel %vm16242_vm14, %v2289_v2, 0.0  ;;  %v2304_v55 = vsel %vm16216_vm5, %v12191_v39, %v2289_v2  ;;  %v2417_v28 = vmul.f32 %v16245_v6, %v2401_v47  ;;  %v16248_v2 = vld [vmem:[#allocation124_spill] sm:$0xff]  ;;  %vm16264_vm14 = vmmov %vm16244_vm15  ;;  %vm16267_vm15 = vcmask 793600  }
 0x31f   :  { %v2337_v46 = vmul.f32 %v16243_v61, %v2321_v11  ;;  %2919 = vmatprep.subr.bf16.mxu1 %v2529_v25  ;;  %v2336_v7 = vmul.f32 %v16246_v3, %v2304_v55  ;;  %v16249_v11 = vld [vmem:[#allocation125_spill] sm:$0xff]  ;;  %v2416_v61 = vmul.f32 %v16250_v52, %v2384_v59  ;;  %v16259_v3 = vld [vmem:[#allocation7_spill] sm:$0xff]  ;;  %vm16266_vm5 = vmmov %vm16223_vm0 }
 0x320   :  { %2920 = vmatpush1.bf16.msra.mxu1 %v2528_v26 }
 0x321   :  { %v2449_v31 = vpop.permute.xlu0 %2448  ;;  %2921 = vmatprep.subr.bf16.mxu1 %v2545_v4  ;;  %v2561_v26 = vpack.c.bf16 %v2417_v28, %v2337_v46  ;;  %v2560_v34 = vpack.c.bf16 %v2416_v61, %v2336_v7 }
 0x322   :  { %v2464_v63 = vsel %vm16223_vm0, %v2447_v40, %v2449_v31  ;;  %v2481_v39 = vsel %vm16247_vm7, %v2449_v31, 0.0  ;;  %vm16268_vm0 = vmmov %vm16267_vm15 }
 0x323   :  { %v2496_v25 = vmul.f32 %v16248_v2, %v2464_v63  ;;  %v2497_v43 = vmul.f32 %v16249_v11, %v2481_v39  ;;  %v12264_v40 = vpop.permute.xlu1 %2961  ;;  %vm16269_vm7 = vmmov %vm16266_vm5 }
 0x324   :  { %2922 = vmatpush1.bf16.msra.mxu1 %v2544_v30 }
 0x325   :  { %2923 = vmatprep.subr.bf16.mxu1 %v2561_v26  ;;  %v2576_v53 = vpack.c.bf16 %v2496_v25, %v2496_v25  ;;  %v2577_v47 = vpack.c.bf16 %v2497_v43, %v2497_v43 }
 0x327   :  { %v2625_v35 = vsel %vm16251_vm4, %v2576_v53, 0 }
 0x328   :  { %2924 = vmatpush1.bf16.msra.mxu1 %v2560_v34 }
 0x329   :  { %8522 = vmatprep.subr.msk.bf16.mxu1 %vm16197_vm1, %v2577_v47  ;;  %vm16270_vm1 = vmmov %vm16264_vm14 }
 0x32c   :  { %2926 = vmatpush1.bf16.msra.mxu1 %v2625_v35 }
 0x32f   :  { %8523 = vmatmul.mubr.msk.bf16.vlgmr.msra.gmra.mrb[28].mxu1 %vm16252_vm9, %v11736_v24  ;;  %vm16271_vm9 = vmmov %vm16251_vm4 }
 0x330   :  { %3879 = vmatprep.mubr.bf16.mxu1 %v15778_v32 }
 0x332   :  { %v12267_v61 = vpop.permute.xlu0 %2983 }
 0x33a   :  { %v2664_v55 = vpop.f32.mrb[16].mxu0 }
 0x33b   :  { %v2964_v46 = vmul.f32 %v12264_v40, %v2664_v55  ;;  %v2666_v4 = vpop.f32.mrb[17].mxu0 }
 0x33c   :  { %v2668_v59 = vpop.f32.mrb[18].mxu0  ;;  %v2965_v7 = vmul.f32 %v12264_v40, %v2666_v4 }
 0x33d   :  { %v2986_v28 = vadd.f32 %v12267_v61, %v2964_v46  ;;  %v2669_v31 = vpop.f32.mrb[19].mxu0 }
 0x33e   :  { %v2987_v24 = vadd.f32 %v12267_v61, %v2965_v7 }
 0x33f   :  { %v12270_v30 = vmax.f32 %v2986_v28, 0.0 }
 0x340   :  { %v12282_v39 = vmax.f32 %v2987_v24, 0.0 }
 0x341   :  { %3434 = vrot.lane.b32.xlu0 %v12270_v30, %s9310_s11  ;;  %3034 = vrot.lane.b32.xlu1 %v12270_v30, %s9306_s7 }
 0x345   :  { %3594 = vrot.lane.b32.xlu0 %v12270_v30, %s9312_s13  ;;  %3114 = vrot.lane.b32.xlu1 %v12270_v30, %s9305_s6 }
 0x346   :  { %v2705_v63 = vpop.f32.mrb[16].mxu1 }
 0x347   :  { %v2707_v25 = vpop.f32.mrb[17].mxu1  ;;  %v2966_v34 = vmul.f32 %v12264_v40, %v2705_v63 }
 0x348   :  { %v2709_v43 = vpop.f32.mrb[18].mxu1  ;;  %v2967_v35 = vmul.f32 %v12264_v40, %v2707_v25 }
 0x349   :  { %3036 = vrot.lane.b32.xlu0 %v12282_v39, %s9306_s7  ;;  %3194 = vrot.lane.b32.xlu1 %v12270_v30, %s9307_s8  ;;  %v2710_v26 = vpop.f32.mrb[19].mxu1  ;;  %v2988_v53 = vadd.f32 %v12267_v61, %v2966_v34 }
 0x34a   :  { %v2989_v55 = vadd.f32 %v12267_v61, %v2967_v35 }
 0x34b   :  { %v12310_v47 = vmax.f32 %v2988_v53, 0.0 }
 0x34c   :  { %v12322_v46 = vmax.f32 %v2989_v55, 0.0 }
 0x34d   :  { %3116 = vrot.lane.b32.xlu0 %v12282_v39, %s9305_s6  ;;  %3274 = vrot.lane.b32.xlu1 %v12270_v30, %s9308_s9 }
 0x351   :  { %3196 = vrot.lane.b32.xlu0 %v12282_v39, %s9307_s8  ;;  %3354 = vrot.lane.b32.xlu1 %v12270_v30, %s9309_s10 }
 0x355   :  { %3276 = vrot.lane.b32.xlu0 %v12282_v39, %s9308_s9  ;;  %3514 = vrot.lane.b32.xlu1 %v12270_v30, %s9311_s12 }
 0x359   :  { %3436 = vrot.lane.b32.xlu0 %v12282_v39, %s9310_s11  ;;  %3356 = vrot.lane.b32.xlu1 %v12282_v39, %s9309_s10 }
 0x35d   :  { %3516 = vrot.lane.b32.xlu0 %v12282_v39, %s9311_s12  ;;  %3596 = vrot.lane.b32.xlu1 %v12282_v39, %s9312_s13 }
 0x361   :  { %3358 = vrot.lane.b32.xlu0 %v12310_v47, %s9309_s10  ;;  %3438 = vrot.lane.b32.xlu1 %v12310_v47, %s9310_s11 }
 0x365   :  { %3598 = vrot.lane.b32.xlu0 %v12310_v47, %s9312_s13  ;;  %3518 = vrot.lane.b32.xlu1 %v12310_v47, %s9311_s12 }
 0x369   :  { %3120 = vrot.lane.b32.xlu0 %v12322_v46, %s9305_s6  ;;  %3040 = vrot.lane.b32.xlu1 %v12322_v46, %s9306_s7 }
 0x36d   :  { %3280 = vrot.lane.b32.xlu0 %v12322_v46, %s9308_s9  ;;  %3200 = vrot.lane.b32.xlu1 %v12322_v46, %s9307_s8 }
 0x372   :  { %v2746_v4 = vpop.f32.mrb[20].mxu0 }
 0x373   :  { %v2968_v59 = vmul.f32 %v12264_v40, %v2746_v4  ;;  %v2748_v28 = vpop.f32.mrb[21].mxu0 }
 0x374   :  { %v2750_v31 = vpop.f32.mrb[22].mxu0  ;;  %v2969_v25 = vmul.f32 %v12264_v40, %v2748_v28 }
 0x375   :  { %v2990_v7 = vadd.f32 %v12267_v61, %v2968_v59  ;;  %v2751_v24 = vpop.f32.mrb[23].mxu0 }
 0x376   :  { %v2991_v43 = vadd.f32 %v12267_v61, %v2969_v25 }
 0x377   :  { %v12334_v63 = vmax.f32 %v2990_v7, 0.0 }
 0x378   :  { %v12346_v26 = vmax.f32 %v2991_v43, 0.0 }
 0x379   :  { %3442 = vrot.lane.b32.xlu0 %v12334_v63, %s9310_s11  ;;  %3042 = vrot.lane.b32.xlu1 %v12334_v63, %s9306_s7 }
 0x37d   :  { %3602 = vrot.lane.b32.xlu0 %v12334_v63, %s9312_s13  ;;  %3122 = vrot.lane.b32.xlu1 %v12334_v63, %s9305_s6 }
 0x381   :  { %3044 = vrot.lane.b32.xlu0 %v12346_v26, %s9306_s7  ;;  %3202 = vrot.lane.b32.xlu1 %v12334_v63, %s9307_s8 }
 0x385   :  { %3124 = vrot.lane.b32.xlu0 %v12346_v26, %s9305_s6  ;;  %3282 = vrot.lane.b32.xlu1 %v12334_v63, %s9308_s9 }
 0x389   :  { %3204 = vrot.lane.b32.xlu0 %v12346_v26, %s9307_s8  ;;  %3362 = vrot.lane.b32.xlu1 %v12334_v63, %s9309_s10 }
 0x38d   :  { %3284 = vrot.lane.b32.xlu0 %v12346_v26, %s9308_s9  ;;  %3522 = vrot.lane.b32.xlu1 %v12334_v63, %s9311_s12 }
 0x391   :  { %3444 = vrot.lane.b32.xlu0 %v12346_v26, %s9310_s11  ;;  %3364 = vrot.lane.b32.xlu1 %v12346_v26, %s9309_s10 }
 0x395   :  { %3524 = vrot.lane.b32.xlu0 %v12346_v26, %s9311_s12  ;;  %3604 = vrot.lane.b32.xlu1 %v12346_v26, %s9312_s13 }
 0x396   :  { %v2787_v34 = vpop.f32.mrb[20].mxu1 }
 0x397   :  { %v2970_v53 = vmul.f32 %v12264_v40, %v2787_v34  ;;  %v2789_v35 = vpop.f32.mrb[21].mxu1 }
 0x398   :  { %v2791_v55 = vpop.f32.mrb[22].mxu1  ;;  %v2971_v31 = vmul.f32 %v12264_v40, %v2789_v35 }
 0x399   :  { %v2992_v4 = vadd.f32 %v12267_v61, %v2970_v53  ;;  %v2792_v59 = vpop.f32.mrb[23].mxu1 }
 0x39a   :  { %v2993_v7 = vadd.f32 %v12267_v61, %v2971_v31 }
 0x39b   :  { %v12374_v28 = vmax.f32 %v2992_v4, 0.0 }
 0x39c   :  { %v12386_v24 = vmax.f32 %v2993_v7, 0.0 }
 0x39d   :  { %16253 = vst [vmem:[#allocation136_spill] sm:$0xff] %v12374_v28  ;;  %3366 = vrot.lane.b32.xlu0 %v12374_v28, %s9309_s10  ;;  %3446 = vrot.lane.b32.xlu1 %v12374_v28, %s9310_s11 }
 0x39e   :  { %16254 = vst [vmem:[#allocation38_spill] sm:$0xff] %v12386_v24 }
 0x3a1   :  { %3606 = vrot.lane.b32.xlu0 %v12374_v28, %s9312_s13  ;;  %3526 = vrot.lane.b32.xlu1 %v12374_v28, %s9311_s12 }
 0x3a5   :  { %3128 = vrot.lane.b32.xlu0 %v12386_v24, %s9305_s6  ;;  %3048 = vrot.lane.b32.xlu1 %v12386_v24, %s9306_s7 }
 0x3a9   :  { %3288 = vrot.lane.b32.xlu0 %v12386_v24, %s9308_s9  ;;  %3208 = vrot.lane.b32.xlu1 %v12386_v24, %s9307_s8 }
 0x3b3   :  { %v12396_v25 = vpop.permute.xlu0 %3434  ;;  %v3035_v43 = vpop.permute.xlu1 %3034 }
 0x3b6   :  { %v2828_v34 = vpop.f32.mrb[24].mxu0 }
 0x3b7   :  { %v2972_v53 = vmul.f32 %v12264_v40, %v2828_v34  ;;  %v2830_v35 = vpop.f32.mrb[25].mxu0  ;;  %v12399_v55 = vpop.permute.xlu0 %3594 }
 0x3b8   :  { %v2973_v4 = vmul.f32 %v12264_v40, %v2830_v35  ;;  %v3115_v59 = vpop.permute.xlu1 %3114  ;;  %v2832_v31 = vpop.f32.mrb[26].mxu0 }
 0x3b9   :  { %v2994_v7 = vadd.f32 %v12267_v61, %v2972_v53  ;;  %v2833_v57 = vpop.f32.mrb[27].mxu0  ;;  %v3177_v34 = vsel %vm16255_vm10, 0.0, %v3115_v59  ;;  %vm16272_vm10 = vcmask 588800  }
 0x3ba   :  { %v2995_v52 = vadd.f32 %v12267_v61, %v2973_v4  ;;  %v3097_v4 = vsel %vm16257_vm2, 0.0, %v3035_v43  ;;  %v3178_v1 = vmul.f32 %v16259_v3, %v3177_v34 }
 0x3bb   :  { %v12403_v6 = vmax.f32 %v2994_v7, 0.0  ;;  %v12406_v11 = vpop.permute.xlu0 %3036 }
 0x3bc   :  { %v3195_v2 = vpop.permute.xlu1 %3194  ;;  %v3066_v35 = vsel %vm16256_vm3, %v3035_v43, %v12406_v11  ;;  %v12415_v53 = vmax.f32 %v2995_v52, 0.0  ;;  %v16262_v52 = vld [vmem:[#allocation4_spill] sm:$0xff]  ;;  %vm16273_vm3 = vmmov %vm16258_vm6 }
 0x3bd   :  { %3450 = vrot.lane.b32.xlu0 %v12403_v6, %s9310_s11  ;;  %3050 = vrot.lane.b32.xlu1 %v12403_v6, %s9306_s7  ;;  %v3099_v8 = vmul.f32 %v16260_v5, %v3066_v35  ;;  %v3098_v10 = vmul.f32 %v16262_v52, %v3097_v4 }
 0x3bf   :  { %v12417_v57 = vpop.permute.xlu0 %3116 }
 0x3c0   :  { %v3146_v31 = vsel %vm16258_vm6, %v3115_v59, %v12417_v57  ;;  %v3275_v7 = vpop.permute.xlu1 %3274  ;;  %v3674_v59 = vpack.c.bf16 %v3178_v1, %v3098_v10  ;;  %vm16274_vm6 = vmmov %vm16257_vm2 }
 0x3c1   :  { %v3179_v19 = vmul.f32 %v16261_v12, %v3146_v31  ;;  %3052 = vrot.lane.b32.xlu0 %v12415_v53, %s9306_s7  ;;  %3130 = vrot.lane.b32.xlu1 %v12403_v6, %s9305_s6  ;;  %v3337_v12 = vsel %vm15723_vm13, 0.0, %v3275_v7 }
 0x3c2   :  { %v3338_v4 = vmul.f32 %v9619_v48, %v3337_v12 }
 0x3c3   :  { %v12430_v17 = vpop.permute.xlu0 %3196  ;;  %v3675_v43 = vpack.c.bf16 %v3179_v19, %v3099_v8  ;;  %v3257_v8 = vsel %vm15721_vm11, 0.0, %v3195_v2 }
 0x3c4   :  { %v3355_v36 = vpop.permute.xlu1 %3354  ;;  %v3226_v5 = vsel %vm15721_vm11, %v3195_v2, %v12430_v17  ;;  %v3258_v2 = vmul.f32 %v9609_v45, %v3257_v8 }
 0x3c5   :  { %3132 = vrot.lane.b32.xlu0 %v12415_v53, %s9305_s6  ;;  %3210 = vrot.lane.b32.xlu1 %v12403_v6, %s9307_s8  ;;  %v3259_v31 = vmul.f32 %v9622_v49, %v3226_v5 }
 0x3c6   :  { %3806 = vmatprep.subr.bf16.mxu0 %v3675_v43  ;;  %v2869_v3 = vpop.f32.mrb[24].mxu1  ;;  %v3690_v38 = vpack.c.bf16 %v3338_v4, %v3258_v2 }
 0x3c7   :  { %3807 = vmatpush1.bf16.msra.mxu0 %v3674_v59  ;;  %v12439_v34 = vpop.f32.mrb[25].mxu1  ;;  %v12441_v35 = vpop.permute.xlu0 %3276  ;;  %v2974_v48 = vmul.f32 %v12264_v40, %v2869_v3 }
 0x3c8   :  { %v3306_v1 = vsel %vm15723_vm13, %v3275_v7, %v12441_v35  ;;  %v3515_v19 = vpop.permute.xlu1 %3514  ;;  %v2873_v10 = vpop.f32.mrb[26].mxu1 }
 0x3c9   :  { %v3339_v52 = vmul.f32 %v9629_v51, %v3306_v1  ;;  %3212 = vrot.lane.b32.xlu0 %v12415_v53, %s9307_s8  ;;  %3290 = vrot.lane.b32.xlu1 %v12403_v6, %s9308_s9  ;;  %v2874_v43 = vpop.f32.mrb[27].mxu1  ;;  %v2996_v12 = vadd.f32 %v12267_v61, %v2974_v48 }
 0x3cb   :  { %v3437_v59 = vpop.permute.xlu0 %3436  ;;  %v3691_v20 = vpack.c.bf16 %v3339_v52, %v3259_v31  ;;  %v12478_v1 = vmax.f32 %v2996_v12, 0.0 }
 0x3cc   :  { %v3357_v7 = vpop.permute.xlu1 %3356 }
 0x3cd   :  { %3292 = vrot.lane.b32.xlu0 %v12415_v53, %s9308_s9  ;;  %3370 = vrot.lane.b32.xlu1 %v12403_v6, %s9309_s10  ;;  %v3386_v45 = vsel %vm16235_vm12, %v3355_v36, %v3357_v7  ;;  %16265 = vst [vmem:[#allocation47_spill] sm:$0xff] %v12478_v1  ;;  %vm16275_vm12 = vmmov %vm16273_vm3 }
 0x3ce   :  { %3808 = vmatprep.subr.bf16.mxu0 %v3691_v20 }
 0x3cf   :  { %3809 = vmatpush1.bf16.msra.mxu0 %v3690_v38  ;;  %v3517_v49 = vpop.permute.xlu0 %3516  ;;  %v3418_v38 = vmul.f32 %v9669_v22, %v3386_v45  ;;  %v3466_v22 = vsel %vm16268_vm0, %v12396_v25, %v3437_v59 }
 0x3d0   :  { %v3597_v51 = vpop.permute.xlu1 %3596  ;;  %v3546_v36 = vsel %vm16264_vm14, %v3515_v19, %v3517_v49  ;;  %vm16286_vm14 = vmmov %vm16263_vm8 }
 0x3d1   :  { %3452 = vrot.lane.b32.xlu0 %v12415_v53, %s9310_s11  ;;  %3530 = vrot.lane.b32.xlu1 %v12403_v6, %s9311_s12  ;;  %v3626_v10 = vsel %vm16266_vm5, %v12399_v55, %v3597_v51  ;;  %v3706_v19 = vpack.c.bf16 %v3418_v38, %v12270_v30  ;;  %v3578_v2 = vmul.f32 %v16050_v21, %v3546_v36  ;;  %vm16288_vm5 = vmmov %vm16270_vm1 }
 0x3d2   :  { %v3498_v21 = vmul.f32 %v16048_v33, %v3466_v22 }
 0x3d3   :  { %v12465_v5 = vpop.permute.xlu0 %3358 }
 0x3d4   :  { %v3387_v20 = vsel %vm16263_vm8, %v3357_v7, %v12465_v5  ;;  %v12469_v8 = vpop.permute.xlu1 %3438 }
 0x3d5   :  { %v3419_v3 = vmul.f32 %v9651_v62, %v3387_v20  ;;  %3532 = vrot.lane.b32.xlu0 %v12415_v53, %s9311_s12  ;;  %3372 = vrot.lane.b32.xlu1 %v12415_v53, %s9309_s10  ;;  %v3467_v4 = vsel %vm16267_vm15, %v3437_v59, %v12469_v8  ;;  %vm16289_vm15 = vmmov %vm16268_vm0 }
 0x3d6   :  { %v3499_v25 = vmul.f32 %v16049_v44, %v3467_v4  ;;  %vm16290_vm0 = vmmov %vm16269_vm7 }
 0x3d7   :  { %v12484_v31 = vpop.permute.xlu0 %3598  ;;  %v3707_v62 = vpack.c.bf16 %v3419_v3, %v12282_v39  ;;  %v3658_v39 = vmul.f32 %v9881_v41, %v3626_v10  ;;  %v3722_v41 = vpack.c.bf16 %v3578_v2, %v3498_v21 }
 0x3d8   :  { %v3627_v52 = vsel %vm16269_vm7, %v3597_v51, %v12484_v31  ;;  %v12491_v43 = vpop.permute.xlu1 %3518  ;;  %vm16291_vm7 = vmmov %vm16289_vm15 }
 0x3d9   :  { %v3547_v55 = vsel %vm16270_vm1, %v3517_v49, %v12491_v43  ;;  %3374 = vrot.lane.b32.xlu0 %v12478_v1, %s9309_s10  ;;  %3454 = vrot.lane.b32.xlu1 %v12478_v1, %s9310_s11  ;;  %v3659_v59 = vmul.f32 %v9878_v15, %v3627_v52  ;;  %v3738_v15 = vpack.c.bf16 %v3658_v39, %v3658_v39  ;;  %v12527_v49 = vld [vmem:[%s12510_s18] sm:$0xf]  ;;  %vm16292_vm1 = vmmov %vm16290_vm0 }
 0x3da   :  { %v3579_v7 = vmul.f32 %v16051_v9, %v3547_v55  ;;  %3810 = vmatprep.subr.bf16.mxu0 %v3707_v62 }
 0x3db   :  { %3811 = vmatpush1.bf16.msra.mxu0 %v3706_v19  ;;  %v3739_v9 = vpack.c.bf16 %v3659_v59, %v3659_v59  ;;  %v12516_v33 = vpop.permute.xlu0 %3120  ;;  %v3759_v48 = vsel %vm16271_vm9, %v3738_v15, 0  ;;  %v16278_v15 = vld [vmem:[#allocation27_spill] sm:$0xff] }
 0x3dc   :  { %v3723_v30 = vpack.c.bf16 %v3579_v7, %v3499_v25  ;;  %v12519_v44 = vpop.permute.xlu1 %3040  ;;  %v16276_v7 = vld [vmem:[#allocation26_spill] sm:$0xff] }
 0x3dd   :  { %3610 = vrot.lane.b32.xlu0 %v12403_v6, %s9312_s13  ;;  %3534 = vrot.lane.b32.xlu1 %v12478_v1, %s9311_s12 }
 0x3de   :  { %3812 = vmatprep.subr.bf16.mxu0 %v3723_v30  ;;  %v16277_v30 = vld [vmem:[#allocation25_spill] sm:$0xff] }
 0x3df   :  { %3813 = vmatpush1.bf16.msra.mxu0 %v3722_v41  ;;  %v12533_v51 = vpop.permute.xlu0 %3280 }
 0x3e0   :  { %8524 = vmatprep.subr.msk.bf16.mxu0 %vm16251_vm4, %v3739_v9  ;;  %v12539_v12 = vpop.permute.xlu1 %3200  ;;  %vm16293_vm4 = vmmov %vm16288_vm5 }
 0x3e1   :  { %3614 = vrot.lane.b32.xlu0 %v12478_v1, %s9312_s13  ;;  %3612 = vrot.lane.b32.xlu1 %v12415_v53, %s9312_s13 }
 0x3e3   :  { %3815 = vmatpush1.bf16.msra.mxu0 %v3759_v48  ;;  %v2975_v48 = vmul.f32 %v12264_v40, %v12439_v34 }
 0x3e5   :  { %3118 = vrot.lane.b32.xlu0 %v12310_v47, %s9305_s6  ;;  %3038 = vrot.lane.b32.xlu1 %v12310_v47, %s9306_s7 }
 0x3e6   :  { %v12535_v45 = vpop.f32.mrb[28].mxu0  ;;  %8525 = vmatmul.mubr.msk.bf16.vlgmr.msra.gmra.mrb[32].mxu0 %vm16272_vm10, %v12527_v49  ;;  %vm16294_vm10 = vmmov %vm16271_vm9 }
 0x3e7   :  { %v12541_v20 = vpop.f32.mrb[29].mxu0  ;;  %3920 = vmatprep.mubr.bf16.mxu0 %v15778_v32 }
 0x3e8   :  { %v2914_v38 = vpop.f32.mrb[30].mxu0 }
 0x3e9   :  { %3278 = vrot.lane.b32.xlu0 %v12310_v47, %s9308_s9  ;;  %3198 = vrot.lane.b32.xlu1 %v12310_v47, %s9307_s8  ;;  %v2915_v3 = vpop.f32.mrb[31].mxu0  ;;  %v16279_v38 = vld [vmem:[#allocation24_spill] sm:$0xff] }
 0x3eb   :  { %v12548_v36 = vpop.permute.xlu0 %3442  ;;  %v3043_v10 = vpop.permute.xlu1 %3042 }
 0x3ec   :  { %v3069_v25 = vsel %vm16274_vm6, %v12519_v44, %v3043_v10  ;;  %vm16297_vm6 = vmmov %vm16275_vm12 }
 0x3ed   :  { %3440 = vrot.lane.b32.xlu0 %v12322_v46, %s9310_s11  ;;  %3360 = vrot.lane.b32.xlu1 %v12322_v46, %s9309_s10  ;;  %v3102_v3 = vmul.f32 %v16279_v38, %v3069_v25  ;;  %v2997_v25 = vadd.f32 %v12267_v61, %v2975_v48  ;;  %v16281_v38 = vld [vmem:[#allocation33_spill] sm:$0xff] }
 0x3ef   :  { %v12554_v4 = vpop.permute.xlu0 %3602  ;;  %v3123_v62 = vpop.permute.xlu1 %3122 }
 0x3f0   :  { %v3149_v19 = vsel %vm16273_vm3, %v12516_v33, %v3123_v62  ;;  %vm16295_vm3 = vcmask 588800  }
 0x3f1   :  { %3600 = vrot.lane.b32.xlu0 %v12322_v46, %s9312_s13  ;;  %3520 = vrot.lane.b32.xlu1 %v12322_v46, %s9311_s12  ;;  %v3182_v21 = vmul.f32 %v16276_v7, %v3149_v19 }
 0x3f3   :  { %v12560_v22 = vpop.permute.xlu0 %3044  ;;  %v3203_v52 = vpop.permute.xlu1 %3202  ;;  %v3678_v7 = vpack.c.bf16 %v3182_v21, %v3102_v3 }
 0x3f4   :  { %v3070_v2 = vsel %vm16257_vm2, %v3043_v10, %v12560_v22  ;;  %v3229_v21 = vsel %vm15721_vm11, %v12539_v12, %v3203_v52 }
 0x3f5   :  { %3126 = vrot.lane.b32.xlu0 %v12374_v28, %s9305_s6  ;;  %3046 = vrot.lane.b32.xlu1 %v12374_v28, %s9306_s7  ;;  %v3103_v41 = vmul.f32 %v16277_v30, %v3070_v2 }
 0x3f7   :  { %v12570_v55 = vpop.permute.xlu0 %3124  ;;  %v3283_v39 = vpop.permute.xlu1 %3282 }
 0x3f8   :  { %v3150_v59 = vsel %vm16275_vm12, %v3123_v62, %v12570_v55  ;;  %v3309_v2 = vsel %vm15723_vm13, %v12533_v51, %v3283_v39  ;;  %vm16298_vm12 = vmmov %vm16257_vm2 }
 0x3f9   :  { %v3183_v9 = vmul.f32 %v16278_v15, %v3150_v59  ;;  %3286 = vrot.lane.b32.xlu0 %v12374_v28, %s9308_s9  ;;  %3206 = vrot.lane.b32.xlu1 %v12374_v28, %s9307_s8  ;;  %v16280_v15 = vld [vmem:[#allocation34_spill] sm:$0xff] }
 0x3fb   :  { %v12586_v10 = vpop.permute.xlu0 %3204  ;;  %v12588_v62 = vpop.permute.xlu1 %3362  ;;  %v3679_v19 = vpack.c.bf16 %v3183_v9, %v3103_v41  ;;  %v3342_v9 = vmul.f32 %v16280_v15, %v3309_v2 }
 0x3fc   :  { %v3230_v34 = vsel %vm15721_vm11, %v3203_v52, %v12586_v10  ;;  %v16283_v52 = vld [vmem:[#allocation32_spill] sm:$0xff] }
 0x3fd   :  { %3448 = vrot.lane.b32.xlu0 %v12386_v24, %s9310_s11  ;;  %3368 = vrot.lane.b32.xlu1 %v12386_v24, %s9309_s10  ;;  %v3263_v3 = vmul.f32 %v16281_v38, %v3230_v34 }
 0x3fe   :  { %3888 = vmatprep.subr.bf16.mxu0 %v3679_v19  ;;  %v12616_v19 = vmax.f32 %v2997_v25, 0.0 }
 0x3ff   :  { %3889 = vmatpush1.bf16.msra.mxu0 %v3678_v7  ;;  %v12599_v59 = vpop.permute.xlu0 %3284  ;;  %v12601_v30 = vpop.permute.xlu1 %3522  ;;  %v3262_v7 = vmul.f32 %v16283_v52, %v3229_v21 }
 0x400   :  { %v3310_v41 = vsel %vm15723_vm13, %v3283_v39, %v12599_v59 }
 0x401   :  { %v3343_v27 = vmul.f32 %v16282_v42, %v3310_v41  ;;  %3608 = vrot.lane.b32.xlu0 %v12386_v24, %s9312_s13  ;;  %3528 = vrot.lane.b32.xlu1 %v12386_v24, %s9311_s12  ;;  %v3694_v34 = vpack.c.bf16 %v3342_v9, %v3262_v7 }
 0x402   :  { %v12614_v48 = vpop.f32.mrb[28].mxu1 }
 0x403   :  { %v12619_v37 = vpop.f32.mrb[29].mxu1  ;;  %v3695_v39 = vpack.c.bf16 %v3343_v27, %v3263_v3  ;;  %v3445_v2 = vpop.permute.xlu0 %3444  ;;  %v2976_v27 = vmul.f32 %v12264_v40, %v12535_v45 }
 0x404   :  { %v2955_v15 = vpop.f32.mrb[30].mxu1  ;;  %v3365_v38 = vpop.permute.xlu1 %3364 }
 0x405   :  { %3056 = vrot.lane.b32.xlu0 %v12616_v19, %s9306_s7  ;;  %3054 = vrot.lane.b32.xlu1 %v12478_v1, %s9306_s7  ;;  %v2956_v42 = vpop.f32.mrb[31].mxu1  ;;  %v3390_v41 = vsel %vm16263_vm8, %v12588_v62, %v3365_v38  ;;  %v2998_v9 = vadd.f32 %v12267_v61, %v2976_v27  ;;  %vm16299_vm8 = vmmov %vm16297_vm6 }
 0x406   :  { %3890 = vmatprep.subr.bf16.mxu0 %v3695_v39  ;;  %v3422_v7 = vmul.f32 %v16092_v14, %v3390_v41  ;;  %v16287_v39 = vld [vmem:[#allocation39_spill] sm:$0xff] }
 0x407   :  { %3891 = vmatpush1.bf16.msra.mxu0 %v3694_v34  ;;  %v3525_v25 = vpop.permute.xlu0 %3524  ;;  %v12654_v27 = vmax.f32 %v2998_v9, 0.0 }
 0x408   :  { %v3605_v21 = vpop.permute.xlu1 %3604  ;;  %v3550_v34 = vsel %vm16288_vm5, %v12601_v30, %v3525_v25  ;;  %vm16304_vm5 = vmmov %vm16286_vm14 }
 0x409   :  { %3136 = vrot.lane.b32.xlu0 %v12616_v19, %s9305_s6  ;;  %3134 = vrot.lane.b32.xlu1 %v12478_v1, %s9305_s6  ;;  %v3630_v14 = vsel %vm16290_vm0, %v12554_v4, %v3605_v21  ;;  %vm16308_vm0 = vmmov %vm16291_vm7 }
 0x40d   :  { %3216 = vrot.lane.b32.xlu0 %v12616_v19, %s9307_s8  ;;  %3214 = vrot.lane.b32.xlu1 %v12478_v1, %s9307_s8 }
 0x40f   :  { %v12638_v3 = vpop.permute.xlu0 %3366  ;;  %v12640_v52 = vpop.permute.xlu1 %3446 }
 0x410   :  { %16284 = vst [vmem:[#allocation44_spill] sm:$0xff] %v12638_v3  ;;  %16285 = vst [vmem:[#allocation46_spill] sm:$0xff] %v12640_v52  ;;  %v3391_v45 = vsel %vm16286_vm14, %v3365_v38, %v12638_v3  ;;  %v3471_v42 = vsel %vm16289_vm15, %v3445_v2, %v12640_v52  ;;  %v3582_v52 = vmul.f32 %v16104_v60, %v3550_v34 }
 0x411   :  { %v3423_v15 = vmul.f32 %v16287_v39, %v3391_v45  ;;  %3296 = vrot.lane.b32.xlu0 %v12616_v19, %s9308_s9  ;;  %3294 = vrot.lane.b32.xlu1 %v12478_v1, %s9308_s9  ;;  %v3470_v39 = vsel %vm16291_vm7, %v12548_v36, %v3445_v2  ;;  %v3710_v1 = vpack.c.bf16 %v3422_v7, %v12334_v63  ;;  %vm16305_vm15 = vmmov %vm16293_vm4 }
 0x412   :  { %v3503_v24 = vmul.f32 %v16096_v50, %v3471_v42  ;;  %v3662_v63 = vmul.f32 %v16106_v58, %v3630_v14  ;;  %v3502_v2 = vmul.f32 %v16110_v54, %v3470_v39  ;;  %v2977_v58 = vmul.f32 %v12264_v40, %v12541_v20  ;;  %vm16309_vm7 = vmmov %vm16308_vm0 }
 0x413   :  { %v12658_v38 = vpop.permute.xlu0 %3606  ;;  %v12660_v41 = vpop.permute.xlu1 %3526  ;;  %v3711_v45 = vpack.c.bf16 %v3423_v15, %v12346_v26  ;;  %v2978_v20 = vmul.f32 %v12264_v40, %v12614_v48 }
 0x414   :  { %v3631_v28 = vsel %vm16292_vm1, %v3605_v21, %v12658_v38  ;;  %v3551_v9 = vsel %vm16293_vm4, %v3525_v25, %v12660_v41  ;;  %v3726_v60 = vpack.c.bf16 %v3582_v52, %v3502_v2  ;;  %v3742_v50 = vpack.c.bf16 %v3662_v63, %v3662_v63  ;;  %vm16311_vm1 = vmmov %vm16293_vm4 }
 0x415   :  { %v3583_v3 = vmul.f32 %v16093_v56, %v3551_v9  ;;  %3378 = vrot.lane.b32.xlu0 %v12654_v27, %s9309_s10  ;;  %3376 = vrot.lane.b32.xlu1 %v12616_v19, %s9309_s10  ;;  %v3663_v26 = vmul.f32 %v16107_v29, %v3631_v28  ;;  %v2999_v54 = vadd.f32 %v12267_v61, %v2977_v58  ;;  %v16301_v58 = vld [vmem:[#allocation57_spill] sm:$0xff]  ;;  %vm16315_vm4 = vcmask 777216  }
 0x416   :  { %3892 = vmatprep.subr.bf16.mxu0 %v3711_v45  ;;  %v3771_v29 = vsel %vm16294_vm10, %v3742_v50, 0  ;;  %v3000_v52 = vadd.f32 %v12267_v61, %v2978_v20  ;;  %vm16318_vm10 = vmmov %vm16297_vm6 }
 0x417   :  { %3893 = vmatpush1.bf16.msra.mxu0 %v3710_v1  ;;  %v3727_v25 = vpack.c.bf16 %v3583_v3, %v3503_v24  ;;  %v3743_v56 = vpack.c.bf16 %v3663_v26, %v3663_v26  ;;  %v12699_v28 = vmax.f32 %v2999_v54, 0.0  ;;  %v12702_v24 = vpop.permute.xlu0 %3128  ;;  %v12704_v1 = vpop.permute.xlu1 %3048 }
 0x418   :  { %v12731_v48 = vmax.f32 %v3000_v52, 0.0 }
 0x419   :  { %3458 = vrot.lane.b32.xlu0 %v12654_v27, %s9310_s11  ;;  %3456 = vrot.lane.b32.xlu1 %v12616_v19, %s9310_s11  ;;  %16296 = vst [vmem:[#allocation52_spill] sm:$0xff] %v12699_v28 }
 0x41a   :  { %3894 = vmatprep.subr.bf16.mxu0 %v3727_v25 }
 0x41b   :  { %3895 = vmatpush1.bf16.msra.mxu0 %v3726_v60  ;;  %v12716_v21 = vpop.permute.xlu0 %3288  ;;  %v12718_v3 = vpop.permute.xlu1 %3208  ;;  %v16300_v60 = vld [vmem:[#allocation59_spill] sm:$0xff] }
 0x41c   :  { %8528 = vmatprep.subr.msk.bf16.mxu0 %vm16271_vm9, %v3743_v56  ;;  %v2979_v56 = vmul.f32 %v12264_v40, %v12619_v37  ;;  %vm16316_vm9 = vmmov %vm16315_vm4 }
 0x41d   :  { %3538 = vrot.lane.b32.xlu0 %v12654_v27, %s9311_s12  ;;  %3536 = vrot.lane.b32.xlu1 %v12616_v19, %s9311_s12 }
 0x41e   :  { %v3001_v37 = vadd.f32 %v12267_v61, %v2979_v56 }
 0x41f   :  { %3897 = vmatpush1.bf16.msra.mxu0 %v3771_v29 }
 0x420   :  { %v12790_v61 = vmax.f32 %v3001_v37, 0.0  ;;  %v16306_v37 = vld [vmem:[#allocation70_spill] sm:$0xff] }
 0x421   :  { %3618 = vrot.lane.b32.xlu0 %v12654_v27, %s9312_s13  ;;  %3616 = vrot.lane.b32.xlu1 %v12616_v19, %s9312_s13 }
 0x422   :  { %8529 = vmatmul.mubr.msk.bf16.vlgmr.msra.gmra.mrb[36].mxu0 %vm16295_vm3, %v12527_v49  ;;  %vm16319_vm3 = vmmov %vm16297_vm6 }
 0x423   :  { %4002 = vmatprep.mubr.bf16.mxu0 %v15778_v32 }
 0x425   :  { %3060 = vrot.lane.b32.xlu0 %v12699_v28, %s9306_s7  ;;  %3058 = vrot.lane.b32.xlu1 %v12654_v27, %s9306_s7 }
 0x429   :  { %3140 = vrot.lane.b32.xlu0 %v12699_v28, %s9305_s6  ;;  %3138 = vrot.lane.b32.xlu1 %v12654_v27, %s9305_s6 }
 0x42d   :  { %3220 = vrot.lane.b32.xlu0 %v12699_v28, %s9307_s8  ;;  %3218 = vrot.lane.b32.xlu1 %v12654_v27, %s9307_s8 }
 0x42f   :  { %v12725_v7 = vpop.permute.xlu0 %3450  ;;  %v3051_v15 = vpop.permute.xlu1 %3050 }
 0x430   :  { %v3073_v63 = vsel %vm16298_vm12, %v12704_v1, %v3051_v15  ;;  %vm16325_vm12 = vcmask 1043456  }
 0x431   :  { %3300 = vrot.lane.b32.xlu0 %v12699_v28, %s9308_s9  ;;  %3298 = vrot.lane.b32.xlu1 %v12654_v27, %s9308_s9  ;;  %v3106_v29 = vmul.f32 %v16301_v58, %v3073_v63 }
 0x433   :  { %v12733_v34 = vpop.permute.xlu0 %3052  ;;  %v3131_v42 = vpop.permute.xlu1 %3130 }
 0x434   :  { %v3074_v14 = vsel %vm16257_vm2, %v3051_v15, %v12733_v34  ;;  %v3153_v45 = vsel %vm16297_vm6, %v12702_v24, %v3131_v42  ;;  %vm16320_vm6 = vmmov %vm16257_vm2 }
 0x435   :  { %3382 = vrot.lane.b32.xlu0 %v12731_v48, %s9309_s10  ;;  %3380 = vrot.lane.b32.xlu1 %v12699_v28, %s9309_s10  ;;  %v3107_v2 = vmul.f32 %v16137_v16, %v3074_v14  ;;  %v3186_v25 = vmul.f32 %v16135_v0, %v3153_v45 }
 0x437   :  { %v12743_v39 = vpop.permute.xlu0 %3132  ;;  %v3211_v9 = vpop.permute.xlu1 %3210  ;;  %v3682_v16 = vpack.c.bf16 %v3186_v25, %v3106_v29 }
 0x438   :  { %v3154_v26 = vsel %vm16299_vm8, %v3131_v42, %v12743_v39  ;;  %v3233_v14 = vsel %vm15721_vm11, %v12718_v3, %v3211_v9  ;;  %vm16326_vm8 = vmmov %vm16325_vm12 }
 0x439   :  { %v3187_v50 = vmul.f32 %v16300_v60, %v3154_v26  ;;  %3462 = vrot.lane.b32.xlu0 %v12731_v48, %s9310_s11  ;;  %3460 = vrot.lane.b32.xlu1 %v12699_v28, %s9310_s11  ;;  %v16302_v26 = vld [vmem:[#allocation66_spill] sm:$0xff]  ;;  %v16303_v60 = vld [vmem:[#allocation65_spill] sm:$0xff] }
 0x43b   :  { %v12764_v54 = vpop.permute.xlu0 %3212  ;;  %v3291_v20 = vpop.permute.xlu1 %3290  ;;  %v3683_v52 = vpack.c.bf16 %v3187_v50, %v3107_v2  ;;  %v3266_v50 = vmul.f32 %v16303_v60, %v3233_v14 }
 0x43c   :  { %v3234_v0 = vsel %vm15721_vm11, %v3211_v9, %v12764_v54  ;;  %v3313_v15 = vsel %vm15723_vm13, %v12716_v21, %v3291_v20 }
 0x43d   :  { %3542 = vrot.lane.b32.xlu0 %v12731_v48, %s9311_s12  ;;  %3540 = vrot.lane.b32.xlu1 %v12699_v28, %s9311_s12  ;;  %v3267_v63 = vmul.f32 %v16143_v13, %v3234_v0  ;;  %v3346_v2 = vmul.f32 %v16302_v26, %v3313_v15 }
 0x43e   :  { %3970 = vmatprep.subr.bf16.mxu0 %v3683_v52 }
 0x43f   :  { %3971 = vmatpush1.bf16.msra.mxu0 %v3682_v16  ;;  %v12775_v40 = vpop.permute.xlu0 %3292  ;;  %v12777_v42 = vpop.permute.xlu1 %3370  ;;  %v3698_v29 = vpack.c.bf16 %v3346_v2, %v3266_v50 }
 0x440   :  { %v3314_v45 = vsel %vm15723_vm13, %v3291_v20, %v12775_v40 }
 0x441   :  { %v3347_v25 = vmul.f32 %v16144_v18, %v3314_v45  ;;  %3622 = vrot.lane.b32.xlu0 %v12731_v48, %s9312_s13  ;;  %3620 = vrot.lane.b32.xlu1 %v12699_v28, %s9312_s13  ;;  %v16307_v45 = vld [vmem:[#allocation71_spill] sm:$0xff] }
 0x443   :  { %v3453_v9 = vpop.permute.xlu0 %3452  ;;  %v12793_v56 = vpop.permute.xlu1 %3530  ;;  %v3699_v58 = vpack.c.bf16 %v3347_v25, %v3267_v63 }
 0x444   :  { %v3474_v50 = vsel %vm16309_vm7, %v12725_v7, %v3453_v9 }
 0x445   :  { %3064 = vrot.lane.b32.xlu0 %v12790_v61, %s9306_s7  ;;  %3062 = vrot.lane.b32.xlu1 %v12731_v48, %s9306_s7 }
 0x446   :  { %3972 = vmatprep.subr.bf16.mxu0 %v3699_v58  ;;  %v16310_v58 = vld [vmem:[#allocation78_spill] sm:$0xff] }
 0x447   :  { %3973 = vmatpush1.bf16.msra.mxu0 %v3698_v29  ;;  %v3533_v13 = vpop.permute.xlu0 %3532  ;;  %v3373_v18 = vpop.permute.xlu1 %3372 }
 0x448   :  { %v3394_v20 = vsel %vm16286_vm14, %v12777_v42, %v3373_v18  ;;  %v3554_v15 = vsel %vm16305_vm15, %v12793_v56, %v3533_v13  ;;  %vm16331_vm14 = vcmask 588800   ;;  %vm16333_vm15 = vcmask 1039360  }
 0x449   :  { %3144 = vrot.lane.b32.xlu0 %v12790_v61, %s9305_s6  ;;  %3142 = vrot.lane.b32.xlu1 %v12731_v48, %s9305_s6  ;;  %v3426_v14 = vmul.f32 %v16306_v37, %v3394_v20  ;;  %v3586_v29 = vmul.f32 %v16310_v58, %v3554_v15  ;;  %v16317_v58 = vld [vmem:[#allocation85_spill] sm:$0xff] }
 0x44b   :  { %v12805_v52 = vpop.permute.xlu0 %3374  ;;  %v12807_v16 = vpop.permute.xlu1 %3454  ;;  %v3714_v20 = vpack.c.bf16 %v3426_v14, %v12403_v6  ;;  %v16314_v6 = vld [vmem:[#allocation77_spill] sm:$0xff] }
 0x44c   :  { %v3395_v0 = vsel %vm16304_vm5, %v3373_v18, %v12805_v52  ;;  %v3475_v26 = vsel %vm16308_vm0, %v3453_v9, %v12807_v16  ;;  %vm16332_vm5 = vmmov %vm16308_vm0 }
 0x44d   :  { %v3427_v63 = vmul.f32 %v16307_v45, %v3395_v0  ;;  %3224 = vrot.lane.b32.xlu0 %v12790_v61, %s9307_s8  ;;  %3222 = vrot.lane.b32.xlu1 %v12731_v48, %s9307_s8  ;;  %v16312_v0 = vld [vmem:[#allocation76_spill] sm:$0xff]  ;;  %v16313_v45 = vld [vmem:[#allocation79_spill] sm:$0xff]  ;;  %vm16334_vm0 = vmmov %vm16333_vm15 }
 0x44e   :  { %v3507_v37 = vmul.f32 %v16312_v0, %v3475_v26  ;;  %vm16337_vm7 = vmmov %vm16332_vm5 }
 0x44f   :  { %v12821_v2 = vpop.permute.xlu0 %3610  ;;  %v12823_v25 = vpop.permute.xlu1 %3534  ;;  %v3715_v60 = vpack.c.bf16 %v3427_v63, %v12415_v53  ;;  %v3506_v53 = vmul.f32 %v16314_v6, %v3474_v50  ;;  %v16321_v6 = vld [vmem:[#allocation12_spill] sm:$0xff] }
 0x450   :  { %v3555_v18 = vsel %vm16311_vm1, %v3533_v13, %v12823_v25  ;;  %vm16339_vm1 = vmmov %vm16315_vm4 }
 0x451   :  { %v3587_v28 = vmul.f32 %v16313_v45, %v3555_v18  ;;  %3304 = vrot.lane.b32.xlu0 %v12790_v61, %s9308_s9  ;;  %3302 = vrot.lane.b32.xlu1 %v12731_v48, %s9308_s9  ;;  %v3730_v26 = vpack.c.bf16 %v3586_v29, %v3506_v53 }
 0x452   :  { %3974 = vmatprep.subr.bf16.mxu0 %v3715_v60 }
 0x453   :  { %3975 = vmatpush1.bf16.msra.mxu0 %v3714_v20  ;;  %v12851_v9 = vpop.permute.xlu0 %3614  ;;  %v3613_v13 = vpop.permute.xlu1 %3612  ;;  %v3731_v15 = vpack.c.bf16 %v3587_v28, %v3507_v37 }
 0x454   :  { %v3634_v14 = vsel %vm16315_vm4, %v12821_v2, %v3613_v13  ;;  %v3635_v63 = vsel %vm16316_vm9, %v3613_v13, %v12851_v9  ;;  %v16322_v13 = vld [vmem:[#allocation11_spill] sm:$0xff]  ;;  %vm16340_vm4 = vmmov %vm16339_vm1  ;;  %vm16341_vm9 = vcmask 785408  }
 0x455   :  { %v3666_v60 = vmul.f32 %v16172_v23, %v3634_v14  ;;  %v3667_v18 = vmul.f32 %v16317_v58, %v3635_v63  ;;  %3464 = vrot.lane.b32.xlu0 %v12790_v61, %s9310_s11  ;;  %3384 = vrot.lane.b32.xlu1 %v12790_v61, %s9309_s10  ;;  %v16323_v14 = vld [vmem:[#allocation13_spill] sm:$0xff]  ;;  %s9324_s11 = smov 17  }
 0x456   :  { %3976 = vmatprep.subr.bf16.mxu0 %v3731_v15  ;;  %s13801_s4 = sld [smem:[%s15438_s0 + %s9324_s11]]  }
 0x457   :  { %v3746_v28 = vpack.c.bf16 %v3666_v60, %v3666_v60  ;;  %v3747_v50 = vpack.c.bf16 %v3667_v18, %v3667_v18  ;;  %3977 = vmatpush1.bf16.msra.mxu0 %v3730_v26  ;;  %v3119_v20 = vpop.permute.xlu0 %3118  ;;  %v3039_v0 = vpop.permute.xlu1 %3038  ;;  %v16324_v26 = vld [vmem:[#allocation10_spill] sm:$0xff] }
 0x458   :  { %v3147_v29 = vsel %vm16318_vm10, %v12417_v57, %v3119_v20  ;;  %v3148_v23 = vsel %vm16319_vm3, %v3119_v20, %v12516_v33  ;;  %v3067_v37 = vsel %vm16257_vm2, %v12406_v11, %v3039_v0  ;;  %v3068_v45 = vsel %vm16320_vm6, %v3039_v0, %v12519_v44  ;;  %v4156_v57 = vld [vmem:[%s12842_s28] sm:$0xff]  ;;  %vm16342_vm10 = vmmov %vm16341_vm9  ;;  %s9335_s28 = smov 18  }
 0x459   :  { %v3180_v53 = vmul.f32 %v16321_v6, %v3147_v29  ;;  %v3181_v15 = vmul.f32 %v16322_v13, %v3148_v23  ;;  %v3100_v63 = vmul.f32 %v16323_v14, %v3067_v37  ;;  %v3101_v60 = vmul.f32 %v16324_v26, %v3068_v45  ;;  %3624 = vrot.lane.b32.xlu0 %v12790_v61, %s9312_s13  ;;  %v4134_v33 = vld [vmem:[%s12848_s3] sm:$0xff]  ;;  %v16328_v45 = vld [vmem:[#allocation20_spill] sm:$0xff]  ;;  %v16330_v14 = vld [vmem:[#allocation19_spill] sm:$0xff]  ;;  %s8328_s13 = sld [smem:[%s15438_s0 + %s9332_s2]]  }
 0x45a   :  { %3544 = vrot.lane.b32.xlu1 %v12790_v61, %s9311_s12  ;;  %8532 = vmatprep.subr.msk.bf16.mxu0 %vm16325_vm12, %v3747_v50  ;;  %v3783_v11 = vsel %vm16326_vm8, %v3746_v28, 0  ;;  %v16327_v37 = vld [vmem:[#allocation18_spill] sm:$0xff]  ;;  %vm16350_vm6 = vmmov %vm16319_vm3  ;;  %s14498_s3 = sld [smem:[%s15438_s0 + %s9335_s28]]   ;;  %s9336_s12 = smov 19  }
 0x45b   :  { %v3676_v44 = vpack.c.bf16 %v3180_v53, %v3100_v63  ;;  %3979 = vmatpush1.bf16.msra.mxu0 %v3783_v11  ;;  %v3279_v58 = vpop.permute.xlu0 %3278  ;;  %v3199_v18 = vpop.permute.xlu1 %3198  ;;  %v3677_v20 = vpack.c.bf16 %v3181_v15, %v3101_v60  ;;  %v16329_v53 = vld [vmem:[#allocation21_spill] sm:$0xff]  ;;  %vm16351_vm12 = vmmov %vm16257_vm2 }
 0x45c   :  { %v3307_v0 = vsel %vm15723_vm13, %v12441_v35, %v3279_v58  ;;  %v3308_v29 = vsel %vm15723_vm13, %v3279_v58, %v12533_v51  ;;  %v3227_v23 = vsel %vm15721_vm11, %v12430_v17, %v3199_v18  ;;  %v3228_v50 = vsel %vm15721_vm11, %v3199_v18, %v12539_v12  ;;  %v16338_v18 = vld [vmem:[#allocation28_spill] sm:$0xff] }
 0x45d   :  { %v3340_v28 = vmul.f32 %v16327_v37, %v3307_v0  ;;  %v3341_v6 = vmul.f32 %v16328_v45, %v3308_v29  ;;  %v3260_v13 = vmul.f32 %v16329_v53, %v3227_v23  ;;  %v3261_v15 = vmul.f32 %v16330_v14, %v3228_v50  ;;  %4159 = vperm.xlu0 %9038, %v4156_v57   ;;  %v16335_v57 = vld [vmem:[#allocation22_spill] sm:$0xff]  ;;  %v16343_v37 = vld [vmem:[#allocation29_spill] sm:$0xff]  ;;  %v16347_v14 = vld [vmem:[#allocation36_spill] sm:$0xff] }
 0x45e   :  { %4137 = vperm.xlu1 %9039, %v4134_v33   ;;  %3847 = vmatprep.subr.bf16.mxu1 %v3677_v20  ;;  %v16336_v33 = vld [vmem:[#allocation23_spill] sm:$0xff] }
 0x45f   :  { %v3692_v35 = vpack.c.bf16 %v3340_v28, %v3260_v13  ;;  %8533 = vmatmul.mubr.msk.bf16.vlgmr.msra.gmra.mrb[40].mxu0 %vm16331_vm14, %v12527_v49  ;;  %3848 = vmatpush1.bf16.msra.mxu1 %v3676_v44  ;;  %v3441_v17 = vpop.permute.xlu0 %3440  ;;  %v3361_v51 = vpop.permute.xlu1 %3360  ;;  %v3693_v63 = vpack.c.bf16 %v3341_v6, %v3261_v15  ;;  %v16345_v6 = vld [vmem:[#allocation30_spill] sm:$0xff]  ;;  %v16346_v13 = vld [vmem:[#allocation31_spill] sm:$0xff]  ;;  %vm16354_vm14 = vmmov %vm16326_vm8 }
 0x460   :  { %v3468_v12 = vsel %vm16332_vm5, %v12469_v8, %v3441_v17  ;;  %v3388_v26 = vsel %vm16333_vm15, %v12465_v5, %v3361_v51  ;;  %v3389_v60 = vsel %vm16334_vm0, %v3361_v51, %v12588_v62  ;;  %4084 = vmatprep.mubr.bf16.mxu0 %v15778_v32  ;;  %v3469_v44 = vsel %vm16337_vm7, %v3441_v17, %v12548_v36  ;;  %vm16357_vm5 = vmmov %vm16334_vm0 }
 0x461   :  { %v3420_v11 = vmul.f32 %v16335_v57, %v3388_v26  ;;  %v3421_v58 = vmul.f32 %v16336_v33, %v3389_v60  ;;  %3849 = vmatprep.subr.bf16.mxu1 %v3693_v63  ;;  %v3500_v20 = vmul.f32 %v16338_v18, %v3468_v12  ;;  %v3501_v28 = vmul.f32 %v16343_v37, %v3469_v44  ;;  %v16348_v63 = vld [vmem:[#allocation43_spill] sm:$0xff]  ;;  %v16349_v26 = vld [vmem:[#allocation40_spill] sm:$0xff]  ;;  %v16352_v18 = vld [vmem:[#allocation42_spill] sm:$0xff] }
 0x462   :  { %vm16361_vm15 = vmmov %vm16334_vm0  ;;  %vm16363_vm0 = vcmask 588800  }
 0x463   :  { %v3708_v8 = vpack.c.bf16 %v3420_v11, %v12310_v47  ;;  %3850 = vmatpush1.bf16.msra.mxu1 %v3692_v35  ;;  %v3601_v0 = vpop.permute.xlu0 %3600  ;;  %v3521_v5 = vpop.permute.xlu1 %3520  ;;  %v3709_v29 = vpack.c.bf16 %v3421_v58, %v12322_v46  ;;  %v16344_v47 = vld [vmem:[#allocation37_spill] sm:$0xff]  ;;  %vm16364_vm7 = vmmov %vm16341_vm9 }
 0x464   :  { %v3628_v62 = vsel %vm16339_vm1, %v12484_v31, %v3601_v0  ;;  %v3629_v23 = vsel %vm16340_vm4, %v3601_v0, %v12554_v4  ;;  %v3548_v50 = vsel %vm16341_vm9, %v12491_v43, %v3521_v5  ;;  %v3549_v36 = vsel %vm16342_vm10, %v3521_v5, %v12601_v30  ;;  %vm16367_vm4 = vmmov %vm16364_vm7 }
 0x465   :  { %v3660_v45 = vmul.f32 %v16344_v47, %v3628_v62  ;;  %v3580_v53 = vmul.f32 %v16345_v6, %v3548_v50  ;;  %v3581_v46 = vmul.f32 %v16346_v13, %v3549_v36  ;;  %3851 = vmatprep.subr.bf16.mxu1 %v3709_v29  ;;  %v3661_v31 = vmul.f32 %v16347_v14, %v3629_v23  ;;  %v16355_v29 = vld [vmem:[#allocation51_spill] sm:$0xff]  ;;  %v16356_v23 = vld [vmem:[#allocation48_spill] sm:$0xff]  ;;  %v16358_v47 = vld [vmem:[#allocation50_spill] sm:$0xff] }
 0x466   :  { %v16359_v6 = vld [vmem:[#allocation49_spill] sm:$0xff]  ;;  %vm16365_vm1 = vcmask 793600   ;;  %vm16370_vm9 = vcmask 777216  }
 0x467   :  { %v3724_v15 = vpack.c.bf16 %v3580_v53, %v3500_v20  ;;  %3852 = vmatpush1.bf16.msra.mxu1 %v3708_v8  ;;  %v3127_v4 = vpop.permute.xlu0 %3126  ;;  %v3047_v35 = vpop.permute.xlu1 %3046  ;;  %v3725_v17 = vpack.c.bf16 %v3581_v46, %v3501_v28  ;;  %v3740_v51 = vpack.c.bf16 %v3660_v45, %v3660_v45  ;;  %v3741_v57 = vpack.c.bf16 %v3661_v31, %v3661_v31  ;;  %v16353_v8 = vld [vmem:[#allocation41_spill] sm:$0xff]  ;;  %v16362_v46 = vld [vmem:[#allocation55_spill] sm:$0xff]  ;;  %vm16371_vm10 = vmmov %vm16370_vm9 }
 0x468   :  { %v3152_v43 = vsel %vm16319_vm3, %v3127_v4, %v12702_v24  ;;  %v3072_v30 = vsel %vm16257_vm2, %v3047_v35, %v12704_v1  ;;  %v3151_v11 = vsel %vm16350_vm6, %v12570_v55, %v3127_v4  ;;  %v3071_v33 = vsel %vm16351_vm12, %v12560_v22, %v3047_v35  ;;  %vm16373_vm3 = vmmov %vm16365_vm1 }
 0x469   :  { %v3185_v12 = vmul.f32 %v16348_v63, %v3152_v43  ;;  %v3105_v60 = vmul.f32 %v16349_v26, %v3072_v30  ;;  %3853 = vmatprep.subr.bf16.mxu1 %v3725_v17  ;;  %v3184_v20 = vmul.f32 %v16352_v18, %v3151_v11  ;;  %v3104_v0 = vmul.f32 %v16353_v8, %v3071_v33  ;;  %v16366_v17 = vld [vmem:[#allocation54_spill] sm:$0xff]  ;;  %v16374_v33 = vld [vmem:[#allocation60_spill] sm:$0xff]  ;;  %vm16380_vm2 = vmmov %vm16350_vm6 }
 0x46a   :  { %v3765_v55 = vsel %vm16354_vm14, %v3740_v51, 0  ;;  %v16369_v63 = vld [vmem:[#allocation38_spill] sm:$0xff]  ;;  %v16377_v18 = vld [vmem:[#allocation68_spill] sm:$0xff]  ;;  %vm16381_vm6 = vmmov %vm16351_vm12 }
 0x46b   :  { %3854 = vmatpush1.bf16.msra.mxu1 %v3724_v15  ;;  %v3287_v58 = vpop.permute.xlu0 %3286  ;;  %v3207_v44 = vpop.permute.xlu1 %3206  ;;  %v3681_v5 = vpack.c.bf16 %v3185_v12, %v3105_v60  ;;  %v3680_v28 = vpack.c.bf16 %v3184_v20, %v3104_v0  ;;  %vm16382_vm12 = vmmov %vm16380_vm2 }
 0x46c   :  { %v3312_v24 = vsel %vm15723_vm13, %v3287_v58, %v12716_v21  ;;  %8526 = vmatprep.subr.msk.bf16.mxu1 %vm16326_vm8, %v3741_v57  ;;  %v3232_v1 = vsel %vm15721_vm11, %v3207_v44, %v12718_v3  ;;  %v3311_v22 = vsel %vm15723_vm13, %v12599_v59, %v3287_v58  ;;  %v3231_v21 = vsel %vm15721_vm11, %v12586_v10, %v3207_v44  ;;  %v16360_v59 = vld [vmem:[#allocation44_spill] sm:$0xff]  ;;  %vm16383_vm8 = vmmov %vm16381_vm6 }
 0x46d   :  { %v3345_v62 = vmul.f32 %v16355_v29, %v3312_v24  ;;  %v3265_v50 = vmul.f32 %v16356_v23, %v3232_v1  ;;  %v3344_v45 = vmul.f32 %v16358_v47, %v3311_v22  ;;  %v3264_v53 = vmul.f32 %v16359_v6, %v3231_v21  ;;  %v16376_v24 = vld [vmem:[#allocation62_spill] sm:$0xff]  ;;  %v16385_v6 = vld [vmem:[#allocation72_spill] sm:$0xff] }
 0x46f   :  { %3856 = vmatpush1.bf16.msra.mxu1 %v3765_v55  ;;  %v3449_v36 = vpop.permute.xlu0 %3448  ;;  %v3369_v3 = vpop.permute.xlu1 %3368  ;;  %v3697_v10 = vpack.c.bf16 %v3345_v62, %v3265_v50  ;;  %v3696_v4 = vpack.c.bf16 %v3344_v45, %v3264_v53 }
 0x470   :  { %3929 = vmatprep.subr.bf16.mxu1 %v3681_v5  ;;  %v3393_v37 = vsel %vm16357_vm5, %v3369_v3, %v12777_v42  ;;  %v3392_v13 = vsel %vm16361_vm15, %v16360_v59, %v3369_v3  ;;  %v3473_v35 = vsel %vm16365_vm1, %v3449_v36, %v12725_v7  ;;  %v16372_v7 = vld [vmem:[#allocation46_spill] sm:$0xff]  ;;  %vm16388_vm5 = vmmov %vm16354_vm14 }
 0x471   :  { %v3425_v14 = vmul.f32 %v16362_v46, %v3393_v37  ;;  %v3424_v43 = vmul.f32 %v16366_v17, %v3392_v13  ;;  %v3472_v11 = vsel %vm16373_vm3, %v16372_v7, %v3449_v36  ;;  %v3505_v58 = vmul.f32 %v16374_v33, %v3473_v35  ;;  %v16384_v37 = vld [vmem:[#allocation75_spill] sm:$0xff]  ;;  %v16386_v59 = vld [vmem:[#allocation74_spill] sm:$0xff]  ;;  %v16387_v46 = vld [vmem:[#allocation73_spill] sm:$0xff] }
 0x472   :  { %8527 = vmatmul.mubr.msk.bf16.vlgmr.msra.gmra.mrb[32].mxu1 %vm16363_vm0, %v12527_v49  ;;  %v16368_v49 = vld [vmem:[#allocation63_spill] sm:$0xff]  ;;  %vm16393_vm15 = vmmov %vm16363_vm0  ;;  %vm16394_vm0 = vcmask 1039360   ;;  %vm16406_vm3 = vcmask 777216  }
 0x473   :  { %3930 = vmatpush1.bf16.msra.mxu1 %v3680_v28  ;;  %v3609_v31 = vpop.permute.xlu0 %3608  ;;  %v3529_v15 = vpop.permute.xlu1 %3528  ;;  %3961 = vmatprep.mubr.bf16.mxu1 %v15778_v32  ;;  %v3713_v12 = vpack.c.bf16 %v3425_v14, %v16369_v63 }
 0x474   :  { %3931 = vmatprep.subr.bf16.mxu1 %v3697_v10  ;;  %v3553_v42 = vsel %vm16364_vm7, %v3529_v15, %v12793_v56  ;;  %v3552_v30 = vsel %vm16367_vm4, %v12660_v41, %v3529_v15  ;;  %v3632_v26 = vsel %vm16370_vm9, %v12658_v38, %v3609_v31  ;;  %v3633_v60 = vsel %vm16371_vm10, %v3609_v31, %v12821_v2  ;;  %v16375_v41 = vld [vmem:[#allocation136_spill] sm:$0xff]  ;;  %v16378_v38 = vld [vmem:[#allocation69_spill] sm:$0xff]  ;;  %vm16395_vm7 = vmmov %vm16394_vm0 }
 0x475   :  { %v3585_v51 = vmul.f32 %v16368_v49, %v3553_v42  ;;  %v3712_v44 = vpack.c.bf16 %v3424_v43, %v16375_v41  ;;  %v3584_v1 = vmul.f32 %v16376_v24, %v3552_v30  ;;  %v3664_v20 = vmul.f32 %v16377_v18, %v3632_v26  ;;  %v16379_v2 = vld [vmem:[#allocation61_spill] sm:$0xff]  ;;  %v16390_v30 = vld [vmem:[#allocation80_spill] sm:$0xff]  ;;  %v16396_v41 = vld [vmem:[#allocation86_spill] sm:$0xff] }
 0x476   :  { %v3665_v8 = vmul.f32 %v16378_v38, %v3633_v60  ;;  %v3504_v55 = vmul.f32 %v16379_v2, %v3472_v11  ;;  %v16389_v43 = vld [vmem:[#allocation81_spill] sm:$0xff]  ;;  %v13014_v60 = vld [vmem:[%s12510_s18] sm:$0xf]  ;;  %v16397_v24 = vld [vmem:[#allocation87_spill] sm:$0xff]  ;;  %vm16400_vm9 = vcmask 785408   ;;  %s9329_s18 = smov 12  }
 0x477   :  { %3932 = vmatpush1.bf16.msra.mxu1 %v3696_v4  ;;  %v12971_v56 = vpop.permute.xlu0 %3056  ;;  %v3055_v57 = vpop.permute.xlu1 %3054  ;;  %v3729_v0 = vpack.c.bf16 %v3585_v51, %v3505_v58  ;;  %v3744_v50 = vpack.c.bf16 %v3664_v20, %v3664_v20  ;;  %v16391_v51 = vld [vmem:[#allocation82_spill] sm:$0xff]  ;;  %v16398_v18 = vld [vmem:[#allocation47_spill] sm:$0xff]  ;;  %vm16399_vm4 = vmmov %vm16365_vm1  ;;  %s8329_s22 = sld [smem:[%s15438_s0 + %s9329_s18]]  }
 0x478   :  { %3933 = vmatprep.subr.bf16.mxu1 %v3713_v12  ;;  %v3728_v62 = vpack.c.bf16 %v3584_v1, %v3504_v55  ;;  %v3076_v21 = vsel %vm16381_vm6, %v3055_v57, %v12971_v56  ;;  %v3745_v36 = vpack.c.bf16 %v3665_v8, %v3665_v8  ;;  %v3075_v3 = vsel %vm16383_vm8, %v12733_v34, %v3055_v57  ;;  %v16392_v12 = vld [vmem:[#allocation83_spill] sm:$0xff]  ;;  %vm16401_vm10 = vmmov %vm16400_vm9  ;;  %s8336_s18 = sld [smem:[%s15438_s0 + %s9336_s12]]  }
 0x479   :  { %v3109_v53 = vmul.f32 %v16385_v6, %v3076_v21  ;;  %v3108_v14 = vmul.f32 %v16387_v46, %v3075_v3  ;;  %v3777_v10 = vsel %vm16388_vm5, %v3744_v50, 0  ;;  %v16402_v21 = vld [vmem:[#allocation93_spill] sm:$0xff]  ;;  %vm16410_vm6 = vmmov %vm16388_vm5 }
 0x47b   :  { %3934 = vmatpush1.bf16.msra.mxu1 %v3712_v44  ;;  %v12981_v5 = vpop.permute.xlu0 %3136  ;;  %v3135_v22 = vpop.permute.xlu1 %3134 }
 0x47c   :  { %3935 = vmatprep.subr.bf16.mxu1 %v3729_v0  ;;  %v3156_v29 = vsel %vm16380_vm2, %v3135_v22, %v12981_v5  ;;  %v3155_v23 = vsel %vm16382_vm12, %v12743_v39, %v3135_v22  ;;  %vm16407_vm2 = vmmov %vm16406_vm3 }
 0x47d   :  { %v3189_v28 = vmul.f32 %v16384_v37, %v3156_v29  ;;  %v3188_v13 = vmul.f32 %v16386_v59, %v3155_v23  ;;  %vm16411_vm12 = vmmov %vm16388_vm5  ;;  %vm16413_vm5 = vcmask 261120  }
 0x47f   :  { %3936 = vmatpush1.bf16.msra.mxu1 %v3728_v62  ;;  %v12992_v47 = vpop.permute.xlu0 %3216  ;;  %v3215_v45 = vpop.permute.xlu1 %3214  ;;  %v3685_v31 = vpack.c.bf16 %v3189_v28, %v3109_v53  ;;  %v3684_v4 = vpack.c.bf16 %v3188_v13, %v3108_v14  ;;  %v16408_v13 = vld [vmem:[#allocation100_spill] sm:$0xff]  ;;  %v16409_v14 = vld [vmem:[#allocation101_spill] sm:$0xff] }
 0x480   :  { %8530 = vmatprep.subr.msk.bf16.mxu1 %vm16354_vm14, %v3745_v36  ;;  %v3235_v39 = vsel %vm15721_vm11, %v12764_v54, %v3215_v45  ;;  %v3236_v34 = vsel %vm15721_vm11, %v3215_v45, %v12992_v47  ;;  %v16404_v36 = vld [vmem:[#allocation94_spill] sm:$0xff]  ;;  %vm16412_vm14 = vmmov %vm16383_vm8 }
 0x481   :  { %v3268_v54 = vmul.f32 %v16389_v43, %v3235_v39  ;;  %v3269_v49 = vmul.f32 %v16390_v30, %v3236_v34 }
 0x483   :  { %3938 = vmatpush1.bf16.msra.mxu1 %v3777_v10  ;;  %v13003_v15 = vpop.permute.xlu0 %3296  ;;  %v3295_v42 = vpop.permute.xlu1 %3294 }
 0x484   :  { %4011 = vmatprep.subr.bf16.mxu1 %v3685_v31  ;;  %v3315_v35 = vsel %vm15723_vm13, %v12775_v40, %v3295_v42  ;;  %v3316_v17 = vsel %vm15723_vm13, %v3295_v42, %v13003_v15 }
 0x485   :  { %v3348_v63 = vmul.f32 %v16391_v51, %v3315_v35  ;;  %v3349_v26 = vmul.f32 %v16392_v12, %v3316_v17 }
 0x486   :  { %8531 = vmatmul.mubr.msk.bf16.vlgmr.msra.gmra.mrb[36].mxu1 %vm16393_vm15, %v13014_v60  ;;  %vm16414_vm15 = vmmov %vm16413_vm5 }
 0x487   :  { %v3700_v57 = vpack.c.bf16 %v3348_v63, %v3268_v54  ;;  %4012 = vmatpush1.bf16.msra.mxu1 %v3684_v4  ;;  %v13018_v7 = vpop.permute.xlu0 %3378  ;;  %v3377_v40 = vpop.permute.xlu1 %3376  ;;  %v3701_v11 = vpack.c.bf16 %v3349_v26, %v3269_v49  ;;  %4043 = vmatprep.mubr.bf16.mxu1 %v15778_v32  ;;  %v16415_v49 = vld [vmem:[#allocation89_spill] sm:$0xff]  ;;  %v16416_v63 = vld [vmem:[#allocation88_spill] sm:$0xff]  ;;  %v16417_v26 = vld [vmem:[#allocation90_spill] sm:$0xff] }
 0x488   :  { %v3396_v33 = vsel %vm16394_vm0, %v12805_v52, %v3377_v40  ;;  %v3397_v58 = vsel %vm16395_vm7, %v3377_v40, %v13018_v7  ;;  %vm16419_vm0 = vcmask 588800  }
 0x489   :  { %v3428_v44 = vmul.f32 %v16396_v41, %v3396_v33  ;;  %v3429_v1 = vmul.f32 %v16397_v24, %v3397_v58  ;;  %4013 = vmatprep.subr.bf16.mxu1 %v3701_v11 }
 0x48b   :  { %v3716_v20 = vpack.c.bf16 %v3428_v44, %v16398_v18  ;;  %4014 = vmatpush1.bf16.msra.mxu1 %v3700_v57  ;;  %v13028_v38 = vpop.permute.xlu0 %3458  ;;  %v3457_v8 = vpop.permute.xlu1 %3456  ;;  %v3717_v0 = vpack.c.bf16 %v3429_v1, %v12616_v19  ;;  %v16403_v19 = vld [vmem:[#allocation92_spill] sm:$0xff] }
 0x48c   :  { %v3476_v52 = vsel %vm16365_vm1, %v12807_v16, %v3457_v8  ;;  %v3477_v2 = vsel %vm16399_vm4, %v3457_v8, %v13028_v38  ;;  %v16405_v16 = vld [vmem:[#allocation95_spill] sm:$0xff]  ;;  %v16420_v8 = vld [vmem:[#allocation97_spill] sm:$0xff]  ;;  %vm16424_vm1 = vmmov %vm16395_vm7 }
 0x48d   :  { %4015 = vmatprep.subr.bf16.mxu1 %v3717_v0  ;;  %v3508_v23 = vmul.f32 %v16402_v21, %v3476_v52  ;;  %v3509_v50 = vmul.f32 %v16403_v19, %v3477_v2  ;;  %v16421_v52 = vld [vmem:[#allocation96_spill] sm:$0xff] }
 0x48f   :  { %4016 = vmatpush1.bf16.msra.mxu1 %v3716_v20  ;;  %v13035_v55 = vpop.permute.xlu0 %3538  ;;  %v3537_v22 = vpop.permute.xlu1 %3536 }
 0x490   :  { %v3556_v29 = vsel %vm16400_vm9, %v12823_v25, %v3537_v22  ;;  %v3557_v62 = vsel %vm16401_vm10, %v3537_v22, %v13035_v55  ;;  %v16422_v22 = vld [vmem:[#allocation98_spill] sm:$0xff]  ;;  %vm16428_vm9 = vmmov %vm16399_vm4 }
 0x491   :  { %v3588_v3 = vmul.f32 %v16404_v36, %v3556_v29  ;;  %v3589_v37 = vmul.f32 %v16405_v16, %v3557_v62 }
 0x493   :  { %v3732_v28 = vpack.c.bf16 %v3588_v3, %v3508_v23  ;;  %v13045_v45 = vpop.permute.xlu0 %3618  ;;  %v3617_v6 = vpop.permute.xlu1 %3616  ;;  %v3733_v53 = vpack.c.bf16 %v3589_v37, %v3509_v50  ;;  %v16425_v3 = vld [vmem:[#allocation102_spill] sm:$0xff]  ;;  %v16426_v37 = vld [vmem:[#allocation103_spill] sm:$0xff] }
 0x494   :  { %v3636_v59 = vsel %vm16406_vm3, %v12851_v9, %v3617_v6  ;;  %v3637_v25 = vsel %vm16407_vm2, %v3617_v6, %v13045_v45  ;;  %vm16429_vm3 = vmmov %vm16401_vm10 }
 0x495   :  { %v3668_v46 = vmul.f32 %v16408_v13, %v3636_v59  ;;  %v3669_v39 = vmul.f32 %v16409_v14, %v3637_v25  ;;  %4017 = vmatprep.subr.bf16.mxu1 %v3733_v53  ;;  %v16427_v25 = vld [vmem:[#allocation52_spill] sm:$0xff] }
 0x496   :  { %4018 = vmatpush1.bf16.msra.mxu1 %v3732_v28 }
 0x497   :  { %v3748_v34 = vpack.c.bf16 %v3668_v46, %v3668_v46  ;;  %v3749_v10 = vpack.c.bf16 %v3669_v39, %v3669_v39  ;;  %v13053_v31 = vpop.permute.xlu0 %3060  ;;  %v3059_v42 = vpop.permute.xlu1 %3058 }
 0x498   :  { %v3077_v9 = vsel %vm16383_vm8, %v12971_v56, %v3059_v42  ;;  %v3078_v35 = vsel %vm16412_vm14, %v3059_v42, %v13053_v31  ;;  %v16418_v56 = vld [vmem:[#allocation91_spill] sm:$0xff]  ;;  %vm16437_vm8 = vmmov %vm16411_vm12 }
 0x499   :  { %8534 = vmatprep.subr.msk.bf16.mxu1 %vm16410_vm6, %v3749_v10  ;;  %v3789_v4 = vsel %vm16411_vm12, %v3748_v34, 0  ;;  %v3110_v51 = vmul.f32 %v16415_v49, %v3077_v9  ;;  %v3111_v12 = vmul.f32 %v16416_v63, %v3078_v35  ;;  %v16430_v10 = vld [vmem:[#allocation105_spill] sm:$0xff]  ;;  %v16432_v35 = vld [vmem:[#allocation106_spill] sm:$0xff]  ;;  %vm16434_vm6 = vmmov %vm16407_vm2 }
 0x49a   :  { %4020 = vmatpush1.bf16.msra.mxu1 %v3789_v4  ;;  %v16431_v4 = vld [vmem:[#allocation104_spill] sm:$0xff] }
 0x49b   :  { %v13061_v17 = vpop.permute.xlu0 %3140  ;;  %v3139_v43 = vpop.permute.xlu1 %3138 }
 0x49c   :  { %v3157_v54 = vsel %vm16413_vm5, %v12981_v5, %v3139_v43  ;;  %v3158_v30 = vsel %vm16414_vm15, %v3139_v43, %v13061_v17  ;;  %vm16438_vm5 = vmmov %vm16412_vm14 }
 0x49d   :  { %v3190_v57 = vmul.f32 %v16417_v26, %v3157_v54  ;;  %v3191_v40 = vmul.f32 %v16418_v56, %v3158_v30  ;;  %8535 = vmatmul.mubr.msk.bf16.vlgmr.msra.gmra.mrb[40].mxu1 %vm16419_vm0, %v13014_v60  ;;  %v16435_v26 = vld [vmem:[#allocation108_spill] sm:$0xff]  ;;  %v16436_v56 = vld [vmem:[#allocation109_spill] sm:$0xff]  ;;  %vm16439_vm0 = vmmov %vm16414_vm15 }
 0x49e   :  { %4125 = vmatprep.mubr.bf16.mxu1 %v15778_v32 }
 0x49f   :  { %v3686_v11 = vpack.c.bf16 %v3190_v57, %v3110_v51  ;;  %v13074_v33 = vpop.permute.xlu0 %3220  ;;  %v3219_v5 = vpop.permute.xlu1 %3218  ;;  %v3687_v58 = vpack.c.bf16 %v3191_v40, %v3111_v12 }
 0x4a0   :  { %v3237_v41 = vsel %vm15721_vm11, %v12992_v47, %v3219_v5  ;;  %v3238_v44 = vsel %vm15721_vm11, %v3219_v5, %v13074_v33  ;;  %v16423_v47 = vld [vmem:[#allocation99_spill] sm:$0xff] }
 0x4a1   :  { %4052 = vmatprep.subr.bf16.mxu0 %v3687_v58  ;;  %v3270_v0 = vmul.f32 %v16420_v8, %v3237_v41  ;;  %v3271_v2 = vmul.f32 %v16421_v52, %v3238_v44  ;;  %v13125_v44 = vld [vmem:[%s12748_s23 + $0x4] ss:$8 sps:$4 sm:$0xff]   ;;  %v13135_v8 = vld [vmem:[%s12748_s23] ss:$8 sps:$4 sm:$0xff]  }
 0x4a2   :  { %4053 = vmatpush1.bf16.msra.mxu0 %v3686_v11 }
 0x4a3   :  { %v13080_v24 = vpop.permute.xlu0 %3300  ;;  %v3299_v1 = vpop.permute.xlu1 %3298 }
 0x4a4   :  { %v3317_v18 = vsel %vm15723_vm13, %v13003_v15, %v3299_v1  ;;  %v3318_v20 = vsel %vm15723_vm13, %v3299_v1, %v13080_v24 }
 0x4a5   :  { %v3350_v29 = vmul.f32 %v16422_v22, %v3317_v18  ;;  %v3351_v62 = vmul.f32 %v16423_v47, %v3318_v20  ;;  %v13141_v22 = vld [vmem:[%s12748_s23 + $0x14] ss:$8 sps:$4 sm:$0xff]  }
 0x4a7   :  { %v3702_v21 = vpack.c.bf16 %v3350_v29, %v3270_v0  ;;  %v13090_v23 = vpop.permute.xlu0 %3382  ;;  %v3381_v19 = vpop.permute.xlu1 %3380  ;;  %v3703_v50 = vpack.c.bf16 %v3351_v62, %v3271_v2  ;;  %v16440_v62 = vld [vmem:[#allocation111_spill] sm:$0xff] }
 0x4a8   :  { %v3398_v36 = vsel %vm16395_vm7, %v13018_v7, %v3381_v19  ;;  %v3399_v15 = vsel %vm16424_vm1, %v3381_v19, %v13090_v23  ;;  %v16441_v19 = vld [vmem:[#allocation110_spill] sm:$0xff]  ;;  %vm16444_vm7 = vcmask 588800  }
 0x4a9   :  { %v3430_v16 = vmul.f32 %v16425_v3, %v3398_v36  ;;  %v3431_v28 = vmul.f32 %v16426_v37, %v3399_v15  ;;  %4054 = vmatprep.subr.bf16.mxu0 %v3703_v50  ;;  %v16442_v36 = vld [vmem:[#allocation112_spill] sm:$0xff]  ;;  %v16443_v3 = vld [vmem:[#allocation113_spill] sm:$0xff] }
 0x4aa   :  { %4055 = vmatpush1.bf16.msra.mxu0 %v3702_v21 }
 0x4ab   :  { %v3718_v6 = vpack.c.bf16 %v3430_v16, %v12654_v27  ;;  %v13099_v53 = vpop.permute.xlu0 %3462  ;;  %v3461_v59 = vpop.permute.xlu1 %3460  ;;  %v3719_v13 = vpack.c.bf16 %v3431_v28, %v16427_v25 }
 0x4ac   :  { %v3478_v7 = vsel %vm16399_vm4, %v13028_v38, %v3461_v59  ;;  %v3479_v46 = vsel %vm16428_vm9, %v3461_v59, %v13099_v53  ;;  %v16433_v38 = vld [vmem:[#allocation107_spill] sm:$0xff]  ;;  %vm16449_vm4 = vmmov %vm16424_vm1 }
 0x4ad   :  { %4056 = vmatprep.subr.bf16.mxu0 %v3719_v13  ;;  %v3510_v42 = vmul.f32 %v16430_v10, %v3478_v7  ;;  %v3511_v9 = vmul.f32 %v16431_v4, %v3479_v46  ;;  %v13158_v13 = vld [vmem:[%s12748_s23 + $0x24] ss:$8 sps:$4 sm:$0xff]   ;;  %v13169_v10 = vld [vmem:[%s12748_s23 + $0x34] ss:$8 sps:$4 sm:$0xff]  }
 0x4ae   :  { %4057 = vmatpush1.bf16.msra.mxu0 %v3718_v6  ;;  %v16445_v4 = vld [vmem:[#allocation115_spill] sm:$0xff] }
 0x4af   :  { %v13106_v14 = vpop.permute.xlu0 %3542  ;;  %v3541_v39 = vpop.permute.xlu1 %3540 }
 0x4b0   :  { %v3558_v34 = vsel %vm16401_vm10, %v13035_v55, %v3541_v39  ;;  %v3559_v27 = vsel %vm16429_vm3, %v3541_v39, %v13106_v14  ;;  %v13165_v39 = vld [vmem:[%s12748_s23 + $0x20] ss:$8 sps:$4 sm:$0xff]   ;;  %vm16452_vm10 = vmmov %vm16428_vm9 }
 0x4b1   :  { %v3590_v43 = vmul.f32 %v16432_v35, %v3558_v34  ;;  %v3591_v54 = vmul.f32 %v16433_v38, %v3559_v27  ;;  %v16446_v35 = vld [vmem:[#allocation114_spill] sm:$0xff]  ;;  %v16447_v38 = vld [vmem:[#allocation116_spill] sm:$0xff]  ;;  %vm16454_vm3 = vmmov %vm16407_vm2 }
 0x4b3   :  { %v3734_v30 = vpack.c.bf16 %v3590_v43, %v3510_v42  ;;  %v13116_v49 = vpop.permute.xlu0 %3622  ;;  %v3621_v51 = vpop.permute.xlu1 %3620  ;;  %v3735_v63 = vpack.c.bf16 %v3591_v54, %v3511_v9 }
 0x4b4   :  { %v3638_v55 = vsel %vm16407_vm2, %v13045_v45, %v3621_v51  ;;  %v3639_v12 = vsel %vm16434_vm6, %v3621_v51, %v13116_v49  ;;  %vm16457_vm6 = vcmask 785408  }
 0x4b5   :  { %v3670_v57 = vmul.f32 %v16435_v26, %v3638_v55  ;;  %v3671_v40 = vmul.f32 %v16436_v56, %v3639_v12  ;;  %4058 = vmatprep.subr.bf16.mxu0 %v3735_v63  ;;  %v13180_v63 = vld [vmem:[%s12748_s23 + $0x30] ss:$8 sps:$4 sm:$0xff]  }
 0x4b6   :  { %4059 = vmatpush1.bf16.msra.mxu0 %v3734_v30  ;;  %v16448_v30 = vld [vmem:[#allocation117_spill] sm:$0xff] }
 0x4b7   :  { %v3750_v11 = vpack.c.bf16 %v3670_v57, %v3670_v57  ;;  %v3751_v5 = vpack.c.bf16 %v3671_v40, %v3671_v40  ;;  %v3065_v58 = vpop.permute.xlu0 %3064  ;;  %v3063_v41 = vpop.permute.xlu1 %3062 }
 0x4b8   :  { %v3079_v18 = vsel %vm16412_vm14, %v13053_v31, %v3063_v41  ;;  %v3080_v20 = vsel %vm16438_vm5, %v3063_v41, %v3065_v58  ;;  %v16451_v41 = vld [vmem:[#allocation119_spill] sm:$0xff]  ;;  %vm16462_vm14 = vmmov %vm16437_vm8 }
 0x4b9   :  { %8536 = vmatprep.subr.msk.bf16.mxu0 %vm16411_vm12, %v3751_v5  ;;  %v3795_v45 = vsel %vm16437_vm8, %v3750_v11, 0  ;;  %v13129_v1 = vpop.f32.mrb[32].mxu0  ;;  %v3112_v21 = vmul.f32 %v16440_v62, %v3079_v18  ;;  %v3113_v50 = vmul.f32 %v16441_v19, %v3080_v20  ;;  %v16450_v5 = vld [vmem:[#allocation118_spill] sm:$0xff]  ;;  %v16455_v19 = vld [vmem:[#allocation121_spill] sm:$0xff]  ;;  %vm16458_vm12 = vmmov %vm16457_vm6 }
 0x4ba   :  { %4061 = vmatpush1.bf16.msra.mxu0 %v3795_v45  ;;  %v13137_v0 = vpop.f32.mrb[33].mxu0  ;;  %v13196_v20 = vld [vmem:[%s12748_s23 + $0x40] ss:$8 sps:$4 sm:$0xff]   ;;  %vm16463_vm5 = vmmov %vm16444_vm7 }
 0x4bb   :  { %v3145_v52 = vpop.permute.xlu0 %3144  ;;  %v3143_v2 = vpop.permute.xlu1 %3142  ;;  %4994 = vmatprep.subr.bf16.mxu0 %v13125_v44 }
 0x4bc   :  { %v3159_v29 = vsel %vm16414_vm15, %v13061_v17, %v3143_v2  ;;  %v3160_v31 = vsel %vm16439_vm0, %v3143_v2, %v3145_v52  ;;  %v3844_v47 = vpop.f32.mrb[34].mxu0  ;;  %v13154_v17 = vld [vmem:[%s12748_s23 + $0x10] ss:$8 sps:$4 sm:$0xff]  }
 0x4bd   :  { %v3192_v15 = vmul.f32 %v16442_v36, %v3159_v29  ;;  %v3193_v16 = vmul.f32 %v16443_v3, %v3160_v31  ;;  %8537 = vmatmul.mubr.msk.bf16.vlgmr.msra.gmra.mrb[44].mxu0 %vm16444_vm7, %v13014_v60  ;;  %v3845_v37 = vpop.f32.mrb[35].mxu0  ;;  %v16453_v29 = vld [vmem:[#allocation120_spill] sm:$0xff]  ;;  %v16459_v3 = vld [vmem:[#allocation125_spill] sm:$0xff] }
 0x4be   :  { %4995 = vmatpush1.bf16.msra.mxu0 %v13135_v8  ;;  %v16460_v37 = vld [vmem:[#allocation122_spill] sm:$0xff] }
 0x4bf   :  { %v3688_v28 = vpack.c.bf16 %v3192_v15, %v3112_v21  ;;  %v3225_v6 = vpop.permute.xlu0 %3224  ;;  %v3223_v59 = vpop.permute.xlu1 %3222  ;;  %v3689_v25 = vpack.c.bf16 %v3193_v16, %v3113_v50  ;;  %4996 = vmatprep.subr.bf16.mxu0 %v13141_v22 }
 0x4c0   :  { %v3239_v7 = vsel %vm15721_vm11, %v13074_v33, %v3223_v59  ;;  %v3240_v46 = vsel %vm15721_vm11, %v3223_v59, %v3225_v6  ;;  %v16461_v6 = vld [vmem:[#allocation123_spill] sm:$0xff]  ;;  %v13218_v59 = vld [vmem:[%s12748_s23 + $0x50] ss:$8 sps:$4 sm:$0xff]  }
 0x4c1   :  { %4093 = vmatprep.subr.bf16.mxu1 %v3689_v25  ;;  %v3272_v9 = vmul.f32 %v16445_v4, %v3239_v7  ;;  %v3273_v43 = vmul.f32 %v16446_v35, %v3240_v46  ;;  %v13234_v4 = vld [vmem:[%s12748_s23 + $0x70] ss:$8 sps:$4 sm:$0xff]   ;;  %v13244_v35 = vld [vmem:[%s12748_s23 + $0x80] ss:$8 sps:$4 sm:$0xff]  }
 0x4c2   :  { %4094 = vmatpush1.bf16.msra.mxu1 %v3688_v28  ;;  %4997 = vmatpush1.bf16.msra.mxu0 %v13154_v17 }
 0x4c3   :  { %v3305_v34 = vpop.permute.xlu0 %3304  ;;  %v3303_v27 = vpop.permute.xlu1 %3302  ;;  %4998 = vmatprep.subr.bf16.mxu0 %v13158_v13 }
 0x4c4   :  { %v3319_v42 = vsel %vm15723_vm13, %v13080_v24, %v3303_v27  ;;  %v3320_v33 = vsel %vm15723_vm13, %v3303_v27, %v3305_v34  ;;  %v13184_v24 = vld [vmem:[%s12748_s23 + $0x44] ss:$8 sps:$4 sm:$0xff]   ;;  %v13226_v27 = vld [vmem:[%s12748_s23 + $0x60] ss:$8 sps:$4 sm:$0xff]  }
 0x4c5   :  { %v3352_v54 = vmul.f32 %v16447_v38, %v3319_v42  ;;  %v3353_v51 = vmul.f32 %v16448_v30, %v3320_v33  ;;  %v9073_v42 = vld [vmem:[%s12748_s23 + $0x74] ss:$8 sps:$4 sm:$0xff]   ;;  %v13264_v30 = vld [vmem:[%s12748_s23 + $0xa4] ss:$8 sps:$4 sm:$0xff]  }
 0x4c6   :  { %4999 = vmatpush1.bf16.msra.mxu0 %v13165_v39 }
 0x4c7   :  { %v3704_v55 = vpack.c.bf16 %v3352_v54, %v3272_v9  ;;  %v3465_v12 = vpop.permute.xlu0 %3464  ;;  %v3385_v26 = vpop.permute.xlu1 %3384  ;;  %v3705_v57 = vpack.c.bf16 %v3353_v51, %v3273_v43  ;;  %5000 = vmatprep.subr.bf16.mxu0 %v13169_v10  ;;  %v13237_v9 = vld [vmem:[%s12748_s23 + $0x84] ss:$8 sps:$4 sm:$0xff]   ;;  %v13248_v43 = vld [vmem:[%s12748_s23 + $0x94] ss:$8 sps:$4 sm:$0xff]  }
 0x4c8   :  { %v3400_v56 = vsel %vm16424_vm1, %v13090_v23, %v3385_v26  ;;  %v3417_v40 = vsel %vm16449_vm4, %v3385_v26, 0.0  ;;  %v3480_v11 = vsel %vm16428_vm9, %v13099_v53, %v3465_v12  ;;  %v3497_v18 = vsel %vm16452_vm10, %v3465_v12, 0.0  ;;  %v13202_v53 = vld [vmem:[%s12748_s23 + $0x54] ss:$8 sps:$4 sm:$0xff]   ;;  %v9088_v26 = vld [vmem:[%s12748_s23 + $0xc4] ss:$8 sps:$4 sm:$0xff]  }
 0x4c9   :  { %v3432_v58 = vmul.f32 %v16450_v5, %v3400_v56  ;;  %v3433_v45 = vmul.f32 %v16451_v41, %v3417_v40  ;;  %4095 = vmatprep.subr.bf16.mxu1 %v3705_v57  ;;  %v3512_v31 = vmul.f32 %v16453_v29, %v3480_v11  ;;  %v3513_v50 = vmul.f32 %v16455_v19, %v3497_v18  ;;  %v16464_v51 = vld [vmem:[#allocation128_spill] sm:$0xff]  ;;  %v9086_v57 = vld [vmem:[%s12748_s23 + $0xc0] ss:$8 sps:$4 sm:$0xff]  }
 0x4ca   :  { %4096 = vmatpush1.bf16.msra.mxu1 %v3704_v55  ;;  %5001 = vmatpush1.bf16.msra.mxu0 %v13180_v63  ;;  %v9085_v55 = vld [vmem:[%s12748_s23 + $0xb4] ss:$8 sps:$4 sm:$0xff]   ;;  %v9089_v56 = vld [vmem:[%s12748_s23 + $0xd0] ss:$8 sps:$4 sm:$0xff]   ;;  %v9092_v40 = vld [vmem:[%s12748_s23 + $0xe0] ss:$8 sps:$4 sm:$0xff]  }
 0x4cb   :  { %v3720_v52 = vpack.c.bf16 %v3432_v58, %v12731_v48  ;;  %v3625_v23 = vpop.permute.xlu0 %3624  ;;  %v3721_v2 = vpack.c.bf16 %v3433_v45, %v12790_v61  ;;  %5002 = vmatprep.subr.bf16.mxu0 %v13184_v24  ;;  %v16456_v48 = vld [vmem:[#allocation124_spill] sm:$0xff]  ;;  %v16465_v11 = vld [vmem:[#allocation126_spill] sm:$0xff]  ;;  %vm15724_vm4 = vcmask 130048  }
 0x4cc   :  { %v3640_v47 = vsel %vm16454_vm3, %v13116_v49, %v3625_v23  ;;  %v3657_v62 = vsel %vm16407_vm2, %v3625_v23, 0.0  ;;  %v3545_v21 = vpop.permute.xlu1 %3544  ;;  %v9095_v45 = vld [vmem:[%s12748_s23 + $0xf0] ss:$8 sps:$4 sm:$0xff]   ;;  %v13310_v29 = vld [vmem:[%s12748_s23 + $0x114] ss:$8 sps:$4 sm:$0xff]   ;;  %vm15725_vm3 = vcmask 138240  }
 0x4cd   :  { %v3672_v36 = vmul.f32 %v16456_v48, %v3640_v47  ;;  %v3560_v61 = vsel %vm16457_vm6, %v13106_v14, %v3545_v21  ;;  %v3577_v15 = vsel %vm16458_vm12, %v3545_v21, 0.0  ;;  %4097 = vmatprep.subr.bf16.mxu1 %v3721_v2  ;;  %v3673_v16 = vmul.f32 %v16459_v3, %v3657_v62  ;;  %v13222_v14 = vld [vmem:[%s12748_s23 + $0x64] ss:$8 sps:$4 sm:$0xff]   ;;  %v13307_v2 = vld [vmem:[%s12748_s23 + $0x100] ss:$8 sps:$4 sm:$0xff]  }
 0x4ce   :  { %v3592_v28 = vmul.f32 %v16460_v37, %v3560_v61  ;;  %v3593_v49 = vmul.f32 %v16461_v6, %v3577_v15  ;;  %4098 = vmatpush1.bf16.msra.mxu1 %v3720_v52  ;;  %5003 = vmatpush1.bf16.msra.mxu0 %v13196_v20  ;;  %v13320_v47 = vld [vmem:[%s12748_s23 + $0x124] ss:$8 sps:$4 sm:$0xff]   ;;  %v13326_v62 = vld [vmem:[%s12748_s23 + $0x120] ss:$8 sps:$4 sm:$0xff]   ;;  %v13330_v21 = vld [vmem:[%s12748_s23 + $0x134] ss:$8 sps:$4 sm:$0xff]  }
 0x4cf   :  { %5004 = vmatprep.subr.bf16.mxu0 %v13202_v53  ;;  %v3752_v46 = vpack.c.bf16 %v3672_v36, %v3672_v36  ;;  %v3753_v34 = vpack.c.bf16 %v3673_v16, %v3673_v16  ;;  %v13335_v19 = vld [vmem:[%s12748_s23 + $0x130] ss:$8 sps:$4 sm:$0xff]   ;;  %v13343_v48 = vld [vmem:[%s12748_s23 + $0x140] ss:$8 sps:$4 sm:$0xff]   ;;  %v13347_v36 = vld [vmem:[%s12748_s23 + $0x154] ss:$8 sps:$4 sm:$0xff]  }
 0x4d0   :  { %v3736_v25 = vpack.c.bf16 %v3592_v28, %v3512_v31  ;;  %v3737_v7 = vpack.c.bf16 %v3593_v49, %v3513_v50  ;;  %v13316_v31 = vld [vmem:[%s12748_s23 + $0x110] ss:$8 sps:$4 sm:$0xff]   ;;  %v13339_v50 = vld [vmem:[%s12748_s23 + $0x144] ss:$8 sps:$4 sm:$0xff]   ;;  %v13359_v3 = vld [vmem:[%s12748_s23 + $0x160] ss:$8 sps:$4 sm:$0xff]  }
 0x4d1   :  { %v3801_v33 = vsel %vm16462_vm14, %v3752_v46, 0  ;;  %v13351_v61 = vld [vmem:[%s12748_s23 + $0x150] ss:$8 sps:$4 sm:$0xff]   ;;  %v13355_v15 = vld [vmem:[%s12748_s23 + $0x164] ss:$8 sps:$4 sm:$0xff]   ;;  %vm15722_vm14 = vcmask 121856  }
 0x4d2   :  { %4099 = vmatprep.subr.bf16.mxu1 %v3737_v7  ;;  %5005 = vmatpush1.bf16.msra.mxu0 %v13218_v59  ;;  %v13363_v16 = vld [vmem:[%s12748_s23 + $0x174] ss:$8 sps:$4 sm:$0xff]   ;;  %v13367_v37 = vld [vmem:[%s12748_s23 + $0x170] ss:$8 sps:$4 sm:$0xff]   ;;  %v13371_v28 = vld [vmem:[%s12748_s23 + $0x184] ss:$8 sps:$4 sm:$0xff]  }
 0x4d3   :  { %4100 = vmatpush1.bf16.msra.mxu1 %v3736_v25  ;;  %5006 = vmatprep.subr.bf16.mxu0 %v13222_v14  ;;  %v13375_v6 = vld [vmem:[%s12748_s23 + $0x180] ss:$8 sps:$4 sm:$0xff]   ;;  %v13379_v49 = vld [vmem:[%s12748_s23 + $0x194] ss:$8 sps:$4 sm:$0xff]   ;;  %v13399_v46 = vld [vmem:[%s12748_s23 + $0x1b0] ss:$8 sps:$4 sm:$0xff]  }
 0x4d4   :  { %8538 = vmatprep.subr.msk.bf16.mxu1 %vm16437_vm8, %v3753_v34  ;;  %v13391_v25 = vld [vmem:[%s12748_s23 + $0x1a0] ss:$8 sps:$4 sm:$0xff]   ;;  %v13395_v7 = vld [vmem:[%s12748_s23 + $0x1b4] ss:$8 sps:$4 sm:$0xff]   ;;  %v13403_v34 = vld [vmem:[%s12748_s23 + $0x1c4] ss:$8 sps:$4 sm:$0xff]  }
 0x4d6   :  { %5007 = vmatpush1.bf16.msra.mxu0 %v13226_v27 }
 0x4d7   :  { %4102 = vmatpush1.bf16.msra.mxu1 %v3801_v33  ;;  %5008 = vmatprep.subr.bf16.mxu0 %v9073_v42  ;;  %v13415_v33 = vld [vmem:[%s12748_s23 + $0x1d0] ss:$8 sps:$4 sm:$0xff]  }
 0x4d8   :  { %5158 = vmatprep.subr.bf16.mxu1 %v13125_v44  ;;  %v13256_v44 = vld [vmem:[%s12748_s23 + $0x90] ss:$8 sps:$4 sm:$0xff]  }
 0x4da   :  { %8539 = vmatmul.mubr.msk.bf16.vlgmr.msra.gmra.mrb[44].mxu1 %vm16463_vm5, %v13014_v60  ;;  %5009 = vmatpush1.bf16.msra.mxu0 %v13234_v4 }
 0x4db   :  { %5010 = vmatprep.subr.bf16.mxu0 %v13237_v9  ;;  %5159 = vmatpush1.bf16.msra.mxu1 %v13135_v8 }
 0x4dc   :  { %5160 = vmatprep.subr.bf16.mxu1 %v13141_v22  ;;  %v13260_v54 = vpop.permute.xlu0 %4159  ;;  %v13271_v22 = vld [vmem:[%s12748_s23 + $0xa0] ss:$8 sps:$4 sm:$0xff]  }
 0x4dd   :  { %v13252_v38 = vpop.permute.xlu1 %4137 }
 0x4de   :  { %5011 = vmatpush1.bf16.msra.mxu0 %v13244_v35  ;;  %v4141_v60 = vmul.f32 %v13252_v38, %v13137_v0 }
 0x4df   :  { %5012 = vmatprep.subr.bf16.mxu0 %v13248_v43  ;;  %5161 = vmatpush1.bf16.msra.mxu1 %v13154_v17 }
 0x4e0   :  { %v4163_v8 = vadd.f32 %v13260_v54, %v4141_v60  ;;  %5162 = vmatprep.subr.bf16.mxu1 %v13158_v13  ;;  %v9083_v13 = vld [vmem:[%s12748_s23 + $0xb0] ss:$8 sps:$4 sm:$0xff]   ;;  %v13428_v60 = vld [vmem:[%s12748_s23 + $0x1f4] ss:$8 sps:$4 sm:$0xff]  }
 0x4e2   :  { %5013 = vmatpush1.bf16.msra.mxu0 %v13256_v44  ;;  %v4179_v0 = vadd.f32 %v4163_v8, %v16464_v51 }
 0x4e3   :  { %5014 = vmatprep.subr.bf16.mxu0 %v13264_v30  ;;  %5163 = vmatpush1.bf16.msra.mxu1 %v13165_v39  ;;  %v9091_v39 = vld [vmem:[%s12748_s23 + $0xd4] ss:$8 sps:$4 sm:$0xff]  }
 0x4e4   :  { %v4195_v12 = vmax.f32 %v4179_v0, 0.0  ;;  %5164 = vmatprep.subr.bf16.mxu1 %v13169_v10  ;;  %v4140_v10 = vmul.f32 %v13252_v38, %v13129_v1  ;;  %v9097_v1 = vld [vmem:[%s12748_s23 + $0xf4] ss:$8 sps:$4 sm:$0xff]  }
 0x4e6   :  { %5015 = vmatpush1.bf16.msra.mxu0 %v13271_v22  ;;  %v4211_v17 = vpack.c.bf16 %v4195_v12, %v4195_v12  ;;  %v16466_v12 = vld [vmem:[#allocation134_spill] sm:$0xff] }
 0x4e7   :  { %5016 = vmatprep.subr.bf16.mxu0 %v9085_v55  ;;  %5165 = vmatpush1.bf16.msra.mxu1 %v13180_v63  ;;  %v9094_v63 = vld [vmem:[%s12748_s23 + $0xe4] ss:$8 sps:$4 sm:$0xff]  }
 0x4e8   :  { %5026 = vmatprep.mubr.bf16.mxu0 %v4211_v17  ;;  %5166 = vmatprep.subr.bf16.mxu1 %v13184_v24  ;;  %v4162_v24 = vadd.f32 %v13260_v54, %v4140_v10 }
 0x4ea   :  { %5017 = vmatpush1.bf16.msra.mxu0 %v9083_v13  ;;  %v4178_v5 = vadd.f32 %v4162_v24, %v16465_v11 }
 0x4eb   :  { %5018 = vmatprep.subr.bf16.mxu0 %v9088_v26  ;;  %5167 = vmatpush1.bf16.msra.mxu1 %v13196_v20  ;;  %v9100_v20 = vld [vmem:[%s12748_s23 + $0x104] ss:$8 sps:$4 sm:$0xff]  }
 0x4ec   :  { %5168 = vmatprep.subr.bf16.mxu1 %v13202_v53  ;;  %v4194_v18 = vmax.f32 %v4178_v5, 0.0 }
 0x4ee   :  { %5019 = vmatpush1.bf16.msra.mxu0 %v9086_v57  ;;  %v4210_v53 = vpack.c.bf16 %v4194_v18, %v4194_v18 }
 0x4ef   :  { %5020 = vmatprep.subr.bf16.mxu0 %v9091_v39  ;;  %5169 = vmatpush1.bf16.msra.mxu1 %v13218_v59  ;;  %v13383_v59 = vld [vmem:[%s12748_s23 + $0x190] ss:$8 sps:$4 sm:$0xff]  }
 0x4f0   :  { %5170 = vmatprep.subr.bf16.mxu1 %v13222_v14  ;;  %v13387_v14 = vld [vmem:[%s12748_s23 + $0x1a4] ss:$8 sps:$4 sm:$0xff]  }
 0x4f2   :  { %5021 = vmatpush1.bf16.msra.mxu0 %v9089_v56 }
 0x4f3   :  { %5022 = vmatprep.subr.bf16.mxu0 %v9094_v63  ;;  %5171 = vmatpush1.bf16.msra.mxu1 %v13226_v27  ;;  %v13407_v27 = vld [vmem:[%s12748_s23 + $0x1c0] ss:$8 sps:$4 sm:$0xff]  }
 0x4f4   :  { %5172 = vmatprep.subr.bf16.mxu1 %v9073_v42  ;;  %v13411_v42 = vld [vmem:[%s12748_s23 + $0x1d4] ss:$8 sps:$4 sm:$0xff]  }
 0x4f5   :  { %v13298_v58 = vpop.f32.mrb[36].mxu0 }
 0x4f6   :  { %v13300_v41 = vpop.f32.mrb[37].mxu0  ;;  %5023 = vmatpush1.bf16.msra.mxu0 %v9092_v40 }
 0x4f7   :  { %5024 = vmatprep.subr.bf16.mxu0 %v9097_v1  ;;  %5173 = vmatpush1.bf16.msra.mxu1 %v13234_v4  ;;  %v3926_v52 = vpop.f32.mrb[38].mxu0  ;;  %v13419_v4 = vld [vmem:[%s12748_s23 + $0x1e4] ss:$8 sps:$4 sm:$0xff]   ;;  %v4145_v24 = vmul.f32 %v13252_v38, %v13300_v41 }
 0x4f8   :  { %5174 = vmatprep.subr.bf16.mxu1 %v13237_v9  ;;  %v3927_v23 = vpop.f32.mrb[39].mxu0  ;;  %v16468_v52 = vld [vmem:[#allocation132_spill] sm:$0xff] }
 0x4fa   :  { %5025 = vmatpush1.bf16.msra.mxu0 %v9095_v45 }
 0x4fb   :  { %5035 = vmatprep.subr.bf16.mxu0 %v9100_v20  ;;  %5175 = vmatpush1.bf16.msra.mxu1 %v13244_v35  ;;  %v13423_v35 = vld [vmem:[%s12748_s23 + $0x1e0] ss:$8 sps:$4 sm:$0xff]  }
 0x4fc   :  { %5176 = vmatprep.subr.bf16.mxu1 %v13248_v43 }
 0x4fd   :  { %5027 = vmatmul.mubr.bf16.vlgmr.msra.gmra.mrb[48].mxu0 %v4210_v53  ;;  %v16469_v53 = vld [vmem:[#allocation127_spill] sm:$0xff] }
 0x4fe   :  { %5036 = vmatpush1.bf16.msra.mxu0 %v13307_v2 }
 0x4ff   :  { %5037 = vmatprep.subr.bf16.mxu0 %v13310_v29  ;;  %5177 = vmatpush1.bf16.msra.mxu1 %v13256_v44 }
 0x500   :  { %5178 = vmatprep.subr.bf16.mxu1 %v13264_v30 }
 0x502   :  { %5038 = vmatpush1.bf16.msra.mxu0 %v13316_v31 }
 0x503   :  { %5039 = vmatprep.subr.bf16.mxu0 %v13320_v47  ;;  %5179 = vmatpush1.bf16.msra.mxu1 %v13271_v22 }
 0x504   :  { %5180 = vmatprep.subr.bf16.mxu1 %v9085_v55  ;;  %v13435_v55 = vld [vmem:[%s12748_s23 + $0x1f0] ss:$8 sps:$4 sm:$0xff]  }
 0x506   :  { %5040 = vmatpush1.bf16.msra.mxu0 %v13326_v62 }
 0x507   :  { %5041 = vmatprep.subr.bf16.mxu0 %v13330_v21  ;;  %5181 = vmatpush1.bf16.msra.mxu1 %v9083_v13  ;;  %v13440_v13 = vld [vmem:[%s12748_s23 + $0x204] ss:$8 sps:$4 sm:$0xff]  }
 0x508   :  { %5182 = vmatprep.subr.bf16.mxu1 %v9088_v26  ;;  %v16467_v26 = vld [vmem:[#allocation135_spill] sm:$0xff] }
 0x50a   :  { %5042 = vmatpush1.bf16.msra.mxu0 %v13335_v19 }
 0x50b   :  { %5043 = vmatprep.subr.bf16.mxu0 %v13339_v50  ;;  %5183 = vmatpush1.bf16.msra.mxu1 %v9086_v57 }
 0x50c   :  { %5184 = vmatprep.subr.bf16.mxu1 %v9091_v39 }
 0x50e   :  { %5044 = vmatpush1.bf16.msra.mxu0 %v13343_v48 }
 0x50f   :  { %5045 = vmatprep.subr.bf16.mxu0 %v13347_v36  ;;  %5185 = vmatpush1.bf16.msra.mxu1 %v9089_v56 }
 0x510   :  { %5186 = vmatprep.subr.bf16.mxu1 %v9094_v63 }
 0x512   :  { %5046 = vmatpush1.bf16.msra.mxu0 %v13351_v61 }
 0x513   :  { %5047 = vmatprep.subr.bf16.mxu0 %v13355_v15  ;;  %5187 = vmatpush1.bf16.msra.mxu1 %v9092_v40  ;;  %v4167_v40 = vadd.f32 %v13260_v54, %v4145_v24  ;;  %v16471_v24 = vld [vmem:[#allocation137_spill] sm:$0xff] }
 0x514   :  { %5188 = vmatprep.subr.bf16.mxu1 %v9097_v1 }
 0x515   :  { %v4183_v23 = vadd.f32 %v4167_v40, %v16468_v52  ;;  %v4144_v52 = vmul.f32 %v13252_v38, %v13298_v58  ;;  %v13613_v58 = vld [vmem:[%s12748_s23 + $0x2e4] ss:$8 sps:$4 sm:$0xff]  }
 0x516   :  { %5048 = vmatpush1.bf16.msra.mxu0 %v13359_v3 }
 0x517   :  { %5049 = vmatprep.subr.bf16.mxu0 %v13363_v16  ;;  %5189 = vmatpush1.bf16.msra.mxu1 %v9095_v45 }
 0x518   :  { %5199 = vmatprep.subr.bf16.mxu1 %v9100_v20 }
 0x51a   :  { %5050 = vmatpush1.bf16.msra.mxu0 %v13367_v37 }
 0x51b   :  { %5051 = vmatprep.subr.bf16.mxu0 %v13371_v28 }
 0x51e   :  { %5052 = vmatpush1.bf16.msra.mxu0 %v13375_v6 }
 0x51f   :  { %5053 = vmatprep.subr.bf16.mxu0 %v13379_v49 }
 0x522   :  { %5054 = vmatpush1.bf16.msra.mxu0 %v13383_v59 }
 0x523   :  { %5055 = vmatprep.subr.bf16.mxu0 %v13387_v14 }
 0x526   :  { %5056 = vmatpush1.bf16.msra.mxu0 %v13391_v25 }
 0x527   :  { %5057 = vmatprep.subr.bf16.mxu0 %v13395_v7 }
 0x52a   :  { %5058 = vmatpush1.bf16.msra.mxu0 %v13399_v46 }
 0x52b   :  { %5059 = vmatprep.subr.bf16.mxu0 %v13403_v34 }
 0x52e   :  { %5060 = vmatpush1.bf16.msra.mxu0 %v13407_v27 }
 0x52f   :  { %5061 = vmatprep.subr.bf16.mxu0 %v13411_v42 }
 0x532   :  { %v4004_v9 = vpop.f32.mrb[40].mxu0  ;;  %5062 = vmatpush1.bf16.msra.mxu0 %v13415_v33 }
 0x533   :  { %v4148_v43 = vmul.f32 %v13252_v38, %v4004_v9  ;;  %v4006_v44 = vpop.f32.mrb[41].mxu0  ;;  %5063 = vmatprep.subr.bf16.mxu0 %v13419_v4 }
 0x534   :  { %v4149_v30 = vmul.f32 %v13252_v38, %v4006_v44  ;;  %v4008_v8 = vpop.f32.mrb[42].mxu0 }
 0x535   :  { %v4170_v22 = vadd.f32 %v13260_v54, %v4148_v43  ;;  %v4009_v51 = vpop.f32.mrb[43].mxu0 }
 0x536   :  { %v4171_v0 = vadd.f32 %v13260_v54, %v4149_v30  ;;  %5064 = vmatpush1.bf16.msra.mxu0 %v13423_v35  ;;  %v13464_v30 = vld [vmem:[%s12748_s23 + $0x200] ss:$8 sps:$4 sm:$0xff]  }
 0x537   :  { %v4186_v17 = vadd.f32 %v4170_v22, %v16466_v12  ;;  %5065 = vmatprep.subr.bf16.mxu0 %v13428_v60  ;;  %v13502_v12 = vld [vmem:[%s12748_s23 + $0x244] ss:$8 sps:$4 sm:$0xff]  }
 0x538   :  { %v4187_v57 = vadd.f32 %v4171_v0, %v16467_v26  ;;  %v13497_v0 = vld [vmem:[%s12748_s23 + $0x230] ss:$8 sps:$4 sm:$0xff]   ;;  %v13552_v26 = vld [vmem:[%s12748_s23 + $0x294] ss:$8 sps:$4 sm:$0xff]  }
 0x539   :  { %v4202_v39 = vmax.f32 %v4186_v17, 0.0  ;;  %v13512_v17 = vld [vmem:[%s12748_s23 + $0x254] ss:$8 sps:$4 sm:$0xff]  }
 0x53a   :  { %v4203_v10 = vmax.f32 %v4187_v57, 0.0  ;;  %5066 = vmatpush1.bf16.msra.mxu0 %v13435_v55 }
 0x53b   :  { %5076 = vmatprep.subr.bf16.mxu0 %v13440_v13  ;;  %v4218_v63 = vpack.c.bf16 %v4202_v39, %v4202_v39 }
 0x53c   :  { %v4219_v56 = vpack.c.bf16 %v4203_v10, %v4203_v10 }
 0x53e   :  { %5190 = vmatprep.mubr.bf16.mxu1 %v4219_v56  ;;  %v13560_v56 = vld [vmem:[%s12748_s23 + $0x290] ss:$8 sps:$4 sm:$0xff]  }
 0x53f   :  { %5191 = vmatmul.mubr.bf16.vlgmr.msra.gmra.mrb[48].mxu1 %v4218_v63 }
 0x540   :  { %5200 = vmatpush1.bf16.msra.mxu1 %v13307_v2 }
 0x541   :  { %5201 = vmatprep.subr.bf16.mxu1 %v13310_v29 }
 0x544   :  { %5202 = vmatpush1.bf16.msra.mxu1 %v13316_v31  ;;  %v16470_v31 = vld [vmem:[#allocation129_spill] sm:$0xff] }
 0x545   :  { %v3881_v1 = vpop.f32.mrb[32].mxu1  ;;  %5203 = vmatprep.subr.bf16.mxu1 %v13320_v47 }
 0x546   :  { %v4142_v11 = vmul.f32 %v13252_v38, %v3881_v1  ;;  %v3883_v5 = vpop.f32.mrb[33].mxu1  ;;  %v16472_v1 = vld [vmem:[#allocation138_spill] sm:$0xff] }
 0x547   :  { %v4143_v45 = vmul.f32 %v13252_v38, %v3883_v5  ;;  %v3885_v18 = vpop.f32.mrb[34].mxu1  ;;  %v13573_v5 = vld [vmem:[%s12748_s23 + $0x2a0] ss:$8 sps:$4 sm:$0xff]  }
 0x548   :  { %v4164_v20 = vadd.f32 %v13260_v54, %v4142_v11  ;;  %5204 = vmatpush1.bf16.msra.mxu1 %v13326_v62  ;;  %v3886_v41 = vpop.f32.mrb[35].mxu1  ;;  %v4199_v62 = vmax.f32 %v4183_v23, 0.0 }
 0x549   :  { %v4165_v2 = vadd.f32 %v13260_v54, %v4143_v45  ;;  %5205 = vmatprep.subr.bf16.mxu1 %v13330_v21  ;;  %v13468_v21 = vld [vmem:[%s12748_s23 + $0x214] ss:$8 sps:$4 sm:$0xff]  }
 0x54a   :  { %v4180_v29 = vadd.f32 %v4164_v20, %v16469_v53  ;;  %v4215_v22 = vpack.c.bf16 %v4199_v62, %v4199_v62 }
 0x54b   :  { %v4181_v47 = vadd.f32 %v4165_v2, %v16470_v31  ;;  %v4166_v2 = vadd.f32 %v13260_v54, %v4144_v52  ;;  %v16473_v31 = vld [vmem:[#allocation130_spill] sm:$0xff] }
 0x54c   :  { %v4196_v9 = vmax.f32 %v4180_v29, 0.0  ;;  %5206 = vmatpush1.bf16.msra.mxu1 %v13335_v19  ;;  %v13473_v19 = vld [vmem:[%s12748_s23 + $0x210] ss:$8 sps:$4 sm:$0xff]   ;;  %v13619_v29 = vld [vmem:[%s12748_s23 + $0x2e0] ss:$8 sps:$4 sm:$0xff]  }
 0x54d   :  { %5207 = vmatprep.subr.bf16.mxu1 %v13339_v50  ;;  %v4197_v43 = vmax.f32 %v4181_v47, 0.0  ;;  %v13478_v50 = vld [vmem:[%s12748_s23 + $0x224] ss:$8 sps:$4 sm:$0xff]   ;;  %v4182_v47 = vadd.f32 %v4166_v2, %v16473_v31 }
 0x54e   :  { %v4212_v8 = vpack.c.bf16 %v4196_v9, %v4196_v9  ;;  %v13625_v9 = vld [vmem:[%s12748_s23 + $0x2f4] ss:$8 sps:$4 sm:$0xff]   ;;  %v9232_v31 = vld [vmem:[%s12748_s23 + $0x3c4] ss:$8 sps:$4 sm:$0xff]  }
 0x54f   :  { %v4213_v44 = vpack.c.bf16 %v4197_v43, %v4197_v43  ;;  %v16474_v43 = vld [vmem:[#allocation133_spill] sm:$0xff] }
 0x550   :  { %5208 = vmatpush1.bf16.msra.mxu1 %v13343_v48  ;;  %v13483_v48 = vld [vmem:[%s12748_s23 + $0x220] ss:$8 sps:$4 sm:$0xff]  }
 0x551   :  { %5067 = vmatprep.mubr.bf16.mxu0 %v4213_v44  ;;  %5209 = vmatprep.subr.bf16.mxu1 %v13347_v36  ;;  %v13488_v36 = vld [vmem:[%s12748_s23 + $0x234] ss:$8 sps:$4 sm:$0xff]   ;;  %v13631_v44 = vld [vmem:[%s12748_s23 + $0x2f0] ss:$8 sps:$4 sm:$0xff]  }
 0x552   :  { %5068 = vmatmul.mubr.bf16.vlgmr.msra.gmra.mrb[48].mxu0 %v4212_v8  ;;  %v13636_v8 = vld [vmem:[%s12748_s23 + $0x304] ss:$8 sps:$4 sm:$0xff]  }
 0x553   :  { %5077 = vmatpush1.bf16.msra.mxu0 %v13464_v30  ;;  %5108 = vmatprep.mubr.bf16.mxu0 %v4215_v22  ;;  %v13641_v22 = vld [vmem:[%s12748_s23 + $0x300] ss:$8 sps:$4 sm:$0xff]  }
 0x554   :  { %5210 = vmatpush1.bf16.msra.mxu1 %v13351_v61  ;;  %5078 = vmatprep.subr.bf16.mxu0 %v13468_v21 }
 0x555   :  { %5211 = vmatprep.subr.bf16.mxu1 %v13355_v15 }
 0x557   :  { %5079 = vmatpush1.bf16.msra.mxu0 %v13473_v19 }
 0x558   :  { %5212 = vmatpush1.bf16.msra.mxu1 %v13359_v3  ;;  %5080 = vmatprep.subr.bf16.mxu0 %v13478_v50 }
 0x559   :  { %v13490_v61 = vpop.f32.mrb[36].mxu1  ;;  %5213 = vmatprep.subr.bf16.mxu1 %v13363_v16  ;;  %v13507_v16 = vld [vmem:[%s12748_s23 + $0x240] ss:$8 sps:$4 sm:$0xff]  }
 0x55a   :  { %v13493_v51 = vpop.f32.mrb[37].mxu1 }
 0x55b   :  { %5081 = vmatpush1.bf16.msra.mxu0 %v13483_v48  ;;  %v3967_v15 = vpop.f32.mrb[38].mxu1  ;;  %v4147_v23 = vmul.f32 %v13252_v38, %v13493_v51 }
 0x55c   :  { %5214 = vmatpush1.bf16.msra.mxu1 %v13367_v37  ;;  %5082 = vmatprep.subr.bf16.mxu0 %v13488_v36  ;;  %v3968_v3 = vpop.f32.mrb[39].mxu1  ;;  %v13517_v37 = vld [vmem:[%s12748_s23 + $0x250] ss:$8 sps:$4 sm:$0xff]  }
 0x55d   :  { %5215 = vmatprep.subr.bf16.mxu1 %v13371_v28  ;;  %v13522_v28 = vld [vmem:[%s12748_s23 + $0x264] ss:$8 sps:$4 sm:$0xff]   ;;  %v4169_v53 = vadd.f32 %v13260_v54, %v4147_v23  ;;  %v13652_v3 = vld [vmem:[%s12748_s23 + $0x310] ss:$8 sps:$4 sm:$0xff]   ;;  %v9229_v23 = vld [vmem:[%s12748_s23 + $0x3b4] ss:$8 sps:$4 sm:$0xff]  }
 0x55f   :  { %5083 = vmatpush1.bf16.msra.mxu0 %v13497_v0  ;;  %v4185_v62 = vadd.f32 %v4169_v53, %v16474_v43  ;;  %v9227_v53 = vld [vmem:[%s12748_s23 + $0x3b0] ss:$8 sps:$4 sm:$0xff]   ;;  %v9235_v43 = vld [vmem:[%s12748_s23 + $0x3d4] ss:$8 sps:$4 sm:$0xff]  }
 0x560   :  { %5216 = vmatpush1.bf16.msra.mxu1 %v13375_v6  ;;  %5084 = vmatprep.subr.bf16.mxu0 %v13502_v12  ;;  %v13527_v6 = vld [vmem:[%s12748_s23 + $0x260] ss:$8 sps:$4 sm:$0xff]  }
 0x561   :  { %5217 = vmatprep.subr.bf16.mxu1 %v13379_v49  ;;  %v13532_v49 = vld [vmem:[%s12748_s23 + $0x274] ss:$8 sps:$4 sm:$0xff]  }
 0x563   :  { %5085 = vmatpush1.bf16.msra.mxu0 %v13507_v16 }
 0x564   :  { %5218 = vmatpush1.bf16.msra.mxu1 %v13383_v59  ;;  %5086 = vmatprep.subr.bf16.mxu0 %v13512_v17  ;;  %v13537_v59 = vld [vmem:[%s12748_s23 + $0x270] ss:$8 sps:$4 sm:$0xff]  }
 0x565   :  { %5219 = vmatprep.subr.bf16.mxu1 %v13387_v14  ;;  %v13542_v14 = vld [vmem:[%s12748_s23 + $0x284] ss:$8 sps:$4 sm:$0xff]  }
 0x567   :  { %5087 = vmatpush1.bf16.msra.mxu0 %v13517_v37 }
 0x568   :  { %5220 = vmatpush1.bf16.msra.mxu1 %v13391_v25  ;;  %5088 = vmatprep.subr.bf16.mxu0 %v13522_v28  ;;  %v13547_v25 = vld [vmem:[%s12748_s23 + $0x280] ss:$8 sps:$4 sm:$0xff]  }
 0x569   :  { %5221 = vmatprep.subr.bf16.mxu1 %v13395_v7 }
 0x56b   :  { %5089 = vmatpush1.bf16.msra.mxu0 %v13527_v6 }
 0x56c   :  { %5222 = vmatpush1.bf16.msra.mxu1 %v13399_v46  ;;  %5090 = vmatprep.subr.bf16.mxu0 %v13532_v49 }
 0x56d   :  { %5223 = vmatprep.subr.bf16.mxu1 %v13403_v34 }
 0x56f   :  { %5091 = vmatpush1.bf16.msra.mxu0 %v13537_v59 }
 0x570   :  { %5224 = vmatpush1.bf16.msra.mxu1 %v13407_v27  ;;  %v4045_v7 = vpop.f32.mrb[40].mxu1  ;;  %5092 = vmatprep.subr.bf16.mxu0 %v13542_v14 }
 0x571   :  { %v4150_v46 = vmul.f32 %v13252_v38, %v4045_v7  ;;  %5225 = vmatprep.subr.bf16.mxu1 %v13411_v42  ;;  %v4047_v57 = vpop.f32.mrb[41].mxu1  ;;  %v13566_v42 = vld [vmem:[%s12748_s23 + $0x2a4] ss:$8 sps:$4 sm:$0xff]  }
 0x572   :  { %v4151_v34 = vmul.f32 %v13252_v38, %v4047_v57  ;;  %v4049_v39 = vpop.f32.mrb[42].mxu1  ;;  %v16475_v7 = vld [vmem:[#allocation14_spill] sm:$0xff] }
 0x573   :  { %v4172_v10 = vadd.f32 %v13260_v54, %v4150_v46  ;;  %5093 = vmatpush1.bf16.msra.mxu0 %v13547_v25  ;;  %v4050_v27 = vpop.f32.mrb[43].mxu1  ;;  %v13664_v57 = vld [vmem:[%s12748_s23 + $0x320] ss:$8 sps:$4 sm:$0xff]  }
 0x574   :  { %v4173_v63 = vadd.f32 %v13260_v54, %v4151_v34  ;;  %5226 = vmatpush1.bf16.msra.mxu1 %v13415_v33  ;;  %5094 = vmatprep.subr.bf16.mxu0 %v13552_v26  ;;  %v13578_v33 = vld [vmem:[%s12748_s23 + $0x2b4] ss:$8 sps:$4 sm:$0xff]   ;;  %v13714_v27 = vld [vmem:[%s12748_s23 + $0x370] ss:$8 sps:$4 sm:$0xff]  }
 0x575   :  { %v4188_v40 = vadd.f32 %v4172_v10, %v16471_v24  ;;  %5227 = vmatprep.subr.bf16.mxu1 %v13419_v4  ;;  %v13583_v4 = vld [vmem:[%s12748_s23 + $0x2b0] ss:$8 sps:$4 sm:$0xff]   ;;  %v13689_v10 = vld [vmem:[%s12748_s23 + $0x354] ss:$8 sps:$4 sm:$0xff]  }
 0x576   :  { %v4189_v11 = vadd.f32 %v4173_v63, %v16472_v1  ;;  %v13728_v1 = vld [vmem:[%s12748_s23 + $0x380] ss:$8 sps:$4 sm:$0xff]  }
 0x577   :  { %5095 = vmatpush1.bf16.msra.mxu0 %v13560_v56  ;;  %v4204_v18 = vmax.f32 %v4188_v40, 0.0 }
 0x578   :  { %5228 = vmatpush1.bf16.msra.mxu1 %v13423_v35  ;;  %5096 = vmatprep.subr.bf16.mxu0 %v13566_v42  ;;  %v4205_v45 = vmax.f32 %v4189_v11, 0.0  ;;  %v13588_v35 = vld [vmem:[%s12748_s23 + $0x2c4] ss:$8 sps:$4 sm:$0xff]  }
 0x579   :  { %5229 = vmatprep.subr.bf16.mxu1 %v13428_v60  ;;  %v4220_v41 = vpack.c.bf16 %v4204_v18, %v4204_v18  ;;  %v13593_v60 = vld [vmem:[%s12748_s23 + $0x2c0] ss:$8 sps:$4 sm:$0xff]  }
 0x57a   :  { %v4221_v20 = vpack.c.bf16 %v4205_v45, %v4205_v45 }
 0x57b   :  { %5097 = vmatpush1.bf16.msra.mxu0 %v13573_v5 }
 0x57c   :  { %5230 = vmatpush1.bf16.msra.mxu1 %v13435_v55  ;;  %5098 = vmatprep.subr.bf16.mxu0 %v13578_v33  ;;  %v13600_v55 = vld [vmem:[%s12748_s23 + $0x2d4] ss:$8 sps:$4 sm:$0xff]  }
 0x57d   :  { %5231 = vmatprep.mubr.bf16.mxu1 %v4221_v20  ;;  %5240 = vmatprep.subr.bf16.mxu1 %v13440_v13  ;;  %v13607_v13 = vld [vmem:[%s12748_s23 + $0x2d0] ss:$8 sps:$4 sm:$0xff]  }
 0x57e   :  { %v13740_v20 = vld [vmem:[%s12748_s23 + $0x390] ss:$8 sps:$4 sm:$0xff]  }
 0x57f   :  { %5099 = vmatpush1.bf16.msra.mxu0 %v13583_v4  ;;  %5232 = vmatmul.mubr.bf16.vlgmr.msra.gmra.mrb[48].mxu1 %v4220_v41 }
 0x580   :  { %5241 = vmatpush1.bf16.msra.mxu1 %v13464_v30  ;;  %5100 = vmatprep.subr.bf16.mxu0 %v13588_v35  ;;  %v4198_v30 = vmax.f32 %v4182_v47, 0.0  ;;  %v9230_v47 = vld [vmem:[%s12748_s23 + $0x3c0] ss:$8 sps:$4 sm:$0xff]  }
 0x581   :  { %5242 = vmatprep.subr.bf16.mxu1 %v13468_v21  ;;  %v4201_v21 = vmax.f32 %v4185_v62, 0.0  ;;  %v9233_v62 = vld [vmem:[%s12748_s23 + $0x3d0] ss:$8 sps:$4 sm:$0xff]  }
 0x583   :  { %5101 = vmatpush1.bf16.msra.mxu0 %v13593_v60  ;;  %v4217_v51 = vpack.c.bf16 %v4201_v21, %v4201_v21 }
 0x584   :  { %5243 = vmatpush1.bf16.msra.mxu1 %v13473_v19  ;;  %5102 = vmatprep.subr.bf16.mxu0 %v13600_v55  ;;  %v4214_v19 = vpack.c.bf16 %v4198_v30, %v4198_v30  ;;  %v9238_v30 = vld [vmem:[%s12748_s23 + $0x3e4] ss:$8 sps:$4 sm:$0xff]  }
 0x585   :  { %5244 = vmatprep.subr.bf16.mxu1 %v13478_v50 }
 0x587   :  { %5103 = vmatpush1.bf16.msra.mxu0 %v13607_v13 }
 0x588   :  { %5245 = vmatpush1.bf16.msra.mxu1 %v13483_v48  ;;  %5104 = vmatprep.subr.bf16.mxu0 %v13613_v58  ;;  %v13646_v48 = vld [vmem:[%s12748_s23 + $0x314] ss:$8 sps:$4 sm:$0xff]  }
 0x589   :  { %5246 = vmatprep.subr.bf16.mxu1 %v13488_v36 }
 0x58b   :  { %5105 = vmatpush1.bf16.msra.mxu0 %v13619_v29 }
 0x58c   :  { %5247 = vmatpush1.bf16.msra.mxu1 %v13497_v0  ;;  %5106 = vmatprep.subr.bf16.mxu0 %v13625_v9 }
 0x58d   :  { %5248 = vmatprep.subr.bf16.mxu1 %v13502_v12 }
 0x58f   :  { %5107 = vmatpush1.bf16.msra.mxu0 %v13631_v44 }
 0x590   :  { %5249 = vmatpush1.bf16.msra.mxu1 %v13507_v16  ;;  %v4086_v50 = vpop.f32.mrb[44].mxu0  ;;  %5117 = vmatprep.subr.bf16.mxu0 %v13636_v8 }
 0x591   :  { %5250 = vmatprep.subr.bf16.mxu1 %v13512_v17  ;;  %v4088_v36 = vpop.f32.mrb[45].mxu0  ;;  %v13658_v17 = vld [vmem:[%s12748_s23 + $0x324] ss:$8 sps:$4 sm:$0xff]   ;;  %v4152_v63 = vmul.f32 %v13252_v38, %v4086_v50 }
 0x592   :  { %5109 = vmatmul.mubr.bf16.vlgmr.msra.gmra.mrb[48].mxu0 %v4214_v19  ;;  %v4153_v15 = vmul.f32 %v13252_v38, %v4088_v36  ;;  %v4090_v0 = vpop.f32.mrb[46].mxu0  ;;  %v9239_v19 = vld [vmem:[%s12748_s23 + $0x3f0] ss:$8 sps:$4 sm:$0xff]  }
 0x593   :  { %5118 = vmatpush1.bf16.msra.mxu0 %v13641_v22  ;;  %5149 = vmatprep.mubr.bf16.mxu0 %v4217_v51  ;;  %v4091_v12 = vpop.f32.mrb[47].mxu0  ;;  %v4174_v45 = vadd.f32 %v13260_v54, %v4152_v63 }
 0x594   :  { %v4175_v16 = vadd.f32 %v13260_v54, %v4153_v15  ;;  %5251 = vmatpush1.bf16.msra.mxu1 %v13517_v37  ;;  %5119 = vmatprep.subr.bf16.mxu0 %v13646_v48  ;;  %v13669_v37 = vld [vmem:[%s12748_s23 + $0x334] ss:$8 sps:$4 sm:$0xff]  }
 0x595   :  { %5252 = vmatprep.subr.bf16.mxu1 %v13522_v28  ;;  %v13674_v28 = vld [vmem:[%s12748_s23 + $0x330] ss:$8 sps:$4 sm:$0xff]  }
 0x596   :  { %v4191_v46 = vadd.f32 %v4175_v16, %v16475_v7  ;;  %v16479_v15 = vld [vmem:[#allocation17_spill] sm:$0xff] }
 0x597   :  { %5120 = vmatpush1.bf16.msra.mxu0 %v13652_v3 }
 0x598   :  { %5253 = vmatpush1.bf16.msra.mxu1 %v13527_v6  ;;  %5121 = vmatprep.subr.bf16.mxu0 %v13658_v17  ;;  %v4207_v34 = vmax.f32 %v4191_v46, 0.0  ;;  %v13679_v6 = vld [vmem:[%s12748_s23 + $0x344] ss:$8 sps:$4 sm:$0xff]  }
 0x599   :  { %5254 = vmatprep.subr.bf16.mxu1 %v13532_v49  ;;  %v13684_v49 = vld [vmem:[%s12748_s23 + $0x340] ss:$8 sps:$4 sm:$0xff]  }
 0x59a   :  { %v4223_v39 = vpack.c.bf16 %v4207_v34, %v4207_v34  ;;  %v5718_v34 = vld [vmem:[%s8329_s22] sm:$0xff] }
 0x59b   :  { %5122 = vmatpush1.bf16.msra.mxu0 %v13664_v57 }
 0x59c   :  { %5255 = vmatpush1.bf16.msra.mxu1 %v13537_v59  ;;  %5123 = vmatprep.subr.bf16.mxu0 %v13669_v37  ;;  %v13694_v59 = vld [vmem:[%s12748_s23 + $0x350] ss:$8 sps:$4 sm:$0xff]  }
 0x59d   :  { %5256 = vmatprep.subr.bf16.mxu1 %v13542_v14  ;;  %5272 = vmatprep.mubr.bf16.mxu1 %v4223_v39  ;;  %v13699_v14 = vld [vmem:[%s12748_s23 + $0x364] ss:$8 sps:$4 sm:$0xff]  }
 0x59e   :  { %v5728_v39 = vld [vmem:[%s8330_s1] sm:$0xff] }
 0x59f   :  { %5124 = vmatpush1.bf16.msra.mxu0 %v13674_v28 }
 0x5a0   :  { %5257 = vmatpush1.bf16.msra.mxu1 %v13547_v25  ;;  %5125 = vmatprep.subr.bf16.mxu0 %v13679_v6  ;;  %v13704_v25 = vld [vmem:[%s12748_s23 + $0x360] ss:$8 sps:$4 sm:$0xff]  }
 0x5a1   :  { %5258 = vmatprep.subr.bf16.mxu1 %v13552_v26  ;;  %v13709_v26 = vld [vmem:[%s12748_s23 + $0x374] ss:$8 sps:$4 sm:$0xff]  }
 0x5a3   :  { %5126 = vmatpush1.bf16.msra.mxu0 %v13684_v49 }
 0x5a4   :  { %5259 = vmatpush1.bf16.msra.mxu1 %v13560_v56  ;;  %5127 = vmatprep.subr.bf16.mxu0 %v13689_v10  ;;  %v13719_v56 = vld [vmem:[%s12748_s23 + $0x384] ss:$8 sps:$4 sm:$0xff]  }
 0x5a5   :  { %5260 = vmatprep.subr.bf16.mxu1 %v13566_v42 }
 0x5a7   :  { %5128 = vmatpush1.bf16.msra.mxu0 %v13694_v59 }
 0x5a8   :  { %5261 = vmatpush1.bf16.msra.mxu1 %v13573_v5  ;;  %5129 = vmatprep.subr.bf16.mxu0 %v13699_v14  ;;  %v13733_v5 = vld [vmem:[%s12748_s23 + $0x394] ss:$8 sps:$4 sm:$0xff]  }
 0x5a9   :  { %5262 = vmatprep.subr.bf16.mxu1 %v13578_v33 }
 0x5ab   :  { %5130 = vmatpush1.bf16.msra.mxu0 %v13704_v25 }
 0x5ac   :  { %5263 = vmatpush1.bf16.msra.mxu1 %v13583_v4  ;;  %5131 = vmatprep.subr.bf16.mxu0 %v13709_v26  ;;  %v13745_v4 = vld [vmem:[%s12748_s23 + $0x3a4] ss:$8 sps:$4 sm:$0xff]  }
 0x5ad   :  { %v13722_v42 = vpop.f32.mrb[44].mxu1  ;;  %5264 = vmatprep.subr.bf16.mxu1 %v13588_v35  ;;  %v16476_v35 = vld [vmem:[#allocation16_spill] sm:$0xff] }
 0x5ae   :  { %v4129_v24 = vpop.f32.mrb[45].mxu1  ;;  %v4190_v41 = vadd.f32 %v4174_v45, %v16476_v35  ;;  %v4154_v36 = vmul.f32 %v13252_v38, %v13722_v42 }
 0x5af   :  { %v4155_v40 = vmul.f32 %v13252_v38, %v4129_v24  ;;  %5132 = vmatpush1.bf16.msra.mxu0 %v13714_v27  ;;  %v4131_v11 = vpop.f32.mrb[46].mxu1 }
 0x5b0   :  { %5265 = vmatpush1.bf16.msra.mxu1 %v13593_v60  ;;  %5133 = vmatprep.subr.bf16.mxu0 %v13719_v56  ;;  %v4132_v33 = vpop.f32.mrb[47].mxu1  ;;  %v16477_v60 = vld [vmem:[#allocation15_spill] sm:$0xff]  ;;  %v4176_v51 = vadd.f32 %v13260_v54, %v4154_v36 }
 0x5b1   :  { %5266 = vmatprep.subr.bf16.mxu1 %v13600_v55  ;;  %v4177_v18 = vadd.f32 %v13260_v54, %v4155_v40  ;;  %v9224_v55 = vld [vmem:[%s12748_s23 + $0x3a0] ss:$8 sps:$4 sm:$0xff]  }
 0x5b2   :  { %v4192_v0 = vadd.f32 %v4176_v51, %v16479_v15 }
 0x5b3   :  { %5134 = vmatpush1.bf16.msra.mxu0 %v13728_v1  ;;  %v4193_v52 = vadd.f32 %v4177_v18, %v16477_v60 }
 0x5b4   :  { %5267 = vmatpush1.bf16.msra.mxu1 %v13607_v13  ;;  %5135 = vmatprep.subr.bf16.mxu0 %v13733_v5  ;;  %v4206_v13 = vmax.f32 %v4190_v41, 0.0 }
 0x5b5   :  { %5268 = vmatprep.subr.bf16.mxu1 %v13613_v58  ;;  %v4209_v2 = vmax.f32 %v4193_v52, 0.0 }
 0x5b6   :  { %v4222_v58 = vpack.c.bf16 %v4206_v13, %v4206_v13 }
 0x5b7   :  { %5136 = vmatpush1.bf16.msra.mxu0 %v13740_v20 }
 0x5b8   :  { %5269 = vmatpush1.bf16.msra.mxu1 %v13619_v29  ;;  %5137 = vmatprep.subr.bf16.mxu0 %v13745_v4  ;;  %v4225_v29 = vpack.c.bf16 %v4209_v2, %v4209_v2 }
 0x5b9   :  { %5270 = vmatprep.subr.bf16.mxu1 %v13625_v9  ;;  %v4146_v9 = vmul.f32 %v13252_v38, %v13490_v61  ;;  %v9236_v61 = vld [vmem:[%s12748_s23 + $0x3e0] ss:$8 sps:$4 sm:$0xff]  }
 0x5bb   :  { %5138 = vmatpush1.bf16.msra.mxu0 %v9224_v55 }
 0x5bc   :  { %5271 = vmatpush1.bf16.msra.mxu1 %v13631_v44  ;;  %5139 = vmatprep.subr.bf16.mxu0 %v9229_v23  ;;  %v4168_v44 = vadd.f32 %v13260_v54, %v4146_v9 }
 0x5bd   :  { %5281 = vmatprep.subr.bf16.mxu1 %v13636_v8  ;;  %v16478_v8 = vld [vmem:[#allocation131_spill] sm:$0xff] }
 0x5be   :  { %v4184_v21 = vadd.f32 %v4168_v44, %v16478_v8 }
 0x5bf   :  { %5273 = vmatmul.mubr.bf16.vlgmr.msra.gmra.mrb[48].mxu1 %v4222_v58  ;;  %5140 = vmatpush1.bf16.msra.mxu0 %v9227_v53 }
 0x5c0   :  { %5282 = vmatpush1.bf16.msra.mxu1 %v13641_v22  ;;  %5313 = vmatprep.mubr.bf16.mxu1 %v4225_v29  ;;  %v9241_v22 = vld [vmem:[%s12748_s23 + $0x3f4] ss:$8 sps:$4 sm:$0xff]   ;;  %v4200_v50 = vmax.f32 %v4184_v21, 0.0  ;;  %s9330_s23 = smov 111  }
 0x5c1   :  { %5141 = vmatprep.subr.bf16.mxu0 %v9232_v31  ;;  %5283 = vmatprep.subr.bf16.mxu1 %v13646_v48 }
 0x5c2   :  { %v4216_v48 = vpack.c.bf16 %v4200_v50, %v4200_v50 }
 0x5c3   :  { %5142 = vmatpush1.bf16.msra.mxu0 %v9230_v47 }
 0x5c4   :  { %5284 = vmatpush1.bf16.msra.mxu1 %v13652_v3  ;;  %5143 = vmatprep.subr.bf16.mxu0 %v9235_v43  ;;  %v4208_v3 = vmax.f32 %v4192_v0, 0.0 }
 0x5c5   :  { %5285 = vmatprep.subr.bf16.mxu1 %v13658_v17 }
 0x5c6   :  { %v4224_v12 = vpack.c.bf16 %v4208_v3, %v4208_v3 }
 0x5c7   :  { %5144 = vmatpush1.bf16.msra.mxu0 %v9233_v62 }
 0x5c8   :  { %5286 = vmatpush1.bf16.msra.mxu1 %v13664_v57  ;;  %5145 = vmatprep.subr.bf16.mxu0 %v9238_v30 }
 0x5c9   :  { %5287 = vmatprep.subr.bf16.mxu1 %v13669_v37 }
 0x5cb   :  { %5146 = vmatpush1.bf16.msra.mxu0 %v9236_v61 }
 0x5cc   :  { %5288 = vmatpush1.bf16.msra.mxu1 %v13674_v28  ;;  %5147 = vmatprep.subr.bf16.mxu0 %v9241_v22  ;;  %v16481_v28 = vld [vmem:[#allocation3_spill] sm:$0xff] }
 0x5cd   :  { %5289 = vmatprep.subr.bf16.mxu1 %v13679_v6  ;;  %v5327_v6 = vshra.s32 %v16481_v28, 4 }
 0x5cf   :  { %5148 = vmatpush1.bf16.msra.mxu0 %v9239_v19 }
 0x5d0   :  { %5290 = vmatpush1.bf16.msra.mxu1 %v13684_v49  ;;  %v16482_v49 = vld [vmem:[#allocation2_spill] sm:$0xff] }
 0x5d1   :  { %5291 = vmatprep.subr.bf16.mxu1 %v13689_v10  ;;  %v5326_v10 = vshra.s32 %v16482_v49, 4 }
 0x5d2   :  { %5150 = vmatmul.mubr.bf16.vlgmr.msra.gmra.mrb[48].mxu0 %v4216_v48 }
 0x5d3   :  { %5668 = vmatprep.mubr.bf16.mxu0 %v15778_v32 }
 0x5d4   :  { %5292 = vmatpush1.bf16.msra.mxu1 %v13694_v59  ;;  %v5323_v59 = vand.u32 15, %v16481_v28 }
 0x5d5   :  { %5293 = vmatprep.subr.bf16.mxu1 %v13699_v14  ;;  %v13884_v14 = vand.u32 15, %v5327_v6 }
 0x5d6   :  { %vm13892_vm0 = vcmp.ge.s32.totalorder %v5323_v59, 1  ;;  %vm13933_vm2 = vcmp.le.s32.totalorder %v5323_v59, 14 }
 0x5d7   :  { %vm5335_vm15 = vcmp.ge.s32.totalorder %v13884_v14, 1 }
 0x5d8   :  { %5294 = vmatpush1.bf16.msra.mxu1 %v13704_v25  ;;  %v5322_v25 = vand.u32 15, %v16482_v49  ;;  %vm5343_vm9 = vmand %vm5335_vm15, %vm13892_vm0 }
 0x5d9   :  { %5295 = vmatprep.subr.bf16.mxu1 %v13709_v26  ;;  %v13887_v26 = vand.u32 15, %v5326_v10  ;;  %vm5367_vm12 = vmand %vm5335_vm15, %vm13933_vm2 }
 0x5da   :  { %vm13897_vm1 = vcmp.ge.s32.totalorder %v5322_v25, 1  ;;  %vm13938_vm6 = vcmp.le.s32.totalorder %v5322_v25, 14 }
 0x5db   :  { %vm5334_vm7 = vcmp.ge.s32.totalorder %v13887_v26, 1 }
 0x5dc   :  { %5296 = vmatpush1.bf16.msra.mxu1 %v13714_v27  ;;  %vm5342_vm10 = vmand %vm5334_vm7, %vm13897_vm1 }
 0x5dd   :  { %5297 = vmatprep.subr.bf16.mxu1 %v13719_v56  ;;  %vm5366_vm8 = vmand %vm5334_vm7, %vm13938_vm6 }
 0x5e0   :  { %5298 = vmatpush1.bf16.msra.mxu1 %v13728_v1  ;;  %v16487_v1 = vmov 0.0  }
 0x5e1   :  { %5299 = vmatprep.subr.bf16.mxu1 %v13733_v5  ;;  %v13914_v11 = vsel %vm5334_vm7, 1.0, %v16487_v1  ;;  %v13918_v33 = vsel %vm5343_vm9, 1.0, %v16487_v1  ;;  %v13925_v18 = vsel %vm5335_vm15, 1.0, %v16487_v1  ;;  %v13957_v9 = vsel %vm13897_vm1, 1.0, %v16487_v1 }
 0x5e4   :  { %5300 = vmatpush1.bf16.msra.mxu1 %v13740_v20  ;;  %v13928_v20 = vsel %vm5342_vm10, 1.0, %v16487_v1  ;;  %vm5395_vm10 = vcmp.le.s32.totalorder %v13884_v14, 14 }
 0x5e5   :  { %5301 = vmatprep.subr.bf16.mxu1 %v13745_v4 }
 0x5e8   :  { %5302 = vmatpush1.bf16.msra.mxu1 %v9224_v55 }
 0x5e9   :  { %5303 = vmatprep.subr.bf16.mxu1 %v9229_v23 }
 0x5ec   :  { %5304 = vmatpush1.bf16.msra.mxu1 %v9227_v53 }
 0x5ed   :  { %5305 = vmatprep.subr.bf16.mxu1 %v9232_v31 }
 0x5f0   :  { %5306 = vmatpush1.bf16.msra.mxu1 %v9230_v47 }
 0x5f1   :  { %5307 = vmatprep.subr.bf16.mxu1 %v9235_v43 }
 0x5f4   :  { %5308 = vmatpush1.bf16.msra.mxu1 %v9233_v62  ;;  %v13961_v62 = vsel %vm5367_vm12, 1.0, %v16487_v1 }
 0x5f5   :  { %5309 = vmatprep.subr.bf16.mxu1 %v9238_v30  ;;  %v13968_v30 = vsel %vm13892_vm0, 1.0, %v16487_v1 }
 0x5f8   :  { %5310 = vmatpush1.bf16.msra.mxu1 %v9236_v61  ;;  %v13971_v61 = vsel %vm5366_vm8, 1.0, %v16487_v1 }
 0x5f9   :  { %5311 = vmatprep.subr.bf16.mxu1 %v9241_v22 }
 0x5fc   :  { %5312 = vmatpush1.bf16.msra.mxu1 %v9239_v19 }
 0x5ff   :  { %5314 = vmatmul.mubr.bf16.vlgmr.msra.gmra.mrb[48].mxu1 %v4224_v12 }
 0x600   :  { %5709 = vmatprep.mubr.bf16.mxu1 %v15778_v32 }
 0x6a5   :  { %v13803_v38 = vpop.f32.mrb[48].mxu0 }
 0x6a6   :  { %16480 = vst [vmem:[#allocation53_spill] sm:$0xff] %v13803_v38  ;;  %5517 = vrot.lane.b32.xlu0 %v13803_v38, %s9309_s10  ;;  %5434 = vrot.lane.b32.xlu1 %v13803_v38, %s9324_s11  ;;  %v13809_v54 = vpop.f32.mrb[49].mxu0 }
 0x6a7   :  { %v5155_v16 = vpop.f32.mrb[50].mxu0 }
 0x6a8   :  { %v5156_v17 = vpop.f32.mrb[51].mxu0 }
 0x6a9   :  { %v16492_v17 = vld [vmem:[#allocation8_spill] sm:$0xff] }
 0x6aa   :  { %5455 = vrot.lane.b32.xlu1 %v13803_v38, %s9325_s5  ;;  %5436 = vrot.lane.b32.xlu0 %v13809_v54, %s9324_s11  ;;  %v5325_v6 = vand.u32 15, %v16492_v17 }
 0x6ac   :  { %vm14001_vm15 = vcmp.ge.s32.totalorder %v5325_v6, 1 }
 0x6ae   :  { %5476 = vrot.lane.b32.xlu1 %v13803_v38, %s9326_s14  ;;  %5457 = vrot.lane.b32.xlu0 %v13809_v54, %s9325_s5 }
 0x6b2   :  { %5497 = vrot.lane.b32.xlu1 %v13803_v38, %s9308_s9  ;;  %5478 = vrot.lane.b32.xlu0 %v13809_v54, %s9326_s14 }
 0x6b6   :  { %5537 = vrot.lane.b32.xlu1 %v13803_v38, %s9327_s16  ;;  %5499 = vrot.lane.b32.xlu0 %v13809_v54, %s9308_s9 }
 0x6ba   :  { %5539 = vrot.lane.b32.xlu1 %v13809_v54, %s9327_s16  ;;  %5519 = vrot.lane.b32.xlu0 %v13809_v54, %s9309_s10 }
 0x6be   :  { %5560 = vrot.lane.b32.xlu1 %v13809_v54, %s9328_s17 }
 0x6d2   :  { %v13833_v7 = vpop.f32.mrb[48].mxu1 }
 0x6d3   :  { %v13835_v46 = vpop.f32.mrb[49].mxu1  ;;  %5438 = vrot.lane.b32.xlu1 %v13833_v7, %s9324_s11  ;;  %5541 = vrot.lane.b32.xlu0 %v13833_v7, %s9327_s16 }
 0x6d4   :  { %v5319_v57 = vpop.f32.mrb[50].mxu1 }
 0x6d5   :  { %v5320_v37 = vpop.f32.mrb[51].mxu1  ;;  %v5329_v57 = vshra.s32 %v16492_v17, 4 }
 0x6d6   :  { %v16493_v37 = vld [vmem:[#allocation9_spill] sm:$0xff] }
 0x6d7   :  { %5459 = vrot.lane.b32.xlu1 %v13833_v7, %s9325_s5  ;;  %5562 = vrot.lane.b32.xlu0 %v13833_v7, %s9328_s17  ;;  %v13993_v10 = vand.u32 15, %v5329_v57  ;;  %v5324_v59 = vand.u32 15, %v16493_v37  ;;  %v14095_v57 = vsel %vm13933_vm2, 1.0, %v16487_v1 }
 0x6d9   :  { %vm5337_vm5 = vcmp.ge.s32.totalorder %v13993_v10, 1  ;;  %vm14006_vm9 = vcmp.ge.s32.totalorder %v5324_v59, 1  ;;  %vm14019_vm11 = vcmp.le.s32.totalorder %v5324_v59, 14 }
 0x6da   :  { %vm5345_vm12 = vmand %vm5337_vm5, %vm14001_vm15 }
 0x6db   :  { %5480 = vrot.lane.b32.xlu1 %v13833_v7, %s9326_s14  ;;  %5440 = vrot.lane.b32.xlu0 %v13835_v46, %s9324_s11 }
 0x6df   :  { %5501 = vrot.lane.b32.xlu1 %v13833_v7, %s9308_s9  ;;  %5461 = vrot.lane.b32.xlu0 %v13835_v46, %s9325_s5 }
 0x6e3   :  { %5521 = vrot.lane.b32.xlu1 %v13833_v7, %s9309_s10  ;;  %5482 = vrot.lane.b32.xlu0 %v13835_v46, %s9326_s14 }
 0x6e7   :  { %5523 = vrot.lane.b32.xlu1 %v13835_v46, %s9309_s10  ;;  %5503 = vrot.lane.b32.xlu0 %v13835_v46, %s9308_s9 }
 0x6eb   :  { %5543 = vrot.lane.b32.xlu1 %v13835_v46, %s9327_s16  ;;  %5558 = vrot.lane.b32.xlu0 %v13803_v38, %s9328_s17 }
 0x6ef   :  { %5583 = vrot.lane.b32.xlu1 %v13833_v7, %s9330_s23  ;;  %5564 = vrot.lane.b32.xlu0 %v13835_v46, %s9328_s17 }
 0x6f3   :  { %5579 = vrot.lane.b32.xlu1 %v13803_v38, %s9330_s23  ;;  %5585 = vrot.lane.b32.xlu0 %v13835_v46, %s9330_s23 }
 0x6f7   :  { %5721 = vperm.xlu1 %9039, %v5718_v34   ;;  %5581 = vrot.lane.b32.xlu0 %v13809_v54, %s9330_s23  ;;  %v5328_v34 = vshra.s32 %v16493_v37, 4 }
 0x6f9   :  { %v13996_v25 = vand.u32 15, %v5328_v34 }
 0x6fb   :  { %5731 = vperm.xlu0 %9038, %v5728_v39   ;;  %vm5336_vm7 = vcmp.ge.s32.totalorder %v13996_v25, 1 }
 0x6fc   :  { %vm5344_vm8 = vmand %vm5336_vm7, %vm14006_vm9 }
 0x6fd   :  { %v14052_v63 = vsel %vm5344_vm8, 1.0, %v16487_v1  ;;  %vm16505_vm8 = vcmask 130048  }
 0x718   :  { %v13889_v27 = vpop.permute.xlu0 %5517  ;;  %v5435_v56 = vpop.permute.xlu1 %5434 }
 0x719   :  { %v5450_v4 = vsel %vm15725_vm3, 0.0, %v5435_v56 }
 0x71a   :  { %v5451_v53 = vmul.f32 %v13928_v20, %v5450_v4 }
 0x71c   :  { %v5456_v24 = vpop.permute.xlu1 %5455  ;;  %v13905_v40 = vpop.permute.xlu0 %5436 }
 0x71d   :  { %v5471_v5 = vsel %vm15724_vm4, 0.0, %v5456_v24  ;;  %v5443_v45 = vsel %vm15725_vm3, %v5435_v56, %v13905_v40 }
 0x71e   :  { %v5472_v60 = vmul.f32 %v13914_v11, %v5471_v5  ;;  %v5452_v23 = vmul.f32 %v13918_v33, %v5443_v45 }
 0x720   :  { %v5477_v35 = vpop.permute.xlu1 %5476  ;;  %v5458_v41 = vpop.permute.xlu0 %5457  ;;  %v5600_v47 = vpack.c.bf16 %v5472_v60, %v5451_v53  ;;  %v14038_v53 = vsel %vm5345_vm12, 1.0, %v16487_v1  ;;  %vm5368_vm12 = vmand %vm5336_vm7, %vm14019_vm11 }
 0x721   :  { %v5464_v52 = vsel %vm15724_vm4, %v5456_v24, %v5458_v41  ;;  %v5492_v8 = vsel %vm15722_vm14, 0.0, %v5477_v35  ;;  %v14090_v17 = vsel %vm5368_vm12, 1.0, %v16487_v1  ;;  %vm16509_vm12 = vcmask 121856  }
 0x722   :  { %v5473_v2 = vmul.f32 %v13925_v18, %v5464_v52  ;;  %v5493_v36 = vmul.f32 %v13971_v61, %v5492_v8  ;;  %v14026_v52 = vsel %vm5336_vm7, 1.0, %v16487_v1  ;;  %v14063_v8 = vsel %vm13938_vm6, 1.0, %v16487_v1 }
 0x723   :  { %vm16506_vm7 = vcmask 916480  }
 0x724   :  { %v5498_v58 = vpop.permute.xlu1 %5497  ;;  %v13948_v31 = vpop.permute.xlu0 %5478  ;;  %v5601_v29 = vpack.c.bf16 %v5473_v2, %v5452_v23 }
 0x725   :  { %v5512_v43 = vsel %vm15723_vm13, 0.0, %v5498_v58  ;;  %v5485_v44 = vsel %vm15722_vm14, %v5477_v35, %v13948_v31  ;;  %vm16504_vm14 = vcmask 1039360  }
 0x726   :  { %5636 = vmatprep.subr.bf16.mxu0 %v5601_v29  ;;  %v5513_v22 = vmul.f32 %v13957_v9, %v5512_v43  ;;  %v5494_v50 = vmul.f32 %v13961_v62, %v5485_v44  ;;  %v14044_v29 = vsel %vm5337_vm5, 1.0, %v16487_v1 }
 0x727   :  { %5637 = vmatpush1.bf16.msra.mxu0 %v5600_v47 }
 0x728   :  { %v13974_v21 = vpop.permute.xlu0 %5499  ;;  %v5604_v15 = vpack.c.bf16 %v5513_v22, %v5493_v36  ;;  %v13982_v0 = vpop.permute.xlu1 %5537 }
 0x729   :  { %v5505_v19 = vsel %vm15723_vm13, %v5498_v58, %v13974_v21  ;;  %vm14033_vm13 = vmand %vm5395_vm10, %vm13892_vm0  ;;  %vm5545_vm0 = vcmask 924672  }
 0x72a   :  { %v5514_v48 = vmul.f32 %v13968_v30, %v5505_v19 }
 0x72c   :  { %v5605_v51 = vpack.c.bf16 %v5514_v48, %v5494_v50  ;;  %v13984_v3 = vpop.permute.xlu1 %5539  ;;  %v5520_v12 = vpop.permute.xlu0 %5519 }
 0x72d   :  { %v5525_v22 = vsel %vm16504_vm14, %v13889_v27, %v5520_v12 }
 0x72e   :  { %5638 = vmatprep.subr.bf16.mxu0 %v5605_v51  ;;  %v5533_v37 = vmul.f32 %v14063_v8, %v5525_v22  ;;  %v14117_v22 = vsel %vm14019_vm11, 1.0, %v16487_v1 }
 0x72f   :  { %5639 = vmatpush1.bf16.msra.mxu0 %v5604_v15  ;;  %v14087_v15 = vsel %vm14033_vm13, 1.0, %v16487_v1  ;;  %vm16507_vm13 = vcmask 1039360  }
 0x730   :  { %v13986_v16 = vpop.permute.xlu1 %5560 }
 0x745   :  { %v5439_v39 = vpop.permute.xlu1 %5438  ;;  %v13990_v28 = vpop.permute.xlu0 %5541 }
 0x746   :  { %v5444_v47 = vsel %vm15725_vm3, %v13905_v40, %v5439_v39  ;;  %v14072_v40 = vsel %vm5395_vm10, 1.0, %v16487_v1  ;;  %v5547_v34 = vsel %vm5545_vm0, %v13984_v3, %v13990_v28 }
 0x747   :  { %v5453_v27 = vmul.f32 %v14052_v63, %v5444_v47 }
 0x749   :  { %v5460_v56 = vpop.permute.xlu1 %5459  ;;  %v13998_v24 = vpop.permute.xlu0 %5562 }
 0x74a   :  { %v5465_v23 = vsel %vm15724_vm4, %v5458_v41, %v5460_v56  ;;  %vm14046_vm4 = vcmp.le.s32.totalorder %v5325_v6, 14  ;;  %v5568_v48 = vsel %vm16506_vm7, %v13986_v16, %v13998_v24  ;;  %vm16510_vm7 = vcmp.le.s32.totalorder %v13887_v26, 14 }
 0x74b   :  { %v5474_v19 = vmul.f32 %v14026_v52, %v5465_v23  ;;  %vm5369_vm14 = vmand %vm5337_vm5, %vm14046_vm4  ;;  %v5576_v23 = vmul.f32 %v14072_v40, %v5568_v48  ;;  %vm16508_vm5 = vcmask 7168  }
 0x74d   :  { %v5481_v4 = vpop.permute.xlu1 %5480  ;;  %v5441_v35 = vpop.permute.xlu0 %5440 }
 0x74e   :  { %v5445_v58 = vsel %vm15725_vm3, %v5439_v39, %v5441_v35  ;;  %v14104_v39 = vsel %vm14006_vm9, 1.0, %v16487_v1  ;;  %v5602_v35 = vpack.c.bf16 %v5474_v19, %v5453_v27  ;;  %v14122_v19 = vsel %vm14046_vm4, 1.0, %v16487_v1 }
 0x74f   :  { %v5454_v36 = vmul.f32 %v14038_v53, %v5445_v58  ;;  %v14109_v58 = vsel %vm5369_vm14, 1.0, %v16487_v1  ;;  %vm14136_vm14 = vmand %vm16510_vm7, %vm13897_vm1  ;;  %vm16515_vm3 = vcmask 7168  }
 0x751   :  { %v5502_v43 = vpop.permute.xlu1 %5501  ;;  %v5462_v44 = vpop.permute.xlu0 %5461 }
 0x752   :  { %v5466_v50 = vsel %vm16505_vm8, %v5460_v56, %v5462_v44  ;;  %v5506_v47 = vsel %vm16508_vm5, %v13974_v21, %v5502_v43  ;;  %v14129_v21 = vsel %vm14001_vm15, 1.0, %v16487_v1  ;;  %vm5396_vm8 = vcmp.le.s32.totalorder %v13996_v25, 14 }
 0x753   :  { %v5475_v51 = vmul.f32 %v14044_v29, %v5466_v50  ;;  %vm5397_vm5 = vcmp.le.s32.totalorder %v13993_v10, 14  ;;  %vm5400_vm7 = vmand %vm5396_vm8, %vm14006_vm9  ;;  %vm16517_vm9 = vcmp.le.s32.totalorder %v13887_v26, 14 }
 0x754   :  { %v14172_v45 = vsel %vm16517_vm9, 1.0, %v16487_v1 }
 0x755   :  { %v5522_v6 = vpop.permute.xlu1 %5521  ;;  %v5483_v59 = vpop.permute.xlu0 %5482  ;;  %v5603_v56 = vpack.c.bf16 %v5475_v51, %v5454_v36  ;;  %v5608_v36 = vpack.c.bf16 %v5533_v37, %v13803_v38 }
 0x756   :  { %v5526_v2 = vsel %vm16507_vm13, %v5520_v12, %v5522_v6  ;;  %v5555_v12 = vmul.f32 %v14087_v15, %v5547_v34  ;;  %v5487_v50 = vsel %vm16509_vm12, %v5481_v4, %v5483_v59  ;;  %vm16513_vm13 = vmmov %vm16509_vm12  ;;  %vm16514_vm12 = vcmask 1039360  }
 0x757   :  { %v5534_v44 = vmul.f32 %v14095_v57, %v5526_v2  ;;  %5677 = vmatprep.subr.bf16.mxu1 %v5603_v56  ;;  %v5486_v51 = vsel %vm16513_vm13, %v13948_v31, %v5481_v4  ;;  %v5515_v56 = vmul.f32 %v14104_v39, %v5506_v47  ;;  %v5496_v49 = vmul.f32 %v14109_v58, %v5487_v50  ;;  %vm16516_vm1 = vmmov %vm16514_vm12 }
 0x758   :  { %5678 = vmatpush1.bf16.msra.mxu1 %v5602_v35  ;;  %v5613_v2 = vpack.c.bf16 %v5576_v23, %v5555_v12  ;;  %v14159_v4 = vsel %vm14136_vm14, 1.0, %v16487_v1  ;;  %vm16518_vm14 = vcmask 916480   ;;  %vm5421_vm13 = vmand %vm5397_vm5, %vm14046_vm4 }
 0x759   :  { %v5524_v27 = vpop.permute.xlu1 %5523  ;;  %v5504_v34 = vpop.permute.xlu0 %5503  ;;  %v5609_v59 = vpack.c.bf16 %v5534_v44, %v13809_v54 }
 0x75a   :  { %v5532_v42 = vsel %vm16514_vm12, %v5524_v27, 0.0  ;;  %v5507_v35 = vsel %vm16515_vm3, %v5502_v43, %v5504_v34  ;;  %v5527_v37 = vsel %vm16516_vm1, %v5522_v6, %v5524_v27  ;;  %v5546_v43 = vsel %vm5545_vm0, %v13982_v0, %v13984_v3  ;;  %vm5401_vm3 = vmand %vm5397_vm5, %vm14001_vm15 }
 0x75b   :  { %v5536_v38 = vmul.f32 %v14122_v19, %v5532_v42  ;;  %v5516_v31 = vmul.f32 %v14129_v21, %v5507_v35  ;;  %5640 = vmatprep.subr.bf16.mxu0 %v5609_v59  ;;  %v5495_v6 = vmul.f32 %v14090_v17, %v5486_v51  ;;  %v5535_v0 = vmul.f32 %v14117_v22, %v5527_v37  ;;  %vm14203_vm15 = vmand %vm5396_vm8, %vm14019_vm11 }
 0x75c   :  { %5641 = vmatpush1.bf16.msra.mxu0 %v5608_v36  ;;  %v14176_v3 = vsel %vm5400_vm7, 1.0, %v16487_v1  ;;  %v5554_v50 = vmul.f32 %v14159_v4, %v5546_v43  ;;  %v14182_v48 = vsel %vm5401_vm3, 1.0, %v16487_v1  ;;  %v14197_v34 = vsel %vm5397_vm5, 1.0, %v16487_v1  ;;  %vm16521_vm12 = vmmov %vm16518_vm14 }
 0x75d   :  { %v5544_v23 = vpop.permute.xlu1 %5543  ;;  %5642 = vmatprep.subr.bf16.mxu0 %v5613_v2  ;;  %v5559_v47 = vpop.permute.xlu0 %5558  ;;  %v5607_v44 = vpack.c.bf16 %v5516_v31, %v5496_v49  ;;  %v5606_v12 = vpack.c.bf16 %v5515_v56, %v5495_v6  ;;  %v5611_v51 = vpack.c.bf16 %v5536_v38, %v13835_v46  ;;  %v5610_v56 = vpack.c.bf16 %v5535_v0, %v13833_v7  ;;  %vm16522_vm1 = vmmov %vm16521_vm12  ;;  %v5620_v38 = vld [vmem:[%s8328_s13] sm:$0xf] }
 0x75e   :  { %v5567_v5 = vsel %vm16518_vm14, %v5559_v47, %v13986_v16  ;;  %v5548_v49 = vsel %vm5545_vm0, %v13990_v28, %v5544_v23  ;;  %v5553_v27 = vsel %vm5545_vm0, %v5544_v23, 0.0  ;;  %v14192_v16 = vsel %vm5396_vm8, 1.0, %v16487_v1  ;;  %vm16523_vm11 = vmmov %vm16517_vm9 }
 0x75f   :  { %v5575_v36 = vmul.f32 %v14172_v45, %v5567_v5  ;;  %5679 = vmatprep.subr.bf16.mxu1 %v5607_v44  ;;  %vm5587_vm7 = vcmask 908288   ;;  %v5556_v25 = vmul.f32 %v14176_v3, %v5548_v49  ;;  %v5557_v35 = vmul.f32 %v14182_v48, %v5553_v27  ;;  %vm5418_vm4 = vmand %vm16523_vm11, %vm13938_vm6 }
 0x760   :  { %5680 = vmatpush1.bf16.msra.mxu1 %v5606_v12  ;;  %v14222_v10 = vsel %vm14203_vm15, 1.0, %v16487_v1  ;;  %vm5419_vm8 = vmand %vm5395_vm10, %vm13933_vm2  ;;  %v14243_v44 = vsel %vm5418_vm4, 1.0, %v16487_v1  ;;  %vm16524_vm2 = vcmask 1043456   ;;  %vm16527_vm5 = vcmask 588800  }
 0x761   :  { %v5612_v28 = vpack.c.bf16 %v5575_v36, %v5554_v50  ;;  %5681 = vmatprep.subr.bf16.mxu1 %v5611_v51  ;;  %v5565_v59 = vpop.permute.xlu0 %5564  ;;  %v5584_v2 = vpop.permute.xlu1 %5583  ;;  %v14246_v12 = vsel %vm5419_vm8, 1.0, %v16487_v1  ;;  %vm16525_vm6 = vmmov %vm16524_vm2  ;;  %vm16530_vm14 = vcmask 130048   ;;  %vm16531_vm15 = vcmask 138240  }
 0x762   :  { %v5569_v42 = vsel %vm16521_vm12, %v13998_v24, %v5565_v59  ;;  %v5574_v60 = vsel %vm16522_vm1, %v5565_v59, 0.0  ;;  %v14225_v24 = vsel %vm5421_vm13, 1.0, %v16487_v1  ;;  %vm16526_vm10 = vmmov %vm16524_vm2  ;;  %vm16534_vm1 = vcmask 7168  }
 0x763   :  { %v5577_v37 = vmul.f32 %v14192_v16, %v5569_v42  ;;  %v5578_v41 = vmul.f32 %v14197_v34, %v5574_v60  ;;  %5643 = vmatpush1.bf16.msra.mxu0 %v5612_v28  ;;  %vm16528_vm3 = vmmov %vm16524_vm2  ;;  %vm16535_vm11 = vcmask 121856  }
 0x764   :  { %5682 = vmatpush1.bf16.msra.mxu1 %v5610_v56  ;;  %vm16529_vm9 = vmmov %vm16527_vm5 }
 0x765   :  { %v5614_v31 = vpack.c.bf16 %v5577_v37, %v5556_v25  ;;  %v5586_v43 = vpop.permute.xlu0 %5585  ;;  %v5615_v6 = vpack.c.bf16 %v5578_v41, %v5557_v35  ;;  %v5580_v55 = vpop.permute.xlu1 %5579  ;;  %vm16532_vm13 = vmmov %vm16531_vm15 }
 0x766   :  { %v5590_v23 = vsel %vm5587_vm7, %v5584_v2, %v5586_v43  ;;  %v5595_v13 = vsel %vm5587_vm7, %v5586_v43, 0.0  ;;  %vm16533_vm12 = vmmov %vm16530_vm14 }
 0x767   :  { %v5598_v26 = vmul.f32 %v14222_v10, %v5590_v23  ;;  %v5599_v47 = vmul.f32 %v14225_v24, %v5595_v13  ;;  %5683 = vmatprep.subr.bf16.mxu1 %v5615_v6  ;;  %vm16536_vm4 = vmmov %vm16535_vm11 }
 0x768   :  { %5684 = vmatpush1.bf16.msra.mxu1 %v5614_v31  ;;  %vm16537_vm8 = vmmov %vm16534_vm1 }
 0x769   :  { %v5618_v0 = vpack.c.bf16 %v5598_v26, %v5598_v26  ;;  %v5619_v14 = vpack.c.bf16 %v5599_v47, %v5599_v47  ;;  %v5582_v5 = vpop.permute.xlu0 %5581 }
 0x76a   :  { %v5588_v50 = vsel %vm5587_vm7, %v5580_v55, %v5582_v5  ;;  %v5589_v36 = vsel %vm5587_vm7, %v5582_v5, %v5584_v2 }
 0x76b   :  { %v5596_v51 = vmul.f32 %v14243_v44, %v5588_v50  ;;  %v5597_v49 = vmul.f32 %v14246_v12, %v5589_v36  ;;  %8702 = vmatprep.subr.msk.bf16.mxu1 %vm16524_vm2, %v5619_v14  ;;  %v5631_v27 = vsel %vm16525_vm6, %v5618_v0, 0  ;;  %vm16538_vm2 = vcmask 1039360  }
 0x76c   :  { %5686 = vmatpush1.bf16.msra.mxu1 %v5631_v27  ;;  %v6034_v27 = vld [vmem:[%s8333_s19] sm:$0xff]  ;;  %vm16539_vm6 = vmmov %vm16538_vm2  ;;  %s9337_s19 = smov 121  }
 0x76d   :  { %v5616_v28 = vpack.c.bf16 %v5596_v51, %v5596_v51  ;;  %v5617_v59 = vpack.c.bf16 %v5597_v49, %v5597_v49 }
 0x76f   :  { %8700 = vmatprep.subr.msk.bf16.mxu0 %vm16526_vm10, %v5617_v59  ;;  %8703 = vmatmul.mubr.msk.bf16.vlgmr.msra.gmra.mrb[52].mxu1 %vm16527_vm5, %v5620_v38  ;;  %v5625_v56 = vsel %vm16528_vm3, %v5616_v28, 0  ;;  %vm16540_vm10 = vcmask 916480   ;;  %vm16542_vm3 = vmmov %vm16533_vm12 }
 0x770   :  { %5645 = vmatpush1.bf16.msra.mxu0 %v5625_v56  ;;  %6015 = vmatprep.mubr.bf16.mxu1 %v15778_v32  ;;  %vm16541_vm5 = vmmov %vm16540_vm10 }
 0x773   :  { %8701 = vmatmul.mubr.msk.bf16.vlgmr.msra.gmra.mrb[52].mxu0 %vm16529_vm9, %v5620_v38  ;;  %v6024_v38 = vld [vmem:[%s8332_s26] sm:$0xff]  ;;  %vm16543_vm9 = vmmov %vm16542_vm3 }
 0x774   :  { %5974 = vmatprep.mubr.bf16.mxu0 %v15778_v32 }
 0x776   :  { %v5722_v37 = vpop.permute.xlu1 %5721 }
 0x77a   :  { %v5732_v6 = vpop.permute.xlu0 %5731 }
 0x842   :  { %v5711_v42 = vpop.f32.mrb[52].mxu1 }
 0x843   :  { %v5713_v60 = vpop.f32.mrb[53].mxu1  ;;  %v5726_v26 = vmul.f32 %v5722_v37, %v5711_v42 }
 0x844   :  { %v5715_v25 = vpop.f32.mrb[54].mxu1  ;;  %v5727_v0 = vmul.f32 %v5722_v37, %v5713_v60 }
 0x845   :  { %v5716_v35 = vpop.f32.mrb[55].mxu1  ;;  %v5736_v55 = vadd.f32 %v5732_v6, %v5726_v26 }
 0x846   :  { %v5670_v2 = vpop.f32.mrb[52].mxu0  ;;  %v5737_v5 = vadd.f32 %v5732_v6, %v5727_v0 }
 0x847   :  { %v5672_v41 = vpop.f32.mrb[53].mxu0  ;;  %v14270_v14 = vmax.f32 %v5736_v55, 0.0  ;;  %v5724_v36 = vmul.f32 %v5722_v37, %v5670_v2 }
 0x848   :  { %v5725_v31 = vmul.f32 %v5722_v37, %v5672_v41  ;;  %v5674_v43 = vpop.f32.mrb[54].mxu0  ;;  %v14276_v50 = vmax.f32 %v5737_v5, 0.0 }
 0x849   :  { %v5675_v23 = vpop.f32.mrb[55].mxu0  ;;  %v5734_v51 = vadd.f32 %v5732_v6, %v5724_v36 }
 0x84a   :  { %v5735_v13 = vadd.f32 %v5732_v6, %v5725_v31 }
 0x84b   :  { %v14306_v49 = vmax.f32 %v5734_v51, 0.0 }
 0x84c   :  { %v14260_v47 = vmax.f32 %v5735_v13, 0.0 }
 0x84e   :  { %5768 = vrot.lane.b32.xlu0 %v14260_v47, %s9325_s5  ;;  %5748 = vrot.lane.b32.xlu1 %v14260_v47, %s9324_s11 }
 0x852   :  { %5808 = vrot.lane.b32.xlu0 %v14260_v47, %s9308_s9  ;;  %5788 = vrot.lane.b32.xlu1 %v14260_v47, %s9326_s14 }
 0x856   :  { %5830 = vrot.lane.b32.xlu0 %v14270_v14, %s9309_s10  ;;  %5750 = vrot.lane.b32.xlu1 %v14270_v14, %s9324_s11 }
 0x85a   :  { %5752 = vrot.lane.b32.xlu0 %v14276_v50, %s9324_s11  ;;  %5770 = vrot.lane.b32.xlu1 %v14270_v14, %s9325_s5 }
 0x85e   :  { %5772 = vrot.lane.b32.xlu0 %v14276_v50, %s9325_s5  ;;  %5790 = vrot.lane.b32.xlu1 %v14270_v14, %s9326_s14 }
 0x862   :  { %5792 = vrot.lane.b32.xlu0 %v14276_v50, %s9326_s14  ;;  %5810 = vrot.lane.b32.xlu1 %v14270_v14, %s9308_s9 }
 0x866   :  { %5812 = vrot.lane.b32.xlu0 %v14276_v50, %s9308_s9  ;;  %5850 = vrot.lane.b32.xlu1 %v14270_v14, %s9327_s16 }
 0x86a   :  { %5870 = vrot.lane.b32.xlu0 %v14270_v14, %s9328_s17  ;;  %5832 = vrot.lane.b32.xlu1 %v14276_v50, %s9309_s10 }
 0x86e   :  { %5872 = vrot.lane.b32.xlu0 %v14276_v50, %s9328_s17  ;;  %5852 = vrot.lane.b32.xlu1 %v14276_v50, %s9327_s16 }
 0x872   :  { %5892 = vrot.lane.b32.xlu0 %v14276_v50, %s9330_s23  ;;  %5890 = vrot.lane.b32.xlu1 %v14270_v14, %s9330_s23 }
 0x876   :  { %5766 = vrot.lane.b32.xlu0 %v14306_v49, %s9325_s5  ;;  %5746 = vrot.lane.b32.xlu1 %v14306_v49, %s9324_s11 }
 0x87a   :  { %5806 = vrot.lane.b32.xlu0 %v14306_v49, %s9308_s9  ;;  %5786 = vrot.lane.b32.xlu1 %v14306_v49, %s9326_s14  ;;  %s9333_s14 = smov 14  }
 0x87b   :  { %s8331_s27 = sld [smem:[%s15438_s0 + %s9333_s14]]  }
 0x87c   :  { %s8337_s14 = sld [smem:[%s15438_s0 + %s9338_s20]]  }
 0x87e   :  { %5826 = vrot.lane.b32.xlu0 %v14306_v49, %s9309_s10  ;;  %5828 = vrot.lane.b32.xlu1 %v14260_v47, %s9309_s10 }
 0x882   :  { %5868 = vrot.lane.b32.xlu0 %v14260_v47, %s9328_s17  ;;  %5848 = vrot.lane.b32.xlu1 %v14260_v47, %s9327_s16 }
 0x886   :  { %5866 = vrot.lane.b32.xlu0 %v14306_v49, %s9328_s17  ;;  %5846 = vrot.lane.b32.xlu1 %v14306_v49, %s9327_s16  ;;  %s9340_s16 = smov 119  }
 0x88a   :  { %5888 = vrot.lane.b32.xlu0 %v14260_v47, %s9330_s23  ;;  %5886 = vrot.lane.b32.xlu1 %v14306_v49, %s9330_s23  ;;  %s9341_s23 = smov 120  }
 0x88e   :  { %6037 = vperm.xlu0 %9038, %v6034_v27   ;;  %6027 = vperm.xlu1 %9039, %v6024_v38  }
 0x8c0   :  { %v14340_v28 = vpop.permute.xlu0 %5768  ;;  %v14342_v59 = vpop.permute.xlu1 %5748 }
 0x8c4   :  { %v14344_v56 = vpop.permute.xlu0 %5808  ;;  %v14346_v42 = vpop.permute.xlu1 %5788 }
 0x8c8   :  { %v14348_v60 = vpop.permute.xlu0 %5830  ;;  %v5751_v25 = vpop.permute.xlu1 %5750 }
 0x8c9   :  { %v5755_v31 = vsel %vm16532_vm13, %v14342_v59, %v5751_v25 }
 0x8ca   :  { %v5764_v0 = vmul.f32 %v14052_v63, %v5755_v31 }
 0x8cc   :  { %v5753_v35 = vpop.permute.xlu0 %5752  ;;  %v5771_v2 = vpop.permute.xlu1 %5770 }
 0x8cd   :  { %v5775_v37 = vsel %vm16530_vm14, %v14340_v28, %v5771_v2  ;;  %v5756_v41 = vsel %vm16531_vm15, %v5751_v25, %v5753_v35  ;;  %vm16544_vm14 = vmmov %vm16532_vm13 }
 0x8ce   :  { %v5784_v23 = vmul.f32 %v14026_v52, %v5775_v37  ;;  %v5765_v26 = vmul.f32 %v14038_v53, %v5756_v41  ;;  %vm16545_vm15 = vmmov %vm16532_vm13  ;;  %vm16546_vm13 = vcmask 1043456  }
 0x8d0   :  { %v5773_v43 = vpop.permute.xlu0 %5772  ;;  %v5791_v6 = vpop.permute.xlu1 %5790  ;;  %v5908_v27 = vpack.c.bf16 %v5784_v23, %v5764_v0 }
 0x8d1   :  { %v5776_v13 = vsel %vm16533_vm12, %v5771_v2, %v5773_v43  ;;  %v5795_v52 = vsel %vm16536_vm4, %v14346_v42, %v5791_v6  ;;  %vm16547_vm12 = vmmov %vm16546_vm13 }
 0x8d2   :  { %v5785_v55 = vmul.f32 %v14044_v29, %v5776_v13  ;;  %v5804_v41 = vmul.f32 %v14090_v17, %v5795_v52 }
 0x8d4   :  { %v5793_v5 = vpop.permute.xlu0 %5792  ;;  %v5811_v36 = vpop.permute.xlu1 %5810  ;;  %v5909_v51 = vpack.c.bf16 %v5785_v55, %v5765_v26 }
 0x8d5   :  { %v5815_v38 = vsel %vm16534_vm1, %v14344_v56, %v5811_v36  ;;  %v5796_v25 = vsel %vm16535_vm11, %v5791_v6, %v5793_v5  ;;  %vm16548_vm11 = vmmov %vm16534_vm1 }
 0x8d6   :  { %5983 = vmatprep.subr.bf16.mxu1 %v5909_v51  ;;  %v5824_v29 = vmul.f32 %v14104_v39, %v5815_v38  ;;  %v5805_v2 = vmul.f32 %v14109_v58, %v5796_v25 }
 0x8d7   :  { %5984 = vmatpush1.bf16.msra.mxu1 %v5908_v27 }
 0x8d8   :  { %v5813_v35 = vpop.permute.xlu0 %5812  ;;  %v14365_v53 = vpop.permute.xlu1 %5850  ;;  %v5912_v13 = vpack.c.bf16 %v5824_v29, %v5804_v41 }
 0x8d9   :  { %v5816_v63 = vsel %vm16537_vm8, %v5811_v36, %v5813_v35  ;;  %vm16549_vm8 = vmmov %vm16536_vm4 }
 0x8da   :  { %v5825_v37 = vmul.f32 %v14129_v21, %v5816_v63 }
 0x8dc   :  { %v14372_v31 = vpop.permute.xlu0 %5870  ;;  %v5833_v43 = vpop.permute.xlu1 %5832  ;;  %v5913_v23 = vpack.c.bf16 %v5825_v37, %v5805_v2 }
 0x8dd   :  { %v5836_v6 = vsel %vm16538_vm2, %v14348_v60, %v5833_v43  ;;  %v5841_v26 = vsel %vm16539_vm6, %v5833_v43, 0.0  ;;  %vm16550_vm2 = vcmask 588800  }
 0x8de   :  { %v5844_v39 = vmul.f32 %v14117_v22, %v5836_v6  ;;  %v5845_v55 = vmul.f32 %v14122_v19, %v5841_v26  ;;  %5985 = vmatprep.subr.bf16.mxu1 %v5913_v23 }
 0x8df   :  { %5986 = vmatpush1.bf16.msra.mxu1 %v5912_v13 }
 0x8e0   :  { %v5916_v58 = vpack.c.bf16 %v5844_v39, %v14270_v14  ;;  %v5873_v21 = vpop.permute.xlu0 %5872  ;;  %v5853_v17 = vpop.permute.xlu1 %5852  ;;  %v5917_v0 = vpack.c.bf16 %v5845_v55, %v14276_v50 }
 0x8e1   :  { %v5876_v5 = vsel %vm16540_vm10, %v14372_v31, %v5873_v21  ;;  %v5881_v36 = vsel %vm16541_vm5, %v5873_v21, 0.0  ;;  %v5856_v51 = vsel %vm5545_vm0, %v14365_v53, %v5853_v17  ;;  %v5861_v22 = vsel %vm5545_vm0, %v5853_v17, 0.0  ;;  %v14416_v17 = vld [vmem:[%s8331_s27] sm:$0xf]  ;;  %vm16551_vm10 = vmmov %vm16539_vm6  ;;  %s9342_s27 = smov 21  }
 0x8e2   :  { %v5884_v19 = vmul.f32 %v14192_v16, %v5876_v5  ;;  %v5885_v27 = vmul.f32 %v14197_v34, %v5881_v36  ;;  %v5864_v14 = vmul.f32 %v14176_v3, %v5856_v51  ;;  %v5865_v38 = vmul.f32 %v14182_v48, %v5861_v22  ;;  %5987 = vmatprep.subr.bf16.mxu1 %v5917_v0  ;;  %v14419_v0 = vld [vmem:[%s13801_s4] sm:$0xff]   ;;  %v14429_v5 = vld [vmem:[%s13801_s4 + $0x48] sm:$0xff]   ;;  %s14625_s2 = sld [smem:[%s15438_s0 + %s9342_s27]]  }
 0x8e3   :  { %5988 = vmatpush1.bf16.msra.mxu1 %v5916_v58 }
 0x8e4   :  { %v5920_v50 = vpack.c.bf16 %v5884_v19, %v5864_v14  ;;  %v5893_v25 = vpop.permute.xlu0 %5892  ;;  %v14391_v52 = vpop.permute.xlu1 %5890  ;;  %v5921_v35 = vpack.c.bf16 %v5885_v27, %v5865_v38 }
 0x8e5   :  { %v5901_v16 = vsel %vm5587_vm7, %v5893_v25, 0.0  ;;  %v5896_v3 = vsel %vm5587_vm7, %v14391_v52, %v5893_v25 }
 0x8e6   :  { %v5905_v48 = vmul.f32 %v14225_v24, %v5901_v16  ;;  %v5904_v34 = vmul.f32 %v14222_v10, %v5896_v3  ;;  %5989 = vmatprep.subr.bf16.mxu1 %v5921_v35  ;;  %v14408_v24 = vld [vmem:[%s13801_s4 + $0x40] sm:$0xff]  }
 0x8e7   :  { %5990 = vmatpush1.bf16.msra.mxu1 %v5920_v50 }
 0x8e8   :  { %v5925_v29 = vpack.c.bf16 %v5905_v48, %v5905_v48  ;;  %v5924_v63 = vpack.c.bf16 %v5904_v34, %v5904_v34  ;;  %v5767_v2 = vpop.permute.xlu0 %5766  ;;  %v5747_v37 = vpop.permute.xlu1 %5746  ;;  %v9247_v48 = vld [vmem:[%s13801_s4 + $0x10] sm:$0xff]  }
 0x8e9   :  { %v5774_v41 = vsel %vm16542_vm3, %v5767_v2, %v14340_v28  ;;  %v5781_v43 = vsel %vm16543_vm9, 0.0, %v5767_v2  ;;  %v5754_v23 = vsel %vm16544_vm14, %v5747_v37, %v14342_v59  ;;  %v5761_v13 = vsel %vm16545_vm15, 0.0, %v5747_v37  ;;  %v9249_v2 = vld [vmem:[%s13801_s4 + $0x18] sm:$0xff]   ;;  %vm16552_vm3 = vmmov %vm16541_vm5 }
 0x8ea   :  { %v5782_v10 = vmul.f32 %v13914_v11, %v5781_v43  ;;  %v5783_v6 = vmul.f32 %v13925_v18, %v5774_v41  ;;  %v5762_v26 = vmul.f32 %v13928_v20, %v5761_v13  ;;  %v5763_v39 = vmul.f32 %v13918_v33, %v5754_v23  ;;  %8706 = vmatprep.subr.msk.bf16.mxu1 %vm16546_vm13, %v5925_v29  ;;  %v9251_v13 = vld [vmem:[%s13801_s4 + $0x20] sm:$0xff]  }
 0x8eb   :  { %v5937_v28 = vsel %vm16547_vm12, %v5924_v63, 0  ;;  %vm6268_vm14 = vcmask 523264   ;;  %vm9339_vm15 = vmmov 0  }
 0x8ec   :  { %v5906_v55 = vpack.c.bf16 %v5782_v10, %v5762_v26  ;;  %5992 = vmatpush1.bf16.msra.mxu1 %v5937_v28  ;;  %v5807_v59 = vpop.permute.xlu0 %5806  ;;  %v5787_v58 = vpop.permute.xlu1 %5786  ;;  %v5907_v21 = vpack.c.bf16 %v5783_v6, %v5763_v39 }
 0x8ed   :  { %v5814_v11 = vsel %vm16534_vm1, %v5807_v59, %v14344_v56  ;;  %v5821_v18 = vsel %vm16548_vm11, 0.0, %v5807_v59  ;;  %v5794_v33 = vsel %vm16536_vm4, %v5787_v58, %v14346_v42  ;;  %v5801_v20 = vsel %vm16549_vm8, 0.0, %v5787_v58  ;;  %8806 = vmatprep.subr.bf16.mxu1 %v14408_v24  ;;  %v9257_v59 = vld [vmem:[%s13801_s4 + $0x38] sm:$0xff]  }
 0x8ee   :  { %v5822_v36 = vmul.f32 %v13957_v9, %v5821_v18  ;;  %v5823_v51 = vmul.f32 %v13968_v30, %v5814_v11  ;;  %v5802_v22 = vmul.f32 %v13971_v61, %v5801_v20  ;;  %v5803_v56 = vmul.f32 %v13961_v62, %v5794_v33  ;;  %5942 = vmatprep.subr.bf16.mxu0 %v5907_v21  ;;  %v9245_v9 = vld [vmem:[%s13801_s4 + $0x8] sm:$0xff]   ;;  %v9246_v62 = vld [vmem:[%s13801_s4 + $0x50] sm:$0xff]  }
 0x8ef   :  { %8707 = vmatmul.mubr.msk.bf16.vlgmr.msra.gmra.mrb[56].mxu1 %vm16550_vm2, %v14416_v17  ;;  %5943 = vmatpush1.bf16.msra.mxu0 %v5906_v55  ;;  %v9256_v55 = vld [vmem:[%s13801_s4 + $0x78] sm:$0xff]   ;;  %vm6307_vm4 = vcmask 64512   ;;  %vm6301_vm8 = vcmask 72704  }
 0x8f0   :  { %v5910_v42 = vpack.c.bf16 %v5822_v36, %v5802_v22  ;;  %v5827_v19 = vpop.permute.xlu0 %5826  ;;  %v5829_v27 = vpop.permute.xlu1 %5828  ;;  %v5911_v14 = vpack.c.bf16 %v5823_v51, %v5803_v56  ;;  %8807 = vmatpush3.bf16.msra.mxu1 %v14419_v0 }
 0x8f1   :  { %v5834_v38 = vsel %vm16539_vm6, %v5827_v19, %v5829_v27  ;;  %v5835_v30 = vsel %vm16551_vm10, %v5829_v27, %v14348_v60  ;;  %8808 = vmatprep.subr.bf16.mxu1 %v14429_v5  ;;  %vm6313_vm6 = vcmask 56320  }
 0x8f2   :  { %v5842_v61 = vmul.f32 %v14063_v8, %v5834_v38  ;;  %v5843_v50 = vmul.f32 %v14095_v57, %v5835_v30  ;;  %5944 = vmatprep.subr.bf16.mxu0 %v5911_v14  ;;  %v9248_v57 = vld [vmem:[%s13801_s4 + $0x58] sm:$0xff]  }
 0x8f3   :  { %5945 = vmatpush1.bf16.msra.mxu0 %v5910_v42 }
 0x8f4   :  { %v5914_v25 = vpack.c.bf16 %v5842_v61, %v14306_v49  ;;  %v5869_v35 = vpop.permute.xlu0 %5868  ;;  %v5849_v16 = vpop.permute.xlu1 %5848  ;;  %v5915_v3 = vpack.c.bf16 %v5843_v50, %v14260_v47  ;;  %8809 = vmatpush3.bf16.msra.mxu1 %v9245_v9 }
 0x8f5   :  { %v5875_v60 = vsel %vm16541_vm5, %v5869_v35, %v14372_v31  ;;  %v5855_v8 = vsel %vm5545_vm0, %v5849_v16, %v14365_v53  ;;  %8810 = vmatprep.subr.bf16.mxu1 %v9246_v62  ;;  %v9250_v53 = vld [vmem:[%s13801_s4 + $0x60] sm:$0xff]   ;;  %vm16562_vm5 = vcmask 7168  }
 0x8f6   :  { %v5883_v34 = vmul.f32 %v14072_v40, %v5875_v60  ;;  %v5863_v49 = vmul.f32 %v14087_v15, %v5855_v8  ;;  %5946 = vmatprep.subr.bf16.mxu0 %v5915_v3 }
 0x8f7   :  { %5947 = vmatpush1.bf16.msra.mxu0 %v5914_v25 }
 0x8f8   :  { %v5867_v29 = vpop.permute.xlu0 %5866  ;;  %v5847_v47 = vpop.permute.xlu1 %5846  ;;  %v5919_v63 = vpack.c.bf16 %v5883_v34, %v5863_v49  ;;  %8811 = vmatpush3.bf16.msra.mxu1 %v9247_v48 }
 0x8f9   :  { %v5874_v31 = vsel %vm16552_vm3, %v5867_v29, %v5869_v35  ;;  %v5854_v37 = vsel %vm5545_vm0, %v5847_v47, %v5849_v16  ;;  %8812 = vmatprep.subr.bf16.mxu1 %v9248_v57  ;;  %vm16553_vm0 = vmmov %vm16547_vm12  ;;  %v16556_v35 = vld [vmem:[#allocation53_spill] sm:$0xff] }
 0x8fa   :  { %v5882_v41 = vmul.f32 %v14172_v45, %v5874_v31  ;;  %v5862_v40 = vmul.f32 %v14159_v4, %v5854_v37  ;;  %5948 = vmatprep.subr.bf16.mxu0 %v5919_v63  ;;  %vm16554_vm9 = vmmov %vm16553_vm0 }
 0x8fc   :  { %v5918_v15 = vpack.c.bf16 %v5882_v41, %v5862_v40  ;;  %v5889_v43 = vpop.permute.xlu0 %5888  ;;  %v5887_v23 = vpop.permute.xlu1 %5886  ;;  %8813 = vmatpush3.bf16.msra.mxu1 %v9249_v2  ;;  %v6404_v41 = vld [vmem:[%s8336_s18 + $0x8] sm:$0xff]  ;;  %v6403_v40 = vld [vmem:[%s8336_s18] sm:$0xff]  ;;  %s9344_s18 = smov 23  }
 0x8fd   :  { %v5895_v10 = vsel %vm5587_vm7, %v5889_v43, %v14391_v52  ;;  %v5894_v6 = vsel %vm5587_vm7, %v5887_v23, %v5889_v43  ;;  %8814 = vmatprep.subr.bf16.mxu1 %v9250_v53  ;;  %vm16555_vm7 = vmmov %vm16550_vm2  ;;  %v9254_v52 = vld [vmem:[%s13801_s4 + $0x70] sm:$0xff]   ;;  %v6417_v43 = vld [vmem:[%s8337_s14] sm:$0xff]  ;;  %s8340_s26 = sld [smem:[%s15438_s0 + %s9344_s18]]  }
 0x8fe   :  { %v5903_v26 = vmul.f32 %v14246_v12, %v5895_v10  ;;  %v5902_v39 = vmul.f32 %v14243_v44, %v5894_v6  ;;  %5949 = vmatpush1.bf16.msra.mxu0 %v5918_v15  ;;  %v9252_v44 = vld [vmem:[%s13801_s4 + $0x68] sm:$0xff]   ;;  %v16557_v23 = vld [vmem:[#allocation2_spill] sm:$0xff] }
 0x8ff   :  { %v9253_v12 = vld [vmem:[%s13801_s4 + $0x28] sm:$0xff]   ;;  %v6270_v6 = vand.u32 7, %v16557_v23 }
 0x900   :  { %v5923_v45 = vpack.c.bf16 %v5903_v26, %v5903_v26  ;;  %v5922_v28 = vpack.c.bf16 %v5902_v39, %v5902_v39  ;;  %8815 = vmatpush3.bf16.msra.mxu1 %v9251_v13  ;;  %v6418_v15 = vld [vmem:[%s8337_s14 + $0x8] sm:$0xff]  ;;  %s9345_s14 = smov 24  }
 0x901   :  { %8816 = vmatprep.subr.bf16.mxu1 %v9252_v44  ;;  %vm14522_vm12 = vcmp.ge.s32.totalorder %v6270_v6, 1  ;;  %vm14528_vm11 = vcmp.le.s32.totalorder %v6270_v6, 6  ;;  %s14718_s1 = sld [smem:[%s15438_s0 + %s9345_s14]]  }
 0x902   :  { %8704 = vmatprep.subr.msk.bf16.mxu0 %vm16553_vm0, %v5923_v45  ;;  %v5931_v4 = vsel %vm16554_vm9, %v5922_v28, 0  ;;  %vm6329_vm0 = vcmask 990208  }
 0x903   :  { %5951 = vmatpush1.bf16.msra.mxu0 %v5931_v4  ;;  %v6593_v6 = vld [vmem:[%s8340_s26] sm:$0xff]  ;;  %v6594_v26 = vld [vmem:[%s8340_s26 + $0x8] sm:$0xff]  ;;  %s9348_s26 = smov 27  }
 0x904   :  { %8784 = vmatprep.subr.bf16.mxu0 %v14408_v24  ;;  %8817 = vmatpush3.bf16.msra.mxu1 %v9253_v12  ;;  %v9255_v24 = vld [vmem:[%s13801_s4 + $0x30] sm:$0xff]   ;;  %s9334_s4 = smov 64   ;;  %s14815_s28 = sld [smem:[%s15438_s0 + %s9348_s26]]  }
 0x905   :  { %8818 = vmatprep.subr.bf16.mxu1 %v9254_v52 }
 0x906   :  { %8705 = vmatmul.mubr.msk.bf16.vlgmr.msra.gmra.mrb[56].mxu0 %vm16555_vm7, %v14416_v17  ;;  %vm16563_vm7 = vcmask 1039360  }
 0x907   :  { %8785 = vmatpush3.bf16.msra.mxu0 %v14419_v0 }
 0x908   :  { %8786 = vmatprep.subr.bf16.mxu0 %v14429_v5  ;;  %8819 = vmatpush3.bf16.msra.mxu1 %v9255_v24 }
 0x909   :  { %8820 = vmatprep.subr.bf16.mxu1 %v9256_v55 }
 0x90b   :  { %8787 = vmatpush3.bf16.msra.mxu0 %v9245_v9 }
 0x90c   :  { %8788 = vmatprep.subr.bf16.mxu0 %v9246_v62  ;;  %8821 = vmatpush3.bf16.msra.mxu1 %v9257_v59 }
 0x90d   :  { %6538 = vmatprep.subr.bf16.mxu1 %v15778_v32  ;;  %v6028_v58 = vpop.permute.xlu1 %6027  ;;  %v6038_v11 = vpop.permute.xlu0 %6037 }
 0x90f   :  { %8789 = vmatpush3.bf16.msra.mxu0 %v9247_v48 }
 0x910   :  { %8790 = vmatprep.subr.bf16.mxu0 %v9248_v57 }
 0x913   :  { %8791 = vmatpush3.bf16.msra.mxu0 %v9249_v2 }
 0x914   :  { %8792 = vmatprep.subr.bf16.mxu0 %v9250_v53 }
 0x917   :  { %8793 = vmatpush3.bf16.msra.mxu0 %v9251_v13  ;;  %v6271_v13 = vshra.s32 %v16557_v23, 3 }
 0x918   :  { %8794 = vmatprep.subr.bf16.mxu0 %v9252_v44 }
 0x919   :  { %v6272_v10 = vand.u32 7, %v6271_v13 }
 0x91b   :  { %8795 = vmatpush3.bf16.msra.mxu0 %v9253_v12  ;;  %vm6273_vm13 = vcmp.ge.s32.totalorder %v6272_v10, 1  ;;  %vm6288_vm10 = vcmp.le.s32.totalorder %v6272_v10, 6 }
 0x91c   :  { %8796 = vmatprep.subr.bf16.mxu0 %v9254_v52  ;;  %vm6275_vm1 = vmand %vm6273_vm13, %vm14522_vm12  ;;  %v14533_v45 = vsel %vm6273_vm13, 1.0, %v16487_v1 }
 0x91d   :  { %v14536_v28 = vsel %vm6275_vm1, 1.0, %v16487_v1  ;;  %vm6281_vm2 = vmand %vm6273_vm13, %vm14528_vm11  ;;  %vm6341_vm13 = vcmask 973824   ;;  %vm16564_vm1 = vcmask 1043456  }
 0x91e   :  { %vm6289_vm3 = vmand %vm6288_vm10, %vm14522_vm12 }
 0x91f   :  { %8797 = vmatpush3.bf16.msra.mxu0 %v9255_v24  ;;  %vm6294_vm9 = vmand %vm6288_vm10, %vm14528_vm11 }
 0x920   :  { %8798 = vmatprep.subr.bf16.mxu0 %v9256_v55 }
 0x923   :  { %8799 = vmatpush3.bf16.msra.mxu0 %v9257_v59  ;;  %v14547_v59 = vsel %vm14522_vm12, 1.0, %v16487_v1  ;;  %vm6335_vm12 = vcmask 982016  }
 0x924   :  { %8885 = vmatprep.subr.bf16.mxu0 %v16487_v1 }
 0x9c2   :  { %v6017_v21 = vpop.f32.mrb[56].mxu1 }
 0x9c3   :  { %v6032_v17 = vmul.f32 %v6028_v58, %v6017_v21  ;;  %v6019_v0 = vpop.f32.mrb[57].mxu1 }
 0x9c4   :  { %v6033_v18 = vmul.f32 %v6028_v58, %v6019_v0  ;;  %v6021_v33 = vpop.f32.mrb[58].mxu1 }
 0x9c5   :  { %v6042_v20 = vadd.f32 %v6038_v11, %v6032_v17  ;;  %v6022_v5 = vpop.f32.mrb[59].mxu1 }
 0x9c6   :  { %v6043_v36 = vadd.f32 %v6038_v11, %v6033_v18  ;;  %v14562_v5 = vsel %vm14528_vm11, 1.0, %v16487_v1  ;;  %vm16565_vm11 = vcmask 588800  }
 0x9c7   :  { %v6046_v51 = vadd.f32 %v6042_v20, %v13833_v7 }
 0x9c8   :  { %v6047_v22 = vadd.f32 %v6043_v36, %v13835_v46 }
 0x9c9   :  { %v6050_v56 = vmax.f32 %v6046_v51, 0.0 }
 0x9ca   :  { %v6051_v42 = vmax.f32 %v6047_v22, 0.0 }
 0x9cb   :  { %v6054_v27 = vpack.c.bf16 %v6050_v56, %v6050_v56 }
 0x9cc   :  { %v6055_v19 = vpack.c.bf16 %v6051_v42, %v6051_v42 }
 0x9ce   :  { %6256 = vmatprep.mubr.bf16.mxu1 %v6055_v19  ;;  %v14571_v19 = vsel %vm6289_vm3, 1.0, %v16487_v1  ;;  %vm16568_vm3 = vmmov %vm16563_vm7 }
 0x9cf   :  { %6257 = vmatmul.mubr.bf16.vlgmr.msra.gmra.mrb[60].mxu1 %v6054_v27 }
 0x9d9   :  { %v5976_v14 = vpop.f32.mrb[56].mxu0 }
 0x9da   :  { %v6030_v9 = vmul.f32 %v6028_v58, %v5976_v14  ;;  %v5978_v38 = vpop.f32.mrb[57].mxu0  ;;  %v14575_v14 = vsel %vm6294_vm9, 1.0, %v16487_v1  ;;  %vm16569_vm9 = vmmov %vm16568_vm3 }
 0x9db   :  { %v6031_v30 = vmul.f32 %v6028_v58, %v5978_v38  ;;  %v5980_v62 = vpop.f32.mrb[58].mxu0  ;;  %v14550_v58 = vsel %vm6281_vm2, 1.0, %v16487_v1  ;;  %vm16566_vm2 = vcmask 130048  }
 0x9dc   :  { %v6040_v61 = vadd.f32 %v6038_v11, %v6030_v9  ;;  %v5981_v50 = vpop.f32.mrb[59].mxu0  ;;  %v14579_v9 = vsel %vm6288_vm10, 1.0, %v16487_v1  ;;  %vm16567_vm10 = vmmov %vm16562_vm5 }
 0x9dd   :  { %v6041_v25 = vadd.f32 %v6038_v11, %v6031_v30 }
 0x9de   :  { %v6044_v16 = vadd.f32 %v6040_v61, %v16556_v35 }
 0x9df   :  { %v6045_v7 = vadd.f32 %v6041_v25, %v13809_v54 }
 0x9e0   :  { %v6048_v3 = vmax.f32 %v6044_v16, 0.0 }
 0x9e1   :  { %v6049_v46 = vmax.f32 %v6045_v7, 0.0 }
 0x9e2   :  { %v6052_v60 = vpack.c.bf16 %v6048_v3, %v6048_v3 }
 0x9e3   :  { %v6053_v48 = vpack.c.bf16 %v6049_v46, %v6049_v46 }
 0x9e5   :  { %6216 = vmatprep.mubr.bf16.mxu0 %v6053_v48  ;;  %v9258_v48 = vld [vmem:[%s14498_s3] sm:$0xff]   ;;  %s9343_s3 = smov 22  }
 0x9e6   :  { %6217 = vmatmul.mubr.bf16.vlgmr.msra.gmra.mrb[60].mxu0 %v6052_v60  ;;  %s8339_s11 = sld [smem:[%s15438_s0 + %s9343_s3]]   ;;  %s9366_s3 = smov 45  }
 0x9e7   :  { %8895 = vmatprep.mubr.msk.bf16.mxu0 %vm9339_vm15, %v16487_v1 }
 0x9ec   :  { %v6579_v13 = vld [vmem:[%s8339_s11] sm:$0xff]  ;;  %v6580_v10 = vld [vmem:[%s8339_s11 + $0x8] sm:$0xff]  ;;  %s9347_s11 = smov 26  }
 0x9ed   :  { %s8343_s22 = sld [smem:[%s15438_s0 + %s9347_s11]]   ;;  %s9360_s11 = smov 123  }
 0xaa2   :  { %v8822_v8 = vpop.f32.mrb[60].mxu1 }
 0xaa3   :  { %v8823_v57 = vpop.f32.mrb[61].mxu1 }
 0xaa4   :  { %v8824_v34 = vadd.f32 %v8823_v57, %v8822_v8  ;;  %v8825_v49 = vpop.f32.mrb[62].mxu1 }
 0xaa5   :  { %v8826_v29 = vpop.f32.mrb[63].mxu1 }
 0xaa6   :  { %6265 = vrot.lane.b32.xlu1 %v8824_v34, %s9334_s4 }
 0xab9   :  { %v8800_v47 = vpop.f32.mrb[60].mxu0 }
 0xaba   :  { %v8801_v63 = vpop.f32.mrb[61].mxu0 }
 0xabb   :  { %v8802_v2 = vadd.f32 %v8801_v63, %v8800_v47  ;;  %v8803_v31 = vpop.f32.mrb[62].mxu0 }
 0xabc   :  { %v8804_v37 = vpop.f32.mrb[63].mxu0 }
 0xb18   :  { %v6266_v54 = vpop.permute.xlu1 %6265 }
 0xb19   :  { %v14489_v53 = vsel %vm6268_vm14, %v8802_v2, %v6266_v54 }
 0xb1a   :  { %6304 = vrot.lane.b32.xlu1 %v14489_v53, %s9323_s30  ;;  %6298 = vrot.lane.b32.xlu0 %v14489_v53, %s9322_s24 }
 0xb1e   :  { %6316 = vrot.lane.b32.xlu1 %v14489_v53, %s9308_s9  ;;  %6310 = vrot.lane.b32.xlu0 %v14489_v53, %s9320_s15 }
 0xb22   :  { %6326 = vrot.lane.b32.xlu1 %v14489_v53, %s9337_s19  ;;  %6321 = vrot.lane.b32.xlu0 %v14489_v53, %s9309_s10 }
 0xb26   :  { %6338 = vrot.lane.b32.xlu1 %v14489_v53, %s9340_s16  ;;  %6332 = vrot.lane.b32.xlu0 %v14489_v53, %s9341_s23 }
 0xb2a   :  { %6412 = vperm.xlu1 %9039, %v6404_v41   ;;  %6407 = vperm.xlu0 %9038, %v6403_v40  }
 0xb2e   :  { %6426 = vperm.xlu1 %9039, %v6418_v15   ;;  %6421 = vperm.xlu0 %9038, %v6417_v43   ;;  %v9259_v43 = vld [vmem:[%s14625_s2 + $0x4] ss:$8 sps:$4 sm:$0xff]  }
 0xb2f   :  { %8736 = vmatprep.mubr.msk.bf16.mxu1 %vm16566_vm2, %v9259_v43 }
 0xb8c   :  { %v6305_v4 = vpop.permute.xlu1 %6304  ;;  %v6299_v44 = vpop.permute.xlu0 %6298 }
 0xb8d   :  { %v6308_v12 = vsel %vm6307_vm4, 0.0, %v6305_v4  ;;  %v6302_v52 = vsel %vm6301_vm8, 0.0, %v6299_v44 }
 0xb8e   :  { %v6309_v24 = vmul.f32 %v14533_v45, %v6308_v12  ;;  %v6303_v55 = vmul.f32 %v14536_v28, %v6302_v52 }
 0xb90   :  { %v6344_v21 = vpack.c.bf16 %v6309_v24, %v6303_v55  ;;  %v6317_v17 = vpop.permute.xlu1 %6316  ;;  %v6311_v0 = vpop.permute.xlu0 %6310 }
 0xb91   :  { %v6319_v11 = vsel %vm16562_vm5, 0.0, %v6317_v17  ;;  %v6314_v18 = vsel %vm6313_vm6, 0.0, %v6311_v0 }
 0xb92   :  { %v6320_v33 = vmul.f32 %v14547_v59, %v6319_v11  ;;  %v6315_v20 = vmul.f32 %v14550_v58, %v6314_v18  ;;  %8886 = vmatpush3.bf16.msra.mxu0 %v6344_v21 }
 0xb93   :  { %8887 = vmatprep.subr.bf16.mxu0 %v16487_v1 }
 0xb94   :  { %v6345_v36 = vpack.c.bf16 %v6320_v33, %v6315_v20  ;;  %v6327_v51 = vpop.permute.xlu1 %6326  ;;  %v6322_v22 = vpop.permute.xlu0 %6321 }
 0xb95   :  { %v6324_v56 = vsel %vm16563_vm7, %v6322_v22, 0.0  ;;  %v6330_v27 = vsel %vm6329_vm0, %v6327_v51, 0.0  ;;  %vm16570_vm7 = vmmov %vm16566_vm2 }
 0xb96   :  { %v6325_v42 = vmul.f32 %v14562_v5, %v6324_v56  ;;  %8888 = vmatpush3.bf16.msra.mxu0 %v6345_v36  ;;  %v6331_v25 = vmul.f32 %v14571_v19, %v6330_v27  ;;  %vm16573_vm2 = vmmov %vm16568_vm3 }
 0xb97   :  { %8889 = vmatprep.subr.bf16.mxu0 %v16487_v1 }
 0xb98   :  { %v6346_v38 = vpack.c.bf16 %v6325_v42, %v14489_v53  ;;  %v6339_v30 = vpop.permute.xlu1 %6338  ;;  %v6333_v62 = vpop.permute.xlu0 %6332 }
 0xb99   :  { %v6342_v61 = vsel %vm6341_vm13, %v6339_v30, 0.0  ;;  %v6336_v50 = vsel %vm6335_vm12, %v6333_v62, 0.0 }
 0xb9a   :  { %v6343_v35 = vmul.f32 %v14575_v14, %v6342_v61  ;;  %v6337_v16 = vmul.f32 %v14579_v9, %v6336_v50  ;;  %8890 = vmatpush3.bf16.msra.mxu0 %v6346_v38 }
 0xb9b   :  { %8891 = vmatprep.subr.bf16.mxu0 %v16487_v1 }
 0xb9c   :  { %v6347_v7 = vpack.c.bf16 %v6337_v16, %v6331_v25  ;;  %v6348_v3 = vpack.c.bf16 %v6343_v35, %v6343_v35 }
 0xb9e   :  { %8892 = vmatpush3.bf16.msra.mxu0 %v6347_v7  ;;  %v6360_v46 = vsel %vm16564_vm1, %v6348_v3, 0  ;;  %vm16571_vm1 = vmmov %vm16562_vm5 }
 0xb9f   :  { %8893 = vmatprep.subr.bf16.mxu0 %v16487_v1 }
 0xba2   :  { %8894 = vmatpush3.bf16.msra.mxu0 %v6360_v46 }
 0xba3   :  { %6715 = vmatprep.subr.bf16.mxu0 %v15778_v32 }
 0xba5   :  { %8896 = vmatmul.mubr.msk.bf16.vlgmr.msra.gmra.mrb[64].mxu0 %vm16565_vm11, %v9258_v48  ;;  %vm16572_vm11 = vmmov %vm16571_vm1 }
 0xba9   :  { %v6408_v60 = vpop.permute.xlu0 %6407  ;;  %v6413_v8 = vpop.permute.xlu1 %6412 }
 0xbad   :  { %v6422_v29 = vpop.permute.xlu0 %6421  ;;  %v6427_v37 = vpop.permute.xlu1 %6426 }
 0xc78   :  { %v6396_v57 = vpop.f32.mrb[64].mxu0 }
 0xc79   :  { %v6415_v34 = vmul.f32 %v6408_v60, %v6396_v57  ;;  %v8897_v49 = vpop.f32.mrb[65].mxu0 }
 0xc7a   :  { %v6399_v47 = vpop.f32.mrb[66].mxu0 }
 0xc7b   :  { %v6429_v63 = vadd.f32 %v6422_v29, %v6415_v34  ;;  %v6416_v2 = vmul.f32 %v6413_v8, %v6399_v47  ;;  %v8898_v31 = vpop.f32.mrb[67].mxu0 }
 0xc7d   :  { %v14594_v54 = vmax.f32 %v6429_v63, 0.0  ;;  %v6430_v41 = vadd.f32 %v6427_v37, %v6416_v2 }
 0xc7f   :  { %v14596_v40 = vmax.f32 %v6430_v41, 0.0  ;;  %6435 = vrot.lane.b32.xlu0 %v14594_v54, %s9322_s24 }
 0xc81   :  { %6437 = vrot.lane.b32.xlu1 %v14596_v40, %s9322_s24  ;;  %v6519_v15 = vpack.c.bf16 %v14596_v40, %v14594_v54 }
 0xc83   :  { %6445 = vrot.lane.b32.xlu0 %v14594_v54, %s9323_s30 }
 0xc85   :  { %6447 = vrot.lane.b32.xlu1 %v14596_v40, %s9323_s30 }
 0xc87   :  { %6455 = vrot.lane.b32.xlu0 %v14594_v54, %s9320_s15 }
 0xc89   :  { %6457 = vrot.lane.b32.xlu1 %v14596_v40, %s9320_s15 }
 0xc8b   :  { %6465 = vrot.lane.b32.xlu0 %v14594_v54, %s9308_s9 }
 0xc8d   :  { %6467 = vrot.lane.b32.xlu1 %v14596_v40, %s9308_s9 }
 0xc8f   :  { %6475 = vrot.lane.b32.xlu0 %v14594_v54, %s9309_s10 }
 0xc91   :  { %6477 = vrot.lane.b32.xlu1 %v14596_v40, %s9309_s10 }
 0xc93   :  { %6485 = vrot.lane.b32.xlu0 %v14594_v54, %s9337_s19 }
 0xc95   :  { %6487 = vrot.lane.b32.xlu1 %v14596_v40, %s9337_s19 }
 0xc97   :  { %6495 = vrot.lane.b32.xlu0 %v14594_v54, %s9341_s23 }
 0xc99   :  { %6497 = vrot.lane.b32.xlu1 %v14596_v40, %s9341_s23 }
 0xc9b   :  { %6505 = vrot.lane.b32.xlu0 %v14594_v54, %s9340_s16 }
 0xc9d   :  { %6507 = vrot.lane.b32.xlu1 %v14596_v40, %s9340_s16 }
 0xc9f   :  { %6583 = vperm.xlu0 %9038, %v6579_v13  }
 0xca1   :  { %6588 = vperm.xlu1 %9039, %v6580_v10  }
 0xca3   :  { %6597 = vperm.xlu0 %9038, %v6593_v6  }
 0xca5   :  { %6602 = vperm.xlu1 %9039, %v6594_v26  }
 0xcf1   :  { %v6436_v39 = vpop.permute.xlu0 %6435 }
 0xcf2   :  { %v6441_v4 = vsel %vm6301_vm8, 0.0, %v6436_v39 }
 0xcf3   :  { %v6438_v44 = vpop.permute.xlu1 %6437  ;;  %v6443_v52 = vmul.f32 %v14536_v28, %v6441_v4 }
 0xcf4   :  { %v6442_v12 = vsel %vm6301_vm8, 0.0, %v6438_v44 }
 0xcf5   :  { %v6444_v24 = vmul.f32 %v14536_v28, %v6442_v12  ;;  %v6446_v55 = vpop.permute.xlu0 %6445 }
 0xcf6   :  { %v6451_v21 = vsel %vm6307_vm4, 0.0, %v6446_v55 }
 0xcf7   :  { %v6515_v17 = vpack.c.bf16 %v6444_v24, %v6443_v52  ;;  %v6448_v0 = vpop.permute.xlu1 %6447  ;;  %v6453_v18 = vmul.f32 %v14533_v45, %v6451_v21  ;;  %v9261_v52 = vld [vmem:[%s14625_s2] ss:$8 sps:$4 sm:$0xff]   ;;  %s9346_s2 = smov 25  }
 0xcf8   :  { %v6452_v11 = vsel %vm6307_vm4, 0.0, %v6448_v0  ;;  %s8342_s13 = sld [smem:[%s15438_s0 + %s9346_s2]]  }
 0xcf9   :  { %v6454_v33 = vmul.f32 %v14533_v45, %v6452_v11  ;;  %6539 = vmatpush1.bf16.msra.mxu1 %v6515_v17  ;;  %v6456_v20 = vpop.permute.xlu0 %6455  ;;  %s8348_s2 = sld [smem:[%s15438_s0 + %s9307_s8]]   ;;  %s9359_s8 = smov 39  }
 0xcfa   :  { %v6461_v36 = vsel %vm6313_vm6, 0.0, %v6456_v20  ;;  %6540 = vmatprep.subr.bf16.mxu1 %v15778_v32 }
 0xcfb   :  { %v6516_v51 = vpack.c.bf16 %v6454_v33, %v6453_v18  ;;  %v6458_v22 = vpop.permute.xlu1 %6457  ;;  %v6463_v42 = vmul.f32 %v14550_v58, %v6461_v36 }
 0xcfc   :  { %v6462_v56 = vsel %vm6313_vm6, 0.0, %v6458_v22 }
 0xcfd   :  { %v6464_v27 = vmul.f32 %v14550_v58, %v6462_v56  ;;  %6541 = vmatpush1.bf16.msra.mxu1 %v6516_v51  ;;  %v6466_v38 = vpop.permute.xlu0 %6465 }
 0xcfe   :  { %v6471_v30 = vsel %vm16567_vm10, 0.0, %v6466_v38  ;;  %6542 = vmatprep.subr.bf16.mxu1 %v15778_v32  ;;  %v6756_v38 = vld [vmem:[%s8342_s13] sm:$0xff]  ;;  %vm16574_vm10 = vmmov %vm16573_vm2 }
 0xcff   :  { %v6517_v62 = vpack.c.bf16 %v6464_v27, %v6463_v42  ;;  %v6468_v61 = vpop.permute.xlu1 %6467  ;;  %v6473_v25 = vmul.f32 %v14547_v59, %v6471_v30  ;;  %v6757_v30 = vld [vmem:[%s8342_s13 + $0x8] sm:$0xff]  ;;  %s9350_s13 = smov 29  }
 0xd00   :  { %v6472_v50 = vsel %vm16562_vm5, 0.0, %v6468_v61  ;;  %v6771_v61 = vld [vmem:[%s8343_s22 + $0x8] sm:$0xff]  ;;  %s8346_s20 = sld [smem:[%s15438_s0 + %s9350_s13]]   ;;  %vm16575_vm5 = vmmov %vm16570_vm7 }
 0xd01   :  { %v6474_v35 = vmul.f32 %v14547_v59, %v6472_v50  ;;  %6543 = vmatpush1.bf16.msra.mxu1 %v6517_v62  ;;  %v6476_v16 = vpop.permute.xlu0 %6475  ;;  %v6770_v62 = vld [vmem:[%s8343_s22] sm:$0xff]  ;;  %s9351_s22 = smov 30   ;;  %s8349_s13 = sld [smem:[%s15438_s0 + %s9305_s6]]  }
 0xd02   :  { %6544 = vmatprep.subr.bf16.mxu1 %v15778_v32  ;;  %v6481_v60 = vsel %vm16569_vm9, %v6476_v16, 0.0  ;;  %vm16577_vm9 = vmmov %vm16571_vm1  ;;  %s14911_s27 = sld [smem:[%s15438_s0 + %s9351_s22]]   ;;  %s9358_s6 = smov 124  }
 0xd03   :  { %v6518_v7 = vpack.c.bf16 %v6474_v35, %v6473_v25  ;;  %v6478_v3 = vpop.permute.xlu1 %6477  ;;  %v6483_v49 = vmul.f32 %v14562_v5, %v6481_v60 }
 0xd04   :  { %v6482_v46 = vsel %vm16568_vm3, %v6478_v3, 0.0  ;;  %vm16576_vm3 = vmmov %vm16571_vm1 }
 0xd05   :  { %6545 = vmatpush1.bf16.msra.mxu1 %v6518_v7  ;;  %v6486_v48 = vpop.permute.xlu0 %6485  ;;  %v6484_v8 = vmul.f32 %v14562_v5, %v6482_v46 }
 0xd06   :  { %6546 = vmatprep.subr.bf16.mxu1 %v15778_v32  ;;  %v6491_v47 = vsel %vm6329_vm0, %v6486_v48, 0.0 }
 0xd07   :  { %v6488_v57 = vpop.permute.xlu1 %6487  ;;  %v6520_v63 = vpack.c.bf16 %v6484_v8, %v6483_v49  ;;  %v6493_v41 = vmul.f32 %v14571_v19, %v6491_v47 }
 0xd08   :  { %v6492_v34 = vsel %vm6329_vm0, %v6488_v57, 0.0 }
 0xd09   :  { %v6496_v29 = vpop.permute.xlu0 %6495  ;;  %6547 = vmatpush1.bf16.msra.mxu1 %v6519_v15  ;;  %v6494_v2 = vmul.f32 %v14571_v19, %v6492_v34 }
 0xd0a   :  { %6548 = vmatprep.subr.bf16.mxu1 %v15778_v32  ;;  %v6501_v43 = vsel %vm6335_vm12, %v6496_v29, 0.0 }
 0xd0b   :  { %v6498_v31 = vpop.permute.xlu1 %6497  ;;  %v6521_v54 = vpack.c.bf16 %v6494_v2, %v6493_v41  ;;  %v6503_v6 = vmul.f32 %v14579_v9, %v6501_v43 }
 0xd0c   :  { %v6502_v37 = vsel %vm6335_vm12, %v6498_v31, 0.0 }
 0xd0d   :  { %6549 = vmatpush1.bf16.msra.mxu1 %v6520_v63  ;;  %v6504_v40 = vmul.f32 %v14579_v9, %v6502_v37  ;;  %v6506_v15 = vpop.permute.xlu0 %6505 }
 0xd0e   :  { %6550 = vmatprep.subr.bf16.mxu1 %v15778_v32  ;;  %v6511_v26 = vsel %vm6341_vm13, %v6506_v15, 0.0 }
 0xd0f   :  { %v6508_v13 = vpop.permute.xlu1 %6507  ;;  %v6522_v39 = vpack.c.bf16 %v6504_v40, %v6503_v6  ;;  %v6513_v44 = vmul.f32 %v14575_v14, %v6511_v26 }
 0xd10   :  { %v6512_v10 = vsel %vm6341_vm13, %v6508_v13, 0.0 }
 0xd11   :  { %6551 = vmatpush1.bf16.msra.mxu1 %v6521_v54  ;;  %v6514_v4 = vmul.f32 %v14575_v14, %v6512_v10 }
 0xd12   :  { %6552 = vmatprep.subr.bf16.mxu1 %v15778_v32 }
 0xd13   :  { %v6523_v12 = vpack.c.bf16 %v6514_v4, %v6513_v44 }
 0xd15   :  { %6553 = vmatpush1.bf16.msra.mxu1 %v6522_v39 }
 0xd16   :  { %6554 = vmatprep.subr.bf16.mxu1 %v15778_v32 }
 0xd19   :  { %6555 = vmatpush1.bf16.msra.mxu1 %v6523_v12 }
 0xd1a   :  { %6891 = vmatprep.subr.bf16.mxu1 %v15778_v32 }
 0xd1c   :  { %6571 = vmatmul.mubr.bf16.vlgmr.msra.gmra.mrb[64].mxu1 %v9261_v52 }
 0xd1e   :  { %v6584_v24 = vpop.permute.xlu0 %6583 }
 0xd20   :  { %v6589_v55 = vpop.permute.xlu1 %6588 }
 0xd22   :  { %v6598_v11 = vpop.permute.xlu0 %6597 }
 0xd24   :  { %v6603_v51 = vpop.permute.xlu1 %6602 }
 0xdef   :  { %v6572_v21 = vpop.f32.mrb[64].mxu1 }
 0xdf0   :  { %v6591_v17 = vmul.f32 %v6584_v24, %v6572_v21  ;;  %v6574_v0 = vpop.f32.mrb[65].mxu1 }
 0xdf1   :  { %v6575_v18 = vpop.f32.mrb[66].mxu1 }
 0xdf2   :  { %v6605_v33 = vadd.f32 %v6598_v11, %v6591_v17  ;;  %v6592_v20 = vmul.f32 %v6589_v55, %v6575_v18  ;;  %v6577_v36 = vpop.f32.mrb[67].mxu1 }
 0xdf4   :  { %v6607_v22 = vadd.f32 %v6605_v33, %v14489_v53  ;;  %v6606_v56 = vadd.f32 %v6603_v51, %v6592_v20  ;;  %v9262_v53 = vld [vmem:[%s14718_s1 + $0x4] ss:$8 sps:$4 sm:$0xff]  }
 0xdf5   :  { %8739 = vmatprep.mubr.msk.bf16.mxu0 %vm16570_vm7, %v9262_v53  ;;  %vm16578_vm7 = vmmov %vm16573_vm2 }
 0xdf6   :  { %v14691_v42 = vmax.f32 %v6607_v22, 0.0  ;;  %v14693_v27 = vmax.f32 %v6606_v56, 0.0 }
 0xdf8   :  { %6612 = vrot.lane.b32.xlu0 %v14691_v42, %s9322_s24  ;;  %6614 = vrot.lane.b32.xlu1 %v14693_v27, %s9322_s24  ;;  %v6696_v17 = vpack.c.bf16 %v14693_v27, %v14691_v42 }
 0xdfc   :  { %6622 = vrot.lane.b32.xlu0 %v14691_v42, %s9323_s30  ;;  %6624 = vrot.lane.b32.xlu1 %v14693_v27, %s9323_s30 }
 0xe00   :  { %6632 = vrot.lane.b32.xlu0 %v14691_v42, %s9320_s15  ;;  %6634 = vrot.lane.b32.xlu1 %v14693_v27, %s9320_s15 }
 0xe04   :  { %6642 = vrot.lane.b32.xlu0 %v14691_v42, %s9308_s9  ;;  %6644 = vrot.lane.b32.xlu1 %v14693_v27, %s9308_s9 }
 0xe08   :  { %6652 = vrot.lane.b32.xlu0 %v14691_v42, %s9309_s10  ;;  %6654 = vrot.lane.b32.xlu1 %v14693_v27, %s9309_s10 }
 0xe0c   :  { %6662 = vrot.lane.b32.xlu0 %v14691_v42, %s9337_s19  ;;  %6664 = vrot.lane.b32.xlu1 %v14693_v27, %s9337_s19 }
 0xe10   :  { %6672 = vrot.lane.b32.xlu0 %v14691_v42, %s9341_s23  ;;  %6674 = vrot.lane.b32.xlu1 %v14693_v27, %s9341_s23 }
 0xe14   :  { %6682 = vrot.lane.b32.xlu0 %v14691_v42, %s9340_s16  ;;  %6684 = vrot.lane.b32.xlu1 %v14693_v27, %s9340_s16 }
 0xe18   :  { %6760 = vperm.xlu0 %9038, %v6756_v38   ;;  %6765 = vperm.xlu1 %9039, %v6757_v30  }
 0xe1c   :  { %6774 = vperm.xlu0 %9038, %v6770_v62   ;;  %6779 = vperm.xlu1 %9039, %v6771_v61  }
 0xe6a   :  { %v6613_v50 = vpop.permute.xlu0 %6612  ;;  %v6615_v25 = vpop.permute.xlu1 %6614 }
 0xe6b   :  { %v6618_v35 = vsel %vm6301_vm8, 0.0, %v6613_v50  ;;  %v6619_v16 = vsel %vm6301_vm8, 0.0, %v6615_v25 }
 0xe6c   :  { %v6620_v7 = vmul.f32 %v14536_v28, %v6618_v35  ;;  %v6621_v3 = vmul.f32 %v14536_v28, %v6619_v16 }
 0xe6e   :  { %v6692_v46 = vpack.c.bf16 %v6621_v3, %v6620_v7  ;;  %v6623_v48 = vpop.permute.xlu0 %6622  ;;  %v6625_v60 = vpop.permute.xlu1 %6624 }
 0xe6f   :  { %v6628_v8 = vsel %vm6307_vm4, 0.0, %v6623_v48  ;;  %v6629_v57 = vsel %vm6307_vm4, 0.0, %v6625_v60 }
 0xe70   :  { %v6630_v34 = vmul.f32 %v14533_v45, %v6628_v8  ;;  %v6631_v49 = vmul.f32 %v14533_v45, %v6629_v57  ;;  %6716 = vmatpush1.bf16.msra.mxu0 %v6692_v46  ;;  %v9264_v46 = vld [vmem:[%s14718_s1] ss:$8 sps:$4 sm:$0xff]   ;;  %s9349_s1 = smov 28  }
 0xe71   :  { %6717 = vmatprep.subr.bf16.mxu0 %v15778_v32  ;;  %s8345_s12 = sld [smem:[%s15438_s0 + %s9349_s1]]  }
 0xe72   :  { %v6693_v29 = vpack.c.bf16 %v6631_v49, %v6630_v34  ;;  %v6633_v47 = vpop.permute.xlu0 %6632  ;;  %v6635_v63 = vpop.permute.xlu1 %6634 }
 0xe73   :  { %v6638_v2 = vsel %vm6313_vm6, 0.0, %v6633_v47  ;;  %v6639_v31 = vsel %vm6313_vm6, 0.0, %v6635_v63 }
 0xe74   :  { %v6640_v37 = vmul.f32 %v14550_v58, %v6638_v2  ;;  %v6641_v41 = vmul.f32 %v14550_v58, %v6639_v31  ;;  %6718 = vmatpush1.bf16.msra.mxu0 %v6693_v29 }
 0xe75   :  { %6719 = vmatprep.subr.bf16.mxu0 %v15778_v32 }
 0xe76   :  { %v6694_v43 = vpack.c.bf16 %v6641_v41, %v6640_v37  ;;  %v6643_v54 = vpop.permute.xlu0 %6642  ;;  %v6645_v40 = vpop.permute.xlu1 %6644 }
 0xe77   :  { %v6648_v15 = vsel %vm16571_vm1, 0.0, %v6643_v54  ;;  %v6649_v13 = vsel %vm16572_vm11, 0.0, %v6645_v40  ;;  %v9265_v40 = vld [vmem:[%s14815_s28 + $0x4] ss:$8 sps:$4 sm:$0xff]   ;;  %vm16579_vm1 = vmmov %vm16573_vm2 }
 0xe78   :  { %v6650_v10 = vmul.f32 %v14547_v59, %v6648_v15  ;;  %v6651_v6 = vmul.f32 %v14547_v59, %v6649_v13  ;;  %6720 = vmatpush1.bf16.msra.mxu0 %v6694_v43  ;;  %8742 = vmatprep.mubr.msk.bf16.mxu1 %vm16575_vm5, %v9265_v40  ;;  %v6932_v15 = vld [vmem:[%s8345_s12] sm:$0xff]  ;;  %v6933_v13 = vld [vmem:[%s8345_s12 + $0x8] sm:$0xff]  ;;  %vm16580_vm11 = vmmov %vm16575_vm5 }
 0xe79   :  { %6721 = vmatprep.subr.bf16.mxu0 %v15778_v32  ;;  %vm16583_vm5 = vmmov %vm16579_vm1 }
 0xe7a   :  { %v6695_v26 = vpack.c.bf16 %v6651_v6, %v6650_v10  ;;  %v6653_v39 = vpop.permute.xlu0 %6652  ;;  %v6655_v4 = vpop.permute.xlu1 %6654  ;;  %v6946_v10 = vld [vmem:[%s8346_s20] sm:$0xff]  ;;  %v6947_v6 = vld [vmem:[%s8346_s20 + $0x8] sm:$0xff]  ;;  %s9353_s20 = smov 35  }
 0xe7b   :  { %v6658_v44 = vsel %vm16573_vm2, %v6653_v39, 0.0  ;;  %v6659_v12 = vsel %vm16574_vm10, %v6655_v4, 0.0  ;;  %vm16581_vm2 = vmmov %vm16576_vm3  ;;  %s8352_s14 = sld [smem:[%s15438_s0 + %s9353_s20]]  }
 0xe7c   :  { %6722 = vmatpush1.bf16.msra.mxu0 %v6695_v26  ;;  %v6660_v52 = vmul.f32 %v14562_v5, %v6658_v44  ;;  %v6661_v24 = vmul.f32 %v14562_v5, %v6659_v12  ;;  %vm16582_vm10 = vmmov %vm16581_vm2 }
 0xe7d   :  { %6723 = vmatprep.subr.bf16.mxu0 %v15778_v32 }
 0xe7e   :  { %v6663_v55 = vpop.permute.xlu0 %6662  ;;  %v6665_v21 = vpop.permute.xlu1 %6664  ;;  %v6697_v18 = vpack.c.bf16 %v6661_v24, %v6660_v52 }
 0xe7f   :  { %v6668_v0 = vsel %vm6329_vm0, %v6663_v55, 0.0  ;;  %v6669_v11 = vsel %vm6329_vm0, %v6665_v21, 0.0 }
 0xe80   :  { %6724 = vmatpush1.bf16.msra.mxu0 %v6696_v17  ;;  %v6670_v33 = vmul.f32 %v14571_v19, %v6668_v0  ;;  %v6671_v20 = vmul.f32 %v14571_v19, %v6669_v11 }
 0xe81   :  { %6725 = vmatprep.subr.bf16.mxu0 %v15778_v32 }
 0xe82   :  { %v6673_v36 = vpop.permute.xlu0 %6672  ;;  %v6675_v51 = vpop.permute.xlu1 %6674  ;;  %v6698_v53 = vpack.c.bf16 %v6671_v20, %v6670_v33 }
 0xe83   :  { %v6678_v22 = vsel %vm6335_vm12, %v6673_v36, 0.0  ;;  %v6679_v56 = vsel %vm6335_vm12, %v6675_v51, 0.0 }
 0xe84   :  { %6726 = vmatpush1.bf16.msra.mxu0 %v6697_v18  ;;  %v6680_v38 = vmul.f32 %v14579_v9, %v6678_v22  ;;  %v6681_v30 = vmul.f32 %v14579_v9, %v6679_v56 }
 0xe85   :  { %6727 = vmatprep.subr.bf16.mxu0 %v15778_v32 }
 0xe86   :  { %v6683_v62 = vpop.permute.xlu0 %6682  ;;  %v6685_v61 = vpop.permute.xlu1 %6684  ;;  %v6699_v35 = vpack.c.bf16 %v6681_v30, %v6680_v38 }
 0xe87   :  { %v6688_v50 = vsel %vm6341_vm13, %v6683_v62, 0.0  ;;  %v6689_v25 = vsel %vm6341_vm13, %v6685_v61, 0.0 }
 0xe88   :  { %6728 = vmatpush1.bf16.msra.mxu0 %v6698_v53  ;;  %v6690_v16 = vmul.f32 %v14575_v14, %v6688_v50  ;;  %v6691_v7 = vmul.f32 %v14575_v14, %v6689_v25 }
 0xe89   :  { %6729 = vmatprep.subr.bf16.mxu0 %v15778_v32 }
 0xe8a   :  { %v6700_v3 = vpack.c.bf16 %v6691_v7, %v6690_v16 }
 0xe8c   :  { %6730 = vmatpush1.bf16.msra.mxu0 %v6699_v35 }
 0xe8d   :  { %6731 = vmatprep.subr.bf16.mxu0 %v15778_v32 }
 0xe90   :  { %6732 = vmatpush1.bf16.msra.mxu0 %v6700_v3 }
 0xe91   :  { %7069 = vmatprep.subr.bf16.mxu0 %v15778_v32 }
 0xe93   :  { %6748 = vmatmul.mubr.bf16.vlgmr.msra.gmra.mrb[68].mxu0 %v9264_v46 }
 0xe97   :  { %v6761_v48 = vpop.permute.xlu0 %6760  ;;  %v6766_v60 = vpop.permute.xlu1 %6765 }
 0xe9b   :  { %v6775_v49 = vpop.permute.xlu0 %6774  ;;  %v6780_v31 = vpop.permute.xlu1 %6779 }
 0xf66   :  { %v6749_v8 = vpop.f32.mrb[68].mxu0 }
 0xf67   :  { %v6768_v57 = vmul.f32 %v6761_v48, %v6749_v8  ;;  %v6751_v34 = vpop.f32.mrb[69].mxu0 }
 0xf68   :  { %v6752_v29 = vpop.f32.mrb[70].mxu0 }
 0xf69   :  { %v6782_v47 = vadd.f32 %v6775_v49, %v6768_v57  ;;  %v6769_v63 = vmul.f32 %v6766_v60, %v6752_v29  ;;  %v6754_v2 = vpop.f32.mrb[71].mxu0 }
 0xf6b   :  { %v14784_v37 = vmax.f32 %v6782_v47, 0.0  ;;  %v6783_v41 = vadd.f32 %v6780_v31, %v6769_v63 }
 0xf6d   :  { %v14786_v43 = vmax.f32 %v6783_v41, 0.0  ;;  %6788 = vrot.lane.b32.xlu0 %v14784_v37, %s9322_s24 }
 0xf6f   :  { %6790 = vrot.lane.b32.xlu1 %v14786_v43, %s9322_s24  ;;  %v6872_v54 = vpack.c.bf16 %v14786_v43, %v14784_v37 }
 0xf71   :  { %6798 = vrot.lane.b32.xlu0 %v14784_v37, %s9323_s30 }
 0xf73   :  { %6800 = vrot.lane.b32.xlu1 %v14786_v43, %s9323_s30 }
 0xf75   :  { %6808 = vrot.lane.b32.xlu0 %v14784_v37, %s9320_s15 }
 0xf77   :  { %6810 = vrot.lane.b32.xlu1 %v14786_v43, %s9320_s15 }
 0xf79   :  { %6818 = vrot.lane.b32.xlu0 %v14784_v37, %s9308_s9 }
 0xf7b   :  { %6820 = vrot.lane.b32.xlu1 %v14786_v43, %s9308_s9 }
 0xf7d   :  { %6828 = vrot.lane.b32.xlu0 %v14784_v37, %s9309_s10 }
 0xf7f   :  { %6830 = vrot.lane.b32.xlu1 %v14786_v43, %s9309_s10 }
 0xf81   :  { %6838 = vrot.lane.b32.xlu0 %v14784_v37, %s9337_s19 }
 0xf83   :  { %6840 = vrot.lane.b32.xlu1 %v14786_v43, %s9337_s19 }
 0xf85   :  { %6848 = vrot.lane.b32.xlu0 %v14784_v37, %s9341_s23 }
 0xf87   :  { %6850 = vrot.lane.b32.xlu1 %v14786_v43, %s9341_s23 }
 0xf89   :  { %6858 = vrot.lane.b32.xlu0 %v14784_v37, %s9340_s16 }
 0xf8b   :  { %6860 = vrot.lane.b32.xlu1 %v14786_v43, %s9340_s16 }
 0xf8d   :  { %6936 = vperm.xlu0 %9038, %v6932_v15  }
 0xf8f   :  { %6941 = vperm.xlu1 %9039, %v6933_v13  }
 0xf91   :  { %6950 = vperm.xlu0 %9038, %v6946_v10  }
 0xf93   :  { %6955 = vperm.xlu1 %9039, %v6947_v6  }
 0xfdf   :  { %v6789_v26 = vpop.permute.xlu0 %6788 }
 0xfe0   :  { %v6794_v39 = vsel %vm6301_vm8, 0.0, %v6789_v26 }
 0xfe1   :  { %v6791_v4 = vpop.permute.xlu1 %6790  ;;  %v6796_v12 = vmul.f32 %v14536_v28, %v6794_v39 }
 0xfe2   :  { %v6795_v44 = vsel %vm6301_vm8, 0.0, %v6791_v4 }
 0xfe3   :  { %v6797_v52 = vmul.f32 %v14536_v28, %v6795_v44  ;;  %v6799_v24 = vpop.permute.xlu0 %6798 }
 0xfe4   :  { %v6804_v55 = vsel %vm6307_vm4, 0.0, %v6799_v24 }
 0xfe5   :  { %v6868_v21 = vpack.c.bf16 %v6797_v52, %v6796_v12  ;;  %v6801_v17 = vpop.permute.xlu1 %6800  ;;  %v6806_v11 = vmul.f32 %v14533_v45, %v6804_v55  ;;  %v9267_v52 = vld [vmem:[%s14815_s28] ss:$8 sps:$4 sm:$0xff]   ;;  %s9365_s28 = smov 44  }
 0xfe6   :  { %v6805_v0 = vsel %vm6307_vm4, 0.0, %v6801_v17 }
 0xfe7   :  { %v6807_v18 = vmul.f32 %v14533_v45, %v6805_v0  ;;  %v6809_v33 = vpop.permute.xlu0 %6808  ;;  %6892 = vmatpush1.bf16.msra.mxu1 %v6868_v21 }
 0xfe8   :  { %v6814_v20 = vsel %vm6313_vm6, 0.0, %v6809_v33  ;;  %6893 = vmatprep.subr.bf16.mxu1 %v15778_v32 }
 0xfe9   :  { %v6869_v36 = vpack.c.bf16 %v6807_v18, %v6806_v11  ;;  %v6811_v51 = vpop.permute.xlu1 %6810  ;;  %v6816_v56 = vmul.f32 %v14550_v58, %v6814_v20 }
 0xfea   :  { %v6815_v22 = vsel %vm6313_vm6, 0.0, %v6811_v51 }
 0xfeb   :  { %v6817_v53 = vmul.f32 %v14550_v58, %v6815_v22  ;;  %v6819_v38 = vpop.permute.xlu0 %6818  ;;  %6894 = vmatpush1.bf16.msra.mxu1 %v6869_v36 }
 0xfec   :  { %v6824_v30 = vsel %vm16576_vm3, 0.0, %v6819_v38  ;;  %6895 = vmatprep.subr.bf16.mxu1 %v15778_v32  ;;  %vm16584_vm3 = vmmov %vm16579_vm1 }
 0xfed   :  { %v6870_v62 = vpack.c.bf16 %v6817_v53, %v6816_v56  ;;  %v6821_v61 = vpop.permute.xlu1 %6820  ;;  %v6826_v25 = vmul.f32 %v14547_v59, %v6824_v30 }
 0xfee   :  { %v6825_v50 = vsel %vm16577_vm9, 0.0, %v6821_v61  ;;  %v7124_v61 = vld [vmem:[%s8349_s13] sm:$0xff]  ;;  %vm16585_vm9 = vmmov %vm16580_vm11 }
 0xfef   :  { %v6827_v35 = vmul.f32 %v14547_v59, %v6825_v50  ;;  %v6829_v16 = vpop.permute.xlu0 %6828  ;;  %6896 = vmatpush1.bf16.msra.mxu1 %v6870_v62  ;;  %v7111_v62 = vld [vmem:[%s8348_s2 + $0x8] sm:$0xff] }
 0xff0   :  { %6897 = vmatprep.subr.bf16.mxu1 %v15778_v32  ;;  %v6834_v60 = vsel %vm16579_vm1, %v6829_v16, 0.0  ;;  %v7125_v50 = vld [vmem:[%s8349_s13 + $0x8] sm:$0xff] }
 0xff1   :  { %v6871_v7 = vpack.c.bf16 %v6827_v35, %v6826_v25  ;;  %v6831_v3 = vpop.permute.xlu1 %6830  ;;  %v6836_v49 = vmul.f32 %v14562_v5, %v6834_v60 }
 0xff2   :  { %v6835_v46 = vsel %vm16578_vm7, %v6831_v3, 0.0  ;;  %vm16589_vm7 = vmmov %vm16579_vm1 }
 0xff3   :  { %v6839_v48 = vpop.permute.xlu0 %6838  ;;  %6898 = vmatpush1.bf16.msra.mxu1 %v6871_v7  ;;  %v6837_v8 = vmul.f32 %v14562_v5, %v6835_v46 }
 0xff4   :  { %6899 = vmatprep.subr.bf16.mxu1 %v15778_v32  ;;  %v6844_v47 = vsel %vm6329_vm0, %v6839_v48, 0.0 }
 0xff5   :  { %v6841_v57 = vpop.permute.xlu1 %6840  ;;  %v6873_v63 = vpack.c.bf16 %v6837_v8, %v6836_v49  ;;  %v6846_v40 = vmul.f32 %v14571_v19, %v6844_v47 }
 0xff6   :  { %v6845_v34 = vsel %vm6329_vm0, %v6841_v57, 0.0 }
 0xff7   :  { %v6849_v29 = vpop.permute.xlu0 %6848  ;;  %6900 = vmatpush1.bf16.msra.mxu1 %v6872_v54  ;;  %v6847_v2 = vmul.f32 %v14571_v19, %v6845_v34 }
 0xff8   :  { %6901 = vmatprep.subr.bf16.mxu1 %v15778_v32  ;;  %v6854_v15 = vsel %vm6335_vm12, %v6849_v29, 0.0 }
 0xff9   :  { %v6851_v31 = vpop.permute.xlu1 %6850  ;;  %v6874_v37 = vpack.c.bf16 %v6847_v2, %v6846_v40  ;;  %v6856_v6 = vmul.f32 %v14579_v9, %v6854_v15 }
 0xffa   :  { %v6855_v41 = vsel %vm6335_vm12, %v6851_v31, 0.0 }
 0xffb   :  { %6902 = vmatpush1.bf16.msra.mxu1 %v6873_v63  ;;  %v6857_v43 = vmul.f32 %v14579_v9, %v6855_v41  ;;  %v6859_v54 = vpop.permute.xlu0 %6858 }
 0xffc   :  { %6903 = vmatprep.subr.bf16.mxu1 %v15778_v32  ;;  %v6864_v26 = vsel %vm6341_vm13, %v6859_v54, 0.0 }
 0xffd   :  { %v6861_v13 = vpop.permute.xlu1 %6860  ;;  %v6875_v39 = vpack.c.bf16 %v6857_v43, %v6856_v6  ;;  %v6866_v44 = vmul.f32 %v14575_v14, %v6864_v26 }
 0xffe   :  { %v6865_v10 = vsel %vm6341_vm13, %v6861_v13, 0.0 }
 0xfff   :  { %6904 = vmatpush1.bf16.msra.mxu1 %v6874_v37  ;;  %v6867_v4 = vmul.f32 %v14575_v14, %v6865_v10 }
0x1000   :  { %6905 = vmatprep.subr.bf16.mxu1 %v15778_v32 }
0x1001   :  { %v6876_v12 = vpack.c.bf16 %v6867_v4, %v6866_v44 }
0x1003   :  { %6906 = vmatpush1.bf16.msra.mxu1 %v6875_v39 }
0x1004   :  { %6907 = vmatprep.subr.bf16.mxu1 %v15778_v32 }
0x1007   :  { %6908 = vmatpush1.bf16.msra.mxu1 %v6876_v12 }
0x1008   :  { %7245 = vmatprep.subr.bf16.mxu1 %v15778_v32 }
0x100a   :  { %6924 = vmatmul.mubr.bf16.vlgmr.msra.gmra.mrb[68].mxu1 %v9267_v52 }
0x100c   :  { %v6937_v24 = vpop.permute.xlu0 %6936 }
0x100e   :  { %v6942_v55 = vpop.permute.xlu1 %6941 }
0x1010   :  { %v6951_v11 = vpop.permute.xlu0 %6950 }
0x1012   :  { %v6956_v51 = vpop.permute.xlu1 %6955 }
0x10dd   :  { %v6925_v21 = vpop.f32.mrb[68].mxu1 }
0x10de   :  { %v6944_v17 = vmul.f32 %v6937_v24, %v6925_v21  ;;  %v6927_v0 = vpop.f32.mrb[69].mxu1 }
0x10df   :  { %v6928_v18 = vpop.f32.mrb[70].mxu1 }
0x10e0   :  { %v6958_v33 = vadd.f32 %v6951_v11, %v6944_v17  ;;  %v6945_v20 = vmul.f32 %v6942_v55, %v6928_v18  ;;  %v6930_v36 = vpop.f32.mrb[71].mxu1 }
0x10e2   :  { %v6960_v22 = vadd.f32 %v6958_v33, %v14691_v42  ;;  %v6959_v56 = vadd.f32 %v6956_v51, %v6945_v20  ;;  %v9268_v42 = vld [vmem:[%s14911_s27 + $0x4] ss:$8 sps:$4 sm:$0xff]  }
0x10e3   :  { %8745 = vmatprep.mubr.msk.bf16.mxu0 %vm16580_vm11, %v9268_v42 }
0x10e4   :  { %v14881_v53 = vmax.f32 %v6960_v22, 0.0  ;;  %v6961_v38 = vadd.f32 %v6959_v56, %v14693_v27  ;;  %v7110_v27 = vld [vmem:[%s8348_s2] sm:$0xff]  ;;  %s9357_s2 = smov 38  }
0x10e5   :  { %s8355_s13 = sld [smem:[%s15438_s0 + %s9357_s2]]  }
0x10e6   :  { %v14884_v30 = vmax.f32 %v6961_v38, 0.0  ;;  %6966 = vrot.lane.b32.xlu0 %v14881_v53, %s9322_s24  ;;  %s8361_s2 = sld [smem:[%s15438_s0 + %s9365_s28]]  }
0x10e8   :  { %6968 = vrot.lane.b32.xlu1 %v14884_v30, %s9322_s24  ;;  %v7050_v17 = vpack.c.bf16 %v14884_v30, %v14881_v53 }
0x10ea   :  { %6976 = vrot.lane.b32.xlu0 %v14881_v53, %s9323_s30 }
0x10ec   :  { %6978 = vrot.lane.b32.xlu1 %v14884_v30, %s9323_s30 }
0x10ee   :  { %6986 = vrot.lane.b32.xlu0 %v14881_v53, %s9320_s15 }
0x10f0   :  { %6988 = vrot.lane.b32.xlu1 %v14884_v30, %s9320_s15 }
0x10f2   :  { %6996 = vrot.lane.b32.xlu0 %v14881_v53, %s9308_s9 }
0x10f4   :  { %6998 = vrot.lane.b32.xlu1 %v14884_v30, %s9308_s9 }
0x10f6   :  { %7006 = vrot.lane.b32.xlu0 %v14881_v53, %s9309_s10 }
0x10f8   :  { %7008 = vrot.lane.b32.xlu1 %v14884_v30, %s9309_s10 }
0x10fa   :  { %7016 = vrot.lane.b32.xlu0 %v14881_v53, %s9337_s19 }
0x10fc   :  { %7018 = vrot.lane.b32.xlu1 %v14884_v30, %s9337_s19 }
0x10fe   :  { %7026 = vrot.lane.b32.xlu0 %v14881_v53, %s9341_s23 }
0x1100   :  { %7028 = vrot.lane.b32.xlu1 %v14884_v30, %s9341_s23 }
0x1102   :  { %7036 = vrot.lane.b32.xlu0 %v14881_v53, %s9340_s16 }
0x1104   :  { %7038 = vrot.lane.b32.xlu1 %v14884_v30, %s9340_s16 }
0x1106   :  { %7114 = vperm.xlu0 %9038, %v7110_v27  }
0x1108   :  { %7119 = vperm.xlu1 %9039, %v7111_v62  }
0x110a   :  { %7128 = vperm.xlu0 %9038, %v7124_v61  }
0x110c   :  { %7133 = vperm.xlu1 %9039, %v7125_v50  }
0x1158   :  { %v6967_v25 = vpop.permute.xlu0 %6966 }
0x1159   :  { %v6972_v35 = vsel %vm6301_vm8, 0.0, %v6967_v25 }
0x115a   :  { %v6969_v16 = vpop.permute.xlu1 %6968  ;;  %v6974_v3 = vmul.f32 %v14536_v28, %v6972_v35 }
0x115b   :  { %v6973_v7 = vsel %vm6301_vm8, 0.0, %v6969_v16 }
0x115c   :  { %v6975_v46 = vmul.f32 %v14536_v28, %v6973_v7  ;;  %v6977_v48 = vpop.permute.xlu0 %6976 }
0x115d   :  { %v6982_v60 = vsel %vm6307_vm4, 0.0, %v6977_v48  ;;  %v9270_v48 = vld [vmem:[%s14911_s27] ss:$8 sps:$4 sm:$0xff]  }
0x115e   :  { %v7046_v8 = vpack.c.bf16 %v6975_v46, %v6974_v3  ;;  %v6979_v57 = vpop.permute.xlu1 %6978  ;;  %v6984_v49 = vmul.f32 %v14533_v45, %v6982_v60 }
0x115f   :  { %v6983_v34 = vsel %vm6307_vm4, 0.0, %v6979_v57 }
0x1160   :  { %v6985_v29 = vmul.f32 %v14533_v45, %v6983_v34  ;;  %v6987_v47 = vpop.permute.xlu0 %6986  ;;  %7070 = vmatpush1.bf16.msra.mxu0 %v7046_v8 }
0x1161   :  { %v6992_v63 = vsel %vm6313_vm6, 0.0, %v6987_v47  ;;  %7071 = vmatprep.subr.bf16.mxu0 %v15778_v32 }
0x1162   :  { %v7047_v2 = vpack.c.bf16 %v6985_v29, %v6984_v49  ;;  %v6989_v31 = vpop.permute.xlu1 %6988  ;;  %v6994_v40 = vmul.f32 %v14550_v58, %v6992_v63 }
0x1163   :  { %v6993_v41 = vsel %vm6313_vm6, 0.0, %v6989_v31 }
0x1164   :  { %v6995_v15 = vmul.f32 %v14550_v58, %v6993_v41  ;;  %v6997_v37 = vpop.permute.xlu0 %6996  ;;  %7072 = vmatpush1.bf16.msra.mxu0 %v7047_v2 }
0x1165   :  { %v7002_v43 = vsel %vm16581_vm2, 0.0, %v6997_v37  ;;  %7073 = vmatprep.subr.bf16.mxu0 %v15778_v32 }
0x1166   :  { %v7048_v54 = vpack.c.bf16 %v6995_v15, %v6994_v40  ;;  %v6999_v13 = vpop.permute.xlu1 %6998  ;;  %v7004_v6 = vmul.f32 %v14547_v59, %v7002_v43 }
0x1167   :  { %v7003_v10 = vsel %vm16582_vm10, 0.0, %v6999_v13  ;;  %vm7498_vm10 = vcmask 31744  }
0x1168   :  { %v7005_v26 = vmul.f32 %v14547_v59, %v7003_v10  ;;  %v7007_v39 = vpop.permute.xlu0 %7006  ;;  %7074 = vmatpush1.bf16.msra.mxu0 %v7048_v54 }
0x1169   :  { %7075 = vmatprep.subr.bf16.mxu0 %v15778_v32  ;;  %v7012_v24 = vsel %vm16584_vm3, %v7007_v39, 0.0 }
0x116a   :  { %v7049_v4 = vpack.c.bf16 %v7005_v26, %v7004_v6  ;;  %v7009_v44 = vpop.permute.xlu1 %7008  ;;  %v7014_v11 = vmul.f32 %v14562_v5, %v7012_v24  ;;  %v7300_v6 = vld [vmem:[%s8352_s14] sm:$0xff]  ;;  %v7301_v26 = vld [vmem:[%s8352_s14 + $0x8] sm:$0xff] }
0x116b   :  { %v7013_v12 = vsel %vm16583_vm5, %v7009_v44, 0.0 }
0x116c   :  { %v7017_v52 = vpop.permute.xlu0 %7016  ;;  %7076 = vmatpush1.bf16.msra.mxu0 %v7049_v4  ;;  %v7015_v55 = vmul.f32 %v14562_v5, %v7013_v12 }
0x116d   :  { %7077 = vmatprep.subr.bf16.mxu0 %v15778_v32  ;;  %v7022_v33 = vsel %vm6329_vm0, %v7017_v52, 0.0 }
0x116e   :  { %v7019_v21 = vpop.permute.xlu1 %7018  ;;  %v7051_v20 = vpack.c.bf16 %v7015_v55, %v7014_v11  ;;  %v7024_v56 = vmul.f32 %v14571_v19, %v7022_v33 }
0x116f   :  { %v7023_v0 = vsel %vm6329_vm0, %v7019_v21, 0.0 }
0x1170   :  { %v7027_v18 = vpop.permute.xlu0 %7026  ;;  %7078 = vmatpush1.bf16.msra.mxu0 %v7050_v17  ;;  %v7025_v36 = vmul.f32 %v14571_v19, %v7023_v0 }
0x1171   :  { %7079 = vmatprep.subr.bf16.mxu0 %v15778_v32  ;;  %v7032_v38 = vsel %vm6335_vm12, %v7027_v18, 0.0 }
0x1172   :  { %v7029_v51 = vpop.permute.xlu1 %7028  ;;  %v7052_v42 = vpack.c.bf16 %v7025_v36, %v7024_v56  ;;  %v7034_v25 = vmul.f32 %v14579_v9, %v7032_v38 }
0x1173   :  { %v7033_v22 = vsel %vm6335_vm12, %v7029_v51, 0.0 }
0x1174   :  { %7080 = vmatpush1.bf16.msra.mxu0 %v7051_v20  ;;  %v7035_v27 = vmul.f32 %v14579_v9, %v7033_v22  ;;  %v7037_v62 = vpop.permute.xlu0 %7036 }
0x1175   :  { %7081 = vmatprep.subr.bf16.mxu0 %v15778_v32  ;;  %v7042_v35 = vsel %vm6341_vm13, %v7037_v62, 0.0 }
0x1176   :  { %v7039_v61 = vpop.permute.xlu1 %7038  ;;  %v7053_v16 = vpack.c.bf16 %v7035_v27, %v7034_v25  ;;  %v7044_v3 = vmul.f32 %v14575_v14, %v7042_v35 }
0x1177   :  { %v7043_v50 = vsel %vm6341_vm13, %v7039_v61, 0.0 }
0x1178   :  { %7082 = vmatpush1.bf16.msra.mxu0 %v7052_v42  ;;  %v7045_v7 = vmul.f32 %v14575_v14, %v7043_v50 }
0x1179   :  { %7083 = vmatprep.subr.bf16.mxu0 %v15778_v32 }
0x117a   :  { %v7054_v46 = vpack.c.bf16 %v7045_v7, %v7044_v3 }
0x117c   :  { %7084 = vmatpush1.bf16.msra.mxu0 %v7053_v16 }
0x117d   :  { %7085 = vmatprep.subr.bf16.mxu0 %v15778_v32 }
0x1180   :  { %7086 = vmatpush1.bf16.msra.mxu0 %v7054_v46 }
0x1181   :  { %8899 = vmatprep.subr.bf16.mxu0 %v16487_v1 }
0x1183   :  { %7102 = vmatmul.mubr.bf16.vlgmr.msra.gmra.mrb[72].mxu0 %v9270_v48 }
0x1184   :  { %8907 = vmatprep.mubr.msk.bf16.mxu0 %vm9339_vm15, %v16487_v1 }
0x1185   :  { %v7115_v60 = vpop.permute.xlu0 %7114 }
0x1187   :  { %v7120_v8 = vpop.permute.xlu1 %7119 }
0x1189   :  { %v7129_v29 = vpop.permute.xlu0 %7128 }
0x118b   :  { %v7134_v41 = vpop.permute.xlu1 %7133 }
0x1256   :  { %v7103_v57 = vpop.f32.mrb[72].mxu0 }
0x1257   :  { %v7122_v34 = vmul.f32 %v7115_v60, %v7103_v57  ;;  %v7105_v49 = vpop.f32.mrb[73].mxu0 }
0x1258   :  { %v7106_v47 = vpop.f32.mrb[74].mxu0 }
0x1259   :  { %v7136_v63 = vadd.f32 %v7129_v29, %v7122_v34  ;;  %v7123_v2 = vmul.f32 %v7120_v8, %v7106_v47  ;;  %v7108_v31 = vpop.f32.mrb[75].mxu0 }
0x125b   :  { %v14979_v40 = vmax.f32 %v7136_v63, 0.0  ;;  %v7137_v15 = vadd.f32 %v7134_v41, %v7123_v2 }
0x125d   :  { %v14981_v37 = vmax.f32 %v7137_v15, 0.0  ;;  %7142 = vrot.lane.b32.xlu0 %v14979_v40, %s9322_s24 }
0x125f   :  { %7144 = vrot.lane.b32.xlu1 %v14981_v37, %s9322_s24  ;;  %v7226_v43 = vpack.c.bf16 %v14981_v37, %v14979_v40  ;;  %s9352_s24 = smov 34  }
0x1260   :  { %s8351_s18 = sld [smem:[%s15438_s0 + %s9352_s24]]  }
0x1261   :  { %7152 = vrot.lane.b32.xlu0 %v14979_v40, %s9323_s30 }
0x1263   :  { %7154 = vrot.lane.b32.xlu1 %v14981_v37, %s9323_s30  ;;  %s8356_s30 = sld [smem:[%s15438_s0 + %s9359_s8]]  }
0x1265   :  { %7162 = vrot.lane.b32.xlu0 %v14979_v40, %s9320_s15 }
0x1266   :  { %v7286_v13 = vld [vmem:[%s8351_s18] sm:$0xff]  ;;  %v7287_v10 = vld [vmem:[%s8351_s18 + $0x8] sm:$0xff]  ;;  %s9361_s18 = smov 40  }
0x1267   :  { %7164 = vrot.lane.b32.xlu1 %v14981_v37, %s9320_s15  ;;  %s15011_s15 = sld [smem:[%s15438_s0 + %s9306_s7]]   ;;  %s9354_s7 = smov 36  }
0x1268   :  { %s15034_s27 = sld [smem:[%s15438_s0 + %s9354_s7]]  }
0x1269   :  { %7172 = vrot.lane.b32.xlu0 %v14979_v40, %s9308_s9 }
0x126b   :  { %7174 = vrot.lane.b32.xlu1 %v14981_v37, %s9308_s9 }
0x126d   :  { %7182 = vrot.lane.b32.xlu0 %v14979_v40, %s9309_s10  ;;  %v9271_v54 = vld [vmem:[%s15011_s15 + $0x4] ss:$8 sps:$4 sm:$0xff]  }
0x126e   :  { %8748 = vmatprep.mubr.msk.bf16.mxu1 %vm16585_vm9, %v9271_v54  ;;  %v15037_v39 = vld [vmem:[%s15034_s27] sm:$0xff]  }
0x126f   :  { %7184 = vrot.lane.b32.xlu1 %v14981_v37, %s9309_s10  ;;  %8900 = vmatpush3.bf16.msra.mxu0 %v15037_v39 }
0x1270   :  { %8901 = vmatprep.subr.bf16.mxu0 %v16487_v1 }
0x1271   :  { %7192 = vrot.lane.b32.xlu0 %v14979_v40, %s9337_s19 }
0x1273   :  { %7194 = vrot.lane.b32.xlu1 %v14981_v37, %s9337_s19 }
0x1275   :  { %7202 = vrot.lane.b32.xlu0 %v14979_v40, %s9341_s23 }
0x1277   :  { %7204 = vrot.lane.b32.xlu1 %v14981_v37, %s9341_s23 }
0x1279   :  { %7212 = vrot.lane.b32.xlu0 %v14979_v40, %s9340_s16 }
0x127b   :  { %7214 = vrot.lane.b32.xlu1 %v14981_v37, %s9340_s16 }
0x127d   :  { %7290 = vperm.xlu0 %9038, %v7286_v13  }
0x127f   :  { %7295 = vperm.xlu1 %9039, %v7287_v10  }
0x1281   :  { %7304 = vperm.xlu0 %9038, %v7300_v6  }
0x1283   :  { %7309 = vperm.xlu1 %9039, %v7301_v26  }
0x12cf   :  { %v7143_v4 = vpop.permute.xlu0 %7142 }
0x12d0   :  { %v7148_v44 = vsel %vm6301_vm8, 0.0, %v7143_v4  ;;  %v9273_v4 = vld [vmem:[%s15011_s15] ss:$8 sps:$4 sm:$0xff]  }
0x12d1   :  { %v7145_v12 = vpop.permute.xlu1 %7144  ;;  %v7150_v24 = vmul.f32 %v14536_v28, %v7148_v44  ;;  %v9276_v44 = vld [vmem:[%s15034_s27 + $0x10] sm:$0xff]  }
0x12d2   :  { %v7149_v52 = vsel %vm6301_vm8, 0.0, %v7145_v12  ;;  %vm16587_vm8 = vmmov %vm16581_vm2  ;;  %v9277_v12 = vld [vmem:[%s15034_s27 + $0x18] sm:$0xff]  }
0x12d3   :  { %v7151_v55 = vmul.f32 %v14536_v28, %v7149_v52  ;;  %v7153_v21 = vpop.permute.xlu0 %7152 }
0x12d4   :  { %v7158_v17 = vsel %vm6307_vm4, 0.0, %v7153_v21 }
0x12d5   :  { %v7222_v0 = vpack.c.bf16 %v7151_v55, %v7150_v24  ;;  %v7155_v11 = vpop.permute.xlu1 %7154  ;;  %v7160_v33 = vmul.f32 %v14533_v45, %v7158_v17 }
0x12d6   :  { %v7159_v18 = vsel %vm6307_vm4, 0.0, %v7155_v11  ;;  %vm16586_vm4 = vmmov %vm16581_vm2  ;;  %vm7487_vm2 = vcmask 39936  }
0x12d7   :  { %v7161_v20 = vmul.f32 %v14533_v45, %v7159_v18  ;;  %v7163_v36 = vpop.permute.xlu0 %7162  ;;  %7246 = vmatpush1.bf16.msra.mxu1 %v7222_v0 }
0x12d8   :  { %v7168_v51 = vsel %vm6313_vm6, 0.0, %v7163_v36  ;;  %7247 = vmatprep.subr.bf16.mxu1 %v15778_v32 }
0x12d9   :  { %v7223_v22 = vpack.c.bf16 %v7161_v20, %v7160_v33  ;;  %v7165_v56 = vpop.permute.xlu1 %7164  ;;  %v7170_v38 = vmul.f32 %v14550_v58, %v7168_v51 }
0x12da   :  { %v7169_v28 = vsel %vm6313_vm6, 0.0, %v7165_v56  ;;  %vm16588_vm6 = vmmov %vm16579_vm1 }
0x12db   :  { %v7171_v42 = vmul.f32 %v14550_v58, %v7169_v28  ;;  %v7173_v27 = vpop.permute.xlu0 %7172  ;;  %7248 = vmatpush1.bf16.msra.mxu1 %v7223_v22 }
0x12dc   :  { %v7178_v62 = vsel %vm16586_vm4, 0.0, %v7173_v27  ;;  %7249 = vmatprep.subr.bf16.mxu1 %v15778_v32 }
0x12dd   :  { %v7224_v45 = vpack.c.bf16 %v7171_v42, %v7170_v38  ;;  %v7175_v61 = vpop.permute.xlu1 %7174  ;;  %v7180_v25 = vmul.f32 %v14547_v59, %v7178_v62 }
0x12de   :  { %v7179_v50 = vsel %vm16587_vm8, 0.0, %v7175_v61  ;;  %vm16597_vm8 = vmmov %vm16586_vm4 }
0x12df   :  { %v7181_v35 = vmul.f32 %v14547_v59, %v7179_v50  ;;  %v7183_v16 = vpop.permute.xlu0 %7182  ;;  %7250 = vmatpush1.bf16.msra.mxu1 %v7224_v45 }
0x12e0   :  { %7251 = vmatprep.subr.bf16.mxu1 %v15778_v32  ;;  %v7188_v48 = vsel %vm16589_vm7, %v7183_v16, 0.0 }
0x12e1   :  { %v7225_v7 = vpack.c.bf16 %v7181_v35, %v7180_v25  ;;  %v7185_v58 = vpop.permute.xlu1 %7184  ;;  %v7190_v59 = vmul.f32 %v14562_v5, %v7188_v48  ;;  %v7681_v48 = vld [vmem:[%s8356_s30] sm:$0xff] }
0x12e2   :  { %v7189_v3 = vsel %vm16588_vm6, %v7185_v58, 0.0  ;;  %vm16598_vm6 = vcmask 252928  }
0x12e3   :  { %v7193_v46 = vpop.permute.xlu0 %7192  ;;  %7252 = vmatpush1.bf16.msra.mxu1 %v7225_v7  ;;  %v7191_v60 = vmul.f32 %v14562_v5, %v7189_v3  ;;  %v7653_v3 = vld [vmem:[%s8355_s13] sm:$0xff] }
0x12e4   :  { %7253 = vmatprep.subr.bf16.mxu1 %v15778_v32  ;;  %v7198_v49 = vsel %vm6329_vm0, %v7193_v46, 0.0  ;;  %v7654_v46 = vld [vmem:[%s8355_s13 + $0x8] sm:$0xff] }
0x12e5   :  { %v7195_v8 = vpop.permute.xlu1 %7194  ;;  %v7227_v29 = vpack.c.bf16 %v7191_v60, %v7190_v59  ;;  %v7200_v31 = vmul.f32 %v14571_v19, %v7198_v49  ;;  %v7682_v60 = vld [vmem:[%s8356_s30 + $0x8] sm:$0xff]  ;;  %v7683_v59 = vld [vmem:[%s8356_s30 + $0x10] sm:$0xff]  ;;  %v7453_v49 = vshra.s32 %v16557_v23, 2 }
0x12e6   :  { %v7199_v57 = vsel %vm6329_vm0, %v7195_v8, 0.0  ;;  %vm16590_vm0 = vmmov %vm16585_vm9  ;;  %v7655_v8 = vld [vmem:[%s8355_s13 + $0x10] sm:$0xff]  ;;  %vm7509_vm9 = vcmask 23552  }
0x12e7   :  { %v7203_v34 = vpop.permute.xlu0 %7202  ;;  %7254 = vmatpush1.bf16.msra.mxu1 %v7226_v43  ;;  %v7201_v47 = vmul.f32 %v14571_v19, %v7199_v57  ;;  %v7656_v57 = vld [vmem:[%s8355_s13 + $0x18] sm:$0xff] }
0x12e8   :  { %7255 = vmatprep.subr.bf16.mxu1 %v15778_v32  ;;  %v7208_v5 = vsel %vm6335_vm12, %v7203_v34, 0.0  ;;  %v7684_v34 = vld [vmem:[%s8356_s30 + $0x18] sm:$0xff] }
0x12e9   :  { %v7205_v63 = vpop.permute.xlu1 %7204  ;;  %v7228_v41 = vpack.c.bf16 %v7201_v47, %v7200_v31  ;;  %v7210_v54 = vmul.f32 %v14579_v9, %v7208_v5  ;;  %v15158_v47 = vand.u32 3, %v7453_v49 }
0x12ea   :  { %v7209_v2 = vsel %vm6335_vm12, %v7205_v63, 0.0 }
0x12eb   :  { %7256 = vmatpush1.bf16.msra.mxu1 %v7227_v29  ;;  %v7211_v40 = vmul.f32 %v14579_v9, %v7209_v2  ;;  %v7213_v15 = vpop.permute.xlu0 %7212  ;;  %v9275_v9 = vld [vmem:[%s15034_s27 + $0x8] sm:$0xff]   ;;  %v7452_v29 = vand.u32 3, %v16557_v23  ;;  %vm7455_vm12 = vcmp.ge.s32.totalorder %v15158_v47, 1  ;;  %vm7470_vm7 = vcmp.le.s32.totalorder %v15158_v47, 2  ;;  %s9364_s27 = smov 43  }
0x12ec   :  { %7257 = vmatprep.subr.bf16.mxu1 %v15778_v32  ;;  %v7218_v19 = vsel %vm6341_vm13, %v7213_v15, 0.0  ;;  %8902 = vmatpush3.bf16.msra.mxu0 %v9275_v9  ;;  %s8360_s16 = sld [smem:[%s15438_s0 + %s9364_s27]]  }
0x12ed   :  { %v7215_v37 = vpop.permute.xlu1 %7214  ;;  %v7229_v13 = vpack.c.bf16 %v7211_v40, %v7210_v54  ;;  %v7220_v6 = vmul.f32 %v14575_v14, %v7218_v19  ;;  %8903 = vmatprep.subr.bf16.mxu0 %v16487_v1  ;;  %vm15161_vm1 = vcmp.ge.s32.totalorder %v7452_v29, 1  ;;  %vm15174_vm5 = vcmp.le.s32.totalorder %v7452_v29, 2 }
0x12ee   :  { %v7219_v43 = vsel %vm6341_vm13, %v7215_v37, 0.0  ;;  %vm16592_vm13 = vmmov %vm16590_vm0  ;;  %v15183_v54 = vsel %vm7455_vm12, 1.0, %v16487_v1 }
0x12ef   :  { %7258 = vmatpush1.bf16.msra.mxu1 %v7228_v41  ;;  %v7221_v10 = vmul.f32 %v14575_v14, %v7219_v43  ;;  %vm7457_vm11 = vmand %vm7455_vm12, %vm15161_vm1 }
0x12f0   :  { %7259 = vmatprep.subr.bf16.mxu1 %v15778_v32  ;;  %8904 = vmatpush3.bf16.msra.mxu0 %v9276_v44  ;;  %v15170_v31 = vsel %vm7457_vm11, 1.0, %v16487_v1  ;;  %vm7463_vm3 = vmand %vm7455_vm12, %vm15174_vm5  ;;  %vm7551_vm12 = vcmask 228352   ;;  %vm7562_vm11 = vcmask 220160  }
0x12f1   :  { %v7230_v26 = vpack.c.bf16 %v7221_v10, %v7220_v6  ;;  %8905 = vmatprep.subr.bf16.mxu0 %v16487_v1 }
0x12f3   :  { %7260 = vmatpush1.bf16.msra.mxu1 %v7229_v13 }
0x12f4   :  { %7261 = vmatprep.subr.bf16.mxu1 %v15778_v32  ;;  %8906 = vmatpush3.bf16.msra.mxu0 %v9277_v12 }
0x12f5   :  { %8911 = vmatprep.subr.bf16.mxu0 %v16487_v1 }
0x12f7   :  { %7262 = vmatpush1.bf16.msra.mxu1 %v7230_v26 }
0x12f8   :  { %7604 = vmatprep.subr.bf16.mxu1 %v15778_v32 }
0x12fa   :  { %7278 = vmatmul.mubr.bf16.vlgmr.msra.gmra.mrb[72].mxu1 %v9273_v4 }
0x12fc   :  { %v7291_v14 = vpop.permute.xlu0 %7290 }
0x12fe   :  { %v7296_v52 = vpop.permute.xlu1 %7295 }
0x1300   :  { %v7305_v17 = vpop.permute.xlu0 %7304 }
0x1302   :  { %v7310_v20 = vpop.permute.xlu1 %7309 }
0x13cd   :  { %v7279_v24 = vpop.f32.mrb[72].mxu1 }
0x13ce   :  { %v7298_v55 = vmul.f32 %v7291_v14, %v7279_v24  ;;  %v7281_v21 = vpop.f32.mrb[73].mxu1 }
0x13cf   :  { %v7282_v0 = vpop.f32.mrb[74].mxu1 }
0x13d0   :  { %v7312_v11 = vadd.f32 %v7305_v17, %v7298_v55  ;;  %v7299_v18 = vmul.f32 %v7296_v52, %v7282_v0  ;;  %v7284_v33 = vpop.f32.mrb[75].mxu1  ;;  %v15204_v0 = vsel %vm15161_vm1, 1.0, %v16487_v1 }
0x13d2   :  { %v7314_v36 = vadd.f32 %v7312_v11, %v14881_v53  ;;  %v7313_v51 = vadd.f32 %v7310_v20, %v7299_v18 }
0x13d4   :  { %v7315_v22 = vadd.f32 %v7313_v51, %v14884_v30  ;;  %v7316_v56 = vmax.f32 %v7314_v36, 0.0 }
0x13d6   :  { %v7317_v28 = vmax.f32 %v7315_v22, 0.0 }
0x13d8   :  { %v7318_v38 = vpack.c.bf16 %v7317_v28, %v7316_v56 }
0x13da   :  { %7396 = vrot.lane.b32.xlu0 %v7318_v38, %s9334_s4  ;;  %8908 = vmatmul.mubr.msk.bf16.vlgmr.msra.gmra.mrb[76].mxu0 %vm6268_vm14, %v7318_v38  ;;  %s9356_s4 = smov 37  }
0x13db   :  { %8912 = vmatpush3.bf16.msra.mxu0 %v15037_v39  ;;  %8919 = vmatprep.mubr.msk.bf16.mxu0 %vm9339_vm15, %v16487_v1  ;;  %s15136_s1 = sld [smem:[%s15438_s0 + %s9356_s4]]  }
0x13dc   :  { %8913 = vmatprep.subr.bf16.mxu0 %v16487_v1 }
0x13df   :  { %8914 = vmatpush3.bf16.msra.mxu0 %v9275_v9 }
0x13e0   :  { %8915 = vmatprep.subr.bf16.mxu0 %v16487_v1 }
0x13e1   :  { %v9278_v58 = vld [vmem:[%s15136_s1 + $0x4] ss:$8 sps:$4 sm:$0xff]  }
0x13e2   :  { %8767 = vmatprep.mubr.msk.bf16.mxu1 %vm16592_vm13, %v9278_v58  ;;  %vm7540_vm13 = vcmask 236544  }
0x13e3   :  { %8916 = vmatpush3.bf16.msra.mxu0 %v9276_v44  ;;  %v15194_v44 = vsel %vm7463_vm3, 1.0, %v16487_v1  ;;  %vm16601_vm3 = vcmask 261120  }
0x13e4   :  { %8917 = vmatprep.subr.bf16.mxu0 %v16487_v1 }
0x13e7   :  { %8918 = vmatpush3.bf16.msra.mxu0 %v9277_v12 }
0x144c   :  { %v7397_v53 = vpop.permute.xlu0 %7396 }
0x144d   :  { %8920 = vmatmul.mubr.msk.bf16.vlgmr.msra.gmra.mrb[80].mxu0 %vm6268_vm14, %v7397_v53  ;;  %vm16591_vm14 = vmmov %vm16590_vm0 }
0x14ad   :  { %v7388_v30 = vpop.f32.mrb[76].mxu0 }
0x14ae   :  { %v8909_v42 = vpop.f32.mrb[77].mxu0 }
0x14af   :  { %v7391_v27 = vpop.f32.mrb[78].mxu0 }
0x14b0   :  { %v8910_v62 = vpop.f32.mrb[79].mxu0 }
0x1520   :  { %v7435_v39 = vpop.f32.mrb[80].mxu0 }
0x1521   :  { %7444 = vrot.lane.b32.xlu1 %v7435_v39, %s9325_s5  ;;  %v8921_v45 = vpop.f32.mrb[81].mxu0 }
0x1522   :  { %v7438_v61 = vpop.f32.mrb[82].mxu0 }
0x1523   :  { %7446 = vrot.lane.b32.xlu0 %v7438_v61, %s9325_s5  ;;  %v8922_v50 = vpop.f32.mrb[83].mxu0  ;;  %s9355_s5 = smov 125  }
0x1593   :  { %v7445_v25 = vpop.permute.xlu1 %7444 }
0x1594   :  { %v15106_v35 = vsel %vm16590_vm0, %v7388_v30, %v7445_v25  ;;  %v15217_v30 = vsel %vm15174_vm5, 1.0, %v16487_v1  ;;  %vm16599_vm0 = vmmov %vm16598_vm6 }
0x1595   :  { %7481 = vrot.lane.b32.xlu1 %v15106_v35, %s9318_s29  ;;  %v7447_v16 = vpop.permute.xlu0 %7446 }
0x1596   :  { %v15111_v7 = vsel %vm16591_vm14, %v7391_v27, %v7447_v16  ;;  %vm7471_vm14 = vmand %vm7470_vm7, %vm15161_vm1 }
0x1597   :  { %7483 = vrot.lane.b32.xlu0 %v15111_v7, %s9318_s29  ;;  %v7571_v39 = vpack.c.bf16 %v15111_v7, %v15106_v35  ;;  %v15231_v25 = vsel %vm7471_vm14, 1.0, %v16487_v1  ;;  %vm7476_vm1 = vmand %vm7470_vm7, %vm15174_vm5  ;;  %vm16600_vm5 = vcmask 130048  }
0x1598   :  { %vm16610_vm14 = vmmov %vm16601_vm3 }
0x1599   :  { %7492 = vrot.lane.b32.xlu1 %v15106_v35, %s9317_s25 }
0x159b   :  { %7494 = vrot.lane.b32.xlu0 %v15111_v7, %s9317_s25 }
0x159d   :  { %7503 = vrot.lane.b32.xlu1 %v15106_v35, %s9316_s21 }
0x159f   :  { %7505 = vrot.lane.b32.xlu0 %v15111_v7, %s9316_s21 }
0x15a1   :  { %7514 = vrot.lane.b32.xlu1 %v15106_v35, %s9308_s9 }
0x15a3   :  { %7516 = vrot.lane.b32.xlu0 %v15111_v7, %s9308_s9 }
0x15a5   :  { %7524 = vrot.lane.b32.xlu1 %v15106_v35, %s9309_s10 }
0x15a7   :  { %7526 = vrot.lane.b32.xlu0 %v15111_v7, %s9309_s10 }
0x15a9   :  { %7534 = vrot.lane.b32.xlu1 %v15106_v35, %s9355_s5 }
0x15ab   :  { %7536 = vrot.lane.b32.xlu0 %v15111_v7, %s9355_s5 }
0x15ad   :  { %7545 = vrot.lane.b32.xlu1 %v15106_v35, %s9358_s6 }
0x15af   :  { %7547 = vrot.lane.b32.xlu0 %v15111_v7, %s9358_s6 }
0x15b1   :  { %7556 = vrot.lane.b32.xlu1 %v15106_v35, %s9360_s11 }
0x15b3   :  { %7558 = vrot.lane.b32.xlu0 %v15111_v7, %s9360_s11 }
0x15b5   :  { %7659 = vperm.xlu1 %9039, %v7653_v3  }
0x15b7   :  { %7664 = vperm.xlu0 %9038, %v7654_v46  }
0x15b9   :  { %7687 = vperm.xlu1 %9039, %v7681_v48  }
0x15bb   :  { %7692 = vperm.xlu0 %9038, %v7682_v60  }
0x15bd   :  { %7669 = vperm.xlu1 %9039, %v7655_v8   ;;  %v15241_v8 = vsel %vm7470_vm7, 1.0, %v16487_v1  ;;  %vm16605_vm7 = vmmov %vm16599_vm0 }
0x15bf   :  { %7674 = vperm.xlu0 %9038, %v7656_v57  }
0x15c1   :  { %7697 = vperm.xlu1 %9039, %v7683_v59  }
0x15c3   :  { %7702 = vperm.xlu0 %9038, %v7684_v34  }
0x1607   :  { %v7482_v2 = vpop.permute.xlu1 %7481 }
0x1608   :  { %v7488_v23 = vsel %vm7487_vm2, 0.0, %v7482_v2 }
0x1609   :  { %v7484_v5 = vpop.permute.xlu0 %7483  ;;  %v7490_v15 = vmul.f32 %v15170_v31, %v7488_v23  ;;  %v15253_v23 = vsel %vm7476_vm1, 1.0, %v16487_v1  ;;  %vm16613_vm1 = vmmov %vm16600_vm5 }
0x160a   :  { %v7489_v41 = vsel %vm7487_vm2, 0.0, %v7484_v5 }
0x160b   :  { %v7491_v37 = vmul.f32 %v15170_v31, %v7489_v41  ;;  %v7493_v43 = vpop.permute.xlu1 %7492 }
0x160c   :  { %v7499_v19 = vsel %vm7498_vm10, 0.0, %v7493_v43  ;;  %v9281_v43 = vld [vmem:[%s15136_s1 + $0x14] ss:$8 sps:$4 sm:$0xff]  }
0x160d   :  { %v7567_v13 = vpack.c.bf16 %v7491_v37, %v7490_v15  ;;  %v7495_v10 = vpop.permute.xlu0 %7494  ;;  %v7501_v26 = vmul.f32 %v15183_v54, %v7499_v19  ;;  %v9280_v37 = vld [vmem:[%s15136_s1] ss:$8 sps:$4 sm:$0xff]   ;;  %v9283_v19 = vld [vmem:[%s15136_s1 + $0x10] ss:$8 sps:$4 sm:$0xff]  }
0x160e   :  { %v7500_v6 = vsel %vm7498_vm10, 0.0, %v7495_v10 }
0x160f   :  { %v7502_v4 = vmul.f32 %v15183_v54, %v7500_v6  ;;  %v7504_v9 = vpop.permute.xlu1 %7503  ;;  %7605 = vmatpush1.bf16.msra.mxu1 %v7567_v13 }
0x1610   :  { %v7510_v12 = vsel %vm7509_vm9, 0.0, %v7504_v9  ;;  %7606 = vmatprep.subr.bf16.mxu1 %v15778_v32 }
0x1611   :  { %v7568_v14 = vpack.c.bf16 %v7502_v4, %v7501_v26  ;;  %v7506_v52 = vpop.permute.xlu0 %7505  ;;  %v7512_v55 = vmul.f32 %v15194_v44, %v7510_v12 }
0x1612   :  { %v7511_v24 = vsel %vm7509_vm9, 0.0, %v7506_v52 }
0x1613   :  { %v7513_v21 = vmul.f32 %v15194_v44, %v7511_v24  ;;  %v7515_v17 = vpop.permute.xlu1 %7514  ;;  %7607 = vmatpush1.bf16.msra.mxu1 %v7568_v14 }
0x1614   :  { %v7520_v11 = vsel %vm16586_vm4, 0.0, %v7515_v17  ;;  %7608 = vmatprep.subr.bf16.mxu1 %v15778_v32  ;;  %vm16602_vm4 = vmmov %vm16599_vm0 }
0x1615   :  { %v7569_v18 = vpack.c.bf16 %v7513_v21, %v7512_v55  ;;  %v7517_v33 = vpop.permute.xlu0 %7516  ;;  %v7522_v36 = vmul.f32 %v15204_v0, %v7520_v11 }
0x1616   :  { %v7521_v20 = vsel %vm16597_vm8, 0.0, %v7517_v33  ;;  %vm16603_vm8 = vmmov %vm16599_vm0 }
0x1617   :  { %v7523_v51 = vmul.f32 %v15204_v0, %v7521_v20  ;;  %v7525_v22 = vpop.permute.xlu1 %7524  ;;  %7609 = vmatpush1.bf16.msra.mxu1 %v7569_v18 }
0x1618   :  { %7610 = vmatprep.subr.bf16.mxu1 %v15778_v32  ;;  %v7530_v42 = vsel %vm16599_vm0, %v7525_v22, 0.0 }
0x1619   :  { %v7570_v56 = vpack.c.bf16 %v7523_v51, %v7522_v36  ;;  %v7527_v28 = vpop.permute.xlu0 %7526  ;;  %v7532_v61 = vmul.f32 %v15217_v30, %v7530_v42 }
0x161a   :  { %v7531_v38 = vsel %vm16598_vm6, %v7527_v28, 0.0  ;;  %vm16604_vm6 = vmmov %vm16599_vm0 }
0x161b   :  { %v7535_v53 = vpop.permute.xlu1 %7534  ;;  %7611 = vmatpush1.bf16.msra.mxu1 %v7570_v56  ;;  %v7533_v27 = vmul.f32 %v15217_v30, %v7531_v38 }
0x161c   :  { %7612 = vmatprep.subr.bf16.mxu1 %v15778_v32  ;;  %v7541_v16 = vsel %vm7540_vm13, %v7535_v53, 0.0 }
0x161d   :  { %v7537_v62 = vpop.permute.xlu0 %7536  ;;  %v7572_v58 = vpack.c.bf16 %v7533_v27, %v7532_v61  ;;  %v7543_v60 = vmul.f32 %v15231_v25, %v7541_v16 }
0x161e   :  { %v7542_v45 = vsel %vm7540_vm13, %v7537_v62, 0.0 }
0x161f   :  { %v7546_v50 = vpop.permute.xlu1 %7545  ;;  %7613 = vmatpush1.bf16.msra.mxu1 %v7571_v39  ;;  %v7544_v3 = vmul.f32 %v15231_v25, %v7542_v45 }
0x1620   :  { %7614 = vmatprep.subr.bf16.mxu1 %v15778_v32  ;;  %v7552_v57 = vsel %vm7551_vm12, %v7546_v50, 0.0 }
0x1621   :  { %v7548_v46 = vpop.permute.xlu0 %7547  ;;  %v7573_v59 = vpack.c.bf16 %v7544_v3, %v7543_v60  ;;  %v7554_v2 = vmul.f32 %v15241_v8, %v7552_v57 }
0x1622   :  { %v7553_v48 = vsel %vm7551_vm12, %v7548_v46, 0.0 }
0x1623   :  { %7615 = vmatpush1.bf16.msra.mxu1 %v7572_v58  ;;  %v7555_v34 = vmul.f32 %v15241_v8, %v7553_v48  ;;  %v7557_v49 = vpop.permute.xlu1 %7556 }
0x1624   :  { %7616 = vmatprep.subr.bf16.mxu1 %v15778_v32  ;;  %v7563_v5 = vsel %vm7562_vm11, %v7557_v49, 0.0 }
0x1625   :  { %v7559_v29 = vpop.permute.xlu0 %7558  ;;  %v7574_v47 = vpack.c.bf16 %v7555_v34, %v7554_v2  ;;  %v7565_v40 = vmul.f32 %v15253_v23, %v7563_v5 }
0x1626   :  { %v7564_v63 = vsel %vm7562_vm11, %v7559_v29, 0.0 }
0x1627   :  { %7617 = vmatpush1.bf16.msra.mxu1 %v7573_v59  ;;  %v7566_v41 = vmul.f32 %v15253_v23, %v7564_v63 }
0x1628   :  { %7618 = vmatprep.subr.bf16.mxu1 %v15778_v32 }
0x1629   :  { %v7575_v15 = vpack.c.bf16 %v7566_v41, %v7565_v40 }
0x162b   :  { %7619 = vmatpush1.bf16.msra.mxu1 %v7574_v47 }
0x162c   :  { %7620 = vmatprep.subr.bf16.mxu1 %v15778_v32 }
0x162f   :  { %7621 = vmatpush1.bf16.msra.mxu1 %v7575_v15 }
0x1632   :  { %7637 = vmatmul.mubr.bf16.vlgmr.msra.gmra.mrb[76].mxu1 %v9280_v37 }
0x1633   :  { %8768 = vmatprep.mubr.msk.bf16.mxu1 %vm16600_vm5, %v9281_v43 }
0x1634   :  { %v7660_v13 = vpop.permute.xlu1 %7659 }
0x1636   :  { %v7665_v10 = vpop.permute.xlu0 %7664 }
0x1638   :  { %v7688_v6 = vpop.permute.xlu1 %7687 }
0x163a   :  { %7645 = vmatmul.mubr.bf16.gmra.mrb[80].mxu1 %v9283_v19  ;;  %v7693_v26 = vpop.permute.xlu0 %7692 }
0x163c   :  { %v7670_v55 = vpop.permute.xlu1 %7669 }
0x163e   :  { %v7675_v11 = vpop.permute.xlu0 %7674 }
0x1640   :  { %v7698_v22 = vpop.permute.xlu1 %7697 }
0x1642   :  { %v7703_v42 = vpop.permute.xlu0 %7702 }
0x1705   :  { %v7638_v4 = vpop.f32.mrb[76].mxu1 }
0x1706   :  { %v7677_v9 = vmul.f32 %v7660_v13, %v7638_v4  ;;  %v7640_v12 = vpop.f32.mrb[77].mxu1 }
0x1707   :  { %v7641_v14 = vpop.f32.mrb[78].mxu1 }
0x1708   :  { %v7705_v52 = vadd.f32 %v7688_v6, %v7677_v9  ;;  %v7678_v24 = vmul.f32 %v7665_v10, %v7641_v14  ;;  %v7643_v32 = vpop.f32.mrb[79].mxu1 }
0x170a   :  { %v7709_v21 = vmax.f32 %v7705_v52, 0.0  ;;  %v7706_v17 = vadd.f32 %v7693_v26, %v7678_v24 }
0x170c   :  { %v7710_v18 = vmax.f32 %v7706_v17, 0.0  ;;  %7717 = vrot.lane.b32.xlu1 %v7709_v21, %s9318_s29 }
0x170d   :  { %v7646_v33 = vpop.f32.mrb[80].mxu1 }
0x170e   :  { %v7679_v20 = vmul.f32 %v7670_v55, %v7646_v33  ;;  %7719 = vrot.lane.b32.xlu0 %v7710_v18, %s9318_s29  ;;  %v7648_v36 = vpop.f32.mrb[81].mxu1  ;;  %v7885_v51 = vpack.c.bf16 %v7710_v18, %v7709_v21 }
0x170f   :  { %v7649_v56 = vpop.f32.mrb[82].mxu1 }
0x1710   :  { %v7707_v28 = vadd.f32 %v7698_v22, %v7679_v20  ;;  %v7680_v38 = vmul.f32 %v7675_v11, %v7649_v56  ;;  %7797 = vrot.lane.b32.xlu1 %v7709_v21, %s9309_s10  ;;  %8844 = vmatprep.subr.bf16.mxu0 %v7885_v51  ;;  %v7651_v53 = vpop.f32.mrb[83].mxu1 }
0x1712   :  { %v7708_v27 = vadd.f32 %v7703_v42, %v7680_v38  ;;  %7799 = vrot.lane.b32.xlu0 %v7710_v18, %s9309_s10  ;;  %v15268_v62 = vmax.f32 %v7707_v28, 0.0 }
0x1714   :  { %v15270_v39 = vmax.f32 %v7708_v27, 0.0  ;;  %7737 = vrot.lane.b32.xlu1 %v7709_v21, %s9317_s25 }
0x1716   :  { %7739 = vrot.lane.b32.xlu0 %v7710_v18, %s9317_s25  ;;  %v7886_v45 = vpack.c.bf16 %v15270_v39, %v15268_v62 }
0x1718   :  { %7817 = vrot.lane.b32.xlu1 %v7709_v21, %s9355_s5 }
0x171a   :  { %7819 = vrot.lane.b32.xlu0 %v7710_v18, %s9355_s5 }
0x171c   :  { %7757 = vrot.lane.b32.xlu1 %v7709_v21, %s9316_s21 }
0x171e   :  { %7759 = vrot.lane.b32.xlu0 %v7710_v18, %s9316_s21 }
0x1720   :  { %7837 = vrot.lane.b32.xlu1 %v7709_v21, %s9358_s6 }
0x1722   :  { %7839 = vrot.lane.b32.xlu0 %v7710_v18, %s9358_s6 }
0x1724   :  { %7777 = vrot.lane.b32.xlu1 %v7709_v21, %s9308_s9 }
0x1726   :  { %7779 = vrot.lane.b32.xlu0 %v7710_v18, %s9308_s9 }
0x1728   :  { %7721 = vrot.lane.b32.xlu1 %v15268_v62, %s9318_s29 }
0x172a   :  { %7723 = vrot.lane.b32.xlu0 %v15270_v39, %s9318_s29  ;;  %s15301_s29 = sld [smem:[%s15438_s0 + %s9361_s18]]  }
0x172c   :  { %7801 = vrot.lane.b32.xlu1 %v15268_v62, %s9309_s10 }
0x172e   :  { %7803 = vrot.lane.b32.xlu0 %v15270_v39, %s9309_s10  ;;  %s9362_s10 = smov 41  }
0x172f   :  { %s8358_s14 = sld [smem:[%s15438_s0 + %s9362_s10]]  }
0x1730   :  { %7741 = vrot.lane.b32.xlu1 %v15268_v62, %s9317_s25  ;;  %v9286_v61 = vld [vmem:[%s15301_s29 + $0x4] ss:$12 sps:$4 sm:$0xff]   ;;  %v9290_v50 = vld [vmem:[%s15301_s29 + $0x8] ss:$12 sps:$4 sm:$0xff]  }
0x1731   :  { %7971 = vmatprep.mubr.bf16.mxu0 %v9286_v61  ;;  %8927 = vmatprep.mubr.msk.bf16.mxu1 %vm16601_vm3, %v9290_v50 }
0x1732   :  { %7743 = vrot.lane.b32.xlu0 %v15270_v39, %s9317_s25 }
0x1734   :  { %7821 = vrot.lane.b32.xlu1 %v15268_v62, %s9355_s5 }
0x1735   :  { %v8037_v16 = vld [vmem:[%s8358_s14] sm:$0xff]  ;;  %v8038_v58 = vld [vmem:[%s8358_s14 + $0x8] sm:$0xff]  ;;  %v8039_v48 = vld [vmem:[%s8358_s14 + $0x10] sm:$0xff] }
0x1736   :  { %7823 = vrot.lane.b32.xlu0 %v15270_v39, %s9355_s5  ;;  %v8040_v60 = vld [vmem:[%s8358_s14 + $0x18] sm:$0xff] }
0x1738   :  { %7761 = vrot.lane.b32.xlu1 %v15268_v62, %s9316_s21 }
0x173a   :  { %7763 = vrot.lane.b32.xlu0 %v15270_v39, %s9316_s21  ;;  %s9363_s21 = smov 42  }
0x173b   :  { %s8359_s23 = sld [smem:[%s15438_s0 + %s9363_s21]]  }
0x173c   :  { %7841 = vrot.lane.b32.xlu1 %v15268_v62, %s9358_s6 }
0x173e   :  { %7843 = vrot.lane.b32.xlu0 %v15270_v39, %s9358_s6  ;;  %s8362_s6 = sld [smem:[%s15438_s0 + %s9366_s3]]  }
0x1740   :  { %7781 = vrot.lane.b32.xlu1 %v15268_v62, %s9308_s9 }
0x1741   :  { %v8065_v3 = vld [vmem:[%s8359_s23] sm:$0xff]  ;;  %v8066_v46 = vld [vmem:[%s8359_s23 + $0x8] sm:$0xff]  ;;  %v8067_v57 = vld [vmem:[%s8359_s23 + $0x10] sm:$0xff] }
0x1742   :  { %7783 = vrot.lane.b32.xlu0 %v15270_v39, %s9308_s9  ;;  %v8068_v59 = vld [vmem:[%s8359_s23 + $0x18] sm:$0xff] }
0x1744   :  { %7857 = vrot.lane.b32.xlu1 %v7709_v21, %s9360_s11 }
0x1746   :  { %7859 = vrot.lane.b32.xlu0 %v7710_v18, %s9360_s11 }
0x1748   :  { %7861 = vrot.lane.b32.xlu1 %v15268_v62, %s9360_s11 }
0x174a   :  { %7863 = vrot.lane.b32.xlu0 %v15270_v39, %s9360_s11 }
0x174c   :  { %8043 = vperm.xlu1 %9039, %v8037_v16  }
0x174e   :  { %8048 = vperm.xlu0 %9038, %v8038_v58  }
0x1750   :  { %8071 = vperm.xlu1 %9039, %v8065_v3  }
0x1752   :  { %8076 = vperm.xlu0 %9038, %v8066_v46  }
0x1754   :  { %8053 = vperm.xlu1 %9039, %v8039_v48  }
0x1756   :  { %8058 = vperm.xlu0 %9038, %v8040_v60  }
0x1758   :  { %8081 = vperm.xlu1 %9039, %v8067_v57  }
0x175a   :  { %8086 = vperm.xlu0 %9038, %v8068_v59  }
0x177e   :  { %v7718_v34 = vpop.permute.xlu1 %7717 }
0x177f   :  { %v7729_v49 = vsel %vm7487_vm2, 0.0, %v7718_v34 }
0x1780   :  { %v7720_v29 = vpop.permute.xlu0 %7719  ;;  %v7733_v2 = vmul.f32 %v15170_v31, %v7729_v49 }
0x1781   :  { %v7730_v63 = vsel %vm7487_vm2, 0.0, %v7720_v29 }
0x1782   :  { %v7734_v5 = vmul.f32 %v15170_v31, %v7730_v63  ;;  %v7798_v47 = vpop.permute.xlu1 %7797 }
0x1783   :  { %v7809_v24 = vsel %vm16603_vm8, %v7798_v47, 0.0  ;;  %vm16619_vm8 = vmmov %vm16610_vm14 }
0x1784   :  { %v7877_v41 = vpack.c.bf16 %v7734_v5, %v7733_v2  ;;  %v7800_v40 = vpop.permute.xlu0 %7799  ;;  %v7813_v20 = vmul.f32 %v15217_v30, %v7809_v24 }
0x1785   :  { %v7810_v12 = vsel %vm16602_vm4, %v7800_v40, 0.0 }
0x1786   :  { %v7738_v15 = vpop.permute.xlu1 %7737  ;;  %8845 = vmatpush3.bf16.msra.mxu0 %v7877_v41  ;;  %v7814_v55 = vmul.f32 %v15217_v30, %v7810_v12 }
0x1787   :  { %8846 = vmatprep.subr.bf16.mxu0 %v7886_v45  ;;  %v7749_v36 = vsel %vm7498_vm10, 0.0, %v7738_v15 }
0x1788   :  { %v7740_v37 = vpop.permute.xlu0 %7739  ;;  %v7887_v38 = vpack.c.bf16 %v7814_v55, %v7813_v20  ;;  %v7753_v42 = vmul.f32 %v15183_v54, %v7749_v36 }
0x1789   :  { %v7750_v21 = vsel %vm7498_vm10, 0.0, %v7740_v37 }
0x178a   :  { %v7818_v43 = vpop.permute.xlu1 %7817  ;;  %v7754_v22 = vmul.f32 %v15183_v54, %v7750_v21 }
0x178b   :  { %v7829_v50 = vsel %vm7540_vm13, %v7818_v43, 0.0 }
0x178c   :  { %v7820_v19 = vpop.permute.xlu0 %7819  ;;  %v7879_v61 = vpack.c.bf16 %v7754_v22, %v7753_v42  ;;  %v7833_v59 = vmul.f32 %v15231_v25, %v7829_v50 }
0x178d   :  { %v7830_v27 = vsel %vm7540_vm13, %v7820_v19, 0.0 }
0x178e   :  { %v7758_v13 = vpop.permute.xlu1 %7757  ;;  %v7834_v3 = vmul.f32 %v15231_v25, %v7830_v27 }
0x178f   :  { %v7769_v34 = vsel %vm7509_vm9, 0.0, %v7758_v13 }
0x1790   :  { %v7760_v10 = vpop.permute.xlu0 %7759  ;;  %v7889_v5 = vpack.c.bf16 %v7834_v3, %v7833_v59  ;;  %v7773_v41 = vmul.f32 %v15194_v44, %v7769_v34  ;;  %v9289_v59 = vld [vmem:[%s15301_s29 + $0x18] ss:$12 sps:$4 sm:$0xff]   ;;  %v9291_v34 = vld [vmem:[%s15301_s29 + $0x20] ss:$12 sps:$4 sm:$0xff]  }
0x1791   :  { %v7770_v46 = vsel %vm7509_vm9, 0.0, %v7760_v10 }
0x1792   :  { %v7838_v6 = vpop.permute.xlu1 %7837  ;;  %v7774_v29 = vmul.f32 %v15194_v44, %v7770_v46 }
0x1793   :  { %v7849_v13 = vsel %vm7551_vm12, %v7838_v6, 0.0 }
0x1794   :  { %v7840_v26 = vpop.permute.xlu0 %7839  ;;  %v7881_v19 = vpack.c.bf16 %v7774_v29, %v7773_v41  ;;  %v7853_v55 = vmul.f32 %v15241_v8, %v7849_v13 }
0x1796   :  { %v15339_v4 = vpop.permute.xlu1 %7777 }
0x1798   :  { %v7780_v9 = vpop.permute.xlu0 %7779 }
0x179a   :  { %v7722_v14 = vpop.permute.xlu1 %7721 }
0x179b   :  { %v7731_v52 = vsel %vm7487_vm2, 0.0, %v7722_v14 }
0x179c   :  { %v7724_v32 = vpop.permute.xlu0 %7723  ;;  %v7735_v11 = vmul.f32 %v15170_v31, %v7731_v52 }
0x179d   :  { %v7732_v17 = vsel %vm7487_vm2, 0.0, %v7724_v32  ;;  %vm16606_vm2 = vcmask 7168  }
0x179e   :  { %v7736_v18 = vmul.f32 %v15170_v31, %v7732_v17  ;;  %v7802_v33 = vpop.permute.xlu1 %7801  ;;  %v7790_v52 = vsel %vm16606_vm2, 0.0, %v7780_v9  ;;  %vm16609_vm0 = vmmov %vm16606_vm2 }
0x179f   :  { %v7811_v51 = vsel %vm16604_vm6, %v7802_v33, 0.0  ;;  %v7794_v17 = vmul.f32 %v15204_v0, %v7790_v52  ;;  %vm16617_vm3 = vmmov %vm16609_vm0  ;;  %vm8310_vm6 = vcmask 15360  }
0x17a0   :  { %v7878_v56 = vpack.c.bf16 %v7736_v18, %v7735_v11  ;;  %v7804_v28 = vpop.permute.xlu0 %7803  ;;  %v7815_v31 = vmul.f32 %v15217_v30, %v7811_v51  ;;  %vm16618_vm4 = vmmov %vm16609_vm0 }
0x17a1   :  { %v7812_v53 = vsel %vm16605_vm7, %v7804_v28, 0.0  ;;  %vm8312_vm7 = vcmask 9216  }
0x17a2   :  { %v7816_v62 = vmul.f32 %v15217_v30, %v7812_v53  ;;  %v7742_v39 = vpop.permute.xlu1 %7741  ;;  %8847 = vmatpush3.bf16.msra.mxu0 %v7878_v56 }
0x17a3   :  { %v7751_v45 = vsel %vm7498_vm10, 0.0, %v7742_v39  ;;  %8848 = vmatprep.subr.bf16.mxu0 %v7887_v38 }
0x17a4   :  { %v7888_v16 = vpack.c.bf16 %v7816_v62, %v7815_v31  ;;  %v7744_v58 = vpop.permute.xlu0 %7743  ;;  %v7755_v60 = vmul.f32 %v15183_v54, %v7751_v45  ;;  %v9284_v45 = vld [vmem:[%s15301_s29] ss:$12 sps:$4 sm:$0xff]  }
0x17a5   :  { %v7752_v48 = vsel %vm7498_vm10, 0.0, %v7744_v58  ;;  %vm16607_vm10 = vmmov %vm16606_vm2  ;;  %v9287_v58 = vld [vmem:[%s15301_s29 + $0x1c] ss:$12 sps:$4 sm:$0xff]  }
0x17a6   :  { %v7756_v30 = vmul.f32 %v15183_v54, %v7752_v48  ;;  %v7822_v57 = vpop.permute.xlu1 %7821  ;;  %8849 = vmatpush3.bf16.msra.mxu0 %v7879_v61  ;;  %v7850_v54 = vsel %vm7551_vm12, %v7840_v26, 0.0  ;;  %v7789_v21 = vsel %vm16607_vm10, 0.0, %v15339_v4 }
0x17a7   :  { %v7831_v49 = vsel %vm7540_vm13, %v7822_v57, 0.0  ;;  %8850 = vmatprep.subr.bf16.mxu0 %v7888_v16  ;;  %v7854_v14 = vmul.f32 %v15241_v8, %v7850_v54  ;;  %v7793_v20 = vmul.f32 %v15204_v0, %v7789_v21 }
0x17a8   :  { %v7880_v63 = vpack.c.bf16 %v7756_v30, %v7755_v60  ;;  %v7824_v2 = vpop.permute.xlu0 %7823  ;;  %v7835_v40 = vmul.f32 %v15231_v25, %v7831_v49  ;;  %v9292_v49 = vld [vmem:[%s8360_s16] sm:$0xff]  }
0x17a9   :  { %v7832_v47 = vsel %vm7540_vm13, %v7824_v2, 0.0  ;;  %v7891_v18 = vpack.c.bf16 %v7854_v14, %v7853_v55  ;;  %v7883_v22 = vpack.c.bf16 %v7794_v17, %v7793_v20  ;;  %vm16611_vm13 = vmmov %vm16600_vm5 }
0x17aa   :  { %v7836_v15 = vmul.f32 %v15231_v25, %v7832_v47  ;;  %v7762_v37 = vpop.permute.xlu1 %7761  ;;  %8851 = vmatpush3.bf16.msra.mxu0 %v7880_v63 }
0x17ab   :  { %v7771_v43 = vsel %vm7509_vm9, 0.0, %v7762_v37  ;;  %8852 = vmatprep.subr.bf16.mxu0 %v7889_v5 }
0x17ac   :  { %v7890_v10 = vpack.c.bf16 %v7836_v15, %v7835_v40  ;;  %v7764_v12 = vpop.permute.xlu0 %7763  ;;  %v7775_v24 = vmul.f32 %v15194_v44, %v7771_v43 }
0x17ad   :  { %v7772_v26 = vsel %vm7509_vm9, 0.0, %v7764_v12  ;;  %vm16608_vm9 = vmmov %vm16606_vm2 }
0x17ae   :  { %v7776_v25 = vmul.f32 %v15194_v44, %v7772_v26  ;;  %v7842_v32 = vpop.permute.xlu1 %7841  ;;  %8853 = vmatpush3.bf16.msra.mxu0 %v7881_v19 }
0x17af   :  { %v7851_v6 = vsel %vm7551_vm12, %v7842_v32, 0.0  ;;  %8854 = vmatprep.subr.bf16.mxu0 %v7890_v10 }
0x17b0   :  { %v7882_v11 = vpack.c.bf16 %v7776_v25, %v7775_v24  ;;  %v7844_v9 = vpop.permute.xlu0 %7843  ;;  %v7855_v44 = vmul.f32 %v15241_v8, %v7851_v6 }
0x17b1   :  { %v7852_v33 = vsel %vm7551_vm12, %v7844_v9, 0.0  ;;  %vm16612_vm12 = vmmov %vm16600_vm5 }
0x17b2   :  { %v7856_v36 = vmul.f32 %v15241_v8, %v7852_v33  ;;  %v7782_v51 = vpop.permute.xlu1 %7781  ;;  %8855 = vmatpush3.bf16.msra.mxu0 %v7882_v11  ;;  %vm16616_vm5 = vmmov %vm16609_vm0 }
0x17b3   :  { %v7791_v4 = vsel %vm16608_vm9, 0.0, %v7782_v51  ;;  %8856 = vmatprep.subr.bf16.mxu0 %v7891_v18 }
0x17b4   :  { %v7892_v56 = vpack.c.bf16 %v7856_v36, %v7855_v44  ;;  %v7784_v28 = vpop.permute.xlu0 %7783  ;;  %v7795_v53 = vmul.f32 %v15204_v0, %v7791_v4 }
0x17b5   :  { %v7792_v38 = vsel %vm16609_vm0, 0.0, %v7784_v28 }
0x17b6   :  { %v7796_v42 = vmul.f32 %v15204_v0, %v7792_v38  ;;  %v7858_v27 = vpop.permute.xlu1 %7857  ;;  %8857 = vmatpush3.bf16.msra.mxu0 %v7883_v22 }
0x17b7   :  { %v7869_v8 = vsel %vm7562_vm11, %v7858_v27, 0.0  ;;  %8858 = vmatprep.subr.bf16.mxu0 %v7892_v56 }
0x17b8   :  { %v7884_v31 = vpack.c.bf16 %v7796_v42, %v7795_v53  ;;  %v7860_v62 = vpop.permute.xlu0 %7859  ;;  %v7873_v61 = vmul.f32 %v15253_v23, %v7869_v8 }
0x17b9   :  { %v7870_v39 = vsel %vm7562_vm11, %v7860_v62, 0.0 }
0x17ba   :  { %v7874_v50 = vmul.f32 %v15253_v23, %v7870_v39  ;;  %v7862_v16 = vpop.permute.xlu1 %7861  ;;  %8859 = vmatpush3.bf16.msra.mxu0 %v7884_v31 }
0x17bb   :  { %v7871_v0 = vsel %vm7562_vm11, %v7862_v16, 0.0  ;;  %8937 = vmatprep.subr.bf16.mxu0 %v9292_v49 }
0x17bc   :  { %v7893_v3 = vpack.c.bf16 %v7874_v50, %v7873_v61  ;;  %v7864_v46 = vpop.permute.xlu0 %7863  ;;  %v7875_v60 = vmul.f32 %v15253_v23, %v7871_v0 }
0x17bd   :  { %v7872_v48 = vsel %vm7562_vm11, %v7864_v46, 0.0  ;;  %7972 = vmatmul.mubr.bf16.vlgmr.msra.gmra.mrb[84].mxu0 %v9284_v45  ;;  %vm16614_vm11 = vmmov %vm16613_vm1 }
0x17be   :  { %v7876_v30 = vmul.f32 %v15253_v23, %v7872_v48  ;;  %8923 = vmatprep.subr.bf16.mxu1 %v7893_v3  ;;  %7979 = vmatprep.mubr.bf16.mxu0 %v9287_v58  ;;  %v8248_v48 = vld [vmem:[%s8362_s6 + $0x8] sm:$0x3] }
0x17bf   :  { %8924 = vmatpush3.bf16.msra.mxu1 %v7893_v3  ;;  %8938 = vmatpush3.bf16.msra.mxu0 %v9292_v49 }
0x17c0   :  { %v7894_v57 = vpack.c.bf16 %v7876_v30, %v7875_v60  ;;  %v8247_v60 = vld [vmem:[%s8362_s6] sm:$0xff] }
0x17c2   :  { %8925 = vmatprep.subr.bf16.mxu1 %v7894_v57 }
0x17c3   :  { %8926 = vmatpush3.bf16.msra.mxu1 %v7894_v57 }
0x17c4   :  { %8931 = vmatprep.subr.bf16.mxu1 %v9292_v49 }
0x17c5   :  { %7980 = vmatmul.mubr.bf16.gmra.mrb[88].mxu0 %v9289_v59 }
0x17c6   :  { %8928 = vmatmul.mubr.msk.bf16.vlgmr.msra.gmra.mrb[84].mxu1 %vm16610_vm14, %v9291_v34 }
0x17c7   :  { %8932 = vmatpush3.bf16.msra.mxu1 %v9292_v49 }
0x17c8   :  { %8943 = vmatprep.subr.bf16.mxu1 %v16487_v1 }
0x17cb   :  { %v8044_v23 = vpop.permute.xlu1 %8043 }
0x17cd   :  { %v8049_v29 = vpop.permute.xlu0 %8048 }
0x17cf   :  { %v8072_v2 = vpop.permute.xlu1 %8071 }
0x17d1   :  { %v8077_v47 = vpop.permute.xlu0 %8076 }
0x17d3   :  { %v8054_v37 = vpop.permute.xlu1 %8053 }
0x17d5   :  { %v8059_v43 = vpop.permute.xlu0 %8058 }
0x17d7   :  { %v8082_v18 = vpop.permute.xlu1 %8081 }
0x17d9   :  { %v8087_v51 = vpop.permute.xlu0 %8086 }
0x1890   :  { %v8860_v63 = vpop.f32.mrb[84].mxu0 }
0x1891   :  { %v8861_v5 = vpop.f32.mrb[85].mxu0 }
0x1892   :  { %v8862_v41 = vadd.f32 %v8861_v5, %v8860_v63  ;;  %v8863_v54 = vpop.f32.mrb[86].mxu0 }
0x1893   :  { %v8864_v40 = vpop.f32.mrb[87].mxu0 }
0x1894   :  { %v8865_v15 = vadd.f32 %v8864_v40, %v8863_v54  ;;  %v9293_v54 = vld [vmem:[%s8361_s2] sm:$0x1f]  }
0x1898   :  { %v8866_v19 = vpop.f32.mrb[88].mxu0 }
0x1899   :  { %v8867_v13 = vpop.f32.mrb[89].mxu0  ;;  %v8929_v10 = vpop.f32.mrb[84].mxu1 }
0x189a   :  { %v8868_v12 = vadd.f32 %v8867_v13, %v8866_v19  ;;  %v8869_v14 = vpop.f32.mrb[90].mxu0  ;;  %v8022_v52 = vpop.f32.mrb[85].mxu1 }
0x189b   :  { %v8023_v26 = vadd.f32 %v8862_v41, %v8022_v52  ;;  %v8870_v24 = vpop.f32.mrb[91].mxu0  ;;  %v8930_v25 = vpop.f32.mrb[86].mxu1 }
0x189c   :  { %v8031_v32 = vadd.f32 %v8929_v10, %v8868_v12  ;;  %v8871_v55 = vadd.f32 %v8870_v24, %v8869_v14  ;;  %v8025_v21 = vpop.f32.mrb[87].mxu1 }
0x189d   :  { %v8061_v6 = vmul.f32 %v8044_v23, %v8023_v26  ;;  %v8026_v17 = vadd.f32 %v8865_v15, %v8025_v21 }
0x189e   :  { %v8063_v11 = vmul.f32 %v8054_v37, %v8031_v32  ;;  %v8034_v9 = vadd.f32 %v8930_v25, %v8871_v55 }
0x189f   :  { %v8089_v33 = vadd.f32 %v8072_v2, %v8061_v6  ;;  %v8062_v20 = vmul.f32 %v8049_v29, %v8026_v17 }
0x18a0   :  { %v8091_v44 = vadd.f32 %v8082_v18, %v8063_v11  ;;  %v8064_v36 = vmul.f32 %v8059_v43, %v8034_v9 }
0x18a1   :  { %v8093_v4 = vadd.f32 %v8089_v33, %v15106_v35  ;;  %v8090_v22 = vadd.f32 %v8077_v47, %v8062_v20 }
0x18a2   :  { %v8092_v56 = vadd.f32 %v8087_v51, %v8064_v36  ;;  %v8097_v38 = vmax.f32 %v8091_v44, 0.0 }
0x18a3   :  { %v8094_v28 = vadd.f32 %v8090_v22, %v15111_v7  ;;  %v8095_v42 = vmax.f32 %v8093_v4, 0.0 }
0x18a4   :  { %v8098_v53 = vmax.f32 %v8092_v56, 0.0 }
0x18a5   :  { %v8096_v27 = vmax.f32 %v8094_v28, 0.0 }
0x18a6   :  { %v8100_v8 = vpack.c.bf16 %v8098_v53, %v8097_v38 }
0x18a7   :  { %v8099_v31 = vpack.c.bf16 %v8096_v27, %v8095_v42 }
0x18a8   :  { %8168 = vrot.lane.b32.xlu0 %v8100_v8, %s9328_s17 }
0x18a9   :  { %8166 = vrot.lane.b32.xlu1 %v8099_v31, %s9328_s17  ;;  %8933 = vmatprep.mubr.msk.bf16.mxu1 %vm16611_vm13, %v8099_v31 }
0x18aa   :  { %8934 = vmatmul.mubr.msk.bf16.vlgmr.msra.gmra.mrb[88].mxu1 %vm16612_vm12, %v8100_v8 }
0x18ab   :  { %8947 = vmatprep.mubr.msk.bf16.mxu1 %vm9339_vm15, %v16487_v1  ;;  %vm16615_vm15 = vmmov %vm16609_vm0 }
0x191a   :  { %v8169_v62 = vpop.permute.xlu0 %8168 }
0x191b   :  { %v8167_v35 = vpop.permute.xlu1 %8166 }
0x191c   :  { %8939 = vmatprep.mubr.msk.bf16.mxu0 %vm16613_vm1, %v8167_v35 }
0x191d   :  { %8940 = vmatmul.mubr.msk.bf16.vlgmr.msra.gmra.mrb[92].mxu0 %vm16614_vm11, %v8169_v62 }
0x197d   :  { %v8935_v7 = vpop.f32.mrb[88].mxu1 }
0x197e   :  { %v8149_v39 = vpop.f32.mrb[89].mxu1 }
0x197f   :  { %v8936_v45 = vpop.f32.mrb[90].mxu1 }
0x1980   :  { %v8152_v61 = vpop.f32.mrb[91].mxu1 }
0x19f0   :  { %v8941_v50 = vpop.f32.mrb[92].mxu0 }
0x19f1   :  { %v8210_v16 = vpop.f32.mrb[93].mxu0 }
0x19f2   :  { %v8942_v58 = vpop.f32.mrb[94].mxu0 }
0x19f3   :  { %v9045_v0 = vpack.i.bf16 %v8942_v58, %v8941_v50  ;;  %v8213_v3 = vpop.f32.mrb[95].mxu0 }
0x19f4   :  { %v9040_v46 = vpack.i.bf16 %v8213_v3, %v8210_v16 }
0x19f5   :  { %9046 = vrot.lane.b32.xlu0 %v9045_v0, %s9308_s9 }
0x19f6   :  { %9041 = vrot.lane.b32.xlu1 %v9040_v46, %s9308_s9  ;;  %s9367_s9 = smov 46  }
0x19f7   :  { %s8363_s24 = sld [smem:[%s15438_s0 + %s9367_s9]]  }
0x19f9   :  { %8258 = vperm.xlu0 %9038, %v8248_v48  }
0x19fa   :  { %8253 = vperm.xlu1 %9039, %v8247_v60  }
0x1a67   :  { %v9047_v30 = vpop.permute.xlu0 %9046 }
0x1a68   :  { %v9049_v57 = vunpack.i.h.bf16 %v9047_v30  ;;  %v9048_v59 = vunpack.i.l.bf16 %v9047_v30  ;;  %v9042_v34 = vpop.permute.xlu1 %9041 }
0x1a69   :  { %v9044_v49 = vunpack.i.h.bf16 %v9042_v34  ;;  %v9043_v23 = vunpack.i.l.bf16 %v9042_v34 }
0x1a6a   :  { %v8243_v29 = vsel %vm16615_vm15, %v8935_v7, %v9048_v59  ;;  %v8244_v63 = vsel %vm16616_vm5, %v8936_v45, %v9049_v57 }
0x1a6b   :  { %v8250_v2 = vpack.c.bf16 %v8244_v63, %v8243_v29  ;;  %v8241_v5 = vsel %vm16617_vm3, %v8149_v39, %v9043_v23  ;;  %v8242_v47 = vsel %vm16618_vm4, %v8152_v61, %v9044_v49 }
0x1a6c   :  { %v8249_v41 = vpack.c.bf16 %v8242_v47, %v8241_v5 }
0x1a6e   :  { %8944 = vmatpush3.bf16.msra.mxu1 %v8249_v41 }
0x1a6f   :  { %8945 = vmatprep.subr.bf16.mxu1 %v16487_v1 }
0x1a72   :  { %8946 = vmatpush3.bf16.msra.mxu1 %v8250_v2 }
0x1a75   :  { %8948 = vmatmul.mubr.msk.bf16.vlgmr.msra.gmra.mrb[92].mxu1 %vm16619_vm8, %v9293_v54 }
0x1a78   :  { %v8259_v19 = vpop.permute.xlu0 %8258 }
0x1a79   :  { %v8254_v40 = vpop.permute.xlu1 %8253 }
0x1b48   :  { %v8303_v15 = vpop.f32.mrb[92].mxu1 }
0x1b49   :  { %v8304_v37 = vadd.f32 %v8303_v15, %v8254_v40  ;;  %v8949_v43 = vpop.f32.mrb[93].mxu1 }
0x1b4a   :  { %v8306_v13 = vpop.f32.mrb[94].mxu1 }
0x1b4b   :  { %8311 = vst.msk [vmem:[%s8363_s24] sm:$0xff] %vm8310_vm6, %v8304_v37  ;;  %v8307_v10 = vadd.f32 %v8306_v13, %v8259_v19  ;;  %v8950_v1 = vpop.f32.mrb[95].mxu1 }
0x1b4d   :  { %8313 = vst.msk [vmem:[%s8363_s24 + $0x8] sm:$0x3] %vm8312_vm7, %v8307_v10 }

</bundles_post_ra>
